<compile_context>
chip_gen: v7x
topology: tpu7x:2x2x1
jax: 0.10.0
libtpu: 0.0.40
codegen_flags: <defaults>
</compile_context>

<pallas_src>
import numpy as np
import jax
import jax.numpy as jnp
from jax.experimental import pallas as pl
from jax.experimental.pallas import tpu as pltpu


# ---------------------------------------------------------------------------
# Kernel
# ---------------------------------------------------------------------------
def _decoder_kernel(mask_ref, y_ref, w1_ref, b1_ref, w2_ref, b2_ref,
                    w3_ref, b3_ref, w4_ref, b4_ref, o_ref):
    # y_ref:  [TB, P]  (f32 or bf16 activations, control columns included)
    # w1:[P,H] w2,w3:[H,H] w4:[H,nxny]  (f32 or bf16); biases [1, dim] f32
    # mask_ref: [1, nxny] f32, 1.0 at control columns, 0.0 elsewhere
    y = y_ref[...]
    cdt = w1_ref.dtype                               # MXU operand dtype

    h = jnp.dot(y.astype(cdt), w1_ref[...], preferred_element_type=jnp.float32)
    h = jnp.maximum(h + b1_ref[...], 0.0)
    h = jnp.dot(h.astype(cdt), w2_ref[...], preferred_element_type=jnp.float32)
    h = jnp.maximum(h + b2_ref[...], 0.0)
    h = jnp.dot(h.astype(cdt), w3_ref[...], preferred_element_type=jnp.float32)
    h = jnp.maximum(h + b3_ref[...], 0.0)
    out = jnp.dot(h.astype(cdt), w4_ref[...], preferred_element_type=jnp.float32)
    out = out + b4_ref[...]

    # Control columns of the folded w4/b4 are exactly zero, so `out` is 0
    # there; the blend reduces to out + mask*y (no (1-mask)*out term needed).
    o_ref[...] = (out + mask_ref[...] * y.astype(jnp.float32)).astype(o_ref.dtype)


# ---------------------------------------------------------------------------
# Parameter construction + offline folding of the index permutation
# ---------------------------------------------------------------------------
def make_decoder_params(key, nxny, M, hidden_dim, P):
    """Raw params with PyTorch Decoder.net shapes, stored [in, out]."""
    in_dim = P - M
    out_dim = nxny - M
    dims = [(in_dim, hidden_dim), (hidden_dim, hidden_dim),
            (hidden_dim, hidden_dim), (hidden_dim, out_dim)]
    params = {}
    for i, (di, do) in enumerate(dims, start=1):
        key, kw, kb = jax.random.split(key, 3)
        scale = 1.0 / np.sqrt(di)
        params[f"w{i}"] = jax.random.normal(kw, (di, do), jnp.float32) * scale
        params[f"b{i}"] = jax.random.normal(kb, (1, do), jnp.float32) * scale
    return params


def fold_decoder_params(raw, control_indices, nxny, P, weight_dtype=jnp.float32):
    """Fold the control/non-control permutation into the weights (done once).

    w1_full[P, H]  : rows of w1 scattered to non-control positions, zeros at
                     control rows  -> full y can be fed to the matmul.
    w4_full[H,nxny]: columns of w4 scattered to non-control positions.
    b4_full[1,nxny]: b4 scattered likewise.
    mask[1, nxny]  : 1.0 at control columns (kernel adds mask*y there).
    """
    assert P == nxny, "Decoder.forward implies y has nxny columns (P == nxny)."
    ci = jnp.asarray(control_indices, dtype=jnp.int32)
    M = int(ci.shape[0])
    keep = jnp.ones((nxny,), dtype=bool).at[ci].set(False)
    non_control = jnp.nonzero(keep, size=nxny - M)[0]

    H = raw["w1"].shape[1]
    w1_full = jnp.zeros((P, H), jnp.float32).at[non_control, :].set(raw["w1"])
    w4_full = jnp.zeros((H, nxny), jnp.float32).at[:, non_control].set(raw["w4"])
    b4_full = jnp.zeros((1, nxny), jnp.float32).at[:, non_control].set(raw["b4"])
    ctrl_mask = jnp.zeros((1, nxny), jnp.float32).at[:, ci].set(1.0)

    return {
        "w1": w1_full.astype(weight_dtype), "b1": raw["b1"].astype(jnp.float32),
        "w2": raw["w2"].astype(weight_dtype), "b2": raw["b2"].astype(jnp.float32),
        "w3": raw["w3"].astype(weight_dtype), "b3": raw["b3"].astype(jnp.float32),
        "w4": w4_full.astype(weight_dtype), "b4": b4_full.astype(jnp.float32),
        "mask": ctrl_mask,
    }


# ---------------------------------------------------------------------------
# Pallas wrapper
# ---------------------------------------------------------------------------
def _round_up(x, m):
    return ((x + m - 1) // m) * m


def _num_tensorcores_hint():
    """Best-effort: 2 TensorCores/chip on v7x, else 1. Never raises."""
    try:
        kind = (getattr(jax.devices()[0], "device_kind", "") or "").lower()
        return 2 if "v7" in kind else 1
    except Exception:
        return 1


def decoder_forward(y, folded, *, block_b=512, buffered_params=True,
                    num_tensorcores=None):
    """One pallas_call: full y [B, P] -> full x [B, nxny] (dtype follows y)."""
    B, P = y.shape
    H = folded["w1"].shape[1]
    nxny = folded["w4"].shape[1]
    assert P == nxny

    if num_tensorcores is None:
        num_tensorcores = _num_tensorcores_hint()

    # Large batch tile (mem-bound kernel: amortize the ~0.35us grid-step cost),
    # but keep >= num_tensorcores grid steps so the "parallel" axis can shard
    # across both TCs on v7x. On 1-TC chips a single big tile is preferred.
    TB = min(block_b, _round_up(B, 8))
    if num_tensorcores > 1:
        TB = min(TB, max(8, _round_up(-(-B // num_tensorcores), 8)))
    B_pad = _round_up(B, TB)
    y_in = y if B_pad == B else jnp.zeros((B_pad, P), y.dtype).at[:B].set(y)
    nb = B_pad // TB

    param_bytes = sum(int(a.size) * a.dtype.itemsize for a in folded.values())
    flops = 2 * B_pad * (P * H + 2 * H * H + H * nxny)
    bytes_accessed = (int(y_in.size) * y_in.dtype.itemsize
                      + B_pad * nxny * y_in.dtype.itemsize
                      + param_bytes)

    def build(use_buffered):
        # Resident params (constant index_maps): request a single buffer.
        res_kw = {"pipeline_mode": pl.Buffered(1)} if use_buffered else {}
        in_specs = [
            pl.BlockSpec((1, nxny), lambda i: (0, 0), **res_kw),   # control mask
            pl.BlockSpec((TB, P), lambda i: (i, 0)),               # y tile (streams)
            pl.BlockSpec((P, H), lambda i: (0, 0), **res_kw),      # w1
            pl.BlockSpec((1, H), lambda i: (0, 0), **res_kw),      # b1
            pl.BlockSpec((H, H), lambda i: (0, 0), **res_kw),      # w2
            pl.BlockSpec((1, H), lambda i: (0, 0), **res_kw),      # b2
            pl.BlockSpec((H, H), lambda i: (0, 0), **res_kw),      # w3
            pl.BlockSpec((1, H), lambda i: (0, 0), **res_kw),      # b3
            pl.BlockSpec((H, nxny), lambda i: (0, 0), **res_kw),   # w4
            pl.BlockSpec((1, nxny), lambda i: (0, 0), **res_kw),   # b4
        ]
        out_specs = pl.BlockSpec((TB, nxny), lambda i: (i, 0))
        return pl.pallas_call(
            _decoder_kernel,
            out_shape=jax.ShapeDtypeStruct((B_pad, nxny), y.dtype),
            grid=(nb,),
            in_specs=in_specs,
            out_specs=out_specs,
            # No hand-set vmem_limit_bytes: default scoped VMEM (32 MiB) is
            # ample for these tiles on v5e/v6e/v7x and avoids under-counting
            # in-kernel intermediates.
            compiler_params=pltpu.CompilerParams(
                dimension_semantics=("parallel",)),
            cost_estimate=pl.CostEstimate(
                flops=int(flops), transcendentals=0,
                bytes_accessed=int(bytes_accessed)),
        )

    args = (folded["mask"], y_in,
            folded["w1"], folded["b1"], folded["w2"], folded["b2"],
            folded["w3"], folded["b3"], folded["w4"], folded["b4"])
    try:
        out = build(buffered_params)(*args)
    except Exception:
        if not buffered_params:
            raise
        out = build(False)(*args)   # fallback if Buffered(1) is rejected
    return out[:B]


# ---------------------------------------------------------------------------
# Pure-JAX reference mirroring the PyTorch module (gather -> MLP -> scatter)
# ---------------------------------------------------------------------------
def decoder_forward_ref(y, raw, control_indices, nxny, compute_dtype=jnp.float32):
    B = y.shape[0]
    ci = jnp.asarray(control_indices, dtype=jnp.int32)
    M = ci.shape[0]
    keep = jnp.ones((nxny,), dtype=bool).at[ci].set(False)
    non_control = jnp.nonzero(keep, size=nxny - M)[0]

    def lin(h, w, b):
        return jnp.dot(h.astype(compute_dtype), w.astype(compute_dtype),
                       preferred_element_type=jnp.float32) + b

    h = jnp.take(y, non_control, axis=1)
    h = jnp.maximum(lin(h, raw["w1"], raw["b1"]), 0.0)
    h = jnp.maximum(lin(h, raw["w2"], raw["b2"]), 0.0)
    h = jnp.maximum(lin(h, raw["w3"], raw["b3"]), 0.0)
    x_nc = lin(h, raw["w4"], raw["b4"])

    x = jnp.zeros((B, nxny), dtype=jnp.float32)
    x = x.at[:, ci].set(y[:, ci].astype(jnp.float32))
    x = x.at[:, non_control].set(x_nc)
    return x


# ---------------------------------------------------------------------------
if __name__ == "__main__":
    # 16x16 grid => nxny = 256 = P (lane-dense), hidden = 128, M = 8 controls.
    nx, ny = 16, 16
    nxny = nx * ny
    P = nxny
    M = 8
    hidden_dim = 128

    control_indices = np.array([3, 17, 42, 65, 100, 128, 200, 250], dtype=np.int32)
    assert control_indices.shape[0] == M

    key = jax.random.PRNGKey(0)
    key, kparams, ky = jax.random.split(key, 3)
    raw = make_decoder_params(kparams, nxny, M, hidden_dim, P)

    # --- f32 path: batch=600 exercises padding (to a TB multiple) and a
    #     multi-step "parallel" batch grid with the enlarged TB.
    batch = 600
    y = jax.random.normal(ky, (batch, P), jnp.float32)
    folded_f32 = fold_decoder_params(raw, control_indices, nxny, P, jnp.float32)
    out = jax.block_until_ready(decoder_forward(y, folded_f32))
    ref = jax.block_until_ready(decoder_forward_ref(y, raw, control_indices, nxny))
    np.testing.assert_allclose(np.asarray(out), np.asarray(ref),
                               rtol=1e-4, atol=1e-4)
    assert out.shape == (batch, nxny)

    # --- bf16 path (v6e/v7x): bf16 weights AND bf16 activation I/O
    #     (y in bf16, x emitted in bf16); accumulation stays f32 in-kernel.
    folded_bf16 = fold_decoder_params(raw, control_indices, nxny, P, jnp.bfloat16)
    y_bf = y[:256].astype(jnp.bfloat16)
    out_bf = jax.block_until_ready(decoder_forward(y_bf, folded_bf16))
    assert out_bf.dtype == jnp.bfloat16 and out_bf.shape == (256, nxny)
    ref_bf = jax.block_until_ready(
        decoder_forward_ref(y_bf.astype(jnp.float32), raw, control_indices, nxny,
                            compute_dtype=jnp.bfloat16))
    np.testing.assert_allclose(np.asarray(out_bf).astype(np.float32),
                               np.asarray(ref_bf), rtol=3e-2, atol=3e-2)

    print("KERNEL_OK")
</pallas_src>

<mosaic_0001>
module attributes {stable_mosaic.version = 11 : i64} {
  func.func @_decoder_kernel(%arg0: i32, %arg1: memref<1x256xf32, #tpu.memory_space<vmem>>, %arg2: memref<512x256xf32, #tpu.memory_space<vmem>>, %arg3: memref<256x128xf32, #tpu.memory_space<vmem>>, %arg4: memref<1x128xf32, #tpu.memory_space<vmem>>, %arg5: memref<128x128xf32, #tpu.memory_space<vmem>>, %arg6: memref<1x128xf32, #tpu.memory_space<vmem>>, %arg7: memref<128x128xf32, #tpu.memory_space<vmem>>, %arg8: memref<1x128xf32, #tpu.memory_space<vmem>>, %arg9: memref<128x256xf32, #tpu.memory_space<vmem>>, %arg10: memref<1x256xf32, #tpu.memory_space<vmem>>, %arg11: memref<512x256xf32, #tpu.memory_space<vmem>>) attributes {dimension_semantics = [#tpu.dimension_semantics<parallel>], iteration_bounds = array<i64: 2>, scalar_prefetch = 0 : i64, scratch_operands = 0 : i64, tpu.core_type = #tpu.core_type<tc>, window_params = [{pipeline_mode = #tpu.pipeline_mode<synchronous>, transform_indices = @transform_0, window_bounds = array<i64: 1, 256>}, {transform_indices = @transform_1, window_bounds = array<i64: 512, 256>}, {pipeline_mode = #tpu.pipeline_mode<synchronous>, transform_indices = @transform_2, window_bounds = array<i64: 256, 128>}, {pipeline_mode = #tpu.pipeline_mode<synchronous>, transform_indices = @transform_3, window_bounds = array<i64: 1, 128>}, {pipeline_mode = #tpu.pipeline_mode<synchronous>, transform_indices = @transform_4, window_bounds = array<i64: 128, 128>}, {pipeline_mode = #tpu.pipeline_mode<synchronous>, transform_indices = @transform_5, window_bounds = array<i64: 1, 128>}, {pipeline_mode = #tpu.pipeline_mode<synchronous>, transform_indices = @transform_6, window_bounds = array<i64: 128, 128>}, {pipeline_mode = #tpu.pipeline_mode<synchronous>, transform_indices = @transform_7, window_bounds = array<i64: 1, 128>}, {pipeline_mode = #tpu.pipeline_mode<synchronous>, transform_indices = @transform_8, window_bounds = array<i64: 128, 256>}, {pipeline_mode = #tpu.pipeline_mode<synchronous>, transform_indices = @transform_9, window_bounds = array<i64: 1, 256>}, {transform_indices = @transform_10, window_bounds = array<i64: 512, 256>}]} {
    %c0 = arith.constant 0 : index
    %c0_0 = arith.constant 0 : index
    %0 = vector.load %arg2[%c0, %c0_0] : memref<512x256xf32, #tpu.memory_space<vmem>>, vector<512x256xf32>
    %c0_1 = arith.constant 0 : index
    %c0_2 = arith.constant 0 : index
    %1 = vector.load %arg3[%c0_1, %c0_2] : memref<256x128xf32, #tpu.memory_space<vmem>>, vector<256x128xf32>
    %cst = arith.constant dense<0.000000e+00> : vector<512x128xf32>
    %2 = tpu.matmul %0, %1, %cst {dimension_numbers = #tpu.dot_dimension_numbers<[1], [0], [0], [1], [0, 0, 1, 1], [], []>} : vector<512x256xf32>, vector<256x128xf32>, vector<512x128xf32> -> vector<512x128xf32>
    %c0_3 = arith.constant 0 : index
    %c0_4 = arith.constant 0 : index
    %3 = vector.load %arg4[%c0_3, %c0_4] : memref<1x128xf32, #tpu.memory_space<vmem>>, vector<1x128xf32>
    %4 = vector.broadcast %3 : vector<1x128xf32> to vector<512x128xf32>
    %5 = arith.addf %2, %4 : vector<512x128xf32>
    %cst_5 = arith.constant 0.000000e+00 : f32
    %6 = vector.broadcast %cst_5 : f32 to vector<512x128xf32>
    %7 = arith.maximumf %5, %6 : vector<512x128xf32>
    %c0_6 = arith.constant 0 : index
    %c0_7 = arith.constant 0 : index
    %8 = vector.load %arg5[%c0_6, %c0_7] : memref<128x128xf32, #tpu.memory_space<vmem>>, vector<128x128xf32>
    %cst_8 = arith.constant dense<0.000000e+00> : vector<512x128xf32>
    %9 = tpu.matmul %7, %8, %cst_8 {dimension_numbers = #tpu.dot_dimension_numbers<[1], [0], [0], [1], [0, 0, 1, 1], [], []>} : vector<512x128xf32>, vector<128x128xf32>, vector<512x128xf32> -> vector<512x128xf32>
    %c0_9 = arith.constant 0 : index
    %c0_10 = arith.constant 0 : index
    %10 = vector.load %arg6[%c0_9, %c0_10] : memref<1x128xf32, #tpu.memory_space<vmem>>, vector<1x128xf32>
    %11 = vector.broadcast %10 : vector<1x128xf32> to vector<512x128xf32>
    %12 = arith.addf %9, %11 : vector<512x128xf32>
    %cst_11 = arith.constant 0.000000e+00 : f32
    %13 = vector.broadcast %cst_11 : f32 to vector<512x128xf32>
    %14 = arith.maximumf %12, %13 : vector<512x128xf32>
    %c0_12 = arith.constant 0 : index
    %c0_13 = arith.constant 0 : index
    %15 = vector.load %arg7[%c0_12, %c0_13] : memref<128x128xf32, #tpu.memory_space<vmem>>, vector<128x128xf32>
    %cst_14 = arith.constant dense<0.000000e+00> : vector<512x128xf32>
    %16 = tpu.matmul %14, %15, %cst_14 {dimension_numbers = #tpu.dot_dimension_numbers<[1], [0], [0], [1], [0, 0, 1, 1], [], []>} : vector<512x128xf32>, vector<128x128xf32>, vector<512x128xf32> -> vector<512x128xf32>
    %c0_15 = arith.constant 0 : index
    %c0_16 = arith.constant 0 : index
    %17 = vector.load %arg8[%c0_15, %c0_16] : memref<1x128xf32, #tpu.memory_space<vmem>>, vector<1x128xf32>
    %18 = vector.broadcast %17 : vector<1x128xf32> to vector<512x128xf32>
    %19 = arith.addf %16, %18 : vector<512x128xf32>
    %cst_17 = arith.constant 0.000000e+00 : f32
    %20 = vector.broadcast %cst_17 : f32 to vector<512x128xf32>
    %21 = arith.maximumf %19, %20 : vector<512x128xf32>
    %c0_18 = arith.constant 0 : index
    %c0_19 = arith.constant 0 : index
    %22 = vector.load %arg9[%c0_18, %c0_19] : memref<128x256xf32, #tpu.memory_space<vmem>>, vector<128x256xf32>
    %cst_20 = arith.constant dense<0.000000e+00> : vector<512x256xf32>
    %23 = tpu.matmul %21, %22, %cst_20 {dimension_numbers = #tpu.dot_dimension_numbers<[1], [0], [0], [1], [0, 0, 1, 1], [], []>} : vector<512x128xf32>, vector<128x256xf32>, vector<512x256xf32> -> vector<512x256xf32>
    %c0_21 = arith.constant 0 : index
    %c0_22 = arith.constant 0 : index
    %24 = vector.load %arg10[%c0_21, %c0_22] : memref<1x256xf32, #tpu.memory_space<vmem>>, vector<1x256xf32>
    %25 = vector.broadcast %24 : vector<1x256xf32> to vector<512x256xf32>
    %26 = arith.addf %23, %25 : vector<512x256xf32>
    %c0_23 = arith.constant 0 : index
    %c0_24 = arith.constant 0 : index
    %27 = vector.load %arg1[%c0_23, %c0_24] : memref<1x256xf32, #tpu.memory_space<vmem>>, vector<1x256xf32>
    %28 = vector.broadcast %27 : vector<1x256xf32> to vector<512x256xf32>
    %29 = arith.mulf %28, %0 : vector<512x256xf32>
    %30 = arith.addf %26, %29 : vector<512x256xf32>
    %c0_25 = arith.constant 0 : index
    %c0_26 = arith.constant 0 : index
    %31 = vector.load %arg11[%c0_25, %c0_26] : memref<512x256xf32, #tpu.memory_space<vmem>>, vector<512x256xf32>
    tpu.vector_store %arg11[%c0_25, %c0_26], %30 {strides = array<i32>} : memref<512x256xf32, #tpu.memory_space<vmem>>, vector<512x256xf32>,
    return
  }
  func.func @transform_0(%arg0: i32) -> (i32, i32) {
    %c0_i32 = arith.constant 0 : i32
    %c0_i32_0 = arith.constant 0 : i32
    %c0_i32_1 = arith.constant 0 : i32
    return %c0_i32, %c0_i32_0 : i32, i32
  }
  func.func @transform_1(%arg0: i32) -> (i32, i32) {
    %c0_i32 = arith.constant 0 : i32
    %c0_i32_0 = arith.constant 0 : i32
    return %arg0, %c0_i32 : i32, i32
  }
  func.func @transform_2(%arg0: i32) -> (i32, i32) {
    %c0_i32 = arith.constant 0 : i32
    %c0_i32_0 = arith.constant 0 : i32
    %c0_i32_1 = arith.constant 0 : i32
    return %c0_i32, %c0_i32_0 : i32, i32
  }
  func.func @transform_3(%arg0: i32) -> (i32, i32) {
    %c0_i32 = arith.constant 0 : i32
    %c0_i32_0 = arith.constant 0 : i32
    %c0_i32_1 = arith.constant 0 : i32
    return %c0_i32, %c0_i32_0 : i32, i32
  }
  func.func @transform_4(%arg0: i32) -> (i32, i32) {
    %c0_i32 = arith.constant 0 : i32
    %c0_i32_0 = arith.constant 0 : i32
    %c0_i32_1 = arith.constant 0 : i32
    return %c0_i32, %c0_i32_0 : i32, i32
  }
  func.func @transform_5(%arg0: i32) -> (i32, i32) {
    %c0_i32 = arith.constant 0 : i32
    %c0_i32_0 = arith.constant 0 : i32
    %c0_i32_1 = arith.constant 0 : i32
    return %c0_i32, %c0_i32_0 : i32, i32
  }
  func.func @transform_6(%arg0: i32) -> (i32, i32) {
    %c0_i32 = arith.constant 0 : i32
    %c0_i32_0 = arith.constant 0 : i32
    %c0_i32_1 = arith.constant 0 : i32
    return %c0_i32, %c0_i32_0 : i32, i32
  }
  func.func @transform_7(%arg0: i32) -> (i32, i32) {
    %c0_i32 = arith.constant 0 : i32
    %c0_i32_0 = arith.constant 0 : i32
    %c0_i32_1 = arith.constant 0 : i32
    return %c0_i32, %c0_i32_0 : i32, i32
  }
  func.func @transform_8(%arg0: i32) -> (i32, i32) {
    %c0_i32 = arith.constant 0 : i32
    %c0_i32_0 = arith.constant 0 : i32
    %c0_i32_1 = arith.constant 0 : i32
    return %c0_i32, %c0_i32_0 : i32, i32
  }
  func.func @transform_9(%arg0: i32) -> (i32, i32) {
    %c0_i32 = arith.constant 0 : i32
    %c0_i32_0 = arith.constant 0 : i32
    %c0_i32_1 = arith.constant 0 : i32
    return %c0_i32, %c0_i32_0 : i32, i32
  }
  func.func @transform_10(%arg0: i32) -> (i32, i32) {
    %c0_i32 = arith.constant 0 : i32
    %c0_i32_0 = arith.constant 0 : i32
    return %arg0, %c0_i32 : i32, i32
  }
}

module attributes {stable_mosaic.version = 11 : i64} {
  func.func @_decoder_kernel(%arg0: i32, %arg1: memref<1x256xf32, #tpu.memory_space<vmem>>, %arg2: memref<512x256xf32, #tpu.memory_space<vmem>>, %arg3: memref<256x128xf32, #tpu.memory_space<vmem>>, %arg4: memref<1x128xf32, #tpu.memory_space<vmem>>, %arg5: memref<128x128xf32, #tpu.memory_space<vmem>>, %arg6: memref<1x128xf32, #tpu.memory_space<vmem>>, %arg7: memref<128x128xf32, #tpu.memory_space<vmem>>, %arg8: memref<1x128xf32, #tpu.memory_space<vmem>>, %arg9: memref<128x256xf32, #tpu.memory_space<vmem>>, %arg10: memref<1x256xf32, #tpu.memory_space<vmem>>, %arg11: memref<512x256xf32, #tpu.memory_space<vmem>>) attributes {dimension_semantics = [#tpu.dimension_semantics<parallel>], iteration_bounds = array<i64: 2>, scalar_prefetch = 0 : i64, scratch_operands = 0 : i64, tpu.core_type = #tpu.core_type<tc>, window_params = [{pipeline_mode = #tpu.pipeline_mode<synchronous>, transform_indices = @transform_0, window_bounds = array<i64: 1, 256>}, {transform_indices = @transform_1, window_bounds = array<i64: 512, 256>}, {pipeline_mode = #tpu.pipeline_mode<synchronous>, transform_indices = @transform_2, window_bounds = array<i64: 256, 128>}, {pipeline_mode = #tpu.pipeline_mode<synchronous>, transform_indices = @transform_3, window_bounds = array<i64: 1, 128>}, {pipeline_mode = #tpu.pipeline_mode<synchronous>, transform_indices = @transform_4, window_bounds = array<i64: 128, 128>}, {pipeline_mode = #tpu.pipeline_mode<synchronous>, transform_indices = @transform_5, window_bounds = array<i64: 1, 128>}, {pipeline_mode = #tpu.pipeline_mode<synchronous>, transform_indices = @transform_6, window_bounds = array<i64: 128, 128>}, {pipeline_mode = #tpu.pipeline_mode<synchronous>, transform_indices = @transform_7, window_bounds = array<i64: 1, 128>}, {pipeline_mode = #tpu.pipeline_mode<synchronous>, transform_indices = @transform_8, window_bounds = array<i64: 128, 256>}, {pipeline_mode = #tpu.pipeline_mode<synchronous>, transform_indices = @transform_9, window_bounds = array<i64: 1, 256>}, {transform_indices = @transform_10, window_bounds = array<i64: 512, 256>}]} {
    %c0 = arith.constant 0 : index
    %c0_0 = arith.constant 0 : index
    %0 = vector.load %arg2[%c0, %c0_0] : memref<512x256xf32, #tpu.memory_space<vmem>>, vector<512x256xf32>
    %c0_1 = arith.constant 0 : index
    %c0_2 = arith.constant 0 : index
    %1 = vector.load %arg3[%c0_1, %c0_2] : memref<256x128xf32, #tpu.memory_space<vmem>>, vector<256x128xf32>
    %cst = arith.constant dense<0.000000e+00> : vector<512x128xf32>
    %2 = tpu.matmul %0, %1, %cst {dimension_numbers = #tpu.dot_dimension_numbers<[1], [0], [0], [1], [0, 0, 1, 1], [], []>} : vector<512x256xf32>, vector<256x128xf32>, vector<512x128xf32> -> vector<512x128xf32>
    %c0_3 = arith.constant 0 : index
    %c0_4 = arith.constant 0 : index
    %3 = vector.load %arg4[%c0_3, %c0_4] : memref<1x128xf32, #tpu.memory_space<vmem>>, vector<1x128xf32>
    %4 = vector.broadcast %3 : vector<1x128xf32> to vector<512x128xf32>
    %5 = arith.addf %2, %4 : vector<512x128xf32>
    %cst_5 = arith.constant 0.000000e+00 : f32
    %6 = vector.broadcast %cst_5 : f32 to vector<512x128xf32>
    %7 = arith.maximumf %5, %6 : vector<512x128xf32>
    %c0_6 = arith.constant 0 : index
    %c0_7 = arith.constant 0 : index
    %8 = vector.load %arg5[%c0_6, %c0_7] : memref<128x128xf32, #tpu.memory_space<vmem>>, vector<128x128xf32>
    %cst_8 = arith.constant dense<0.000000e+00> : vector<512x128xf32>
    %9 = tpu.matmul %7, %8, %cst_8 {dimension_numbers = #tpu.dot_dimension_numbers<[1], [0], [0], [1], [0, 0, 1, 1], [], []>} : vector<512x128xf32>, vector<128x128xf32>, vector<512x128xf32> -> vector<512x128xf32>
    %c0_9 = arith.constant 0 : index
    %c0_10 = arith.constant 0 : index
    %10 = vector.load %arg6[%c0_9, %c0_10] : memref<1x128xf32, #tpu.memory_space<vmem>>, vector<1x128xf32>
    %11 = vector.broadcast %10 : vector<1x128xf32> to vector<512x128xf32>
    %12 = arith.addf %9, %11 : vector<512x128xf32>
    %cst_11 = arith.constant 0.000000e+00 : f32
    %13 = vector.broadcast %cst_11 : f32 to vector<512x128xf32>
    %14 = arith.maximumf %12, %13 : vector<512x128xf32>
    %c0_12 = arith.constant 0 : index
    %c0_13 = arith.constant 0 : index
    %15 = vector.load %arg7[%c0_12, %c0_13] : memref<128x128xf32, #tpu.memory_space<vmem>>, vector<128x128xf32>
    %cst_14 = arith.constant dense<0.000000e+00> : vector<512x128xf32>
    %16 = tpu.matmul %14, %15, %cst_14 {dimension_numbers = #tpu.dot_dimension_numbers<[1], [0], [0], [1], [0, 0, 1, 1], [], []>} : vector<512x128xf32>, vector<128x128xf32>, vector<512x128xf32> -> vector<512x128xf32>
    %c0_15 = arith.constant 0 : index
    %c0_16 = arith.constant 0 : index
    %17 = vector.load %arg8[%c0_15, %c0_16] : memref<1x128xf32, #tpu.memory_space<vmem>>, vector<1x128xf32>
    %18 = vector.broadcast %17 : vector<1x128xf32> to vector<512x128xf32>
    %19 = arith.addf %16, %18 : vector<512x128xf32>
    %cst_17 = arith.constant 0.000000e+00 : f32
    %20 = vector.broadcast %cst_17 : f32 to vector<512x128xf32>
    %21 = arith.maximumf %19, %20 : vector<512x128xf32>
    %c0_18 = arith.constant 0 : index
    %c0_19 = arith.constant 0 : index
    %22 = vector.load %arg9[%c0_18, %c0_19] : memref<128x256xf32, #tpu.memory_space<vmem>>, vector<128x256xf32>
    %cst_20 = arith.constant dense<0.000000e+00> : vector<512x256xf32>
    %23 = tpu.matmul %21, %22, %cst_20 {dimension_numbers = #tpu.dot_dimension_numbers<[1], [0], [0], [1], [0, 0, 1, 1], [], []>} : vector<512x128xf32>, vector<128x256xf32>, vector<512x256xf32> -> vector<512x256xf32>
    %c0_21 = arith.constant 0 : index
    %c0_22 = arith.constant 0 : index
    %24 = vector.load %arg10[%c0_21, %c0_22] : memref<1x256xf32, #tpu.memory_space<vmem>>, vector<1x256xf32>
    %25 = vector.broadcast %24 : vector<1x256xf32> to vector<512x256xf32>
    %26 = arith.addf %23, %25 : vector<512x256xf32>
    %c0_23 = arith.constant 0 : index
    %c0_24 = arith.constant 0 : index
    %27 = vector.load %arg1[%c0_23, %c0_24] : memref<1x256xf32, #tpu.memory_space<vmem>>, vector<1x256xf32>
    %28 = vector.broadcast %27 : vector<1x256xf32> to vector<512x256xf32>
    %29 = arith.mulf %28, %0 : vector<512x256xf32>
    %30 = arith.addf %26, %29 : vector<512x256xf32>
    %c0_25 = arith.constant 0 : index
    %c0_26 = arith.constant 0 : index
    %31 = vector.load %arg11[%c0_25, %c0_26] : memref<512x256xf32, #tpu.memory_space<vmem>>, vector<512x256xf32>
    tpu.vector_store %arg11[%c0_25, %c0_26], %30 {strides = array<i32>} : memref<512x256xf32, #tpu.memory_space<vmem>>, vector<512x256xf32>,
    return
  }
  func.func @transform_0(%arg0: i32) -> (i32, i32) {
    %c0_i32 = arith.constant 0 : i32
    %c0_i32_0 = arith.constant 0 : i32
    %c0_i32_1 = arith.constant 0 : i32
    return %c0_i32, %c0_i32_0 : i32, i32
  }
  func.func @transform_1(%arg0: i32) -> (i32, i32) {
    %c0_i32 = arith.constant 0 : i32
    %c0_i32_0 = arith.constant 0 : i32
    return %arg0, %c0_i32 : i32, i32
  }
  func.func @transform_2(%arg0: i32) -> (i32, i32) {
    %c0_i32 = arith.constant 0 : i32
    %c0_i32_0 = arith.constant 0 : i32
    %c0_i32_1 = arith.constant 0 : i32
    return %c0_i32, %c0_i32_0 : i32, i32
  }
  func.func @transform_3(%arg0: i32) -> (i32, i32) {
    %c0_i32 = arith.constant 0 : i32
    %c0_i32_0 = arith.constant 0 : i32
    %c0_i32_1 = arith.constant 0 : i32
    return %c0_i32, %c0_i32_0 : i32, i32
  }
  func.func @transform_4(%arg0: i32) -> (i32, i32) {
    %c0_i32 = arith.constant 0 : i32
    %c0_i32_0 = arith.constant 0 : i32
    %c0_i32_1 = arith.constant 0 : i32
    return %c0_i32, %c0_i32_0 : i32, i32
  }
  func.func @transform_5(%arg0: i32) -> (i32, i32) {
    %c0_i32 = arith.constant 0 : i32
    %c0_i32_0 = arith.constant 0 : i32
    %c0_i32_1 = arith.constant 0 : i32
    return %c0_i32, %c0_i32_0 : i32, i32
  }
  func.func @transform_6(%arg0: i32) -> (i32, i32) {
    %c0_i32 = arith.constant 0 : i32
    %c0_i32_0 = arith.constant 0 : i32
    %c0_i32_1 = arith.constant 0 : i32
    return %c0_i32, %c0_i32_0 : i32, i32
  }
  func.func @transform_7(%arg0: i32) -> (i32, i32) {
    %c0_i32 = arith.constant 0 : i32
    %c0_i32_0 = arith.constant 0 : i32
    %c0_i32_1 = arith.constant 0 : i32
    return %c0_i32, %c0_i32_0 : i32, i32
  }
  func.func @transform_8(%arg0: i32) -> (i32, i32) {
    %c0_i32 = arith.constant 0 : i32
    %c0_i32_0 = arith.constant 0 : i32
    %c0_i32_1 = arith.constant 0 : i32
    return %c0_i32, %c0_i32_0 : i32, i32
  }
  func.func @transform_9(%arg0: i32) -> (i32, i32) {
    %c0_i32 = arith.constant 0 : i32
    %c0_i32_0 = arith.constant 0 : i32
    %c0_i32_1 = arith.constant 0 : i32
    return %c0_i32, %c0_i32_0 : i32, i32
  }
  func.func @transform_10(%arg0: i32) -> (i32, i32) {
    %c0_i32 = arith.constant 0 : i32
    %c0_i32_0 = arith.constant 0 : i32
    return %arg0, %c0_i32 : i32, i32
  }
}

</mosaic_0001>

<bundles_post_ra>
// kernel: tpu_custom_call.1
= control target key start
LH: loop header
LB: loop body
LE: loop exit
PB: predicated region body
PF: predicated region fallthrough
CT: control target
= control target key end

     0   :  { %s5488_s0 = inlined_call_operand.hbm [shape: f32[1,256], index: 0, kind: input, shape index: {}]   ;;  %s5489_s1 = inlined_call_operand.hbm [shape: f32[1024,256], index: 1, kind: input, shape index: {}]   ;;  %s5490_s2 = inlined_call_operand.hbm [shape: f32[256,128], index: 2, kind: input, shape index: {}]   ;;  %s5491_s3 = inlined_call_operand.vmem [shape: f32[1,128], index: 3, kind: input, shape index: {}]   ;;  %s5492_s4 = inlined_call_operand.hbm [shape: f32[128,128], index: 4, kind: input, shape index: {}]   ;;  %s5493_s5 = inlined_call_operand.vmem [shape: f32[1,128], index: 5, kind: input, shape index: {}]   ;;  %s5494_s6 = inlined_call_operand.hbm [shape: f32[128,128], index: 6, kind: input, shape index: {}]   ;;  %s5495_s7 = inlined_call_operand.vmem [shape: f32[1,128], index: 7, kind: input, shape index: {}]   ;;  %s5496_s8 = inlined_call_operand.hbm [shape: f32[128,256], index: 8, kind: input, shape index: {}]   ;;  %s5497_s9 = inlined_call_operand.vmem [shape: f32[1,256], index: 9, kind: input, shape index: {}]   ;;  %s5498_s10 = inlined_call_operand.hbm [shape: f32[1024,256], index: 10, kind: output, shape index: {}]  }
   0x1   :  { %5506 = sst [smem:[#allocation22_spill]] %s5497_s9 }
   0x2   :  { %5507 = sst [smem:[#allocation23_spill]] %s5498_s10 }
   0x3   :  { %15 = vsyncpa [#allocation3], 0 }
   0x4   :  { %16 = vsyncpa [#allocation6], 0 }
   0x5   :  { %18 = vsyncpa [#allocation6 + $0x1], 0 }
   0x6   :  { %19 = vsyncpa [#allocation9], 0 }
   0x7   :  { %20 = vsyncpa [#allocation12], 0 }
   0x8   :  { %21 = vsyncpa [#allocation4], 0 }
   0x9   :  { %23 = vsyncpa [#allocation4 + $0x1], 0  ;;  %s4205_s13 = smov 0   ;;  %s4207_s14 = smov 0  }
   0xa   :  { %s4209_s15 = smov 0   ;;  %s4211_s16 = smov 0  }
   0xb LB: > { %5508 = sst [smem:[#allocation20_spill]] %s4121_s13  ;;  %s4226_s17 = sadd.s32 4294967295, %s4133_s16   ;;  %s4133_s16 = sphi %s4211_s16, %s5538_s16   ;;  %s4129_s15 = sphi %s4209_s15, %s5537_s15   ;;  %s4125_s14 = sphi %s4207_s14, %s5536_s14   ;;  %s4121_s13 = sphi %s4205_s13, %s5535_s13  }
   0xc   : > { %s3039_s18 = sadd.s32 4294967294, %s4133_s16   ;;  %p70_p0 = scmp.ne.s32.totalorder %s4125_s14, %s4121_s13 }
   0xd   : > { %p5499_p1 = scmp.eq.s32.totalorder %s4226_s17, 0  ;;  %p268_p3 = scmp.eq.s32.totalorder %s3039_s18, 1 }
   0xe   : > { %p3040_p5 = scmp.ge.s32.totalorder %s4133_s16, 1  ;;  %p275_p7 = scmp.lt.s32.totalorder %s4133_s16, 3 }
   0xf   : > { %p4235_p4 = por %p5499_p1, %p70_p0  ;;  %p4240_p6 = por %p268_p3, %p70_p0 }
  0x10   : > { %p4245_p8 = pnand %p3040_p5, %p275_p7  ;;  %s4135_s22 = smov [#allocation7]  }
  0x11   : > { %s5509_s19 = scalar_select %p4235_p4, 1, 0 }
  0x12   : > { %s5510_s20 = scalar_select %p4240_p6, 1, 0 }
  0x13   : > { %s5512_s21 = scalar_select %p4245_p8, 1, 0 }
  0x14   : > { %5511 = sst [smem:[#allocation21_spill]] %s5510_s20  ;;  %s298_s23 = sshll.u32 %s4135_s22, 4  ;;  %s4249_s23 = int_to_ptr.vmem [resolvable:$true] %s298_s23 }
  0x15   : > { %p3672_p9 = pneg %p4245_p8  ;;  %s4136_s25 = smov [#allocation8]  }
  0x16   : > { %s314_s26 = sshll.u32 %s4136_s25, 4  ;;  %s4137_s27 = smov [#allocation2]   ;;  %s4260_s26 = int_to_ptr.vmem [resolvable:$true] %s314_s26 }
  0x17   : > { %p4256_p11 = pnand %p3672_p9, %p5499_p1  ;;  %s4262_s28 = sshll.u32 %s4137_s27, 4  ;;  %s289_s28 = int_to_ptr.vmem [resolvable:$true] %s4262_s28 }
  0x18   : > { %s3881_s11 = scalar_lea.hbm %s5490_s2, 4096 }
  0x19   : > { %p3882_p12 = scmp.ne.s32.totalorder %s5490_s2, %s3881_s11  ;;  %p4272_p13 = pneg %p4256_p11 }
  0x1a   : > { %p3888_p5 = scmp.lt.u32.totalorder %s3881_s11, %s5490_s2 }
  0x1b   : > { %p3884_p0 = pnand %p4272_p13, %p3882_p12 }
  0x1d   : > { %p3885_p3 = pneg %p3884_p0 }
  0x1f   : > { %p3890_p7 = pnand %p3888_p5, %p3885_p3 }
  0x21   : > { %3893 = shalt.err (!%p3890_p7)
}
  0x22   : > { %s3894_s29 = scalar_lea.vmem %s4249_s23, 4096  ;;  %p3902_p2 = scmp.lt.s32.totalorder %s4249_s23, %s4249_s23 }
  0x23   : > { %p3895_p9 = scmp.ne.s32.totalorder %s4249_s23, %s3894_s29  ;;  %p3903_p6 = scmp.lt.s32.totalorder %s3894_s29, %s3894_s29 }
  0x25   : > { %p3897_p10 = pnand %p3895_p9, %p4272_p13  ;;  %p3904_p12 = por %p3903_p6, %p3902_p2 }
  0x27   : > { %p3898_p1 = pneg %p3897_p10 }
  0x29   : > { %p3905_p0 = pnand %p3904_p12, %p3898_p1 }
  0x2b   : > { %3908 = shalt.err (!%p3905_p0)
}
  0x2c   : > { %s5505_s30 = smov 128   ;;  %s4139_s11 = smov 8  }
  0x2d   : > { %3678 = dma.hbm_to_vmem [thread:$0]  (!%p4256_p11), %s5490_s2, 4096, %s4249_s23, [#allocation6], %s5505_s30, %s5505_s30, %s4139_s11  }
  0x2e   : > { %s3909_s29 = scalar_lea.hbm %s5492_s4, 2048 }
  0x2f   : > { %p3910_p1 = scmp.ne.s32.totalorder %s5492_s4, %s3909_s29  ;;  %p3916_p10 = scmp.lt.u32.totalorder %s3909_s29, %s5492_s4 }
  0x31   : > { %p3912_p2 = pnand %p3910_p1, %p4272_p13 }
  0x33   : > { %p3913_p6 = pneg %p3912_p2 }
  0x35   : > { %p3918_p3 = pnand %p3916_p10, %p3913_p6 }
  0x37   : > { %3921 = shalt.err (!%p3918_p3)
}
  0x38   : > { %s3922_s23 = scalar_lea.vmem %s4260_s26, 2048  ;;  %p3930_p12 = scmp.lt.s32.totalorder %s4260_s26, %s4260_s26 }
  0x39   : > { %p3923_p5 = scmp.ne.s32.totalorder %s4260_s26, %s3922_s23  ;;  %p3931_p0 = scmp.lt.s32.totalorder %s3922_s23, %s3922_s23 }
  0x3b   : > { %p3925_p7 = pnand %p3923_p5, %p4272_p13  ;;  %p3932_p1 = por %p3931_p0, %p3930_p12 }
  0x3d   : > { %p3926_p9 = pneg %p3925_p7 }
  0x3f   : > { %p3933_p2 = pnand %p3932_p1, %p3926_p9 }
  0x41   : > { %3936 = shalt.err (!%p3933_p2)
}
  0x42   : > { %3681 = dma.hbm_to_vmem [thread:$0]  (!%p4256_p11), %s5492_s4, 2048, %s4260_s26, [#allocation9], %s5505_s30, %s5505_s30, %s4139_s11  }
  0x43   : > { %s3937_s12 = scalar_lea.hbm %s5488_s0, 32 }
  0x44   : > { %p3938_p6 = scmp.ne.s32.totalorder %s5488_s0, %s3937_s12  ;;  %p3944_p5 = scmp.lt.u32.totalorder %s3937_s12, %s5488_s0 }
  0x46   : > { %p3940_p10 = pnand %p3938_p6, %p4272_p13 }
  0x48   : > { %p3941_p3 = pneg %p3940_p10 }
  0x4a   : > { %p3946_p7 = pnand %p3944_p5, %p3941_p3 }
  0x4c   : > { %3949 = shalt.err (!%p3946_p7)
}
  0x4d   : > { %s3950_s23 = scalar_lea.vmem %s289_s28, 32  ;;  %p3958_p1 = scmp.lt.s32.totalorder %s289_s28, %s289_s28 }
  0x4e   : > { %p3951_p9 = scmp.ne.s32.totalorder %s289_s28, %s3950_s23  ;;  %p3959_p2 = scmp.lt.s32.totalorder %s3950_s23, %s3950_s23 }
  0x50   : > { %p3953_p12 = pnand %p3951_p9, %p4272_p13  ;;  %p3960_p4 = por %p3959_p2, %p3958_p1 }
  0x52   : > { %p3954_p0 = pneg %p3953_p12 }
  0x54   : > { %p3961_p8 = pnand %p3960_p4, %p3954_p0 }
  0x56   : > { %3964 = shalt.err (!%p3961_p8)
}
  0x57   : > { %3675 = dma.hbm_to_vmem [thread:$0]  (!%p4256_p11), %s5488_s0, 32, %s289_s28, [#allocation3]  }
  0x58   : > { %s4140_s10 = smov [#allocation10]   ;;  %s4141_s20 = smov [#allocation11]  }
  0x59   : > { %s330_s13 = sshll.u32 %s4140_s10, 4  ;;  %s346_s12 = sshll.u32 %s4141_s20, 4  ;;  %s331_s13 = int_to_ptr.vmem [resolvable:$true] %s330_s13  ;;  %s347_s12 = int_to_ptr.vmem [resolvable:$true] %s346_s12 }
  0x5a   : > { %s3965_s27 = scalar_lea.hbm %s5494_s6, 2048 }
  0x5b   : > { %p3966_p4 = scmp.ne.s32.totalorder %s5494_s6, %s3965_s27  ;;  %p3972_p10 = scmp.lt.u32.totalorder %s3965_s27, %s5494_s6 }
  0x5d   : > { %p3968_p8 = pnand %p3966_p4, %p4272_p13 }
  0x5f   : > { %p3969_p6 = pneg %p3968_p8 }
  0x61   : > { %p3974_p3 = pnand %p3972_p10, %p3969_p6 }
  0x63   : > { %3977 = shalt.err (!%p3974_p3)
}
  0x64   : > { %s3978_s28 = scalar_lea.vmem %s331_s13, 2048  ;;  %p3986_p12 = scmp.lt.s32.totalorder %s331_s13, %s331_s13 }
  0x65   : > { %p3979_p5 = scmp.ne.s32.totalorder %s331_s13, %s3978_s28  ;;  %p3987_p0 = scmp.lt.s32.totalorder %s3978_s28, %s3978_s28 }
  0x67   : > { %p3981_p7 = pnand %p3979_p5, %p4272_p13  ;;  %p3988_p1 = por %p3987_p0, %p3986_p12 }
  0x69   : > { %p3982_p9 = pneg %p3981_p7 }
  0x6b   : > { %p3989_p2 = pnand %p3988_p1, %p3982_p9 }
  0x6d   : > { %3992 = shalt.err (!%p3989_p2)
}
  0x6e   : > { %s5515_s9 = smov 128   ;;  %s3993_s25 = scalar_lea.hbm %s5496_s8, 4096 }
  0x6f   : > { %3684 = dma.hbm_to_vmem [thread:$0]  (!%p4256_p11), %s5494_s6, 2048, %s331_s13, [#allocation9], %s5515_s9, %s5515_s9, %s4139_s11  }
  0x70   : > { %p3994_p4 = scmp.ne.s32.totalorder %s5496_s8, %s3993_s25  ;;  %p4000_p10 = scmp.lt.u32.totalorder %s3993_s25, %s5496_s8 }
  0x72   : > { %p3996_p8 = pnand %p3994_p4, %p4272_p13 }
  0x74   : > { %p3997_p6 = pneg %p3996_p8 }
  0x76   : > { %p4002_p3 = pnand %p4000_p10, %p3997_p6 }
  0x78   : > { %4005 = shalt.err (!%p4002_p3)
}
  0x79   : > { %s4006_s28 = scalar_lea.vmem %s347_s12, 4096  ;;  %p4014_p12 = scmp.lt.s32.totalorder %s347_s12, %s347_s12 }
  0x7a   : > { %p4007_p5 = scmp.ne.s32.totalorder %s347_s12, %s4006_s28  ;;  %p4015_p0 = scmp.lt.s32.totalorder %s4006_s28, %s4006_s28 }
  0x7c   : > { %p4009_p7 = pnand %p4007_p5, %p4272_p13  ;;  %p4016_p1 = por %p4015_p0, %p4014_p12 }
  0x7e   : > { %p4010_p9 = pneg %p4009_p7 }
  0x80   : > { %p4017_p2 = pnand %p4016_p1, %p4010_p9 }
  0x82   : > { %4020 = shalt.err (!%p4017_p2)
}
  0x83   : > { %s4142_s11 = smov 256   ;;  %s4143_s22 = smov 16  }
  0x84   : > { %3687 = dma.hbm_to_vmem [thread:$0]  (!%p4256_p11), %s5496_s8, 4096, %s347_s12, [#allocation12], %s4142_s11, %s4142_s11, %s4143_s22  }
  0x85   : > { %s4384_s30 = sadd.s32 1, %s4133_s16   ;;  %s57_s20 = sadd.s32 1, %s4129_s15 }
  0x86   : > { %s54_s10 = ssub.s32 %s4133_s16, %s4384_s30  ;;  %p64_p4 = scmp.ne.s32.totalorder %s4129_s15, %s4125_s14 }
  0x87   : > { %p55_p13 = scmp.eq.s32.totalorder %s54_s10, 0  ;;  %p65_p8 = scmp.eq.s32.totalorder %s4133_s16, 0 }
  0x88   : > { %p3701_p6 = scmp.lt.s32.totalorder %s4133_s16, 2  ;;  %p5516_p3 = scmp.eq.s32.totalorder %s4226_s17, 1 }
  0x89   : > { %s4394_s18 = scalar_select %p55_p13, %s4129_s15, %s57_s20  }
  0x8a   : > { %p66_p10 = por %p65_p8, %p64_p4  ;;  %p4398_p5 = por %p5516_p3, %p64_p4 }
  0x8b   : > { %s363_s25 = sand.u32 1, %s4133_s16   ;;  %s365_s27 = sand.u32 1, %s4129_s15  }
  0x8c   : > { %s3047_s12 = sshll.u32 %s365_s27, 10  ;;  %s3069_s29 = sshll.u32 %s4133_s16, 14 }
  0x8d   : > { %s4408_s28 = scalar_lea.hbm %s5489_s1, %s3069_s29  ;;  %s367_s13 = scalar_lea.vmem [#allocation5], %s3047_s12 }
  0x8e   : > { %s375_s9 = sshll.u32 %s367_s13, 4  ;;  %p4412_p11 = pnand %p3701_p6, %p66_p10  ;;  %s4410_s9 = int_to_ptr.vmem [resolvable:$true] %s375_s9 }
  0x8f   : > { %s4416_s20 = scalar_lea.sflag [#allocation6], %s363_s25  ;;  %s4021_s27 = scalar_lea.hbm %s4408_s28, 16384 }
  0x90   : > { %p4022_p7 = scmp.ne.s32.totalorder %s4408_s28, %s4021_s27  ;;  %p4023_p9 = pneg %p4412_p11 }
  0x91   : > { %s4026_s23 = scalar_lea.hbm %s5489_s1, 32768  ;;  %p4027_p1 = scmp.lt.u32.totalorder %s4408_s28, %s5489_s1 }
  0x92   : > { %p4024_p12 = pnand %p4023_p9, %p4022_p7  ;;  %p4028_p2 = scmp.lt.u32.totalorder %s4026_s23, %s4021_s27 }
  0x93   : > { %p4030_p4 = scmp.lt.u32.totalorder %s4021_s27, %s4408_s28 }
  0x94   : > { %p4025_p0 = pneg %p4024_p12  ;;  %p4029_p13 = por %p4028_p2, %p4027_p1 }
  0x96   : > { %p4031_p8 = por %p4030_p4, %p4029_p13 }
  0x98   : > { %p4032_p6 = pnand %p4031_p8, %p4025_p0 }
  0x9a   : > { %4035 = shalt.err (!%p4032_p6)
}
  0x9b   : > { %s4036_s25 = scalar_lea.vmem %s4410_s9, 16384  ;;  %s4144_s12 = smov [#allocation5]  }
  0x9c   : > { %p4037_p10 = scmp.ne.s32.totalorder %s4410_s9, %s4036_s25  ;;  %s4041_s29 = sshll.u32 %s4144_s12, 4  ;;  %s4042_s29 = int_to_ptr.vmem [resolvable:$false] %s4041_s29 }
  0x9d   : > { %s4043_s26 = scalar_lea.vmem %s4042_s29, 32768  ;;  %p4044_p12 = scmp.lt.s32.totalorder %s4410_s9, %s4042_s29 }
  0x9e   : > { %p4039_p3 = pnand %p4037_p10, %p4023_p9  ;;  %p4045_p1 = scmp.lt.s32.totalorder %s4043_s26, %s4036_s25 }
  0xa0   : > { %p4040_p7 = pneg %p4039_p3  ;;  %p4046_p2 = por %p4045_p1, %p4044_p12 }
  0xa2   : > { %p4047_p13 = pnand %p4046_p2, %p4040_p7 }
  0xa4   : > { %4050 = shalt.err (!%p4047_p13)
}
  0xa5   : > { %3691 = dma.hbm_to_vmem [thread:$0]  (!%p4412_p11), %s4408_s28, 16384, %s4410_s9, %s4416_s20, %s4142_s11, %s4142_s11, %s4143_s22  }
  0xa6   : > { %p5519_p9 = scmp.ne.s32.totalorder %s5512_s21, 0 }
  0xa7   : > { %p5520_p0 = scmp.eq.s32.totalorder (!%p5519_p9), %s4226_s17, 0 }
  0xa8   : > { %387 = sbr.rel (%p5519_p9) target bundleno = 1395 (0x573), region = 60 }
  0xaf   : > { %4096 = dma.done.wait (%p5520_p0), [#allocation3], 32   ;;  %p5521_p4 = pmov %p5520_p0 }
  0xb0   : > { %s393_s10 = sand.u32 1, %s4226_s17   ;;  %s395_s27 = sand.u32 1, %s4125_s14  }
  0xb1   : > { %4098 = vsyncadd (%p5521_p4), [#allocation3], 4294967264  ;;  %s4457_s23 = sshll.u32 %s395_s27, 10  ;;  %s394_s11 = scalar_lea.sflag [#allocation6], %s393_s10 }
  0xb2   : > { %s4460_s22 = scalar_lea.vmem [#allocation5], %s4457_s23  ;;  %p5522_p11 = scmp.ne.s32.totalorder %s5509_s19, 0 }
  0xb4   : > { %4100 = dma.done.wait (%p5522_p11), %s394_s11, 16384  }
  0xb5   : > { %4102 = vsyncadd (%p5522_p11), %s394_s11, 4294950912  ;;  %p5523_p8 = pmov %p5520_p0 }
  0xb6   : > { %p5524_p6 = pmov %p5520_p0 }
  0xb7   : > { %4104 = dma.done.wait (%p5523_p8), [#allocation6], 4096  }
  0xb8   : > { %4106 = vsyncadd (%p5524_p6), [#allocation6], 4294963200  ;;  %p5525_p10 = pmov %p5520_p0 }
  0xb9   : > { %p5526_p3 = pmov %p5520_p0 }
  0xba   : > { %4108 = dma.done.wait (%p5525_p10), [#allocation9], 4096  }
  0xbb   : > { %4110 = vsyncadd (%p5526_p3), [#allocation9], 4294963200  ;;  %p5527_p7 = pmov %p5520_p0 }
  0xbc   : > { %p5528_p12 = pmov %p5520_p0 }
  0xbd   : > { %4112 = dma.done.wait (%p5527_p7), [#allocation12], 4096  }
  0xbe   : > { %4114 = vsyncadd (%p5528_p12), [#allocation12], 4294963200  ;;  %v4145_v0 = vmov 0.0|0.0   ;;  %v580_v1 = vld [vmem:[#allocation7] sm:$0xff]  ;;  %v581_v2 = vld [vmem:[#allocation7 + $0x8] sm:$0xff]  ;;  %s5529_s29 = sld [smem:[#allocation22_spill]] }
  0xbf   : > { %3488 = vmatprep.subr.bf16.mxu0 %v4145_v0  ;;  %v582_v3 = vld [vmem:[#allocation7 + $0x10] sm:$0xff]  ;;  %v3489_v4 = vpack.c.bf16 %v581_v2, %v580_v1  ;;  %v583_v5 = vld [vmem:[#allocation7 + $0x18] sm:$0xff]  ;;  %v584_v7 = vld [vmem:[#allocation7 + $0x20] sm:$0xff]  ;;  %s4931_s26 = scalar_lea.vmem [#allocation13], %s4457_s23  ;;  %s3071_s10 = sshll.u32 %s4226_s17, 14 }
  0xc0   : > { %v3492_v6 = vpack.c.bf16 %v583_v5, %v582_v3  ;;  %v585_v8 = vld [vmem:[#allocation7 + $0x28] sm:$0xff]  ;;  %v586_v10 = vld [vmem:[#allocation7 + $0x30] sm:$0xff]  ;;  %v587_v11 = vld [vmem:[#allocation7 + $0x38] sm:$0xff]  ;;  %s2916_s23 = sshll.u32 %s4931_s26, 4  ;;  %s5446_s17 = scalar_lea.sflag [#allocation4], %s395_s27  ;;  %s5440_s23 = int_to_ptr.vmem [resolvable:$true] %s2916_s23 }
  0xc1   : > { %3490 = vmatpush1.bf16.msra.mxu0 %v3489_v4  ;;  %v3495_v9 = vpack.c.bf16 %v585_v8, %v584_v7  ;;  %v453_v12 = vld [vmem:[%s4460_s22 + $0x8] sm:$0xff]  ;;  %v3498_v13 = vpack.c.bf16 %v587_v11, %v586_v10  ;;  %v588_v14 = vld [vmem:[#allocation7 + $0x40] sm:$0xff]  ;;  %v590_v17 = vld [vmem:[#allocation7 + $0x50] sm:$0xff]  ;;  %s4051_s28 = scalar_lea.vmem %s5440_s23, 16384  ;;  %s4147_s9 = smov [#allocation13]  }
  0xc2   : > { %3491 = vmatprep.subr.bf16.mxu0 %v4145_v0  ;;  %683 = vmatprep.mubr.f32.mxu0 %v453_v12  ;;  %v589_v15 = vld [vmem:[#allocation7 + $0x48] sm:$0xff]  ;;  %v591_v18 = vld [vmem:[#allocation7 + $0x58] sm:$0xff]  ;;  %v592_v20 = vld [vmem:[#allocation7 + $0x60] sm:$0xff]  ;;  %p4052_p1 = scmp.ne.s32.totalorder %s5440_s23, %s4051_s28  ;;  %s4055_s20 = sshll.u32 %s4147_s9, 4  ;;  %s4056_s20 = int_to_ptr.vmem [resolvable:$false] %s4055_s20 }
  0xc3   : > { %v3501_v16 = vpack.c.bf16 %v589_v15, %v588_v14  ;;  %v3504_v19 = vpack.c.bf16 %v591_v18, %v590_v17  ;;  %v593_v21 = vld [vmem:[#allocation7 + $0x68] sm:$0xff]  ;;  %v594_v23 = vld [vmem:[#allocation7 + $0x70] sm:$0xff]  ;;  %v595_v24 = vld [vmem:[#allocation7 + $0x78] sm:$0xff]  ;;  %s4057_s13 = scalar_lea.vmem %s4056_s20, 32768  ;;  %p4058_p9 = scmp.lt.s32.totalorder %s5440_s23, %s4056_s20 }
  0xc4   : > { %v3507_v22 = vpack.c.bf16 %v593_v21, %v592_v20  ;;  %v3510_v25 = vpack.c.bf16 %v595_v24, %v594_v23  ;;  %v596_v26 = vld [vmem:[#allocation7 + $0x80] sm:$0xff]  ;;  %v597_v27 = vld [vmem:[#allocation7 + $0x88] sm:$0xff]  ;;  %v598_v29 = vld [vmem:[#allocation7 + $0x90] sm:$0xff]  ;;  %p4053_p2 = pnand %p4052_p1, %p4398_p5  ;;  %p4059_p0 = scmp.lt.s32.totalorder %s4057_s13, %s4051_s28 }
  0xc5   : > { %3493 = vmatpush1.bf16.msra.mxu0 %v3492_v6  ;;  %v3513_v28 = vpack.c.bf16 %v597_v27, %v596_v26  ;;  %v599_v30 = vld [vmem:[#allocation7 + $0x98] sm:$0xff]  ;;  %v600_v32 = vld [vmem:[#allocation7 + $0xa0] sm:$0xff]  ;;  %v601_v33 = vld [vmem:[#allocation7 + $0xa8] sm:$0xff] }
  0xc6   : > { %3494 = vmatprep.subr.bf16.mxu0 %v4145_v0  ;;  %v3516_v31 = vpack.c.bf16 %v599_v30, %v598_v29  ;;  %v3519_v34 = vpack.c.bf16 %v601_v33, %v600_v32  ;;  %v602_v35 = vld [vmem:[#allocation7 + $0xb0] sm:$0xff]  ;;  %v603_v36 = vld [vmem:[#allocation7 + $0xb8] sm:$0xff]  ;;  %v604_v38 = vld [vmem:[#allocation7 + $0xc0] sm:$0xff]  ;;  %p4054_p13 = pneg %p4053_p2  ;;  %p4060_p4 = por %p4059_p0, %p4058_p9 }
  0xc7   : > { %v3522_v37 = vpack.c.bf16 %v603_v36, %v602_v35  ;;  %v605_v39 = vld [vmem:[#allocation7 + $0xc8] sm:$0xff]  ;;  %v606_v41 = vld [vmem:[#allocation7 + $0xd0] sm:$0xff]  ;;  %v607_v42 = vld [vmem:[#allocation7 + $0xd8] sm:$0xff] }
  0xc8   : > { %v3525_v40 = vpack.c.bf16 %v605_v39, %v604_v38  ;;  %v3528_v43 = vpack.c.bf16 %v607_v42, %v606_v41  ;;  %v608_v44 = vld [vmem:[#allocation7 + $0xe0] sm:$0xff]  ;;  %v609_v45 = vld [vmem:[#allocation7 + $0xe8] sm:$0xff]  ;;  %v610_v47 = vld [vmem:[#allocation7 + $0xf0] sm:$0xff]  ;;  %p4061_p11 = pnand %p4060_p4, %p4054_p13 }
  0xc9   : > { %3496 = vmatpush1.bf16.msra.mxu0 %v3495_v9  ;;  %v3531_v46 = vpack.c.bf16 %v609_v45, %v608_v44  ;;  %v611_v48 = vld [vmem:[#allocation7 + $0xf8] sm:$0xff]  ;;  %v452_v50 = vld [vmem:[%s4460_s22] sm:$0xff]  ;;  %v454_v52 = vld [vmem:[%s4460_s22 + $0x10] sm:$0xff] }
  0xca   : > { %3497 = vmatprep.subr.bf16.mxu0 %v4145_v0  ;;  %v3534_v49 = vpack.c.bf16 %v611_v48, %v610_v47  ;;  %v455_v51 = vld [vmem:[%s4460_s22 + $0x18] sm:$0xff]  ;;  %v457_v53 = vld [vmem:[%s4460_s22 + $0x28] sm:$0xff]  ;;  %v456_v54 = vld [vmem:[%s4460_s22 + $0x20] sm:$0xff] }
  0xcb   : > { %v459_v55 = vld [vmem:[%s4460_s22 + $0x38] sm:$0xff]  ;;  %v458_v56 = vld [vmem:[%s4460_s22 + $0x30] sm:$0xff]  ;;  %v461_v57 = vld [vmem:[%s4460_s22 + $0x48] sm:$0xff] }
  0xcc   : > { %v460_v58 = vld [vmem:[%s4460_s22 + $0x40] sm:$0xff]  ;;  %v463_v59 = vld [vmem:[%s4460_s22 + $0x58] sm:$0xff]  ;;  %v462_v60 = vld [vmem:[%s4460_s22 + $0x50] sm:$0xff] }
  0xcd   : > { %3499 = vmatpush1.bf16.msra.mxu0 %v3498_v13  ;;  %v465_v61 = vld [vmem:[%s4460_s22 + $0x68] sm:$0xff]  ;;  %v464_v62 = vld [vmem:[%s4460_s22 + $0x60] sm:$0xff]  ;;  %v467_v63 = vld [vmem:[%s4460_s22 + $0x78] sm:$0xff] }
  0xce   : > { %3500 = vmatprep.subr.bf16.mxu0 %v4145_v0  ;;  %v469_v1 = vld [vmem:[%s4460_s22 + $0x88] sm:$0xff]  ;;  %v468_v2 = vld [vmem:[%s4460_s22 + $0x80] sm:$0xff]  ;;  %v471_v3 = vld [vmem:[%s4460_s22 + $0x98] sm:$0xff] }
  0xcf   : > { %v470_v4 = vld [vmem:[%s4460_s22 + $0x90] sm:$0xff]  ;;  %v473_v5 = vld [vmem:[%s4460_s22 + $0xa8] sm:$0xff]  ;;  %v472_v6 = vld [vmem:[%s4460_s22 + $0xa0] sm:$0xff] }
  0xd0   : > { %v475_v7 = vld [vmem:[%s4460_s22 + $0xb8] sm:$0xff]  ;;  %v474_v8 = vld [vmem:[%s4460_s22 + $0xb0] sm:$0xff]  ;;  %v477_v9 = vld [vmem:[%s4460_s22 + $0xc8] sm:$0xff] }
  0xd1   : > { %3502 = vmatpush1.bf16.msra.mxu0 %v3501_v16  ;;  %v476_v10 = vld [vmem:[%s4460_s22 + $0xc0] sm:$0xff]  ;;  %v479_v11 = vld [vmem:[%s4460_s22 + $0xd8] sm:$0xff]  ;;  %v478_v12 = vld [vmem:[%s4460_s22 + $0xd0] sm:$0xff] }
  0xd2   : > { %3503 = vmatprep.subr.bf16.mxu0 %v4145_v0  ;;  %v481_v13 = vld [vmem:[%s4460_s22 + $0xe8] sm:$0xff]  ;;  %v480_v14 = vld [vmem:[%s4460_s22 + $0xe0] sm:$0xff]  ;;  %v483_v15 = vld [vmem:[%s4460_s22 + $0xf8] sm:$0xff] }
  0xd3   : > { %v482_v16 = vld [vmem:[%s4460_s22 + $0xf0] sm:$0xff]  ;;  %v1068_v17 = vld [vmem:[#allocation8] sm:$0xff]  ;;  %v1069_v18 = vld [vmem:[#allocation8 + $0x8] sm:$0xff] }
  0xd4   : > { %v3536_v20 = vpack.c.bf16 %v1069_v18, %v1068_v17  ;;  %v484_v21 = vld [vmem:[%s4460_s22 + $0x100] sm:$0xff]  ;;  %v1071_v23 = vld [vmem:[#allocation8 + $0x18] sm:$0xff]  ;;  %v486_v26 = vld [vmem:[%s4460_s22 + $0x110] sm:$0xff] }
  0xd5   : > { %3505 = vmatpush1.bf16.msra.mxu0 %v3504_v19  ;;  %v485_v19 = vld [vmem:[%s4460_s22 + $0x108] sm:$0xff]  ;;  %v487_v24 = vld [vmem:[%s4460_s22 + $0x118] sm:$0xff]  ;;  %v1072_v27 = vld [vmem:[#allocation8 + $0x20] sm:$0xff] }
  0xd6   : > { %3506 = vmatprep.subr.bf16.mxu0 %v4145_v0  ;;  %3537 = vmatprep.subr.bf16.mxu1 %v3536_v20  ;;  %v489_v29 = vld [vmem:[%s4460_s22 + $0x128] sm:$0xff]  ;;  %v1074_v32 = vld [vmem:[#allocation8 + $0x30] sm:$0xff]  ;;  %v1075_v33 = vld [vmem:[#allocation8 + $0x38] sm:$0xff] }
  0xd7   : > { %3539 = vmatpush3.bf16.msra.mxu1 %v3536_v20  ;;  %v3548_v35 = vpack.c.bf16 %v1075_v33, %v1074_v32  ;;  %v490_v36 = vld [vmem:[%s4460_s22 + $0x130] sm:$0xff]  ;;  %v1077_v38 = vld [vmem:[#allocation8 + $0x48] sm:$0xff]  ;;  %v492_v41 = vld [vmem:[%s4460_s22 + $0x140] sm:$0xff] }
  0xd8   : > { %v493_v39 = vld [vmem:[%s4460_s22 + $0x148] sm:$0xff]  ;;  %v1078_v42 = vld [vmem:[#allocation8 + $0x50] sm:$0xff]  ;;  %v495_v44 = vld [vmem:[%s4460_s22 + $0x158] sm:$0xff] }
  0xd9   : > { %3508 = vmatpush1.bf16.msra.mxu0 %v3507_v22  ;;  %v1070_v22 = vld [vmem:[#allocation8 + $0x10] sm:$0xff]  ;;  %v1080_v47 = vld [vmem:[#allocation8 + $0x60] sm:$0xff]  ;;  %v1081_v48 = vld [vmem:[#allocation8 + $0x68] sm:$0xff] }
  0xda   : > { %3509 = vmatprep.subr.bf16.mxu0 %v4145_v0  ;;  %v525_v17 = vld [vmem:[%s4460_s22 + $0x248] sm:$0xff]  ;;  %v524_v18 = vld [vmem:[%s4460_s22 + $0x240] sm:$0xff]  ;;  %v526_v20 = vld [vmem:[%s4460_s22 + $0x250] sm:$0xff] }
  0xdb   : > { %v538_v32 = vld [vmem:[%s4460_s22 + $0x2b0] sm:$0xff]  ;;  %v541_v33 = vld [vmem:[%s4460_s22 + $0x2c8] sm:$0xff] }
  0xdd   : > { %3511 = vmatpush1.bf16.msra.mxu0 %v3510_v25  ;;  %v3540_v25 = vpack.c.bf16 %v1071_v23, %v1070_v22  ;;  %v528_v22 = vld [vmem:[%s4460_s22 + $0x260] sm:$0xff]  ;;  %v531_v23 = vld [vmem:[%s4460_s22 + $0x278] sm:$0xff] }
  0xde   : > { %3512 = vmatprep.subr.bf16.mxu0 %v4145_v0 }
  0xdf   : > { %3541 = vmatprep.subr.bf16.mxu1 %v3540_v25 }
  0xe0   : > { %3543 = vmatpush3.bf16.msra.mxu1 %v3540_v25  ;;  %v533_v25 = vld [vmem:[%s4460_s22 + $0x288] sm:$0xff] }
  0xe1   : > { %3514 = vmatpush1.bf16.msra.mxu0 %v3513_v28  ;;  %v1073_v28 = vld [vmem:[#allocation8 + $0x28] sm:$0xff] }
  0xe2   : > { %3515 = vmatprep.subr.bf16.mxu0 %v4145_v0  ;;  %v3544_v30 = vpack.c.bf16 %v1073_v28, %v1072_v27  ;;  %v535_v27 = vld [vmem:[%s4460_s22 + $0x298] sm:$0xff]  ;;  %v534_v28 = vld [vmem:[%s4460_s22 + $0x290] sm:$0xff] }
  0xe4   : > { %3545 = vmatprep.subr.bf16.mxu1 %v3544_v30 }
  0xe5   : > { %3517 = vmatpush1.bf16.msra.mxu0 %v3516_v31  ;;  %v488_v31 = vld [vmem:[%s4460_s22 + $0x120] sm:$0xff]  ;;  %3547 = vmatpush3.bf16.msra.mxu1 %v3544_v30 }
  0xe6   : > { %3518 = vmatprep.subr.bf16.mxu0 %v4145_v0  ;;  %3549 = vmatprep.subr.bf16.mxu1 %v3548_v35  ;;  %v536_v30 = vld [vmem:[%s4460_s22 + $0x2a0] sm:$0xff] }
  0xe9   : > { %3520 = vmatpush1.bf16.msra.mxu0 %v3519_v34  ;;  %v491_v34 = vld [vmem:[%s4460_s22 + $0x138] sm:$0xff]  ;;  %3551 = vmatpush3.bf16.msra.mxu1 %v3548_v35 }
  0xea   : > { %3521 = vmatprep.subr.bf16.mxu0 %v4145_v0  ;;  %v543_v35 = vld [vmem:[%s4460_s22 + $0x2d8] sm:$0xff] }
  0xed   : > { %3523 = vmatpush1.bf16.msra.mxu0 %v3522_v37  ;;  %v1076_v37 = vld [vmem:[#allocation8 + $0x40] sm:$0xff] }
  0xee   : > { %3524 = vmatprep.subr.bf16.mxu0 %v4145_v0 }
  0xf1   : > { %3526 = vmatpush1.bf16.msra.mxu0 %v3525_v40  ;;  %v3552_v40 = vpack.c.bf16 %v1077_v38, %v1076_v37  ;;  %v545_v37 = vld [vmem:[%s4460_s22 + $0x2e8] sm:$0xff]  ;;  %v544_v38 = vld [vmem:[%s4460_s22 + $0x2e0] sm:$0xff] }
  0xf2   : > { %3527 = vmatprep.subr.bf16.mxu0 %v4145_v0 }
  0xf3   : > { %3553 = vmatprep.subr.bf16.mxu1 %v3552_v40 }
  0xf4   : > { %3555 = vmatpush3.bf16.msra.mxu1 %v3552_v40  ;;  %v546_v40 = vld [vmem:[%s4460_s22 + $0x2f0] sm:$0xff] }
  0xf5   : > { %3529 = vmatpush1.bf16.msra.mxu0 %v3528_v43  ;;  %v1079_v43 = vld [vmem:[#allocation8 + $0x58] sm:$0xff] }
  0xf6   : > { %3530 = vmatprep.subr.bf16.mxu0 %v4145_v0  ;;  %v3556_v45 = vpack.c.bf16 %v1079_v43, %v1078_v42  ;;  %v548_v42 = vld [vmem:[%s4460_s22 + $0x300] sm:$0xff]  ;;  %v551_v43 = vld [vmem:[%s4460_s22 + $0x318] sm:$0xff] }
  0xf8   : > { %3557 = vmatprep.subr.bf16.mxu1 %v3556_v45 }
  0xf9   : > { %3532 = vmatpush1.bf16.msra.mxu0 %v3531_v46  ;;  %v494_v46 = vld [vmem:[%s4460_s22 + $0x150] sm:$0xff]  ;;  %3559 = vmatpush3.bf16.msra.mxu1 %v3556_v45  ;;  %v553_v45 = vld [vmem:[%s4460_s22 + $0x328] sm:$0xff] }
  0xfa   : > { %3533 = vmatprep.subr.bf16.mxu0 %v4145_v0  ;;  %v466_v0 = vld [vmem:[%s4460_s22 + $0x70] sm:$0xff] }
  0xfd   : > { %3535 = vmatpush1.bf16.msra.mxu0 %v3534_v49  ;;  %v497_v49 = vld [vmem:[%s4460_s22 + $0x168] sm:$0xff] }
 0x100   : > { %684 = vmatmul.mubr.f32.vlgmr.msra.gmra.mrb[0].mxu0 %v452_v50  ;;  %v3560_v50 = vpack.c.bf16 %v1081_v48, %v1080_v47  ;;  %v555_v47 = vld [vmem:[%s4460_s22 + $0x338] sm:$0xff]  ;;  %v554_v48 = vld [vmem:[%s4460_s22 + $0x330] sm:$0xff] }
 0x101   : > { %688 = vmatprep.mubr.f32.mxu0 %v455_v51  ;;  %v496_v51 = vld [vmem:[%s4460_s22 + $0x160] sm:$0xff] }
 0x102   : > { %3561 = vmatprep.subr.bf16.mxu1 %v3560_v50 }
 0x103   : > { %3563 = vmatpush3.bf16.msra.mxu1 %v3560_v50  ;;  %v556_v50 = vld [vmem:[%s4460_s22 + $0x340] sm:$0xff] }
 0x104   : > { %689 = vmatmul.mubr.f32.gmra.mrb[2].mxu0 %v454_v52  ;;  %v1082_v52 = vld [vmem:[#allocation8 + $0x70] sm:$0xff] }
 0x105   : > { %693 = vmatprep.mubr.f32.mxu0 %v457_v53  ;;  %v1083_v53 = vld [vmem:[#allocation8 + $0x78] sm:$0xff] }
 0x108   : > { %694 = vmatmul.mubr.f32.gmra.mrb[4].mxu0 %v456_v54  ;;  %v499_v54 = vld [vmem:[%s4460_s22 + $0x178] sm:$0xff] }
 0x109   : > { %698 = vmatprep.mubr.f32.mxu0 %v459_v55  ;;  %v3564_v55 = vpack.c.bf16 %v1083_v53, %v1082_v52  ;;  %v558_v52 = vld [vmem:[%s4460_s22 + $0x350] sm:$0xff]  ;;  %v4605_v53 = vld [vmem:[%s5491_s3] ss:$0 sm:$0xff] }
 0x10b   : > { %3565 = vmatprep.subr.bf16.mxu1 %v3564_v55 }
 0x10c   : > { %699 = vmatmul.mubr.f32.gmra.mrb[6].mxu0 %v458_v56  ;;  %v498_v56 = vld [vmem:[%s4460_s22 + $0x170] sm:$0xff]  ;;  %3567 = vmatpush3.bf16.msra.mxu1 %v3564_v55 }
 0x10d   : > { %703 = vmatprep.mubr.f32.mxu0 %v461_v57  ;;  %v501_v57 = vld [vmem:[%s4460_s22 + $0x188] sm:$0xff] }
 0x110   : > { %704 = vmatmul.mubr.f32.gmra.mrb[8].mxu0 %v460_v58  ;;  %v500_v58 = vld [vmem:[%s4460_s22 + $0x180] sm:$0xff] }
 0x111   : > { %708 = vmatprep.mubr.f32.mxu0 %v463_v59  ;;  %v503_v59 = vld [vmem:[%s4460_s22 + $0x198] sm:$0xff] }
 0x114   : > { %709 = vmatmul.mubr.f32.gmra.mrb[10].mxu0 %v462_v60  ;;  %v502_v60 = vld [vmem:[%s4460_s22 + $0x190] sm:$0xff] }
 0x115   : > { %713 = vmatprep.mubr.f32.mxu0 %v465_v61  ;;  %v505_v61 = vld [vmem:[%s4460_s22 + $0x1a8] sm:$0xff] }
 0x118   : > { %714 = vmatmul.mubr.f32.gmra.mrb[12].mxu0 %v464_v62  ;;  %v504_v62 = vld [vmem:[%s4460_s22 + $0x1a0] sm:$0xff] }
 0x119   : > { %718 = vmatprep.mubr.f32.mxu0 %v467_v63  ;;  %v507_v63 = vld [vmem:[%s4460_s22 + $0x1b8] sm:$0xff] }
 0x11c   : > { %719 = vmatmul.mubr.f32.gmra.mrb[14].mxu0 %v466_v0  ;;  %v506_v0 = vld [vmem:[%s4460_s22 + $0x1b0] sm:$0xff] }
 0x11d   : > { %723 = vmatprep.mubr.f32.mxu0 %v469_v1  ;;  %v509_v1 = vld [vmem:[%s4460_s22 + $0x1c8] sm:$0xff] }
 0x120   : > { %724 = vmatmul.mubr.f32.gmra.mrb[16].mxu0 %v468_v2  ;;  %v508_v2 = vld [vmem:[%s4460_s22 + $0x1c0] sm:$0xff] }
 0x121   : > { %728 = vmatprep.mubr.f32.mxu0 %v471_v3  ;;  %v511_v3 = vld [vmem:[%s4460_s22 + $0x1d8] sm:$0xff] }
 0x124   : > { %729 = vmatmul.mubr.f32.gmra.mrb[18].mxu0 %v470_v4  ;;  %v510_v4 = vld [vmem:[%s4460_s22 + $0x1d0] sm:$0xff] }
 0x125   : > { %733 = vmatprep.mubr.f32.mxu0 %v473_v5  ;;  %v513_v5 = vld [vmem:[%s4460_s22 + $0x1e8] sm:$0xff] }
 0x128   : > { %734 = vmatmul.mubr.f32.gmra.mrb[20].mxu0 %v472_v6  ;;  %v512_v6 = vld [vmem:[%s4460_s22 + $0x1e0] sm:$0xff] }
 0x129   : > { %738 = vmatprep.mubr.f32.mxu0 %v475_v7  ;;  %v515_v7 = vld [vmem:[%s4460_s22 + $0x1f8] sm:$0xff] }
 0x12c   : > { %739 = vmatmul.mubr.f32.gmra.mrb[22].mxu0 %v474_v8  ;;  %v514_v8 = vld [vmem:[%s4460_s22 + $0x1f0] sm:$0xff] }
 0x12d   : > { %743 = vmatprep.mubr.f32.mxu0 %v477_v9  ;;  %v517_v9 = vld [vmem:[%s4460_s22 + $0x208] sm:$0xff] }
 0x130   : > { %744 = vmatmul.mubr.f32.gmra.mrb[24].mxu0 %v476_v10  ;;  %v516_v10 = vld [vmem:[%s4460_s22 + $0x200] sm:$0xff] }
 0x131   : > { %748 = vmatprep.mubr.f32.mxu0 %v479_v11  ;;  %v519_v11 = vld [vmem:[%s4460_s22 + $0x218] sm:$0xff] }
 0x134   : > { %749 = vmatmul.mubr.f32.gmra.mrb[26].mxu0 %v478_v12  ;;  %v518_v12 = vld [vmem:[%s4460_s22 + $0x210] sm:$0xff] }
 0x135   : > { %753 = vmatprep.mubr.f32.mxu0 %v481_v13  ;;  %v521_v13 = vld [vmem:[%s4460_s22 + $0x228] sm:$0xff] }
 0x138   : > { %754 = vmatmul.mubr.f32.gmra.mrb[28].mxu0 %v480_v14  ;;  %v520_v14 = vld [vmem:[%s4460_s22 + $0x220] sm:$0xff] }
 0x139   : > { %758 = vmatprep.mubr.f32.mxu0 %v483_v15  ;;  %v523_v15 = vld [vmem:[%s4460_s22 + $0x238] sm:$0xff] }
 0x13c   : > { %759 = vmatmul.mubr.f32.gmra.mrb[30].mxu0 %v482_v16  ;;  %v522_v16 = vld [vmem:[%s4460_s22 + $0x230] sm:$0xff] }
 0x13d   : > { %763 = vmatprep.mubr.f32.mxu0 %v485_v19  ;;  %v527_v19 = vld [vmem:[%s4460_s22 + $0x258] sm:$0xff] }
 0x140   : > { %764 = vmatmul.mubr.f32.gmra.mrb[32].mxu0 %v484_v21  ;;  %v529_v21 = vld [vmem:[%s4460_s22 + $0x268] sm:$0xff] }
 0x141   : > { %768 = vmatprep.mubr.f32.mxu0 %v487_v24  ;;  %v530_v24 = vld [vmem:[%s4460_s22 + $0x270] sm:$0xff] }
 0x144   : > { %769 = vmatmul.mubr.f32.gmra.mrb[34].mxu0 %v486_v26  ;;  %v532_v26 = vld [vmem:[%s4460_s22 + $0x280] sm:$0xff] }
 0x145   : > { %773 = vmatprep.mubr.f32.mxu0 %v489_v29  ;;  %v537_v29 = vld [vmem:[%s4460_s22 + $0x2a8] sm:$0xff] }
 0x148   : > { %774 = vmatmul.mubr.f32.gmra.mrb[36].mxu0 %v488_v31  ;;  %v539_v31 = vld [vmem:[%s4460_s22 + $0x2b8] sm:$0xff] }
 0x149   : > { %778 = vmatprep.mubr.f32.mxu0 %v491_v34  ;;  %v540_v34 = vld [vmem:[%s4460_s22 + $0x2c0] sm:$0xff] }
 0x14c   : > { %779 = vmatmul.mubr.f32.gmra.mrb[38].mxu0 %v490_v36  ;;  %v542_v36 = vld [vmem:[%s4460_s22 + $0x2d0] sm:$0xff] }
 0x14d   : > { %783 = vmatprep.mubr.f32.mxu0 %v493_v39  ;;  %v547_v39 = vld [vmem:[%s4460_s22 + $0x2f8] sm:$0xff] }
 0x150   : > { %784 = vmatmul.mubr.f32.gmra.mrb[40].mxu0 %v492_v41  ;;  %v549_v41 = vld [vmem:[%s4460_s22 + $0x308] sm:$0xff] }
 0x151   : > { %788 = vmatprep.mubr.f32.mxu0 %v495_v44  ;;  %v550_v44 = vld [vmem:[%s4460_s22 + $0x310] sm:$0xff] }
 0x154   : > { %789 = vmatmul.mubr.f32.gmra.mrb[42].mxu0 %v494_v46  ;;  %v552_v46 = vld [vmem:[%s4460_s22 + $0x320] sm:$0xff] }
 0x155   : > { %793 = vmatprep.mubr.f32.mxu0 %v497_v49  ;;  %v557_v49 = vld [vmem:[%s4460_s22 + $0x348] sm:$0xff] }
 0x158   : > { %794 = vmatmul.mubr.f32.gmra.mrb[44].mxu0 %v496_v51  ;;  %v559_v51 = vld [vmem:[%s4460_s22 + $0x358] sm:$0xff] }
 0x159   : > { %798 = vmatprep.mubr.f32.mxu0 %v499_v54  ;;  %v561_v54 = vld [vmem:[%s4460_s22 + $0x368] sm:$0xff] }
 0x15c   : > { %799 = vmatmul.mubr.f32.gmra.mrb[46].mxu0 %v498_v56 }
 0x15d   : > { %803 = vmatprep.mubr.f32.mxu0 %v501_v57 }
 0x160   : > { %804 = vmatmul.mubr.f32.gmra.mrb[48].mxu0 %v500_v58  ;;  %v560_v58 = vld [vmem:[%s4460_s22 + $0x360] sm:$0xff] }
 0x161   : > { %808 = vmatprep.mubr.f32.mxu0 %v503_v59 }
 0x164   : > { %809 = vmatmul.mubr.f32.gmra.mrb[50].mxu0 %v502_v60  ;;  %v563_v60 = vld [vmem:[%s4460_s22 + $0x378] sm:$0xff] }
 0x165   : > { %813 = vmatprep.mubr.f32.mxu0 %v505_v61 }
 0x168   : > { %814 = vmatmul.mubr.f32.gmra.mrb[52].mxu0 %v504_v62 }
 0x169   : > { %818 = vmatprep.mubr.f32.mxu0 %v507_v63 }
 0x16c   : > { %819 = vmatmul.mubr.f32.gmra.mrb[54].mxu0 %v506_v0  ;;  %v562_v0 = vld [vmem:[%s4460_s22 + $0x370] sm:$0xff] }
 0x16d   : > { %823 = vmatprep.mubr.f32.mxu0 %v509_v1 }
 0x170   : > { %824 = vmatmul.mubr.f32.gmra.mrb[56].mxu0 %v508_v2  ;;  %v565_v2 = vld [vmem:[%s4460_s22 + $0x388] sm:$0xff] }
 0x171   : > { %828 = vmatprep.mubr.f32.mxu0 %v511_v3 }
 0x174   : > { %829 = vmatmul.mubr.f32.gmra.mrb[58].mxu0 %v510_v4 }
 0x175   : > { %833 = vmatprep.mubr.f32.mxu0 %v513_v5 }
 0x178   : > { %834 = vmatmul.mubr.f32.gmra.mrb[60].mxu0 %v512_v6  ;;  %v564_v6 = vld [vmem:[%s4460_s22 + $0x380] sm:$0xff] }
 0x179   : > { %838 = vmatprep.mubr.f32.mxu0 %v515_v7 }
 0x17c   : > { %839 = vmatmul.mubr.f32.gmra.mrb[62].mxu0 %v514_v8  ;;  %v567_v8 = vld [vmem:[%s4460_s22 + $0x398] sm:$0xff] }
 0x17d   : > { %843 = vmatprep.mubr.f32.mxu0 %v517_v9 }
 0x180   : > { %844 = vmatmul.mubr.f32.gmra.mrb[64].mxu0 %v516_v10 }
 0x181   : > { %848 = vmatprep.mubr.f32.mxu0 %v519_v11 }
 0x184   : > { %849 = vmatmul.mubr.f32.gmra.mrb[66].mxu0 %v518_v12  ;;  %v566_v12 = vld [vmem:[%s4460_s22 + $0x390] sm:$0xff] }
 0x185   : > { %853 = vmatprep.mubr.f32.mxu0 %v521_v13 }
 0x188   : > { %854 = vmatmul.mubr.f32.gmra.mrb[68].mxu0 %v520_v14  ;;  %v569_v14 = vld [vmem:[%s4460_s22 + $0x3a8] sm:$0xff] }
 0x189   : > { %858 = vmatprep.mubr.f32.mxu0 %v523_v15 }
 0x18c   : > { %859 = vmatmul.mubr.f32.gmra.mrb[70].mxu0 %v522_v16 }
 0x18d   : > { %863 = vmatprep.mubr.f32.mxu0 %v525_v17 }
 0x190   : > { %864 = vmatmul.mubr.f32.gmra.mrb[72].mxu0 %v524_v18  ;;  %v568_v18 = vld [vmem:[%s4460_s22 + $0x3a0] sm:$0xff] }
 0x191   : > { %868 = vmatprep.mubr.f32.mxu0 %v527_v19 }
 0x194   : > { %869 = vmatmul.mubr.f32.gmra.mrb[74].mxu0 %v526_v20  ;;  %v571_v20 = vld [vmem:[%s4460_s22 + $0x3b8] sm:$0xff] }
 0x195   : > { %873 = vmatprep.mubr.f32.mxu0 %v529_v21 }
 0x198   : > { %874 = vmatmul.mubr.f32.gmra.mrb[76].mxu0 %v528_v22 }
 0x199   : > { %878 = vmatprep.mubr.f32.mxu0 %v531_v23 }
 0x19c   : > { %879 = vmatmul.mubr.f32.gmra.mrb[78].mxu0 %v530_v24  ;;  %v570_v24 = vld [vmem:[%s4460_s22 + $0x3b0] sm:$0xff] }
 0x19d   : > { %883 = vmatprep.mubr.f32.mxu0 %v533_v25 }
 0x1a0   : > { %884 = vmatmul.mubr.f32.gmra.mrb[80].mxu0 %v532_v26  ;;  %v573_v26 = vld [vmem:[%s4460_s22 + $0x3c8] sm:$0xff] }
 0x1a1   : > { %888 = vmatprep.mubr.f32.mxu0 %v535_v27 }
 0x1a4   : > { %889 = vmatmul.mubr.f32.gmra.mrb[82].mxu0 %v534_v28 }
 0x1a5   : > { %893 = vmatprep.mubr.f32.mxu0 %v537_v29 }
 0x1a8   : > { %894 = vmatmul.mubr.f32.gmra.mrb[84].mxu0 %v536_v30  ;;  %v572_v30 = vld [vmem:[%s4460_s22 + $0x3c0] sm:$0xff] }
 0x1a9   : > { %898 = vmatprep.mubr.f32.mxu0 %v539_v31 }
 0x1ac   : > { %899 = vmatmul.mubr.f32.gmra.mrb[86].mxu0 %v538_v32  ;;  %v575_v32 = vld [vmem:[%s4460_s22 + $0x3d8] sm:$0xff] }
 0x1ad   : > { %903 = vmatprep.mubr.f32.mxu0 %v541_v33  ;;  %v1540_v33 = vld [vmem:[#allocation10] sm:$0xff] }
 0x1b0   : > { %904 = vmatmul.mubr.f32.gmra.mrb[88].mxu0 %v540_v34  ;;  %v1541_v34 = vld [vmem:[#allocation10 + $0x8] sm:$0xff] }
 0x1b1   : > { %908 = vmatprep.mubr.f32.mxu0 %v543_v35 }
 0x1b4   : > { %909 = vmatmul.mubr.f32.gmra.mrb[90].mxu0 %v542_v36  ;;  %v3568_v36 = vpack.c.bf16 %v1541_v34, %v1540_v33  ;;  %v1547_v33 = vld [vmem:[#allocation10 + $0x38] sm:$0xff] }
 0x1b5   : > { %913 = vmatprep.mubr.f32.mxu0 %v545_v37 }
 0x1b6   : > { %3569 = vmatprep.subr.bf16.mxu1 %v3568_v36 }
 0x1b8   : > { %914 = vmatmul.mubr.f32.gmra.mrb[92].mxu0 %v544_v38 }
 0x1b9   : > { %918 = vmatprep.mubr.f32.mxu0 %v547_v39  ;;  %v574_v39 = vld [vmem:[%s4460_s22 + $0x3d0] sm:$0xff] }
 0x1bc   : > { %919 = vmatmul.mubr.f32.gmra.mrb[94].mxu0 %v546_v40 }
 0x1bd   : > { %923 = vmatprep.mubr.f32.mxu0 %v549_v41  ;;  %v577_v41 = vld [vmem:[%s4460_s22 + $0x3e8] sm:$0xff] }
 0x1c0   : > { %924 = vmatmul.mubr.f32.gmra.mrb[96].mxu0 %v548_v42 }
 0x1c1   : > { %928 = vmatprep.mubr.f32.mxu0 %v551_v43 }
 0x1c4   : > { %929 = vmatmul.mubr.f32.gmra.mrb[98].mxu0 %v550_v44 }
 0x1c5   : > { %933 = vmatprep.mubr.f32.mxu0 %v553_v45  ;;  %v576_v45 = vld [vmem:[%s4460_s22 + $0x3e0] sm:$0xff] }
 0x1c8   : > { %934 = vmatmul.mubr.f32.gmra.mrb[100].mxu0 %v552_v46 }
 0x1c9   : > { %938 = vmatprep.mubr.f32.mxu0 %v555_v47  ;;  %v579_v47 = vld [vmem:[%s4460_s22 + $0x3f8] sm:$0xff] }
 0x1cc   : > { %939 = vmatmul.mubr.f32.gmra.mrb[102].mxu0 %v554_v48 }
 0x1cd   : > { %943 = vmatprep.mubr.f32.mxu0 %v557_v49 }
 0x1d0   : > { %944 = vmatmul.mubr.f32.gmra.mrb[104].mxu0 %v556_v50 }
 0x1d1   : > { %948 = vmatprep.mubr.f32.mxu0 %v559_v51  ;;  %v578_v51 = vld [vmem:[%s4460_s22 + $0x3f0] sm:$0xff] }
 0x1d3   : > { %v685_v55 = vpop.f32.mrb[0].mxu0 }
 0x1d4   : > { %v687_v56 = vpop.f32.mrb[1].mxu0  ;;  %949 = vmatmul.mubr.f32.gmra.mrb[106].mxu0 %v558_v52  ;;  %v686_v57 = vadd.f32 %v4605_v53, %v685_v55 }
 0x1d5   : > { %953 = vmatprep.mubr.f32.mxu0 %v561_v54 }
 0x1d6   : > { %v1004_v59 = vmax.f32 %v686_v57, 0.0 }
 0x1d7   : > { %v690_v61 = vpop.f32.mrb[2].mxu0 }
 0x1d8   : > { %v691_v62 = vadd.f32 %v4605_v53, %v690_v61  ;;  %v692_v63 = vpop.f32.mrb[3].mxu0  ;;  %954 = vmatmul.mubr.f32.gmra.mrb[108].mxu0 %v560_v58  ;;  %3264 = vmatprep.mubr.f32.mxu1 %v1004_v59  ;;  %v1542_v58 = vld [vmem:[#allocation10 + $0x10] sm:$0xff]  ;;  %v1543_v59 = vld [vmem:[#allocation10 + $0x18] sm:$0xff] }
 0x1d9   : > { %958 = vmatprep.mubr.f32.mxu0 %v563_v60  ;;  %v3572_v61 = vpack.c.bf16 %v1543_v59, %v1542_v58 }
 0x1da   : > { %v1005_v1 = vmax.f32 %v691_v62, 0.0 }
 0x1db   : > { %v695_v3 = vpop.f32.mrb[4].mxu0 }
 0x1dc   : > { %v696_v4 = vadd.f32 %v4605_v53, %v695_v3  ;;  %v697_v5 = vpop.f32.mrb[5].mxu0  ;;  %959 = vmatmul.mubr.f32.gmra.mrb[110].mxu0 %v562_v0  ;;  %3265 = vmatmul.mubr.f32.vlgmr.msra.gmra.mrb[0].mxu1 %v1005_v1 }
 0x1dd   : > { %963 = vmatprep.mubr.f32.mxu0 %v565_v2  ;;  %3571 = vmatpush3.bf16.msra.mxu1 %v3568_v36 }
 0x1de   : > { %v1006_v7 = vmax.f32 %v696_v4, 0.0  ;;  %3573 = vmatprep.subr.bf16.mxu1 %v3572_v61 }
 0x1df   : > { %v700_v9 = vpop.f32.mrb[6].mxu0 }
 0x1e0   : > { %v701_v10 = vadd.f32 %v4605_v53, %v700_v9  ;;  %v702_v11 = vpop.f32.mrb[7].mxu0  ;;  %964 = vmatmul.mubr.f32.gmra.mrb[112].mxu0 %v564_v6  ;;  %3267 = vmatprep.mubr.f32.mxu1 %v1006_v7 }
 0x1e1   : > { %968 = vmatprep.mubr.f32.mxu0 %v567_v8  ;;  %3575 = vmatpush3.bf16.msra.mxu1 %v3572_v61 }
 0x1e2   : > { %v1007_v13 = vmax.f32 %v701_v10, 0.0 }
 0x1e3   : > { %v705_v15 = vpop.f32.mrb[8].mxu0 }
 0x1e4   : > { %v706_v16 = vadd.f32 %v4605_v53, %v705_v15  ;;  %v707_v17 = vpop.f32.mrb[9].mxu0  ;;  %969 = vmatmul.mubr.f32.gmra.mrb[114].mxu0 %v566_v12  ;;  %3268 = vmatmul.mubr.f32.gmra.mrb[2].mxu1 %v1007_v13  ;;  %v1544_v13 = vld [vmem:[#allocation10 + $0x20] sm:$0xff] }
 0x1e5   : > { %973 = vmatprep.mubr.f32.mxu0 %v569_v14  ;;  %v1545_v14 = vld [vmem:[#allocation10 + $0x28] sm:$0xff] }
 0x1e6   : > { %v1008_v19 = vmax.f32 %v706_v16, 0.0  ;;  %v3576_v16 = vpack.c.bf16 %v1545_v14, %v1544_v13 }
 0x1e7   : > { %v710_v21 = vpop.f32.mrb[10].mxu0 }
 0x1e8   : > { %v711_v22 = vadd.f32 %v4605_v53, %v710_v21  ;;  %v712_v23 = vpop.f32.mrb[11].mxu0  ;;  %974 = vmatmul.mubr.f32.gmra.mrb[116].mxu0 %v568_v18  ;;  %3270 = vmatprep.mubr.f32.mxu1 %v1008_v19 }
 0x1e9   : > { %978 = vmatprep.mubr.f32.mxu0 %v571_v20  ;;  %3577 = vmatprep.subr.bf16.mxu1 %v3576_v16 }
 0x1ea   : > { %v1009_v25 = vmax.f32 %v711_v22, 0.0  ;;  %3579 = vmatpush3.bf16.msra.mxu1 %v3576_v16 }
 0x1eb   : > { %v715_v27 = vpop.f32.mrb[12].mxu0 }
 0x1ec   : > { %v716_v28 = vadd.f32 %v4605_v53, %v715_v27  ;;  %v717_v29 = vpop.f32.mrb[13].mxu0  ;;  %979 = vmatmul.mubr.f32.gmra.mrb[118].mxu0 %v570_v24  ;;  %3271 = vmatmul.mubr.f32.gmra.mrb[4].mxu1 %v1009_v25 }
 0x1ed   : > { %983 = vmatprep.mubr.f32.mxu0 %v573_v26 }
 0x1ee   : > { %v1010_v31 = vmax.f32 %v716_v28, 0.0 }
 0x1ef   : > { %v720_v35 = vpop.f32.mrb[14].mxu0 }
 0x1f0   : > { %v721_v37 = vadd.f32 %v4605_v53, %v720_v35  ;;  %v722_v38 = vpop.f32.mrb[15].mxu0  ;;  %984 = vmatmul.mubr.f32.gmra.mrb[120].mxu0 %v572_v30  ;;  %3273 = vmatprep.mubr.f32.mxu1 %v1010_v31 }
 0x1f1   : > { %988 = vmatprep.mubr.f32.mxu0 %v575_v32  ;;  %v1546_v32 = vld [vmem:[#allocation10 + $0x30] sm:$0xff] }
 0x1f2   : > { %v1011_v40 = vmax.f32 %v721_v37, 0.0  ;;  %v3580_v35 = vpack.c.bf16 %v1547_v33, %v1546_v32  ;;  %v1554_v32 = vld [vmem:[#allocation10 + $0x70] sm:$0xff]  ;;  %v1555_v33 = vld [vmem:[#allocation10 + $0x78] sm:$0xff] }
 0x1f3   : > { %v725_v42 = vpop.f32.mrb[16].mxu0 }
 0x1f4   : > { %v726_v43 = vadd.f32 %v4605_v53, %v725_v42  ;;  %v727_v44 = vpop.f32.mrb[17].mxu0  ;;  %989 = vmatmul.mubr.f32.gmra.mrb[122].mxu0 %v574_v39  ;;  %3274 = vmatmul.mubr.f32.gmra.mrb[6].mxu1 %v1011_v40 }
 0x1f5   : > { %993 = vmatprep.mubr.f32.mxu0 %v577_v41  ;;  %3581 = vmatprep.subr.bf16.mxu1 %v3580_v35 }
 0x1f6   : > { %v1012_v46 = vmax.f32 %v726_v43, 0.0  ;;  %3583 = vmatpush3.bf16.msra.mxu1 %v3580_v35  ;;  %v3596_v35 = vpack.c.bf16 %v1555_v33, %v1554_v32 }
 0x1f7   : > { %v730_v48 = vpop.f32.mrb[18].mxu0 }
 0x1f8   : > { %v731_v49 = vadd.f32 %v4605_v53, %v730_v48  ;;  %v732_v50 = vpop.f32.mrb[19].mxu0  ;;  %994 = vmatmul.mubr.f32.gmra.mrb[124].mxu0 %v576_v45  ;;  %3276 = vmatprep.mubr.f32.mxu1 %v1012_v46 }
 0x1f9   : > { %998 = vmatprep.mubr.f32.mxu0 %v579_v47 }
 0x1fa   : > { %v1013_v52 = vmax.f32 %v731_v49, 0.0 }
 0x1fb   : > { %v735_v54 = vpop.f32.mrb[20].mxu0 }
 0x1fc   : > { %v736_v55 = vadd.f32 %v4605_v53, %v735_v54  ;;  %v737_v56 = vpop.f32.mrb[21].mxu0  ;;  %999 = vmatmul.mubr.f32.gmra.mrb[126].mxu0 %v578_v51  ;;  %3277 = vmatmul.mubr.f32.gmra.mrb[8].mxu1 %v1013_v52  ;;  %v1548_v51 = vld [vmem:[#allocation10 + $0x40] sm:$0xff]  ;;  %v1549_v52 = vld [vmem:[#allocation10 + $0x48] sm:$0xff] }
 0x1fe   : > { %v1014_v57 = vmax.f32 %v736_v55, 0.0  ;;  %v3584_v55 = vpack.c.bf16 %v1549_v52, %v1548_v51 }
 0x1ff   : > { %v740_v60 = vpop.f32.mrb[22].mxu0 }
 0x200   : > { %v741_v62 = vadd.f32 %v4605_v53, %v740_v60  ;;  %v742_v63 = vpop.f32.mrb[23].mxu0  ;;  %3279 = vmatprep.mubr.f32.mxu1 %v1014_v57  ;;  %3585 = vmatprep.subr.bf16.mxu1 %v3584_v55 }
 0x201   : > { %3587 = vmatpush3.bf16.msra.mxu1 %v3584_v55 }
 0x202   : > { %v1015_v0 = vmax.f32 %v741_v62, 0.0 }
 0x203   : > { %v745_v1 = vpop.f32.mrb[24].mxu0 }
 0x204   : > { %v746_v2 = vadd.f32 %v4605_v53, %v745_v1  ;;  %v747_v3 = vpop.f32.mrb[25].mxu0  ;;  %3280 = vmatmul.mubr.f32.gmra.mrb[10].mxu1 %v1015_v0 }
 0x206   : > { %v1016_v4 = vmax.f32 %v746_v2, 0.0 }
 0x207   : > { %v750_v5 = vpop.f32.mrb[26].mxu0 }
 0x208   : > { %v751_v6 = vadd.f32 %v4605_v53, %v750_v5  ;;  %v752_v7 = vpop.f32.mrb[27].mxu0  ;;  %3282 = vmatprep.mubr.f32.mxu1 %v1016_v4 }
 0x209   : > { %v1550_v7 = vld [vmem:[#allocation10 + $0x50] sm:$0xff] }
 0x20a   : > { %v1017_v8 = vmax.f32 %v751_v6, 0.0 }
 0x20b   : > { %v755_v9 = vpop.f32.mrb[28].mxu0 }
 0x20c   : > { %v756_v10 = vadd.f32 %v4605_v53, %v755_v9  ;;  %v757_v11 = vpop.f32.mrb[29].mxu0  ;;  %3283 = vmatmul.mubr.f32.gmra.mrb[12].mxu1 %v1017_v8  ;;  %v1551_v8 = vld [vmem:[#allocation10 + $0x58] sm:$0xff] }
 0x20e   : > { %v1018_v12 = vmax.f32 %v756_v10, 0.0  ;;  %v3588_v10 = vpack.c.bf16 %v1551_v8, %v1550_v7 }
 0x20f   : > { %v760_v15 = vpop.f32.mrb[30].mxu0 }
 0x210   : > { %v761_v17 = vadd.f32 %v4605_v53, %v760_v15  ;;  %v762_v18 = vpop.f32.mrb[31].mxu0  ;;  %3285 = vmatprep.mubr.f32.mxu1 %v1018_v12  ;;  %3589 = vmatprep.subr.bf16.mxu1 %v3588_v10 }
 0x211   : > { %3591 = vmatpush3.bf16.msra.mxu1 %v3588_v10 }
 0x212   : > { %v1019_v19 = vmax.f32 %v761_v17, 0.0 }
 0x213   : > { %v765_v20 = vpop.f32.mrb[32].mxu0 }
 0x214   : > { %v766_v21 = vadd.f32 %v4605_v53, %v765_v20  ;;  %v767_v22 = vpop.f32.mrb[33].mxu0  ;;  %3286 = vmatmul.mubr.f32.gmra.mrb[14].mxu1 %v1019_v19 }
 0x216   : > { %v1020_v23 = vmax.f32 %v766_v21, 0.0 }
 0x217   : > { %v770_v24 = vpop.f32.mrb[34].mxu0 }
 0x218   : > { %v771_v25 = vadd.f32 %v4605_v53, %v770_v24  ;;  %v772_v26 = vpop.f32.mrb[35].mxu0  ;;  %3288 = vmatprep.mubr.f32.mxu1 %v1020_v23 }
 0x219   : > { %v1553_v26 = vld [vmem:[#allocation10 + $0x68] sm:$0xff] }
 0x21a   : > { %v1021_v27 = vmax.f32 %v771_v25, 0.0  ;;  %v1552_v25 = vld [vmem:[#allocation10 + $0x60] sm:$0xff] }
 0x21b   : > { %v775_v28 = vpop.f32.mrb[36].mxu0 }
 0x21c   : > { %v776_v29 = vadd.f32 %v4605_v53, %v775_v28  ;;  %v777_v30 = vpop.f32.mrb[37].mxu0  ;;  %3289 = vmatmul.mubr.f32.gmra.mrb[16].mxu1 %v1021_v27  ;;  %v3592_v28 = vpack.c.bf16 %v1553_v26, %v1552_v25 }
 0x21e   : > { %v1022_v31 = vmax.f32 %v776_v29, 0.0  ;;  %3593 = vmatprep.subr.bf16.mxu1 %v3592_v28 }
 0x21f   : > { %v780_v34 = vpop.f32.mrb[38].mxu0  ;;  %3595 = vmatpush3.bf16.msra.mxu1 %v3592_v28 }
 0x220   : > { %v781_v36 = vadd.f32 %v4605_v53, %v780_v34  ;;  %v782_v37 = vpop.f32.mrb[39].mxu0  ;;  %3291 = vmatprep.mubr.f32.mxu1 %v1022_v31  ;;  %3597 = vmatprep.subr.bf16.mxu1 %v3596_v35 }
 0x222   : > { %v1023_v38 = vmax.f32 %v781_v36, 0.0 }
 0x223   : > { %v785_v39 = vpop.f32.mrb[40].mxu0  ;;  %3599 = vmatpush3.bf16.msra.mxu1 %v3596_v35 }
 0x224   : > { %v786_v40 = vadd.f32 %v4605_v53, %v785_v39  ;;  %v787_v41 = vpop.f32.mrb[41].mxu0  ;;  %3292 = vmatmul.mubr.f32.gmra.mrb[18].mxu1 %v1023_v38 }
 0x226   : > { %v1024_v42 = vmax.f32 %v786_v40, 0.0 }
 0x227   : > { %v790_v43 = vpop.f32.mrb[42].mxu0 }
 0x228   : > { %v791_v44 = vadd.f32 %v4605_v53, %v790_v43  ;;  %v792_v45 = vpop.f32.mrb[43].mxu0  ;;  %3294 = vmatprep.mubr.f32.mxu1 %v1024_v42 }
 0x22a   : > { %v1025_v46 = vmax.f32 %v791_v44, 0.0 }
 0x22b   : > { %v795_v47 = vpop.f32.mrb[44].mxu0 }
 0x22c   : > { %v796_v48 = vadd.f32 %v4605_v53, %v795_v47  ;;  %v797_v49 = vpop.f32.mrb[45].mxu0  ;;  %3295 = vmatmul.mubr.f32.gmra.mrb[20].mxu1 %v1025_v46 }
 0x22e   : > { %v1026_v50 = vmax.f32 %v796_v48, 0.0 }
 0x22f   : > { %v800_v54 = vpop.f32.mrb[46].mxu0 }
 0x230   : > { %v801_v56 = vadd.f32 %v4605_v53, %v800_v54  ;;  %v802_v57 = vpop.f32.mrb[47].mxu0  ;;  %3297 = vmatprep.mubr.f32.mxu1 %v1026_v50 }
 0x232   : > { %v1027_v58 = vmax.f32 %v801_v56, 0.0 }
 0x233   : > { %v805_v59 = vpop.f32.mrb[48].mxu0 }
 0x234   : > { %v806_v60 = vadd.f32 %v4605_v53, %v805_v59  ;;  %v807_v61 = vpop.f32.mrb[49].mxu0  ;;  %3298 = vmatmul.mubr.f32.gmra.mrb[22].mxu1 %v1027_v58 }
 0x236   : > { %v1028_v62 = vmax.f32 %v806_v60, 0.0 }
 0x237   : > { %v810_v63 = vpop.f32.mrb[50].mxu0 }
 0x238   : > { %v811_v0 = vadd.f32 %v4605_v53, %v810_v63  ;;  %v812_v1 = vpop.f32.mrb[51].mxu0  ;;  %3300 = vmatprep.mubr.f32.mxu1 %v1028_v62 }
 0x23a   : > { %v1029_v2 = vmax.f32 %v811_v0, 0.0 }
 0x23b   : > { %v815_v3 = vpop.f32.mrb[52].mxu0 }
 0x23c   : > { %v816_v4 = vadd.f32 %v4605_v53, %v815_v3  ;;  %v817_v5 = vpop.f32.mrb[53].mxu0  ;;  %3301 = vmatmul.mubr.f32.gmra.mrb[24].mxu1 %v1029_v2 }
 0x23e   : > { %v1030_v6 = vmax.f32 %v816_v4, 0.0 }
 0x23f   : > { %v820_v9 = vpop.f32.mrb[54].mxu0 }
 0x240   : > { %v821_v11 = vadd.f32 %v4605_v53, %v820_v9  ;;  %v822_v12 = vpop.f32.mrb[55].mxu0  ;;  %3303 = vmatprep.mubr.f32.mxu1 %v1030_v6 }
 0x242   : > { %v1031_v13 = vmax.f32 %v821_v11, 0.0 }
 0x243   : > { %v825_v14 = vpop.f32.mrb[56].mxu0 }
 0x244   : > { %v826_v15 = vadd.f32 %v4605_v53, %v825_v14  ;;  %v827_v16 = vpop.f32.mrb[57].mxu0  ;;  %3304 = vmatmul.mubr.f32.gmra.mrb[26].mxu1 %v1031_v13 }
 0x246   : > { %v1032_v17 = vmax.f32 %v826_v15, 0.0 }
 0x247   : > { %v830_v18 = vpop.f32.mrb[58].mxu0 }
 0x248   : > { %v831_v19 = vadd.f32 %v4605_v53, %v830_v18  ;;  %v832_v20 = vpop.f32.mrb[59].mxu0  ;;  %3306 = vmatprep.mubr.f32.mxu1 %v1032_v17 }
 0x24a   : > { %v1033_v21 = vmax.f32 %v831_v19, 0.0 }
 0x24b   : > { %v835_v22 = vpop.f32.mrb[60].mxu0 }
 0x24c   : > { %v836_v23 = vadd.f32 %v4605_v53, %v835_v22  ;;  %v837_v24 = vpop.f32.mrb[61].mxu0  ;;  %3307 = vmatmul.mubr.f32.gmra.mrb[28].mxu1 %v1033_v21 }
 0x24e   : > { %v1034_v27 = vmax.f32 %v836_v23, 0.0 }
 0x24f   : > { %v840_v29 = vpop.f32.mrb[62].mxu0 }
 0x250   : > { %v841_v30 = vadd.f32 %v4605_v53, %v840_v29  ;;  %v842_v31 = vpop.f32.mrb[63].mxu0  ;;  %3309 = vmatprep.mubr.f32.mxu1 %v1034_v27 }
 0x252   : > { %v1035_v34 = vmax.f32 %v841_v30, 0.0 }
 0x253   : > { %v845_v36 = vpop.f32.mrb[64].mxu0 }
 0x254   : > { %v846_v37 = vadd.f32 %v4605_v53, %v845_v36  ;;  %v847_v38 = vpop.f32.mrb[65].mxu0  ;;  %3310 = vmatmul.mubr.f32.gmra.mrb[30].mxu1 %v1035_v34 }
 0x256   : > { %v1036_v39 = vmax.f32 %v846_v37, 0.0 }
 0x257   : > { %v850_v40 = vpop.f32.mrb[66].mxu0 }
 0x258   : > { %v851_v41 = vadd.f32 %v4605_v53, %v850_v40  ;;  %v852_v42 = vpop.f32.mrb[67].mxu0  ;;  %3312 = vmatprep.mubr.f32.mxu1 %v1036_v39 }
 0x25a   : > { %v1037_v43 = vmax.f32 %v851_v41, 0.0 }
 0x25b   : > { %v855_v44 = vpop.f32.mrb[68].mxu0 }
 0x25c   : > { %v856_v45 = vadd.f32 %v4605_v53, %v855_v44  ;;  %v857_v46 = vpop.f32.mrb[69].mxu0  ;;  %3313 = vmatmul.mubr.f32.gmra.mrb[32].mxu1 %v1037_v43 }
 0x25e   : > { %v1038_v47 = vmax.f32 %v856_v45, 0.0 }
 0x25f   : > { %v860_v48 = vpop.f32.mrb[70].mxu0 }
 0x260   : > { %v861_v49 = vadd.f32 %v4605_v53, %v860_v48  ;;  %v862_v50 = vpop.f32.mrb[71].mxu0  ;;  %3315 = vmatprep.mubr.f32.mxu1 %v1038_v47 }
 0x261   : > { %v2015_v50 = vld [vmem:[#allocation11 + $0x18] sm:$0xff] }
 0x262   : > { %v1039_v51 = vmax.f32 %v861_v49, 0.0  ;;  %v2013_v49 = vld [vmem:[#allocation11 + $0x8] sm:$0xff] }
 0x263   : > { %v865_v52 = vpop.f32.mrb[72].mxu0 }
 0x264   : > { %v866_v54 = vadd.f32 %v4605_v53, %v865_v52  ;;  %v867_v55 = vpop.f32.mrb[73].mxu0  ;;  %3316 = vmatmul.mubr.f32.gmra.mrb[34].mxu1 %v1039_v51  ;;  %v3600_v52 = vpack.c.bf16 %v2015_v50, %v2013_v49 }
 0x266   : > { %v1040_v56 = vmax.f32 %v866_v54, 0.0  ;;  %3601 = vmatprep.subr.bf16.mxu0 %v3600_v52  ;;  %3632 = vmatprep.subr.bf16.mxu1 %v3600_v52 }
 0x267   : > { %v870_v57 = vpop.f32.mrb[74].mxu0 }
 0x268   : > { %v871_v58 = vadd.f32 %v4605_v53, %v870_v57  ;;  %v872_v59 = vpop.f32.mrb[75].mxu0  ;;  %3318 = vmatprep.mubr.f32.mxu1 %v1040_v56  ;;  %v2012_v57 = vld [vmem:[#allocation11] sm:$0xff] }
 0x26a   : > { %v1041_v60 = vmax.f32 %v871_v58, 0.0  ;;  %v2014_v58 = vld [vmem:[#allocation11 + $0x10] sm:$0xff] }
 0x26b   : > { %v875_v61 = vpop.f32.mrb[76].mxu0 }
 0x26c   : > { %v876_v62 = vadd.f32 %v4605_v53, %v875_v61  ;;  %v877_v63 = vpop.f32.mrb[77].mxu0  ;;  %3319 = vmatmul.mubr.f32.gmra.mrb[36].mxu1 %v1041_v60  ;;  %v4679_v60 = vpack.c.bf16 %v2014_v58, %v2012_v57 }
 0x26e   : > { %v1042_v0 = vmax.f32 %v876_v62, 0.0  ;;  %3603 = vmatpush1.bf16.msra.mxu0 %v4679_v60 }
 0x26f   : > { %v880_v1 = vpop.f32.mrb[78].mxu0 }
 0x270   : > { %v881_v2 = vadd.f32 %v4605_v53, %v880_v1  ;;  %v882_v3 = vpop.f32.mrb[79].mxu0  ;;  %3321 = vmatprep.mubr.f32.mxu1 %v1042_v0 }
 0x272   : > { %v1043_v4 = vmax.f32 %v881_v2, 0.0 }
 0x273   : > { %v885_v5 = vpop.f32.mrb[80].mxu0 }
 0x274   : > { %v886_v6 = vadd.f32 %v4605_v53, %v885_v5  ;;  %v887_v7 = vpop.f32.mrb[81].mxu0  ;;  %3322 = vmatmul.mubr.f32.gmra.mrb[38].mxu1 %v1043_v4 }
 0x276   : > { %v1044_v8 = vmax.f32 %v886_v6, 0.0 }
 0x277   : > { %v890_v9 = vpop.f32.mrb[82].mxu0 }
 0x278   : > { %v891_v10 = vadd.f32 %v4605_v53, %v890_v9  ;;  %v892_v11 = vpop.f32.mrb[83].mxu0  ;;  %3324 = vmatprep.mubr.f32.mxu1 %v1044_v8 }
 0x27a   : > { %v1045_v12 = vmax.f32 %v891_v10, 0.0 }
 0x27b   : > { %v895_v13 = vpop.f32.mrb[84].mxu0 }
 0x27c   : > { %v896_v14 = vadd.f32 %v4605_v53, %v895_v13  ;;  %v897_v15 = vpop.f32.mrb[85].mxu0  ;;  %3325 = vmatmul.mubr.f32.gmra.mrb[40].mxu1 %v1045_v12 }
 0x27e   : > { %v1046_v16 = vmax.f32 %v896_v14, 0.0 }
 0x27f   : > { %v900_v17 = vpop.f32.mrb[86].mxu0 }
 0x280   : > { %v901_v18 = vadd.f32 %v4605_v53, %v900_v17  ;;  %v902_v19 = vpop.f32.mrb[87].mxu0  ;;  %3327 = vmatprep.mubr.f32.mxu1 %v1046_v16 }
 0x282   : > { %v1047_v20 = vmax.f32 %v901_v18, 0.0 }
 0x283   : > { %v905_v21 = vpop.f32.mrb[88].mxu0 }
 0x284   : > { %v906_v22 = vadd.f32 %v4605_v53, %v905_v21  ;;  %v907_v23 = vpop.f32.mrb[89].mxu0  ;;  %3328 = vmatmul.mubr.f32.gmra.mrb[42].mxu1 %v1047_v20 }
 0x286   : > { %v1048_v24 = vmax.f32 %v906_v22, 0.0 }
 0x287   : > { %v910_v25 = vpop.f32.mrb[90].mxu0 }
 0x288   : > { %v911_v26 = vadd.f32 %v4605_v53, %v910_v25  ;;  %v912_v27 = vpop.f32.mrb[91].mxu0  ;;  %3330 = vmatprep.mubr.f32.mxu1 %v1048_v24 }
 0x28a   : > { %v1049_v28 = vmax.f32 %v911_v26, 0.0 }
 0x28b   : > { %v915_v29 = vpop.f32.mrb[92].mxu0 }
 0x28c   : > { %v916_v30 = vadd.f32 %v4605_v53, %v915_v29  ;;  %v917_v31 = vpop.f32.mrb[93].mxu0  ;;  %3331 = vmatmul.mubr.f32.gmra.mrb[44].mxu1 %v1049_v28  ;;  %v2017_v28 = vld [vmem:[#allocation11 + $0x28] sm:$0xff]  ;;  %v2019_v29 = vld [vmem:[#allocation11 + $0x38] sm:$0xff] }
 0x28e   : > { %v1050_v32 = vmax.f32 %v916_v30, 0.0 }
 0x28f   : > { %v920_v33 = vpop.f32.mrb[94].mxu0 }
 0x290   : > { %v921_v34 = vadd.f32 %v4605_v53, %v920_v33  ;;  %v922_v35 = vpop.f32.mrb[95].mxu0  ;;  %3333 = vmatprep.mubr.f32.mxu1 %v1050_v32  ;;  %v3604_v32 = vpack.c.bf16 %v2019_v29, %v2017_v28 }
 0x292   : > { %v1051_v36 = vmax.f32 %v921_v34, 0.0  ;;  %3605 = vmatprep.subr.bf16.mxu0 %v3604_v32 }
 0x293   : > { %v925_v37 = vpop.f32.mrb[96].mxu0 }
 0x294   : > { %v926_v38 = vadd.f32 %v4605_v53, %v925_v37  ;;  %v927_v39 = vpop.f32.mrb[97].mxu0  ;;  %3334 = vmatmul.mubr.f32.gmra.mrb[46].mxu1 %v1051_v36  ;;  %v2016_v37 = vld [vmem:[#allocation11 + $0x20] sm:$0xff] }
 0x296   : > { %v1052_v40 = vmax.f32 %v926_v38, 0.0  ;;  %v2018_v38 = vld [vmem:[#allocation11 + $0x30] sm:$0xff] }
 0x297   : > { %v930_v41 = vpop.f32.mrb[98].mxu0 }
 0x298   : > { %v931_v42 = vadd.f32 %v4605_v53, %v930_v41  ;;  %v932_v43 = vpop.f32.mrb[99].mxu0  ;;  %3336 = vmatprep.mubr.f32.mxu1 %v1052_v40  ;;  %v3606_v40 = vpack.c.bf16 %v2018_v38, %v2016_v37 }
 0x29a   : > { %v1053_v44 = vmax.f32 %v931_v42, 0.0  ;;  %3607 = vmatpush1.bf16.msra.mxu0 %v3606_v40 }
 0x29b   : > { %v935_v45 = vpop.f32.mrb[100].mxu0 }
 0x29c   : > { %v936_v46 = vadd.f32 %v4605_v53, %v935_v45  ;;  %v937_v47 = vpop.f32.mrb[101].mxu0  ;;  %3337 = vmatmul.mubr.f32.gmra.mrb[48].mxu1 %v1053_v44 }
 0x29e   : > { %v1054_v48 = vmax.f32 %v936_v46, 0.0 }
 0x29f   : > { %v940_v51 = vpop.f32.mrb[102].mxu0 }
 0x2a0   : > { %v941_v54 = vadd.f32 %v4605_v53, %v940_v51  ;;  %v942_v55 = vpop.f32.mrb[103].mxu0  ;;  %3339 = vmatprep.mubr.f32.mxu1 %v1054_v48  ;;  %v4697_v51 = vld [vmem:[%s5493_s5] ss:$0 sm:$0xff] }
 0x2a2   : > { %v1055_v56 = vmax.f32 %v941_v54, 0.0 }
 0x2a3   : > { %v945_v59 = vpop.f32.mrb[104].mxu0 }
 0x2a4   : > { %v946_v61 = vadd.f32 %v4605_v53, %v945_v59  ;;  %v947_v62 = vpop.f32.mrb[105].mxu0  ;;  %3340 = vmatmul.mubr.f32.gmra.mrb[50].mxu1 %v1055_v56 }
 0x2a6   : > { %v1056_v63 = vmax.f32 %v946_v61, 0.0 }
 0x2a7   : > { %v950_v0 = vpop.f32.mrb[106].mxu0 }
 0x2a8   : > { %v951_v1 = vadd.f32 %v4605_v53, %v950_v0  ;;  %v952_v2 = vpop.f32.mrb[107].mxu0  ;;  %3342 = vmatprep.mubr.f32.mxu1 %v1056_v63 }
 0x2aa   : > { %v1057_v3 = vmax.f32 %v951_v1, 0.0 }
 0x2ab   : > { %v955_v4 = vpop.f32.mrb[108].mxu0 }
 0x2ac   : > { %v956_v5 = vadd.f32 %v4605_v53, %v955_v4  ;;  %v957_v6 = vpop.f32.mrb[109].mxu0  ;;  %3343 = vmatmul.mubr.f32.gmra.mrb[52].mxu1 %v1057_v3 }
 0x2ae   : > { %v1058_v7 = vmax.f32 %v956_v5, 0.0 }
 0x2af   : > { %v960_v8 = vpop.f32.mrb[110].mxu0  ;;  %v4685_v9 = vpop.f32.mrb[0].mxu1 }
 0x2b0   : > { %v961_v10 = vadd.f32 %v4605_v53, %v960_v8  ;;  %v962_v11 = vpop.f32.mrb[111].mxu0  ;;  %v1157_v12 = vpop.f32.mrb[1].mxu1  ;;  %3345 = vmatprep.mubr.f32.mxu1 %v1058_v7  ;;  %v1163_v63 = vadd.f32 %v4685_v9, %v4697_v51 }
 0x2b1   : > { %v1158_v56 = vadd.f32 %v4697_v51, %v1157_v12 }
 0x2b2   : > { %v1059_v13 = vmax.f32 %v961_v10, 0.0  ;;  %v1477_v3 = vmax.f32 %v1163_v63, 0.0  ;;  %v2024_v63 = vld [vmem:[#allocation11 + $0x60] sm:$0xff] }
 0x2b3   : > { %v965_v14 = vpop.f32.mrb[112].mxu0  ;;  %v1476_v1 = vmax.f32 %v1158_v56, 0.0  ;;  %v2027_v56 = vld [vmem:[#allocation11 + $0x78] sm:$0xff] }
 0x2b4   : > { %v966_v15 = vadd.f32 %v4605_v53, %v965_v14  ;;  %v967_v16 = vpop.f32.mrb[113].mxu0  ;;  %3346 = vmatmul.mubr.f32.gmra.mrb[54].mxu1 %v1059_v13  ;;  %v2021_v14 = vld [vmem:[#allocation11 + $0x48] sm:$0xff] }
 0x2b6   : > { %v1060_v17 = vmax.f32 %v966_v15, 0.0  ;;  %v2023_v15 = vld [vmem:[#allocation11 + $0x58] sm:$0xff] }
 0x2b7   : > { %v970_v18 = vpop.f32.mrb[114].mxu0  ;;  %v3269_v19 = vpop.f32.mrb[2].mxu1 }
 0x2b8   : > { %v971_v20 = vadd.f32 %v4605_v53, %v970_v18  ;;  %v972_v21 = vpop.f32.mrb[115].mxu0  ;;  %v1167_v22 = vpop.f32.mrb[3].mxu1  ;;  %3348 = vmatprep.mubr.f32.mxu1 %v1060_v17  ;;  %v1173_v4 = vadd.f32 %v3269_v19, %v4697_v51 }
 0x2b9   : > { %v1168_v2 = vadd.f32 %v4697_v51, %v1167_v22  ;;  %v2020_v22 = vld [vmem:[#allocation11 + $0x40] sm:$0xff] }
 0x2ba   : > { %v1061_v23 = vmax.f32 %v971_v20, 0.0  ;;  %v1479_v8 = vmax.f32 %v1173_v4, 0.0 }
 0x2bb   : > { %v975_v24 = vpop.f32.mrb[116].mxu0  ;;  %v1478_v5 = vmax.f32 %v1168_v2, 0.0 }
 0x2bc   : > { %v976_v25 = vadd.f32 %v4605_v53, %v975_v24  ;;  %v977_v26 = vpop.f32.mrb[117].mxu0  ;;  %3349 = vmatmul.mubr.f32.gmra.mrb[56].mxu1 %v1061_v23  ;;  %v2022_v23 = vld [vmem:[#allocation11 + $0x50] sm:$0xff] }
 0x2bd   : > { %v3610_v26 = vpack.c.bf16 %v2022_v23, %v2020_v22 }
 0x2be   : > { %v1062_v27 = vmax.f32 %v976_v25, 0.0 }
 0x2bf   : > { %v980_v30 = vpop.f32.mrb[118].mxu0  ;;  %v3272_v31 = vpop.f32.mrb[4].mxu1 }
 0x2c0   : > { %v981_v33 = vadd.f32 %v4605_v53, %v980_v30  ;;  %v982_v34 = vpop.f32.mrb[119].mxu0  ;;  %v1177_v35 = vpop.f32.mrb[5].mxu1  ;;  %3351 = vmatprep.mubr.f32.mxu1 %v1062_v27  ;;  %v1183_v9 = vadd.f32 %v3272_v31, %v4697_v51 }
 0x2c1   : > { %v1178_v6 = vadd.f32 %v4697_v51, %v1177_v35 }
 0x2c2   : > { %v1063_v36 = vmax.f32 %v981_v33, 0.0  ;;  %v1481_v12 = vmax.f32 %v1183_v9, 0.0 }
 0x2c3   : > { %v985_v39 = vpop.f32.mrb[120].mxu0  ;;  %v1480_v10 = vmax.f32 %v1178_v6, 0.0 }
 0x2c4   : > { %v986_v41 = vadd.f32 %v4605_v53, %v985_v39  ;;  %v987_v42 = vpop.f32.mrb[121].mxu0  ;;  %3352 = vmatmul.mubr.f32.gmra.mrb[58].mxu1 %v1063_v36 }
 0x2c6   : > { %v1064_v43 = vmax.f32 %v986_v41, 0.0 }
 0x2c7   : > { %v990_v44 = vpop.f32.mrb[122].mxu0  ;;  %v3275_v45 = vpop.f32.mrb[6].mxu1 }
 0x2c8   : > { %v991_v46 = vadd.f32 %v4605_v53, %v990_v44  ;;  %v992_v47 = vpop.f32.mrb[123].mxu0  ;;  %v1187_v48 = vpop.f32.mrb[7].mxu1  ;;  %3354 = vmatprep.mubr.f32.mxu1 %v1064_v43  ;;  %v1193_v13 = vadd.f32 %v3275_v45, %v4697_v51 }
 0x2c9   : > { %v1188_v11 = vadd.f32 %v4697_v51, %v1187_v48 }
 0x2ca   : > { %v1065_v49 = vmax.f32 %v991_v46, 0.0  ;;  %v1483_v20 = vmax.f32 %v1193_v13, 0.0 }
 0x2cb   : > { %v995_v50 = vpop.f32.mrb[124].mxu0  ;;  %v1482_v16 = vmax.f32 %v1188_v11, 0.0 }
 0x2cc   : > { %v996_v52 = vadd.f32 %v4605_v53, %v995_v50  ;;  %v997_v54 = vpop.f32.mrb[125].mxu0  ;;  %3355 = vmatmul.mubr.f32.gmra.mrb[60].mxu1 %v1065_v49 }
 0x2ce   : > { %v1066_v55 = vmax.f32 %v996_v52, 0.0 }
 0x2cf   : > { %v1000_v57 = vpop.f32.mrb[126].mxu0  ;;  %v3278_v58 = vpop.f32.mrb[8].mxu1 }
 0x2d0   : > { %v1001_v59 = vadd.f32 %v4605_v53, %v1000_v57  ;;  %v1002_v61 = vpop.f32.mrb[127].mxu0  ;;  %v1197_v62 = vpop.f32.mrb[9].mxu1  ;;  %3357 = vmatprep.mubr.f32.mxu1 %v1066_v55  ;;  %v1203_v21 = vadd.f32 %v3278_v58, %v4697_v51  ;;  %v2025_v55 = vld [vmem:[#allocation11 + $0x68] sm:$0xff] }
 0x2d1   : > { %v1198_v17 = vadd.f32 %v4697_v51, %v1197_v62  ;;  %v3612_v58 = vpack.c.bf16 %v2027_v56, %v2025_v55  ;;  %v2042_v55 = vld [vmem:[#allocation11 + $0xf0] sm:$0xff] }
 0x2d2   : > { %v1067_v0 = vmax.f32 %v1001_v59, 0.0  ;;  %v1485_v27 = vmax.f32 %v1203_v21, 0.0  ;;  %v2031_v21 = vld [vmem:[#allocation11 + $0x98] sm:$0xff] }
 0x2d3   : > { %v1484_v24 = vmax.f32 %v1198_v17, 0.0 }
 0x2d4   : > { %3358 = vmatmul.mubr.f32.gmra.mrb[62].mxu1 %v1067_v0  ;;  %v2026_v0 = vld [vmem:[#allocation11 + $0x70] sm:$0xff] }
 0x2d5   : > { %3392 = vmatprep.mubr.f32.mxu1 %v1476_v1  ;;  %v3614_v2 = vpack.c.bf16 %v2026_v0, %v2024_v63 }
 0x2d7   : > { %v3281_v7 = vpop.f32.mrb[10].mxu1 }
 0x2d8   : > { %v1207_v53 = vpop.f32.mrb[11].mxu1  ;;  %3393 = vmatmul.mubr.f32.vlgmr.msra.gmra.mrb[64].mxu1 %v1477_v3  ;;  %v1213_v28 = vadd.f32 %v3281_v7, %v4697_v51 }
 0x2d9   : > { %3395 = vmatprep.mubr.f32.mxu1 %v1478_v5  ;;  %3640 = vmatpush1.bf16.msra.mxu1 %v4679_v60  ;;  %v3608_v60 = vpack.c.bf16 %v2023_v15, %v2021_v14  ;;  %v1208_v25 = vadd.f32 %v4697_v51, %v1207_v53 }
 0x2da   : > { %3633 = vmatprep.subr.bf16.mxu1 %v3604_v32  ;;  %v1487_v33 = vmax.f32 %v1213_v28, 0.0 }
 0x2db   : > { %3609 = vmatprep.subr.bf16.mxu0 %v3608_v60  ;;  %v1486_v29 = vmax.f32 %v1208_v25, 0.0  ;;  %v2030_v25 = vld [vmem:[#allocation11 + $0x90] sm:$0xff] }
 0x2dc   : > { %3396 = vmatmul.mubr.f32.gmra.mrb[66].mxu1 %v1479_v8  ;;  %3611 = vmatpush1.bf16.msra.mxu0 %v3610_v26 }
 0x2dd   : > { %3398 = vmatprep.mubr.f32.mxu1 %v1480_v10  ;;  %3641 = vmatpush1.bf16.msra.mxu1 %v3606_v40 }
 0x2de   : > { %3634 = vmatprep.subr.bf16.mxu1 %v3608_v60  ;;  %3613 = vmatprep.subr.bf16.mxu0 %v3612_v58 }
 0x2df   : > { %v3284_v18 = vpop.f32.mrb[12].mxu1 }
 0x2e0   : > { %v1217_v19 = vpop.f32.mrb[13].mxu1  ;;  %3399 = vmatmul.mubr.f32.gmra.mrb[68].mxu1 %v1481_v12  ;;  %v1223_v34 = vadd.f32 %v3284_v18, %v4697_v51  ;;  %3615 = vmatpush1.bf16.msra.mxu0 %v3614_v2 }
 0x2e1   : > { %3401 = vmatprep.mubr.f32.mxu1 %v1482_v16  ;;  %3642 = vmatpush1.bf16.msra.mxu1 %v3610_v26  ;;  %v1218_v30 = vadd.f32 %v4697_v51, %v1217_v19 }
 0x2e2   : > { %v1489_v37 = vmax.f32 %v1223_v34, 0.0  ;;  %3635 = vmatprep.subr.bf16.mxu1 %v3612_v58  ;;  %v2032_v34 = vld [vmem:[#allocation11 + $0xa0] sm:$0xff] }
 0x2e3   : > { %v1488_v35 = vmax.f32 %v1218_v30, 0.0  ;;  %v2033_v30 = vld [vmem:[#allocation11 + $0xa8] sm:$0xff] }
 0x2e4   : > { %3402 = vmatmul.mubr.f32.gmra.mrb[70].mxu1 %v1483_v20  ;;  %v2029_v20 = vld [vmem:[#allocation11 + $0x88] sm:$0xff] }
 0x2e5   : > { %3404 = vmatprep.mubr.f32.mxu1 %v1484_v24  ;;  %3643 = vmatpush1.bf16.msra.mxu1 %v3614_v2  ;;  %v3616_v23 = vpack.c.bf16 %v2031_v21, %v2029_v20  ;;  %v2028_v24 = vld [vmem:[#allocation11 + $0x80] sm:$0xff] }
 0x2e6   : > { %v3618_v28 = vpack.c.bf16 %v2030_v25, %v2028_v24 }
 0x2e7   : > { %v3287_v31 = vpop.f32.mrb[14].mxu1  ;;  %3617 = vmatprep.subr.bf16.mxu0 %v3616_v23  ;;  %3636 = vmatprep.subr.bf16.mxu1 %v3616_v23 }
 0x2e8   : > { %v1227_v32 = vpop.f32.mrb[15].mxu1  ;;  %3405 = vmatmul.mubr.f32.gmra.mrb[72].mxu1 %v1485_v27  ;;  %v1233_v38 = vadd.f32 %v3287_v31, %v4697_v51  ;;  %3619 = vmatpush1.bf16.msra.mxu0 %v3618_v28  ;;  %v2035_v31 = vld [vmem:[#allocation11 + $0xb8] sm:$0xff] }
 0x2e9   : > { %3407 = vmatprep.mubr.f32.mxu1 %v1486_v29  ;;  %v1228_v36 = vadd.f32 %v4697_v51, %v1227_v32  ;;  %3644 = vmatpush1.bf16.msra.mxu1 %v3618_v28 }
 0x2ea   : > { %v1491_v43 = vmax.f32 %v1233_v38, 0.0  ;;  %v2037_v38 = vld [vmem:[#allocation11 + $0xc8] sm:$0xff] }
 0x2eb   : > { %v1490_v39 = vmax.f32 %v1228_v36, 0.0 }
 0x2ec   : > { %3408 = vmatmul.mubr.f32.gmra.mrb[74].mxu1 %v1487_v33  ;;  %v3620_v33 = vpack.c.bf16 %v2035_v31, %v2033_v30 }
 0x2ed   : > { %3410 = vmatprep.mubr.f32.mxu1 %v1488_v35  ;;  %v2034_v35 = vld [vmem:[#allocation11 + $0xb0] sm:$0xff] }
 0x2ee   : > { %3621 = vmatprep.subr.bf16.mxu0 %v3620_v33  ;;  %3637 = vmatprep.subr.bf16.mxu1 %v3620_v33 }
 0x2ef   : > { %v3290_v40 = vpop.f32.mrb[16].mxu1 }
 0x2f0   : > { %v1237_v41 = vpop.f32.mrb[17].mxu1  ;;  %3411 = vmatmul.mubr.f32.gmra.mrb[76].mxu1 %v1489_v37  ;;  %v1243_v44 = vadd.f32 %v3290_v40, %v4697_v51  ;;  %v3622_v37 = vpack.c.bf16 %v2034_v35, %v2032_v34 }
 0x2f1   : > { %v1238_v42 = vadd.f32 %v4697_v51, %v1237_v41  ;;  %3413 = vmatprep.mubr.f32.mxu1 %v1490_v39  ;;  %v2039_v39 = vld [vmem:[#allocation11 + $0xd8] sm:$0xff] }
 0x2f2   : > { %v1493_v46 = vmax.f32 %v1243_v44, 0.0  ;;  %3623 = vmatpush1.bf16.msra.mxu0 %v3622_v37  ;;  %v3624_v41 = vpack.c.bf16 %v2039_v39, %v2037_v38  ;;  %3645 = vmatpush1.bf16.msra.mxu1 %v3622_v37 }
 0x2f3   : > { %v1492_v45 = vmax.f32 %v1238_v42, 0.0  ;;  %v2036_v42 = vld [vmem:[#allocation11 + $0xc0] sm:$0xff] }
 0x2f4   : > { %3414 = vmatmul.mubr.f32.gmra.mrb[78].mxu1 %v1491_v43  ;;  %v2038_v43 = vld [vmem:[#allocation11 + $0xd0] sm:$0xff]  ;;  %3625 = vmatprep.subr.bf16.mxu0 %v3624_v41 }
 0x2f5   : > { %3416 = vmatprep.mubr.f32.mxu1 %v1492_v45  ;;  %3638 = vmatprep.subr.bf16.mxu1 %v3624_v41 }
 0x2f7   : > { %v3293_v47 = vpop.f32.mrb[18].mxu1 }
 0x2f8   : > { %v1253_v48 = vadd.f32 %v3293_v47, %v4697_v51  ;;  %v1247_v49 = vpop.f32.mrb[19].mxu1  ;;  %3417 = vmatmul.mubr.f32.gmra.mrb[80].mxu1 %v1493_v46  ;;  %v3626_v46 = vpack.c.bf16 %v2038_v43, %v2036_v42 }
 0x2f9   : > { %v1248_v50 = vadd.f32 %v4697_v51, %v1247_v49  ;;  %v2043_v49 = vld [vmem:[#allocation11 + $0xf8] sm:$0xff] }
 0x2fa   : > { %v1495_v54 = vmax.f32 %v1253_v48, 0.0  ;;  %3627 = vmatpush1.bf16.msra.mxu0 %v3626_v46  ;;  %v2041_v48 = vld [vmem:[#allocation11 + $0xe8] sm:$0xff]  ;;  %3646 = vmatpush1.bf16.msra.mxu1 %v3626_v46 }
 0x2fb   : > { %v1494_v52 = vmax.f32 %v1248_v50, 0.0 }
 0x2fd   : > { %3419 = vmatprep.mubr.f32.mxu1 %v1494_v52  ;;  %v3628_v52 = vpack.c.bf16 %v2043_v49, %v2041_v48 }
 0x2fe   : > { %3420 = vmatmul.mubr.f32.gmra.mrb[82].mxu1 %v1495_v54  ;;  %v2040_v54 = vld [vmem:[#allocation11 + $0xe0] sm:$0xff] }
 0x2ff   : > { %v3296_v57 = vpop.f32.mrb[20].mxu1  ;;  %3629 = vmatprep.subr.bf16.mxu0 %v3628_v52  ;;  %3639 = vmatprep.subr.bf16.mxu1 %v3628_v52 }
 0x300   : > { %v1263_v59 = vadd.f32 %v3296_v57, %v4697_v51  ;;  %v1257_v61 = vpop.f32.mrb[21].mxu1  ;;  %v3630_v57 = vpack.c.bf16 %v2042_v55, %v2040_v54 }
 0x301   : > { %v1258_v62 = vadd.f32 %v4697_v51, %v1257_v61 }
 0x302   : > { %v1497_v3 = vmax.f32 %v1263_v59, 0.0  ;;  %3631 = vmatpush1.bf16.msra.mxu0 %v3630_v57  ;;  %3647 = vmatpush1.bf16.msra.mxu1 %v3630_v57 }
 0x303   : > { %v1496_v1 = vmax.f32 %v1258_v62, 0.0  ;;  %v4146_v62 = vmov 0.0  }
 0x304   : > { %2120 = vmatprep.mubr.f32.mxu0 %v4146_v62 }
 0x305   : > { %3422 = vmatprep.mubr.f32.mxu1 %v1496_v1 }
 0x306   : > { %3423 = vmatmul.mubr.f32.gmra.mrb[84].mxu1 %v1497_v3 }
 0x307   : > { %v3299_v4 = vpop.f32.mrb[22].mxu1 }
 0x308   : > { %v1273_v5 = vadd.f32 %v3299_v4, %v4697_v51  ;;  %v1267_v6 = vpop.f32.mrb[23].mxu1 }
 0x309   : > { %v1268_v7 = vadd.f32 %v4697_v51, %v1267_v6 }
 0x30a   : > { %v1499_v8 = vmax.f32 %v1273_v5, 0.0 }
 0x30b   : > { %v1498_v53 = vmax.f32 %v1268_v7, 0.0 }
 0x30d   : > { %3425 = vmatprep.mubr.f32.mxu1 %v1498_v53 }
 0x30e   : > { %3426 = vmatmul.mubr.f32.gmra.mrb[86].mxu1 %v1499_v8 }
 0x30f   : > { %v3302_v9 = vpop.f32.mrb[24].mxu1 }
 0x310   : > { %v1283_v10 = vadd.f32 %v3302_v9, %v4697_v51  ;;  %v1277_v11 = vpop.f32.mrb[25].mxu1 }
 0x311   : > { %v1278_v12 = vadd.f32 %v4697_v51, %v1277_v11 }
 0x312   : > { %v1501_v14 = vmax.f32 %v1283_v10, 0.0 }
 0x313   : > { %v1500_v13 = vmax.f32 %v1278_v12, 0.0 }
 0x315   : > { %3428 = vmatprep.mubr.f32.mxu1 %v1500_v13 }
 0x316   : > { %3429 = vmatmul.mubr.f32.gmra.mrb[88].mxu1 %v1501_v14 }
 0x317   : > { %v3305_v15 = vpop.f32.mrb[26].mxu1 }
 0x318   : > { %v1293_v16 = vadd.f32 %v3305_v15, %v4697_v51  ;;  %v1287_v17 = vpop.f32.mrb[27].mxu1 }
 0x319   : > { %v1288_v18 = vadd.f32 %v4697_v51, %v1287_v17 }
 0x31a   : > { %v1503_v19 = vmax.f32 %v1293_v16, 0.0 }
 0x31b   : > { %v1502_v60 = vmax.f32 %v1288_v18, 0.0 }
 0x31d   : > { %3431 = vmatprep.mubr.f32.mxu1 %v1502_v60 }
 0x31e   : > { %3432 = vmatmul.mubr.f32.gmra.mrb[90].mxu1 %v1503_v19 }
 0x31f   : > { %v3308_v22 = vpop.f32.mrb[28].mxu1 }
 0x320   : > { %v1303_v26 = vadd.f32 %v3308_v22, %v4697_v51  ;;  %v1297_v27 = vpop.f32.mrb[29].mxu1 }
 0x321   : > { %v1298_v29 = vadd.f32 %v4697_v51, %v1297_v27 }
 0x322   : > { %v1505_v36 = vmax.f32 %v1303_v26, 0.0 }
 0x323   : > { %v1504_v32 = vmax.f32 %v1298_v29, 0.0 }
 0x325   : > { %3434 = vmatprep.mubr.f32.mxu1 %v1504_v32 }
 0x326   : > { %3435 = vmatmul.mubr.f32.gmra.mrb[92].mxu1 %v1505_v36 }
 0x327   : > { %v3311_v40 = vpop.f32.mrb[30].mxu1 }
 0x328   : > { %v1313_v44 = vadd.f32 %v3311_v40, %v4697_v51  ;;  %v1307_v45 = vpop.f32.mrb[31].mxu1 }
 0x329   : > { %v1308_v47 = vadd.f32 %v4697_v51, %v1307_v45 }
 0x32a   : > { %v1507_v56 = vmax.f32 %v1313_v44, 0.0 }
 0x32b   : > { %v1506_v50 = vmax.f32 %v1308_v47, 0.0 }
 0x32d   : > { %3437 = vmatprep.mubr.f32.mxu1 %v1506_v50 }
 0x32e   : > { %3438 = vmatmul.mubr.f32.gmra.mrb[94].mxu1 %v1507_v56 }
 0x32f   : > { %v3314_v58 = vpop.f32.mrb[32].mxu1 }
 0x330   : > { %v1323_v59 = vadd.f32 %v3314_v58, %v4697_v51  ;;  %v1317_v61 = vpop.f32.mrb[33].mxu1 }
 0x331   : > { %v1318_v63 = vadd.f32 %v4697_v51, %v1317_v61 }
 0x332   : > { %v1509_v1 = vmax.f32 %v1323_v59, 0.0 }
 0x333   : > { %v1508_v0 = vmax.f32 %v1318_v63, 0.0 }
 0x335   : > { %3440 = vmatprep.mubr.f32.mxu1 %v1508_v0 }
 0x336   : > { %3441 = vmatmul.mubr.f32.gmra.mrb[96].mxu1 %v1509_v1 }
 0x337   : > { %v3317_v2 = vpop.f32.mrb[34].mxu1 }
 0x338   : > { %v1333_v3 = vadd.f32 %v3317_v2, %v4697_v51  ;;  %v1327_v4 = vpop.f32.mrb[35].mxu1 }
 0x339   : > { %v1328_v5 = vadd.f32 %v4697_v51, %v1327_v4 }
 0x33a   : > { %v1511_v7 = vmax.f32 %v1333_v3, 0.0 }
 0x33b   : > { %v1510_v6 = vmax.f32 %v1328_v5, 0.0 }
 0x33d   : > { %3443 = vmatprep.mubr.f32.mxu1 %v1510_v6 }
 0x33e   : > { %3444 = vmatmul.mubr.f32.gmra.mrb[98].mxu1 %v1511_v7 }
 0x33f   : > { %v3320_v53 = vpop.f32.mrb[36].mxu1 }
 0x340   : > { %v1343_v8 = vadd.f32 %v3320_v53, %v4697_v51  ;;  %v1337_v9 = vpop.f32.mrb[37].mxu1 }
 0x341   : > { %v1338_v10 = vadd.f32 %v4697_v51, %v1337_v9 }
 0x342   : > { %v1513_v12 = vmax.f32 %v1343_v8, 0.0 }
 0x343   : > { %v1512_v11 = vmax.f32 %v1338_v10, 0.0 }
 0x345   : > { %3446 = vmatprep.mubr.f32.mxu1 %v1512_v11 }
 0x346   : > { %3447 = vmatmul.mubr.f32.gmra.mrb[100].mxu1 %v1513_v12 }
 0x347   : > { %v3323_v13 = vpop.f32.mrb[38].mxu1 }
 0x348   : > { %v1353_v14 = vadd.f32 %v3323_v13, %v4697_v51  ;;  %v1347_v15 = vpop.f32.mrb[39].mxu1 }
 0x349   : > { %v1348_v16 = vadd.f32 %v4697_v51, %v1347_v15 }
 0x34a   : > { %v1515_v18 = vmax.f32 %v1353_v14, 0.0 }
 0x34b   : > { %v1514_v17 = vmax.f32 %v1348_v16, 0.0 }
 0x34d   : > { %3449 = vmatprep.mubr.f32.mxu1 %v1514_v17 }
 0x34e   : > { %3450 = vmatmul.mubr.f32.gmra.mrb[102].mxu1 %v1515_v18 }
 0x34f   : > { %v3326_v60 = vpop.f32.mrb[40].mxu1 }
 0x350   : > { %v1363_v19 = vadd.f32 %v3326_v60, %v4697_v51  ;;  %v1357_v20 = vpop.f32.mrb[41].mxu1 }
 0x351   : > { %v1358_v21 = vadd.f32 %v4697_v51, %v1357_v20 }
 0x352   : > { %v1517_v23 = vmax.f32 %v1363_v19, 0.0 }
 0x353   : > { %v1516_v22 = vmax.f32 %v1358_v21, 0.0 }
 0x355   : > { %3452 = vmatprep.mubr.f32.mxu1 %v1516_v22 }
 0x356   : > { %3453 = vmatmul.mubr.f32.gmra.mrb[104].mxu1 %v1517_v23 }
 0x357   : > { %v3329_v24 = vpop.f32.mrb[42].mxu1 }
 0x358   : > { %v1373_v25 = vadd.f32 %v3329_v24, %v4697_v51  ;;  %v1367_v26 = vpop.f32.mrb[43].mxu1 }
 0x359   : > { %v1368_v27 = vadd.f32 %v4697_v51, %v1367_v26  ;;  %v4771_v26 = vld [vmem:[%s5495_s7] ss:$0 sm:$0xff] }
 0x35a   : > { %v1519_v29 = vmax.f32 %v1373_v25, 0.0 }
 0x35b   : > { %v1518_v28 = vmax.f32 %v1368_v27, 0.0 }
 0x35d   : > { %3455 = vmatprep.mubr.f32.mxu1 %v1518_v28 }
 0x35e   : > { %3456 = vmatmul.mubr.f32.gmra.mrb[106].mxu1 %v1519_v29 }
 0x35f   : > { %v3332_v30 = vpop.f32.mrb[44].mxu1 }
 0x360   : > { %v1383_v31 = vadd.f32 %v3332_v30, %v4697_v51  ;;  %v1377_v32 = vpop.f32.mrb[45].mxu1 }
 0x361   : > { %v1378_v33 = vadd.f32 %v4697_v51, %v1377_v32 }
 0x362   : > { %v1521_v35 = vmax.f32 %v1383_v31, 0.0 }
 0x363   : > { %v1520_v34 = vmax.f32 %v1378_v33, 0.0 }
 0x365   : > { %3458 = vmatprep.mubr.f32.mxu1 %v1520_v34 }
 0x366   : > { %3459 = vmatmul.mubr.f32.gmra.mrb[108].mxu1 %v1521_v35 }
 0x367   : > { %v3335_v36 = vpop.f32.mrb[46].mxu1 }
 0x368   : > { %v1393_v37 = vadd.f32 %v3335_v36, %v4697_v51  ;;  %v1387_v38 = vpop.f32.mrb[47].mxu1 }
 0x369   : > { %v1388_v39 = vadd.f32 %v4697_v51, %v1387_v38 }
 0x36a   : > { %v1523_v41 = vmax.f32 %v1393_v37, 0.0 }
 0x36b   : > { %v1522_v40 = vmax.f32 %v1388_v39, 0.0 }
 0x36d   : > { %3461 = vmatprep.mubr.f32.mxu1 %v1522_v40 }
 0x36e   : > { %3462 = vmatmul.mubr.f32.gmra.mrb[110].mxu1 %v1523_v41 }
 0x36f   : > { %v3338_v42 = vpop.f32.mrb[48].mxu1 }
 0x370   : > { %v1403_v43 = vadd.f32 %v3338_v42, %v4697_v51  ;;  %v1397_v44 = vpop.f32.mrb[49].mxu1 }
 0x371   : > { %v1398_v45 = vadd.f32 %v4697_v51, %v1397_v44 }
 0x372   : > { %v1525_v47 = vmax.f32 %v1403_v43, 0.0 }
 0x373   : > { %v1524_v46 = vmax.f32 %v1398_v45, 0.0 }
 0x375   : > { %3464 = vmatprep.mubr.f32.mxu1 %v1524_v46 }
 0x376   : > { %3465 = vmatmul.mubr.f32.gmra.mrb[112].mxu1 %v1525_v47 }
 0x377   : > { %v3341_v48 = vpop.f32.mrb[50].mxu1 }
 0x378   : > { %v1413_v49 = vadd.f32 %v3341_v48, %v4697_v51  ;;  %v1407_v50 = vpop.f32.mrb[51].mxu1 }
 0x379   : > { %v1408_v52 = vadd.f32 %v4697_v51, %v1407_v50 }
 0x37a   : > { %v1527_v55 = vmax.f32 %v1413_v49, 0.0 }
 0x37b   : > { %v1526_v54 = vmax.f32 %v1408_v52, 0.0 }
 0x37d   : > { %3467 = vmatprep.mubr.f32.mxu1 %v1526_v54 }
 0x37e   : > { %3468 = vmatmul.mubr.f32.gmra.mrb[114].mxu1 %v1527_v55 }
 0x37f   : > { %v3344_v56 = vpop.f32.mrb[52].mxu1 }
 0x380   : > { %v1423_v57 = vadd.f32 %v3344_v56, %v4697_v51  ;;  %v1417_v58 = vpop.f32.mrb[53].mxu1 }
 0x381   : > { %v1418_v59 = vadd.f32 %v4697_v51, %v1417_v58 }
 0x382   : > { %v1529_v63 = vmax.f32 %v1423_v57, 0.0 }
 0x383   : > { %v1528_v61 = vmax.f32 %v1418_v59, 0.0 }
 0x385   : > { %3470 = vmatprep.mubr.f32.mxu1 %v1528_v61 }
 0x386   : > { %3471 = vmatmul.mubr.f32.gmra.mrb[116].mxu1 %v1529_v63 }
 0x387   : > { %v3347_v0 = vpop.f32.mrb[54].mxu1 }
 0x388   : > { %v1433_v1 = vadd.f32 %v3347_v0, %v4697_v51  ;;  %v1427_v2 = vpop.f32.mrb[55].mxu1 }
 0x389   : > { %v1428_v3 = vadd.f32 %v4697_v51, %v1427_v2 }
 0x38a   : > { %v1531_v5 = vmax.f32 %v1433_v1, 0.0 }
 0x38b   : > { %v1530_v4 = vmax.f32 %v1428_v3, 0.0 }
 0x38d   : > { %3473 = vmatprep.mubr.f32.mxu1 %v1530_v4 }
 0x38e   : > { %3474 = vmatmul.mubr.f32.gmra.mrb[118].mxu1 %v1531_v5 }
 0x38f   : > { %v3350_v6 = vpop.f32.mrb[56].mxu1 }
 0x390   : > { %v1443_v7 = vadd.f32 %v3350_v6, %v4697_v51  ;;  %v1437_v53 = vpop.f32.mrb[57].mxu1 }
 0x391   : > { %v1438_v8 = vadd.f32 %v4697_v51, %v1437_v53 }
 0x392   : > { %v1533_v10 = vmax.f32 %v1443_v7, 0.0 }
 0x393   : > { %v1532_v9 = vmax.f32 %v1438_v8, 0.0 }
 0x395   : > { %3476 = vmatprep.mubr.f32.mxu1 %v1532_v9 }
 0x396   : > { %3477 = vmatmul.mubr.f32.gmra.mrb[120].mxu1 %v1533_v10 }
 0x397   : > { %v3353_v11 = vpop.f32.mrb[58].mxu1 }
 0x398   : > { %v1453_v12 = vadd.f32 %v3353_v11, %v4697_v51  ;;  %v1447_v13 = vpop.f32.mrb[59].mxu1 }
 0x399   : > { %v1448_v14 = vadd.f32 %v4697_v51, %v1447_v13 }
 0x39a   : > { %v1535_v16 = vmax.f32 %v1453_v12, 0.0 }
 0x39b   : > { %v1534_v15 = vmax.f32 %v1448_v14, 0.0 }
 0x39d   : > { %3479 = vmatprep.mubr.f32.mxu1 %v1534_v15 }
 0x39e   : > { %3480 = vmatmul.mubr.f32.gmra.mrb[122].mxu1 %v1535_v16 }
 0x39f   : > { %v3356_v17 = vpop.f32.mrb[60].mxu1 }
 0x3a0   : > { %v1463_v18 = vadd.f32 %v3356_v17, %v4697_v51  ;;  %v1457_v60 = vpop.f32.mrb[61].mxu1 }
 0x3a1   : > { %v1458_v19 = vadd.f32 %v4697_v51, %v1457_v60 }
 0x3a2   : > { %v1537_v21 = vmax.f32 %v1463_v18, 0.0 }
 0x3a3   : > { %v1536_v20 = vmax.f32 %v1458_v19, 0.0 }
 0x3a5   : > { %3482 = vmatprep.mubr.f32.mxu1 %v1536_v20 }
 0x3a6   : > { %3483 = vmatmul.mubr.f32.gmra.mrb[124].mxu1 %v1537_v21 }
 0x3a7   : > { %v3359_v22 = vpop.f32.mrb[62].mxu1 }
 0x3a8   : > { %v1473_v23 = vadd.f32 %v3359_v22, %v4697_v51  ;;  %v1467_v24 = vpop.f32.mrb[63].mxu1 }
 0x3a9   : > { %v1468_v25 = vadd.f32 %v4697_v51, %v1467_v24 }
 0x3aa   : > { %v1539_v29 = vmax.f32 %v1473_v23, 0.0 }
 0x3ab   : > { %v1538_v27 = vmax.f32 %v1468_v25, 0.0  ;;  %v3394_v28 = vpop.f32.mrb[64].mxu1 }
 0x3ac   : > { %v1629_v30 = vpop.f32.mrb[65].mxu1  ;;  %v1635_v32 = vadd.f32 %v3394_v28, %v4771_v26 }
 0x3ad   : > { %v1630_v31 = vadd.f32 %v4771_v26, %v1629_v30  ;;  %3485 = vmatprep.mubr.f32.mxu1 %v1538_v27 }
 0x3ae   : > { %3486 = vmatmul.mubr.f32.gmra.mrb[126].mxu1 %v1539_v29  ;;  %v1949_v35 = vmax.f32 %v1635_v32, 0.0 }
 0x3af   : > { %v1948_v33 = vmax.f32 %v1630_v31, 0.0  ;;  %v3397_v34 = vpop.f32.mrb[66].mxu1  ;;  %2288 = vmatprep.mubr.f32.mxu1 %v4146_v62 }
 0x3b0   : > { %v1639_v51 = vpop.f32.mrb[67].mxu1  ;;  %v1645_v39 = vadd.f32 %v3397_v34, %v4771_v26 }
 0x3b1   : > { %2121 = vmatmul.mubr.f32.vlgmr.msra.gmra.mrb[128].mxu0 %v1948_v33  ;;  %v1640_v36 = vadd.f32 %v4771_v26, %v1639_v51 }
 0x3b2   : > { %2126 = vmatprep.mubr.f32.mxu0 %v4146_v62  ;;  %v1951_v43 = vmax.f32 %v1645_v39, 0.0 }
 0x3b3   : > { %v3400_v37 = vpop.f32.mrb[68].mxu1  ;;  %v1950_v40 = vmax.f32 %v1640_v36, 0.0 }
 0x3b4   : > { %v1649_v38 = vpop.f32.mrb[69].mxu1  ;;  %v1655_v47 = vadd.f32 %v3400_v37, %v4771_v26 }
 0x3b5   : > { %2127 = vmatmul.mubr.f32.gmra.mrb[130].mxu0 %v1949_v35  ;;  %v1650_v44 = vadd.f32 %v4771_v26, %v1649_v38 }
 0x3b6   : > { %2132 = vmatprep.mubr.f32.mxu0 %v4146_v62  ;;  %v1953_v52 = vmax.f32 %v1655_v47, 0.0 }
 0x3b7   : > { %v3403_v41 = vpop.f32.mrb[70].mxu1  ;;  %v1952_v48 = vmax.f32 %v1650_v44, 0.0 }
 0x3b8   : > { %v1659_v42 = vpop.f32.mrb[71].mxu1  ;;  %v1665_v57 = vadd.f32 %v3403_v41, %v4771_v26 }
 0x3b9   : > { %2133 = vmatmul.mubr.f32.gmra.mrb[132].mxu0 %v1950_v40  ;;  %v1660_v54 = vadd.f32 %v4771_v26, %v1659_v42 }
 0x3ba   : > { %2138 = vmatprep.mubr.f32.mxu0 %v4146_v62  ;;  %v1955_v63 = vmax.f32 %v1665_v57, 0.0 }
 0x3bb   : > { %v3406_v45 = vpop.f32.mrb[72].mxu1  ;;  %v1954_v58 = vmax.f32 %v1660_v54, 0.0 }
 0x3bc   : > { %v1669_v46 = vpop.f32.mrb[73].mxu1  ;;  %v1675_v3 = vadd.f32 %v3406_v45, %v4771_v26 }
 0x3bd   : > { %2139 = vmatmul.mubr.f32.gmra.mrb[134].mxu0 %v1951_v43  ;;  %v1670_v0 = vadd.f32 %v4771_v26, %v1669_v46 }
 0x3be   : > { %2144 = vmatprep.mubr.f32.mxu0 %v4146_v62  ;;  %v1957_v7 = vmax.f32 %v1675_v3, 0.0 }
 0x3bf   : > { %v3409_v49 = vpop.f32.mrb[74].mxu1  ;;  %v1956_v4 = vmax.f32 %v1670_v0, 0.0 }
 0x3c0   : > { %v1679_v50 = vpop.f32.mrb[75].mxu1  ;;  %v1685_v8 = vadd.f32 %v3409_v49, %v4771_v26 }
 0x3c1   : > { %2145 = vmatmul.mubr.f32.gmra.mrb[136].mxu0 %v1952_v48  ;;  %v1680_v53 = vadd.f32 %v4771_v26, %v1679_v50 }
 0x3c2   : > { %2150 = vmatprep.mubr.f32.mxu0 %v4146_v62  ;;  %v1959_v12 = vmax.f32 %v1685_v8, 0.0 }
 0x3c3   : > { %v3412_v55 = vpop.f32.mrb[76].mxu1  ;;  %v1958_v9 = vmax.f32 %v1680_v53, 0.0 }
 0x3c4   : > { %v1689_v56 = vpop.f32.mrb[77].mxu1  ;;  %v1695_v14 = vadd.f32 %v3412_v55, %v4771_v26 }
 0x3c5   : > { %2151 = vmatmul.mubr.f32.gmra.mrb[138].mxu0 %v1953_v52  ;;  %v1690_v13 = vadd.f32 %v4771_v26, %v1689_v56 }
 0x3c6   : > { %2156 = vmatprep.mubr.f32.mxu0 %v4146_v62  ;;  %v1961_v18 = vmax.f32 %v1695_v14, 0.0 }
 0x3c7   : > { %v3415_v59 = vpop.f32.mrb[78].mxu1  ;;  %v1960_v15 = vmax.f32 %v1690_v13, 0.0 }
 0x3c8   : > { %v1699_v61 = vpop.f32.mrb[79].mxu1  ;;  %v1705_v19 = vadd.f32 %v3415_v59, %v4771_v26 }
 0x3c9   : > { %2157 = vmatmul.mubr.f32.gmra.mrb[140].mxu0 %v1954_v58  ;;  %v1700_v60 = vadd.f32 %v4771_v26, %v1699_v61 }
 0x3ca   : > { %2162 = vmatprep.mubr.f32.mxu0 %v4146_v62  ;;  %v1963_v23 = vmax.f32 %v1705_v19, 0.0 }
 0x3cb   : > { %v3418_v1 = vpop.f32.mrb[80].mxu1  ;;  %v1962_v20 = vmax.f32 %v1700_v60, 0.0 }
 0x3cc   : > { %v1709_v2 = vpop.f32.mrb[81].mxu1  ;;  %v1715_v25 = vadd.f32 %v3418_v1, %v4771_v26 }
 0x3cd   : > { %2163 = vmatmul.mubr.f32.gmra.mrb[142].mxu0 %v1955_v63  ;;  %v1710_v24 = vadd.f32 %v4771_v26, %v1709_v2 }
 0x3ce   : > { %2168 = vmatprep.mubr.f32.mxu0 %v4146_v62  ;;  %v1965_v30 = vmax.f32 %v1715_v25, 0.0 }
 0x3cf   : > { %v1964_v27 = vmax.f32 %v1710_v24, 0.0 }
 0x3d1   : > { %v3421_v5 = vpop.f32.mrb[82].mxu1  ;;  %2169 = vmatmul.mubr.f32.gmra.mrb[144].mxu0 %v1956_v4 }
 0x3d2   : > { %v1719_v6 = vpop.f32.mrb[83].mxu1  ;;  %2174 = vmatprep.mubr.f32.mxu0 %v4146_v62  ;;  %v1725_v32 = vadd.f32 %v3421_v5, %v4771_v26 }
 0x3d3   : > { %v1720_v31 = vadd.f32 %v4771_v26, %v1719_v6 }
 0x3d4   : > { %v1967_v35 = vmax.f32 %v1725_v32, 0.0 }
 0x3d5   : > { %2175 = vmatmul.mubr.f32.gmra.mrb[146].mxu0 %v1957_v7  ;;  %v1966_v33 = vmax.f32 %v1720_v31, 0.0 }
 0x3d6   : > { %2180 = vmatprep.mubr.f32.mxu0 %v4146_v62 }
 0x3d9   : > { %v3424_v10 = vpop.f32.mrb[84].mxu1  ;;  %2181 = vmatmul.mubr.f32.gmra.mrb[148].mxu0 %v1958_v9 }
 0x3da   : > { %v1729_v11 = vpop.f32.mrb[85].mxu1  ;;  %2186 = vmatprep.mubr.f32.mxu0 %v4146_v62  ;;  %v1735_v40 = vadd.f32 %v3424_v10, %v4771_v26 }
 0x3db   : > { %v1730_v36 = vadd.f32 %v4771_v26, %v1729_v11 }
 0x3dc   : > { %v1969_v45 = vmax.f32 %v1735_v40, 0.0 }
 0x3dd   : > { %2187 = vmatmul.mubr.f32.gmra.mrb[150].mxu0 %v1959_v12  ;;  %v1968_v41 = vmax.f32 %v1730_v36, 0.0 }
 0x3de   : > { %2192 = vmatprep.mubr.f32.mxu0 %v4146_v62 }
 0x3e1   : > { %v3427_v16 = vpop.f32.mrb[86].mxu1  ;;  %2193 = vmatmul.mubr.f32.gmra.mrb[152].mxu0 %v1960_v15 }
 0x3e2   : > { %v1739_v17 = vpop.f32.mrb[87].mxu1  ;;  %2198 = vmatprep.mubr.f32.mxu0 %v4146_v62  ;;  %v1745_v50 = vadd.f32 %v3427_v16, %v4771_v26 }
 0x3e3   : > { %v1740_v46 = vadd.f32 %v4771_v26, %v1739_v17 }
 0x3e4   : > { %v1971_v57 = vmax.f32 %v1745_v50, 0.0 }
 0x3e5   : > { %2199 = vmatmul.mubr.f32.gmra.mrb[154].mxu0 %v1961_v18  ;;  %v1970_v52 = vmax.f32 %v1740_v46, 0.0 }
 0x3e6   : > { %2204 = vmatprep.mubr.f32.mxu0 %v4146_v62 }
 0x3e9   : > { %v4804_v21 = vpop.f32.mrb[88].mxu1  ;;  %2205 = vmatmul.mubr.f32.gmra.mrb[156].mxu0 %v1962_v20 }
 0x3ea   : > { %v1749_v22 = vpop.f32.mrb[89].mxu1  ;;  %2210 = vmatprep.mubr.f32.mxu0 %v4146_v62  ;;  %v1755_v0 = vadd.f32 %v4804_v21, %v4771_v26 }
 0x3eb   : > { %v1750_v58 = vadd.f32 %v4771_v26, %v1749_v22 }
 0x3ec   : > { %v1973_v5 = vmax.f32 %v1755_v0, 0.0 }
 0x3ed   : > { %2211 = vmatmul.mubr.f32.gmra.mrb[158].mxu0 %v1963_v23  ;;  %v1972_v1 = vmax.f32 %v1750_v58, 0.0 }
 0x3ee   : > { %2216 = vmatprep.mubr.f32.mxu0 %v4146_v62 }
 0x3f1   : > { %v4810_v28 = vpop.f32.mrb[90].mxu1  ;;  %2217 = vmatmul.mubr.f32.gmra.mrb[160].mxu0 %v1964_v27 }
 0x3f2   : > { %v4812_v29 = vpop.f32.mrb[91].mxu1  ;;  %2222 = vmatprep.mubr.f32.mxu0 %v4146_v62  ;;  %v1765_v9 = vadd.f32 %v4810_v28, %v4771_v26 }
 0x3f3   : > { %v1760_v6 = vadd.f32 %v4771_v26, %v4812_v29 }
 0x3f4   : > { %v1975_v14 = vmax.f32 %v1765_v9, 0.0 }
 0x3f5   : > { %2223 = vmatmul.mubr.f32.gmra.mrb[162].mxu0 %v1965_v30  ;;  %v1974_v10 = vmax.f32 %v1760_v6, 0.0 }
 0x3f6   : > { %2228 = vmatprep.mubr.f32.mxu0 %v4146_v62 }
 0x3f9   : > { %v3436_v34 = vpop.f32.mrb[92].mxu1  ;;  %2229 = vmatmul.mubr.f32.gmra.mrb[164].mxu0 %v1966_v33 }
 0x3fa   : > { %v1769_v51 = vpop.f32.mrb[93].mxu1  ;;  %2234 = vmatprep.mubr.f32.mxu0 %v4146_v62  ;;  %v1775_v38 = vadd.f32 %v3436_v34, %v4771_v26 }
 0x3fb   : > { %v1770_v37 = vadd.f32 %v4771_v26, %v1769_v51 }
 0x3fc   : > { %v1977_v42 = vmax.f32 %v1775_v38, 0.0 }
 0x3fd   : > { %v1976_v39 = vmax.f32 %v1770_v37, 0.0  ;;  %2235 = vmatmul.mubr.f32.gmra.mrb[166].mxu0 %v1967_v35 }
 0x3fe   : > { %2240 = vmatprep.mubr.f32.mxu0 %v4146_v62 }
 0x3ff   : > { %2289 = vmatmul.mubr.f32.vlgmr.msra.gmra.mrb[128].mxu1 %v1976_v39 }
 0x400   : > { %2294 = vmatprep.mubr.f32.mxu1 %v4146_v62 }
 0x401   : > { %v3439_v43 = vpop.f32.mrb[94].mxu1  ;;  %2241 = vmatmul.mubr.f32.gmra.mrb[168].mxu0 %v1968_v41 }
 0x402   : > { %v1779_v44 = vpop.f32.mrb[95].mxu1  ;;  %2246 = vmatprep.mubr.f32.mxu0 %v4146_v62  ;;  %v1785_v48 = vadd.f32 %v3439_v43, %v4771_v26 }
 0x403   : > { %v1780_v47 = vadd.f32 %v4771_v26, %v1779_v44  ;;  %2295 = vmatmul.mubr.f32.gmra.mrb[130].mxu1 %v1977_v42 }
 0x404   : > { %2300 = vmatprep.mubr.f32.mxu1 %v4146_v62  ;;  %v1979_v54 = vmax.f32 %v1785_v48, 0.0 }
 0x405   : > { %v1978_v49 = vmax.f32 %v1780_v47, 0.0  ;;  %2247 = vmatmul.mubr.f32.gmra.mrb[170].mxu0 %v1969_v45 }
 0x406   : > { %2252 = vmatprep.mubr.f32.mxu0 %v4146_v62 }
 0x407   : > { %2301 = vmatmul.mubr.f32.gmra.mrb[132].mxu1 %v1978_v49 }
 0x408   : > { %2306 = vmatprep.mubr.f32.mxu1 %v4146_v62 }
 0x409   : > { %v3442_v55 = vpop.f32.mrb[96].mxu1  ;;  %2253 = vmatmul.mubr.f32.gmra.mrb[172].mxu0 %v1970_v52 }
 0x40a   : > { %v1789_v56 = vpop.f32.mrb[97].mxu1  ;;  %2258 = vmatprep.mubr.f32.mxu0 %v4146_v62  ;;  %v1795_v61 = vadd.f32 %v3442_v55, %v4771_v26 }
 0x40b   : > { %v1790_v59 = vadd.f32 %v4771_v26, %v1789_v56  ;;  %2307 = vmatmul.mubr.f32.gmra.mrb[134].mxu1 %v1979_v54 }
 0x40c   : > { %2312 = vmatprep.mubr.f32.mxu1 %v4146_v62  ;;  %v1981_v2 = vmax.f32 %v1795_v61, 0.0 }
 0x40d   : > { %v1980_v63 = vmax.f32 %v1790_v59, 0.0  ;;  %2259 = vmatmul.mubr.f32.gmra.mrb[174].mxu0 %v1971_v57 }
 0x40e   : > { %2264 = vmatprep.mubr.f32.mxu0 %v4146_v62 }
 0x40f   : > { %2313 = vmatmul.mubr.f32.gmra.mrb[136].mxu1 %v1980_v63 }
 0x410   : > { %2318 = vmatprep.mubr.f32.mxu1 %v4146_v62 }
 0x411   : > { %v3445_v3 = vpop.f32.mrb[98].mxu1  ;;  %2265 = vmatmul.mubr.f32.gmra.mrb[176].mxu0 %v1972_v1 }
 0x412   : > { %v1799_v4 = vpop.f32.mrb[99].mxu1  ;;  %2270 = vmatprep.mubr.f32.mxu0 %v4146_v62  ;;  %v1805_v53 = vadd.f32 %v3445_v3, %v4771_v26 }
 0x413   : > { %v1800_v7 = vadd.f32 %v4771_v26, %v1799_v4  ;;  %2319 = vmatmul.mubr.f32.gmra.mrb[138].mxu1 %v1981_v2 }
 0x414   : > { %2324 = vmatprep.mubr.f32.mxu1 %v4146_v62  ;;  %v1983_v11 = vmax.f32 %v1805_v53, 0.0 }
 0x415   : > { %v1982_v8 = vmax.f32 %v1800_v7, 0.0  ;;  %2271 = vmatmul.mubr.f32.gmra.mrb[178].mxu0 %v1973_v5 }
 0x416   : > { %2276 = vmatprep.mubr.f32.mxu0 %v4146_v62 }
 0x417   : > { %2325 = vmatmul.mubr.f32.gmra.mrb[140].mxu1 %v1982_v8 }
 0x418   : > { %2330 = vmatprep.mubr.f32.mxu1 %v4146_v62 }
 0x419   : > { %v3448_v12 = vpop.f32.mrb[100].mxu1  ;;  %2277 = vmatmul.mubr.f32.gmra.mrb[180].mxu0 %v1974_v10 }
 0x41a   : > { %v1809_v13 = vpop.f32.mrb[101].mxu1  ;;  %2282 = vmatprep.mubr.f32.mxu0 %v4146_v62  ;;  %v1815_v16 = vadd.f32 %v3448_v12, %v4771_v26 }
 0x41b   : > { %v1810_v15 = vadd.f32 %v4771_v26, %v1809_v13  ;;  %2331 = vmatmul.mubr.f32.gmra.mrb[142].mxu1 %v1983_v11 }
 0x41c   : > { %2336 = vmatprep.mubr.f32.mxu1 %v4146_v62  ;;  %v1985_v18 = vmax.f32 %v1815_v16, 0.0 }
 0x41d   : > { %v1984_v17 = vmax.f32 %v1810_v15, 0.0  ;;  %2283 = vmatmul.mubr.f32.gmra.mrb[182].mxu0 %v1975_v14 }
 0x41f   : > { %2337 = vmatmul.mubr.f32.gmra.mrb[144].mxu1 %v1984_v17 }
 0x420   : > { %2342 = vmatprep.mubr.f32.mxu1 %v4146_v62 }
 0x421   : > { %v3451_v60 = vpop.f32.mrb[102].mxu1 }
 0x422   : > { %v1819_v19 = vpop.f32.mrb[103].mxu1  ;;  %v1825_v21 = vadd.f32 %v3451_v60, %v4771_v26  ;;  %v2046_v60 = vlaneseq }
 0x423   : > { %v1820_v20 = vadd.f32 %v4771_v26, %v1819_v19  ;;  %2343 = vmatmul.mubr.f32.gmra.mrb[146].mxu1 %v1985_v18 }
 0x424   : > { %2348 = vmatprep.mubr.f32.mxu1 %v4146_v62  ;;  %v1987_v23 = vmax.f32 %v1825_v21, 0.0 }
 0x425   : > { %v1986_v22 = vmax.f32 %v1820_v20, 0.0 }
 0x427   : > { %2349 = vmatmul.mubr.f32.gmra.mrb[148].mxu1 %v1986_v22  ;;  %v2047_v22 = vshrl.u32 %v2046_v60, 7  ;;  %v3761_v60 = vld [vmem:[%s4460_s22 + $0x40] sm:$0xff] }
 0x428   : > { %2354 = vmatprep.mubr.f32.mxu1 %v4146_v62 }
 0x429   : > { %v3454_v24 = vpop.f32.mrb[104].mxu1 }
 0x42a   : > { %v1829_v25 = vpop.f32.mrb[105].mxu1  ;;  %v1835_v28 = vadd.f32 %v3454_v24, %v4771_v26 }
 0x42b   : > { %v1830_v27 = vadd.f32 %v4771_v26, %v1829_v25  ;;  %2355 = vmatmul.mubr.f32.gmra.mrb[150].mxu1 %v1987_v23 }
 0x42c   : > { %2360 = vmatprep.mubr.f32.mxu1 %v4146_v62  ;;  %v1989_v30 = vmax.f32 %v1835_v28, 0.0 }
 0x42d   : > { %v1988_v29 = vmax.f32 %v1830_v27, 0.0  ;;  %v2048_v27 = vsub.s32 0, %v2047_v22 }
 0x42f   : > { %2361 = vmatmul.mubr.f32.gmra.mrb[152].mxu1 %v1988_v29  ;;  %v2052_v29 = vsub.s32 1, %v2047_v22 }
 0x430   : > { %2366 = vmatprep.mubr.f32.mxu1 %v4146_v62 }
 0x431   : > { %v3457_v31 = vpop.f32.mrb[106].mxu1 }
 0x432   : > { %v1839_v32 = vpop.f32.mrb[107].mxu1  ;;  %v1845_v34 = vadd.f32 %v3457_v31, %v4771_v26 }
 0x433   : > { %v1840_v33 = vadd.f32 %v4771_v26, %v1839_v32  ;;  %2367 = vmatmul.mubr.f32.gmra.mrb[154].mxu1 %v1989_v30  ;;  %v2505_v30 = vld [vmem:[#allocation2] sm:$0x3] }
 0x434   : > { %2372 = vmatprep.mubr.f32.mxu1 %v4146_v62  ;;  %v1991_v35 = vmax.f32 %v1845_v34, 0.0  ;;  %v4907_v34 = vrot.slane %v2505_v30, %v2048_v27 }
 0x435   : > { %v1990_v51 = vmax.f32 %v1840_v33, 0.0  ;;  %v2044_v33 = vld [vmem:[%s5529_s29] sm:$0x3] }
 0x437   : > { %2373 = vmatmul.mubr.f32.gmra.mrb[156].mxu1 %v1990_v51  ;;  %v4909_v51 = vrot.slane %v2505_v30, %v2052_v29 }
 0x438   : > { %2378 = vmatprep.mubr.f32.mxu1 %v4146_v62 }
 0x439   : > { %v3460_v36 = vpop.f32.mrb[108].mxu1 }
 0x43a   : > { %v1849_v37 = vpop.f32.mrb[109].mxu1  ;;  %v1855_v39 = vadd.f32 %v3460_v36, %v4771_v26 }
 0x43b   : > { %v1850_v38 = vadd.f32 %v4771_v26, %v1849_v37  ;;  %2379 = vmatmul.mubr.f32.gmra.mrb[158].mxu1 %v1991_v35  ;;  %v4912_v37 = vrot.slane %v2044_v33, %v2048_v27 }
 0x43c   : > { %2384 = vmatprep.mubr.f32.mxu1 %v4146_v62  ;;  %v1993_v41 = vmax.f32 %v1855_v39, 0.0  ;;  %v4914_v39 = vrot.slane %v2044_v33, %v2052_v29  ;;  %v3763_v29 = vld [vmem:[%s4460_s22 + $0x50] sm:$0xff] }
 0x43d   : > { %v1992_v40 = vmax.f32 %v1850_v38, 0.0  ;;  %v2527_v30 = vmul.f32 %v3763_v29, %v4907_v34  ;;  %v3775_v29 = vld [vmem:[%s4460_s22 + $0xb0] sm:$0xff] }
 0x43f   : > { %2385 = vmatmul.mubr.f32.gmra.mrb[160].mxu1 %v1992_v40  ;;  %v3753_v40 = vld [vmem:[%s4460_s22] sm:$0xff] }
 0x440   : > { %2390 = vmatprep.mubr.f32.mxu1 %v4146_v62 }
 0x441   : > { %v3463_v42 = vpop.f32.mrb[110].mxu1 }
 0x442   : > { %v1859_v43 = vpop.f32.mrb[111].mxu1  ;;  %v1865_v45 = vadd.f32 %v3463_v42, %v4771_v26 }
 0x443   : > { %v1860_v44 = vadd.f32 %v4771_v26, %v1859_v43  ;;  %2391 = vmatmul.mubr.f32.gmra.mrb[162].mxu1 %v1993_v41  ;;  %v2517_v41 = vmul.f32 %v3753_v40, %v4907_v34  ;;  %v3754_v43 = vld [vmem:[%s4460_s22 + $0x8] sm:$0xff] }
 0x444   : > { %2396 = vmatprep.mubr.f32.mxu1 %v4146_v62  ;;  %v1995_v47 = vmax.f32 %v1865_v45, 0.0 }
 0x445   : > { %v1994_v46 = vmax.f32 %v1860_v44, 0.0  ;;  %v2518_v44 = vmul.f32 %v3754_v43, %v4909_v51 }
 0x447   : > { %2397 = vmatmul.mubr.f32.gmra.mrb[164].mxu1 %v1994_v46 }
 0x448   : > { %2402 = vmatprep.mubr.f32.mxu1 %v4146_v62 }
 0x449   : > { %v3466_v48 = vpop.f32.mrb[112].mxu1 }
 0x44a   : > { %v1869_v49 = vpop.f32.mrb[113].mxu1  ;;  %v1875_v52 = vadd.f32 %v3466_v48, %v4771_v26 }
 0x44b   : > { %v1870_v50 = vadd.f32 %v4771_v26, %v1869_v49  ;;  %2403 = vmatmul.mubr.f32.gmra.mrb[166].mxu1 %v1995_v47 }
 0x44c   : > { %2408 = vmatprep.mubr.f32.mxu1 %v4146_v62  ;;  %v1997_v55 = vmax.f32 %v1875_v52, 0.0  ;;  %v3755_v52 = vld [vmem:[%s4460_s22 + $0x10] sm:$0xff] }
 0x44d   : > { %v1996_v54 = vmax.f32 %v1870_v50, 0.0 }
 0x44f   : > { %2409 = vmatmul.mubr.f32.gmra.mrb[168].mxu1 %v1996_v54  ;;  %v2519_v54 = vmul.f32 %v3755_v52, %v4907_v34 }
 0x450   : > { %2414 = vmatprep.mubr.f32.mxu1 %v4146_v62 }
 0x451   : > { %v3469_v56 = vpop.f32.mrb[114].mxu1 }
 0x452   : > { %v1879_v57 = vpop.f32.mrb[115].mxu1  ;;  %v1885_v59 = vadd.f32 %v3469_v56, %v4771_v26  ;;  %v3756_v56 = vld [vmem:[%s4460_s22 + $0x18] sm:$0xff] }
 0x453   : > { %v1880_v58 = vadd.f32 %v4771_v26, %v1879_v57  ;;  %2415 = vmatmul.mubr.f32.gmra.mrb[170].mxu1 %v1997_v55  ;;  %v2520_v57 = vmul.f32 %v3756_v56, %v4909_v51 }
 0x454   : > { %2420 = vmatprep.mubr.f32.mxu1 %v4146_v62  ;;  %v1999_v63 = vmax.f32 %v1885_v59, 0.0 }
 0x455   : > { %v1998_v61 = vmax.f32 %v1880_v58, 0.0 }
 0x457   : > { %2421 = vmatmul.mubr.f32.gmra.mrb[172].mxu1 %v1998_v61 }
 0x458   : > { %2426 = vmatprep.mubr.f32.mxu1 %v4146_v62 }
 0x459   : > { %v3472_v0 = vpop.f32.mrb[116].mxu1 }
 0x45a   : > { %v1889_v1 = vpop.f32.mrb[117].mxu1  ;;  %v1895_v3 = vadd.f32 %v3472_v0, %v4771_v26 }
 0x45b   : > { %v1890_v2 = vadd.f32 %v4771_v26, %v1889_v1  ;;  %2427 = vmatmul.mubr.f32.gmra.mrb[174].mxu1 %v1999_v63  ;;  %v3757_v1 = vld [vmem:[%s4460_s22 + $0x20] sm:$0xff] }
 0x45c   : > { %2432 = vmatprep.mubr.f32.mxu1 %v4146_v62  ;;  %v2001_v5 = vmax.f32 %v1895_v3, 0.0  ;;  %v3758_v3 = vld [vmem:[%s4460_s22 + $0x28] sm:$0xff] }
 0x45d   : > { %v2000_v4 = vmax.f32 %v1890_v2, 0.0  ;;  %v2521_v2 = vmul.f32 %v3757_v1, %v4907_v34  ;;  %v3769_v1 = vld [vmem:[%s4460_s22 + $0x80] sm:$0xff] }
 0x45f   : > { %2433 = vmatmul.mubr.f32.gmra.mrb[176].mxu1 %v2000_v4  ;;  %v2522_v4 = vmul.f32 %v3758_v3, %v4909_v51  ;;  %v3770_v3 = vld [vmem:[%s4460_s22 + $0x88] sm:$0xff] }
 0x460   : > { %2438 = vmatprep.mubr.f32.mxu1 %v4146_v62 }
 0x461   : > { %v3475_v6 = vpop.f32.mrb[118].mxu1 }
 0x462   : > { %v1899_v7 = vpop.f32.mrb[119].mxu1  ;;  %v1905_v8 = vadd.f32 %v3475_v6, %v4771_v26 }
 0x463   : > { %v1900_v53 = vadd.f32 %v4771_v26, %v1899_v7  ;;  %2439 = vmatmul.mubr.f32.gmra.mrb[178].mxu1 %v2001_v5 }
 0x464   : > { %2444 = vmatprep.mubr.f32.mxu1 %v4146_v62  ;;  %v2003_v10 = vmax.f32 %v1905_v8, 0.0 }
 0x465   : > { %v2002_v9 = vmax.f32 %v1900_v53, 0.0 }
 0x467   : > { %2445 = vmatmul.mubr.f32.gmra.mrb[180].mxu1 %v2002_v9  ;;  %v3759_v9 = vld [vmem:[%s4460_s22 + $0x30] sm:$0xff] }
 0x468   : > { %2450 = vmatprep.mubr.f32.mxu1 %v4146_v62 }
 0x469   : > { %v3478_v11 = vpop.f32.mrb[120].mxu1 }
 0x46a   : > { %v1909_v12 = vpop.f32.mrb[121].mxu1  ;;  %v1915_v14 = vadd.f32 %v3478_v11, %v4771_v26 }
 0x46b   : > { %v1910_v13 = vadd.f32 %v4771_v26, %v1909_v12  ;;  %2451 = vmatmul.mubr.f32.gmra.mrb[182].mxu1 %v2003_v10  ;;  %v2523_v10 = vmul.f32 %v3759_v9, %v4907_v34  ;;  %v3760_v12 = vld [vmem:[%s4460_s22 + $0x38] sm:$0xff]  ;;  %v3771_v9 = vld [vmem:[%s4460_s22 + $0x90] sm:$0xff] }
 0x46c   : > { %2456 = vmatprep.mubr.f32.mxu1 %v4146_v62  ;;  %v2005_v16 = vmax.f32 %v1915_v14, 0.0 }
 0x46d   : > { %v2004_v15 = vmax.f32 %v1910_v13, 0.0  ;;  %v2524_v13 = vmul.f32 %v3760_v12, %v4909_v51  ;;  %v3772_v12 = vld [vmem:[%s4460_s22 + $0x98] sm:$0xff] }
 0x46f   : > { %2457 = vmatmul.mubr.f32.gmra.mrb[184].mxu1 %v2004_v15 }
 0x470   : > { %2462 = vmatprep.mubr.f32.mxu1 %v4146_v62 }
 0x471   : > { %v3481_v17 = vpop.f32.mrb[122].mxu1 }
 0x472   : > { %v1919_v18 = vpop.f32.mrb[123].mxu1  ;;  %v1925_v20 = vadd.f32 %v3481_v17, %v4771_v26 }
 0x473   : > { %v1920_v19 = vadd.f32 %v4771_v26, %v1919_v18  ;;  %2463 = vmatmul.mubr.f32.gmra.mrb[186].mxu1 %v2005_v16 }
 0x474   : > { %2468 = vmatprep.mubr.f32.mxu1 %v4146_v62  ;;  %v2007_v23 = vmax.f32 %v1925_v20, 0.0 }
 0x475   : > { %v2006_v21 = vmax.f32 %v1920_v19, 0.0  ;;  %v2525_v19 = vmul.f32 %v3761_v60, %v4907_v34  ;;  %v3773_v60 = vld [vmem:[%s4460_s22 + $0xa0] sm:$0xff] }
 0x477   : > { %2469 = vmatmul.mubr.f32.gmra.mrb[188].mxu1 %v2006_v21  ;;  %v3762_v21 = vld [vmem:[%s4460_s22 + $0x48] sm:$0xff] }
 0x478   : > { %2474 = vmatprep.mubr.f32.mxu1 %v4146_v62  ;;  %v2526_v22 = vmul.f32 %v3762_v21, %v4909_v51  ;;  %v3774_v21 = vld [vmem:[%s4460_s22 + $0xa8] sm:$0xff] }
 0x479   : > { %v3484_v24 = vpop.f32.mrb[124].mxu1 }
 0x47a   : > { %v1929_v25 = vpop.f32.mrb[125].mxu1  ;;  %v1935_v31 = vadd.f32 %v3484_v24, %v4771_v26 }
 0x47b   : > { %v1930_v28 = vadd.f32 %v4771_v26, %v1929_v25  ;;  %2475 = vmatmul.mubr.f32.gmra.mrb[190].mxu1 %v2007_v23 }
 0x47c   : > { %2480 = vmatprep.mubr.f32.mxu1 %v4146_v62  ;;  %v2009_v35 = vmax.f32 %v1935_v31, 0.0 }
 0x47d   : > { %v2008_v32 = vmax.f32 %v1930_v28, 0.0 }
 0x47f   : > { %2481 = vmatmul.mubr.f32.gmra.mrb[192].mxu1 %v2008_v32  ;;  %v3764_v32 = vld [vmem:[%s4460_s22 + $0x58] sm:$0xff] }
 0x480   : > { %2486 = vmatprep.mubr.f32.mxu1 %v4146_v62  ;;  %v2528_v33 = vmul.f32 %v3764_v32, %v4909_v51  ;;  %v3776_v32 = vld [vmem:[%s4460_s22 + $0xb8] sm:$0xff] }
 0x481   : > { %v3487_v36 = vpop.f32.mrb[126].mxu1 }
 0x482   : > { %v1939_v38 = vpop.f32.mrb[127].mxu1  ;;  %v1945_v46 = vadd.f32 %v3487_v36, %v4771_v26 }
 0x483   : > { %v1940_v42 = vadd.f32 %v4771_v26, %v1939_v38  ;;  %2487 = vmatmul.mubr.f32.gmra.mrb[194].mxu1 %v2009_v35 }
 0x484   : > { %v2122_v45 = vpop.f32.mrb[128].mxu0  ;;  %2492 = vmatprep.mubr.f32.mxu1 %v4146_v62  ;;  %v2011_v26 = vmax.f32 %v1945_v46, 0.0 }
 0x485   : > { %v2010_v47 = vmax.f32 %v1940_v42, 0.0  ;;  %v2123_v48 = vadd.f32 %v2122_v45, %v4912_v37  ;;  %v2124_v49 = vpop.f32.mrb[129].mxu0  ;;  %v3765_v42 = vld [vmem:[%s4460_s22 + $0x60] sm:$0xff]  ;;  %v3766_v45 = vld [vmem:[%s4460_s22 + $0x68] sm:$0xff] }
 0x486   : > { %v2125_v50 = vadd.f32 %v2124_v49, %v4914_v39  ;;  %v2529_v43 = vmul.f32 %v3765_v42, %v4907_v34  ;;  %v2530_v46 = vmul.f32 %v3766_v45, %v4909_v51  ;;  %v3777_v42 = vld [vmem:[%s4460_s22 + $0xc0] sm:$0xff]  ;;  %v3778_v45 = vld [vmem:[%s4460_s22 + $0xc8] sm:$0xff] }
 0x487   : > { %v2645_v55 = vadd.f32 %v2517_v41, %v2123_v48  ;;  %2493 = vmatmul.mubr.f32.gmra.mrb[196].mxu1 %v2010_v47 }
 0x488   : > { %v2646_v58 = vadd.f32 %v2518_v44, %v2125_v50  ;;  %v2128_v59 = vpop.f32.mrb[130].mxu0  ;;  %2498 = vmatprep.mubr.f32.mxu1 %v4146_v62 }
 0x489   : > { %2773 = vst [vmem:[%s4931_s26] sm:$0xff] %v2645_v55  ;;  %v2129_v61 = vadd.f32 %v2128_v59, %v4912_v37  ;;  %v2130_v63 = vpop.f32.mrb[131].mxu0 }
 0x48a   : > { %2774 = vst [vmem:[%s4931_s26 + $0x8] sm:$0xff] %v2646_v58  ;;  %v2131_v0 = vadd.f32 %v2130_v63, %v4914_v39 }
 0x48b   : > { %v2647_v62 = vadd.f32 %v2519_v54, %v2129_v61  ;;  %2499 = vmatmul.mubr.f32.gmra.mrb[198].mxu1 %v2011_v26  ;;  %v3767_v54 = vld [vmem:[%s4460_s22 + $0x70] sm:$0xff] }
 0x48c   : > { %v2648_v5 = vadd.f32 %v2520_v57, %v2131_v0  ;;  %v2134_v6 = vpop.f32.mrb[132].mxu0  ;;  %v2531_v55 = vmul.f32 %v3767_v54, %v4907_v34  ;;  %v3768_v57 = vld [vmem:[%s4460_s22 + $0x78] sm:$0xff]  ;;  %v3779_v54 = vld [vmem:[%s4460_s22 + $0xd0] sm:$0xff] }
 0x48d   : > { %2775 = vst [vmem:[%s4931_s26 + $0x10] sm:$0xff] %v2647_v62  ;;  %v2135_v7 = vadd.f32 %v2134_v6, %v4912_v37  ;;  %v2136_v53 = vpop.f32.mrb[133].mxu0  ;;  %v2532_v58 = vmul.f32 %v3768_v57, %v4909_v51  ;;  %v3780_v57 = vld [vmem:[%s4460_s22 + $0xd8] sm:$0xff] }
 0x48e   : > { %2776 = vst [vmem:[%s4931_s26 + $0x18] sm:$0xff] %v2648_v5  ;;  %v2137_v8 = vadd.f32 %v2136_v53, %v4914_v39 }
 0x48f   : > { %v2649_v11 = vadd.f32 %v2521_v2, %v2135_v7  ;;  %v2533_v2 = vmul.f32 %v3769_v1, %v4907_v34  ;;  %v3781_v1 = vld [vmem:[%s4460_s22 + $0xe0] sm:$0xff] }
 0x490   : > { %v2650_v14 = vadd.f32 %v2522_v4, %v2137_v8  ;;  %v2140_v15 = vpop.f32.mrb[134].mxu0  ;;  %v2534_v4 = vmul.f32 %v3770_v3, %v4909_v51  ;;  %v3782_v3 = vld [vmem:[%s4460_s22 + $0xe8] sm:$0xff] }
 0x491   : > { %2777 = vst [vmem:[%s4931_s26 + $0x20] sm:$0xff] %v2649_v11  ;;  %v2141_v16 = vadd.f32 %v2140_v15, %v4912_v37  ;;  %v2142_v17 = vpop.f32.mrb[135].mxu0 }
 0x492   : > { %2778 = vst [vmem:[%s4931_s26 + $0x28] sm:$0xff] %v2650_v14  ;;  %v2143_v18 = vadd.f32 %v2142_v17, %v4914_v39 }
 0x493   : > { %v2651_v20 = vadd.f32 %v2523_v10, %v2141_v16  ;;  %v2535_v10 = vmul.f32 %v3771_v9, %v4907_v34  ;;  %v3783_v9 = vld [vmem:[%s4460_s22 + $0xf0] sm:$0xff] }
 0x494   : > { %v2652_v23 = vadd.f32 %v2524_v13, %v2143_v18  ;;  %v2146_v24 = vpop.f32.mrb[136].mxu0  ;;  %v2536_v13 = vmul.f32 %v3772_v12, %v4909_v51  ;;  %v3784_v12 = vld [vmem:[%s4460_s22 + $0xf8] sm:$0xff] }
 0x495   : > { %2779 = vst [vmem:[%s4931_s26 + $0x30] sm:$0xff] %v2651_v20  ;;  %v2147_v25 = vadd.f32 %v2146_v24, %v4912_v37  ;;  %v2148_v27 = vpop.f32.mrb[137].mxu0 }
 0x496   : > { %2780 = vst [vmem:[%s4931_s26 + $0x38] sm:$0xff] %v2652_v23  ;;  %v2149_v28 = vadd.f32 %v2148_v27, %v4914_v39 }
 0x497   : > { %v2653_v31 = vadd.f32 %v2525_v19, %v2147_v25  ;;  %v2537_v19 = vmul.f32 %v3773_v60, %v4907_v34  ;;  %v3785_v60 = vld [vmem:[%s4460_s22 + $0x100] sm:$0xff] }
 0x498   : > { %v2654_v35 = vadd.f32 %v2526_v22, %v2149_v28  ;;  %v2152_v36 = vpop.f32.mrb[138].mxu0  ;;  %v2538_v22 = vmul.f32 %v3774_v21, %v4909_v51  ;;  %v3786_v21 = vld [vmem:[%s4460_s22 + $0x108] sm:$0xff] }
 0x499   : > { %2781 = vst [vmem:[%s4931_s26 + $0x40] sm:$0xff] %v2653_v31  ;;  %v2153_v38 = vadd.f32 %v2152_v36, %v4912_v37  ;;  %v2154_v40 = vpop.f32.mrb[139].mxu0 }
 0x49a   : > { %2782 = vst [vmem:[%s4931_s26 + $0x48] sm:$0xff] %v2654_v35  ;;  %v2155_v41 = vadd.f32 %v2154_v40, %v4914_v39 }
 0x49b   : > { %v2655_v44 = vadd.f32 %v2527_v30, %v2153_v38  ;;  %v2539_v30 = vmul.f32 %v3775_v29, %v4907_v34  ;;  %v3787_v29 = vld [vmem:[%s4460_s22 + $0x110] sm:$0xff] }
 0x49c   : > { %v2656_v47 = vadd.f32 %v2528_v33, %v2155_v41  ;;  %v2158_v48 = vpop.f32.mrb[140].mxu0  ;;  %v2540_v33 = vmul.f32 %v3776_v32, %v4909_v51  ;;  %v3788_v32 = vld [vmem:[%s4460_s22 + $0x118] sm:$0xff] }
 0x49d   : > { %2783 = vst [vmem:[%s4931_s26 + $0x50] sm:$0xff] %v2655_v44  ;;  %v2159_v49 = vadd.f32 %v2158_v48, %v4912_v37  ;;  %v2160_v50 = vpop.f32.mrb[141].mxu0 }
 0x49e   : > { %2784 = vst [vmem:[%s4931_s26 + $0x58] sm:$0xff] %v2656_v47  ;;  %v2161_v52 = vadd.f32 %v2160_v50, %v4914_v39 }
 0x49f   : > { %v2657_v56 = vadd.f32 %v2529_v43, %v2159_v49  ;;  %v2541_v43 = vmul.f32 %v3777_v42, %v4907_v34  ;;  %v3789_v42 = vld [vmem:[%s4460_s22 + $0x120] sm:$0xff] }
 0x4a0   : > { %v2658_v59 = vadd.f32 %v2530_v46, %v2161_v52  ;;  %v2164_v26 = vpop.f32.mrb[142].mxu0  ;;  %v2542_v46 = vmul.f32 %v3778_v45, %v4909_v51  ;;  %v3790_v45 = vld [vmem:[%s4460_s22 + $0x128] sm:$0xff] }
 0x4a1   : > { %2785 = vst [vmem:[%s4931_s26 + $0x60] sm:$0xff] %v2657_v56  ;;  %v2165_v61 = vadd.f32 %v2164_v26, %v4912_v37  ;;  %v2166_v63 = vpop.f32.mrb[143].mxu0 }
 0x4a2   : > { %2786 = vst [vmem:[%s4931_s26 + $0x68] sm:$0xff] %v2658_v59  ;;  %v2167_v0 = vadd.f32 %v2166_v63, %v4914_v39 }
 0x4a3   : > { %v2659_v62 = vadd.f32 %v2531_v55, %v2165_v61  ;;  %v2543_v55 = vmul.f32 %v3779_v54, %v4907_v34  ;;  %v3791_v54 = vld [vmem:[%s4460_s22 + $0x130] sm:$0xff] }
 0x4a4   : > { %v2660_v5 = vadd.f32 %v2532_v58, %v2167_v0  ;;  %v2170_v6 = vpop.f32.mrb[144].mxu0  ;;  %v2544_v58 = vmul.f32 %v3780_v57, %v4909_v51  ;;  %v3792_v57 = vld [vmem:[%s4460_s22 + $0x138] sm:$0xff] }
 0x4a5   : > { %2787 = vst [vmem:[%s4931_s26 + $0x70] sm:$0xff] %v2659_v62  ;;  %v2171_v7 = vadd.f32 %v2170_v6, %v4912_v37  ;;  %v2172_v53 = vpop.f32.mrb[145].mxu0 }
 0x4a6   : > { %2788 = vst [vmem:[%s4931_s26 + $0x78] sm:$0xff] %v2660_v5  ;;  %v2173_v8 = vadd.f32 %v2172_v53, %v4914_v39 }
 0x4a7   : > { %v2661_v11 = vadd.f32 %v2533_v2, %v2171_v7  ;;  %v2545_v2 = vmul.f32 %v3781_v1, %v4907_v34 }
 0x4a8   : > { %v2662_v14 = vadd.f32 %v2534_v4, %v2173_v8  ;;  %v2176_v15 = vpop.f32.mrb[146].mxu0  ;;  %v2546_v4 = vmul.f32 %v3782_v3, %v4909_v51 }
 0x4a9   : > { %2789 = vst [vmem:[%s4931_s26 + $0x80] sm:$0xff] %v2661_v11  ;;  %v2177_v16 = vadd.f32 %v2176_v15, %v4912_v37  ;;  %v2178_v17 = vpop.f32.mrb[147].mxu0 }
 0x4aa   : > { %2790 = vst [vmem:[%s4931_s26 + $0x88] sm:$0xff] %v2662_v14  ;;  %v2179_v18 = vadd.f32 %v2178_v17, %v4914_v39 }
 0x4ab   : > { %v2663_v20 = vadd.f32 %v2535_v10, %v2177_v16  ;;  %v2547_v10 = vmul.f32 %v3783_v9, %v4907_v34  ;;  %v3796_v9 = vld [vmem:[%s4460_s22 + $0x148] sm:$0xff] }
 0x4ac   : > { %v2664_v23 = vadd.f32 %v2536_v13, %v2179_v18  ;;  %v2182_v24 = vpop.f32.mrb[148].mxu0  ;;  %v2548_v13 = vmul.f32 %v3784_v12, %v4909_v51 }
 0x4ad   : > { %2791 = vst [vmem:[%s4931_s26 + $0x90] sm:$0xff] %v2663_v20  ;;  %v2183_v25 = vadd.f32 %v2182_v24, %v4912_v37  ;;  %v2184_v27 = vpop.f32.mrb[149].mxu0 }
 0x4ae   : > { %2792 = vst [vmem:[%s4931_s26 + $0x98] sm:$0xff] %v2664_v23  ;;  %v2185_v28 = vadd.f32 %v2184_v27, %v4914_v39 }
 0x4af   : > { %v2665_v31 = vadd.f32 %v2537_v19, %v2183_v25  ;;  %v2549_v19 = vmul.f32 %v3785_v60, %v4907_v34  ;;  %v3798_v60 = vld [vmem:[%s4460_s22 + $0x1d8] sm:$0xff] }
 0x4b0   : > { %v2666_v35 = vadd.f32 %v2538_v22, %v2185_v28  ;;  %v2188_v36 = vpop.f32.mrb[150].mxu0  ;;  %v2550_v22 = vmul.f32 %v3786_v21, %v4909_v51 }
 0x4b1   : > { %2793 = vst [vmem:[%s4931_s26 + $0xa0] sm:$0xff] %v2665_v31  ;;  %v2189_v38 = vadd.f32 %v2188_v36, %v4912_v37  ;;  %v2190_v40 = vpop.f32.mrb[151].mxu0 }
 0x4b2   : > { %2794 = vst [vmem:[%s4931_s26 + $0xa8] sm:$0xff] %v2666_v35  ;;  %v2191_v41 = vadd.f32 %v2190_v40, %v4914_v39 }
 0x4b3   : > { %v2667_v44 = vadd.f32 %v2539_v30, %v2189_v38  ;;  %v2551_v30 = vmul.f32 %v3787_v29, %v4907_v34  ;;  %v3800_v29 = vld [vmem:[%s4460_s22 + $0x158] sm:$0xff] }
 0x4b4   : > { %v2668_v47 = vadd.f32 %v2540_v33, %v2191_v41  ;;  %v2194_v48 = vpop.f32.mrb[152].mxu0  ;;  %v2552_v33 = vmul.f32 %v3788_v32, %v4909_v51 }
 0x4b5   : > { %2795 = vst [vmem:[%s4931_s26 + $0xb0] sm:$0xff] %v2667_v44  ;;  %v2195_v49 = vadd.f32 %v2194_v48, %v4912_v37  ;;  %v2196_v50 = vpop.f32.mrb[153].mxu0 }
 0x4b6   : > { %2796 = vst [vmem:[%s4931_s26 + $0xb8] sm:$0xff] %v2668_v47  ;;  %v2197_v52 = vadd.f32 %v2196_v50, %v4914_v39 }
 0x4b7   : > { %v2669_v56 = vadd.f32 %v2541_v43, %v2195_v49  ;;  %v2553_v43 = vmul.f32 %v3789_v42, %v4907_v34  ;;  %v3802_v42 = vld [vmem:[%s4460_s22 + $0x1e8] sm:$0xff] }
 0x4b8   : > { %v2670_v59 = vadd.f32 %v2542_v46, %v2197_v52  ;;  %v2200_v26 = vpop.f32.mrb[154].mxu0  ;;  %v2554_v46 = vmul.f32 %v3790_v45, %v4909_v51 }
 0x4b9   : > { %2797 = vst [vmem:[%s4931_s26 + $0xc0] sm:$0xff] %v2669_v56  ;;  %v2201_v61 = vadd.f32 %v2200_v26, %v4912_v37  ;;  %v2202_v63 = vpop.f32.mrb[155].mxu0 }
 0x4ba   : > { %2798 = vst [vmem:[%s4931_s26 + $0xc8] sm:$0xff] %v2670_v59  ;;  %v2203_v0 = vadd.f32 %v2202_v63, %v4914_v39 }
 0x4bb   : > { %v2671_v62 = vadd.f32 %v2543_v55, %v2201_v61  ;;  %v2555_v55 = vmul.f32 %v3791_v54, %v4907_v34  ;;  %v3793_v61 = vld [vmem:[%s4460_s22 + $0x1c0] sm:$0xff]  ;;  %v3804_v54 = vld [vmem:[%s4460_s22 + $0x168] sm:$0xff] }
 0x4bc   : > { %v2672_v5 = vadd.f32 %v2544_v58, %v2203_v0  ;;  %v2206_v6 = vpop.f32.mrb[156].mxu0  ;;  %v2556_v58 = vmul.f32 %v3792_v57, %v4909_v51  ;;  %v2573_v63 = vmul.f32 %v3793_v61, %v4907_v34 }
 0x4bd   : > { %2799 = vst [vmem:[%s4931_s26 + $0xd0] sm:$0xff] %v2671_v62  ;;  %v2207_v7 = vadd.f32 %v2206_v6, %v4912_v37  ;;  %v2208_v53 = vpop.f32.mrb[157].mxu0 }
 0x4be   : > { %2800 = vst [vmem:[%s4931_s26 + $0xd8] sm:$0xff] %v2672_v5  ;;  %v2209_v8 = vadd.f32 %v2208_v53, %v4914_v39  ;;  %v3795_v5 = vld [vmem:[%s4460_s22 + $0x140] sm:$0xff] }
 0x4bf   : > { %v2673_v11 = vadd.f32 %v2545_v2, %v2207_v7  ;;  %v3794_v2 = vld [vmem:[%s4460_s22 + $0x1c8] sm:$0xff]  ;;  %v2557_v6 = vmul.f32 %v3795_v5, %v4907_v34  ;;  %v3807_v5 = vld [vmem:[%s4460_s22 + $0x170] sm:$0xff] }
 0x4c0   : > { %v2674_v14 = vadd.f32 %v2546_v4, %v2209_v8  ;;  %v2212_v15 = vpop.f32.mrb[158].mxu0  ;;  %v2574_v62 = vmul.f32 %v3794_v2, %v4909_v51 }
 0x4c1   : > { %2801 = vst [vmem:[%s4931_s26 + $0xe0] sm:$0xff] %v2673_v11  ;;  %v2213_v16 = vadd.f32 %v2212_v15, %v4912_v37  ;;  %v2214_v17 = vpop.f32.mrb[159].mxu0 }
 0x4c2   : > { %2802 = vst [vmem:[%s4931_s26 + $0xe8] sm:$0xff] %v2674_v14  ;;  %v2215_v18 = vadd.f32 %v2214_v17, %v4914_v39  ;;  %v3797_v14 = vld [vmem:[%s4460_s22 + $0x1d0] sm:$0xff] }
 0x4c3   : > { %v2675_v20 = vadd.f32 %v2547_v10, %v2213_v16  ;;  %v2558_v10 = vmul.f32 %v3796_v9, %v4909_v51  ;;  %v2575_v15 = vmul.f32 %v3797_v14, %v4907_v34  ;;  %v3808_v9 = vld [vmem:[%s4460_s22 + $0x178] sm:$0xff]  ;;  %v3809_v14 = vld [vmem:[%s4460_s22 + $0x200] sm:$0xff] }
 0x4c4   : > { %v2676_v23 = vadd.f32 %v2548_v13, %v2215_v18  ;;  %v2218_v24 = vpop.f32.mrb[160].mxu0 }
 0x4c5   : > { %2803 = vst [vmem:[%s4931_s26 + $0xf0] sm:$0xff] %v2675_v20  ;;  %v2219_v25 = vadd.f32 %v2218_v24, %v4912_v37  ;;  %v2220_v27 = vpop.f32.mrb[161].mxu0 }
 0x4c6   : > { %2804 = vst [vmem:[%s4931_s26 + $0xf8] sm:$0xff] %v2676_v23  ;;  %v2221_v28 = vadd.f32 %v2220_v27, %v4914_v39  ;;  %v3799_v23 = vld [vmem:[%s4460_s22 + $0x150] sm:$0xff] }
 0x4c7   : > { %v2677_v31 = vadd.f32 %v2549_v19, %v2219_v25  ;;  %v2576_v19 = vmul.f32 %v3798_v60, %v4909_v51  ;;  %v2559_v24 = vmul.f32 %v3799_v23, %v4907_v34  ;;  %v3810_v60 = vld [vmem:[%s4460_s22 + $0x208] sm:$0xff]  ;;  %v3811_v23 = vld [vmem:[%s4460_s22 + $0x180] sm:$0xff] }
 0x4c8   : > { %v2678_v35 = vadd.f32 %v2550_v22, %v2221_v28  ;;  %v2224_v36 = vpop.f32.mrb[162].mxu0 }
 0x4c9   : > { %2805 = vst [vmem:[%s4931_s26 + $0x100] sm:$0xff] %v2677_v31  ;;  %v2225_v38 = vadd.f32 %v2224_v36, %v4912_v37  ;;  %v2226_v40 = vpop.f32.mrb[163].mxu0 }
 0x4ca   : > { %2806 = vst [vmem:[%s4931_s26 + $0x108] sm:$0xff] %v2678_v35  ;;  %v2227_v41 = vadd.f32 %v2226_v40, %v4914_v39  ;;  %v3801_v35 = vld [vmem:[%s4460_s22 + $0x1e0] sm:$0xff] }
 0x4cb   : > { %v2679_v44 = vadd.f32 %v2551_v30, %v2225_v38  ;;  %v2560_v30 = vmul.f32 %v3800_v29, %v4909_v51  ;;  %v2577_v36 = vmul.f32 %v3801_v35, %v4907_v34  ;;  %v3812_v29 = vld [vmem:[%s4460_s22 + $0x188] sm:$0xff]  ;;  %v3813_v35 = vld [vmem:[%s4460_s22 + $0x210] sm:$0xff] }
 0x4cc   : > { %v2680_v47 = vadd.f32 %v2552_v33, %v2227_v41  ;;  %v2230_v48 = vpop.f32.mrb[164].mxu0 }
 0x4cd   : > { %2807 = vst [vmem:[%s4931_s26 + $0x110] sm:$0xff] %v2679_v44  ;;  %v2231_v49 = vadd.f32 %v2230_v48, %v4912_v37  ;;  %v2232_v50 = vpop.f32.mrb[165].mxu0 }
 0x4ce   : > { %2808 = vst [vmem:[%s4931_s26 + $0x118] sm:$0xff] %v2680_v47  ;;  %v2233_v52 = vadd.f32 %v2232_v50, %v4914_v39  ;;  %v3803_v47 = vld [vmem:[%s4460_s22 + $0x160] sm:$0xff] }
 0x4cf   : > { %v2681_v56 = vadd.f32 %v2553_v43, %v2231_v49  ;;  %v2578_v43 = vmul.f32 %v3802_v42, %v4909_v51  ;;  %v2561_v48 = vmul.f32 %v3803_v47, %v4907_v34  ;;  %v3814_v42 = vld [vmem:[%s4460_s22 + $0x218] sm:$0xff]  ;;  %v3815_v47 = vld [vmem:[%s4460_s22 + $0x190] sm:$0xff] }
 0x4d0   : > { %v2682_v59 = vadd.f32 %v2554_v46, %v2233_v52  ;;  %v2236_v26 = vpop.f32.mrb[166].mxu0 }
 0x4d1   : > { %2809 = vst [vmem:[%s4931_s26 + $0x120] sm:$0xff] %v2681_v56  ;;  %v2237_v0 = vadd.f32 %v2236_v26, %v4912_v37  ;;  %v2238_v1 = vpop.f32.mrb[167].mxu0 }
 0x4d2   : > { %2810 = vst [vmem:[%s4931_s26 + $0x128] sm:$0xff] %v2682_v59  ;;  %v2239_v3 = vadd.f32 %v2238_v1, %v4914_v39  ;;  %v2290_v4 = vpop.f32.mrb[128].mxu1  ;;  %v3805_v59 = vld [vmem:[%s4460_s22 + $0x1f0] sm:$0xff]  ;;  %v3806_v1 = vld [vmem:[%s4460_s22 + $0x1f8] sm:$0xff] }
 0x4d3   : > { %v2683_v7 = vadd.f32 %v2555_v55, %v2237_v0  ;;  %v2291_v53 = vadd.f32 %v2290_v4, %v4912_v37  ;;  %v2292_v8 = vpop.f32.mrb[129].mxu1  ;;  %v2562_v55 = vmul.f32 %v3804_v54, %v4909_v51  ;;  %v2579_v26 = vmul.f32 %v3805_v59, %v4907_v34  ;;  %v3816_v54 = vld [vmem:[%s4460_s22 + $0x198] sm:$0xff]  ;;  %v3817_v59 = vld [vmem:[%s4460_s22 + $0x220] sm:$0xff] }
 0x4d4   : > { %v2684_v11 = vadd.f32 %v2556_v58, %v2239_v3  ;;  %v2293_v12 = vadd.f32 %v2292_v8, %v4914_v39  ;;  %v2242_v13 = vpop.f32.mrb[168].mxu0  ;;  %v2580_v2 = vmul.f32 %v3806_v1, %v4909_v51  ;;  %v3818_v1 = vld [vmem:[%s4460_s22 + $0x228] sm:$0xff] }
 0x4d5   : > { %2811 = vst [vmem:[%s4931_s26 + $0x130] sm:$0xff] %v2683_v7  ;;  %v2701_v16 = vadd.f32 %v2573_v63, %v2291_v53  ;;  %v2243_v17 = vadd.f32 %v2242_v13, %v4912_v37  ;;  %v2244_v18 = vpop.f32.mrb[169].mxu0 }
 0x4d6   : > { %2812 = vst [vmem:[%s4931_s26 + $0x138] sm:$0xff] %v2684_v11  ;;  %v2702_v20 = vadd.f32 %v2574_v62, %v2293_v12  ;;  %v2245_v21 = vadd.f32 %v2244_v18, %v4914_v39  ;;  %v2296_v22 = vpop.f32.mrb[130].mxu1 }
 0x4d7   : > { %2829 = vst [vmem:[%s4931_s26 + $0x1c0] sm:$0xff] %v2701_v16  ;;  %v2685_v25 = vadd.f32 %v2557_v6, %v2243_v17  ;;  %v2297_v27 = vadd.f32 %v2296_v22, %v4912_v37  ;;  %v2298_v28 = vpop.f32.mrb[131].mxu1  ;;  %v2563_v6 = vmul.f32 %v3807_v5, %v4907_v34  ;;  %v3819_v5 = vld [vmem:[%s4460_s22 + $0x1a0] sm:$0xff] }
 0x4d8   : > { %2830 = vst [vmem:[%s4931_s26 + $0x1c8] sm:$0xff] %v2702_v20  ;;  %v2686_v31 = vadd.f32 %v2558_v10, %v2245_v21  ;;  %v2299_v32 = vadd.f32 %v2298_v28, %v4914_v39  ;;  %v2248_v33 = vpop.f32.mrb[170].mxu0  ;;  %v2564_v10 = vmul.f32 %v3808_v9, %v4909_v51  ;;  %v3820_v9 = vld [vmem:[%s4460_s22 + $0x1a8] sm:$0xff] }
 0x4d9   : > { %2813 = vst [vmem:[%s4931_s26 + $0x140] sm:$0xff] %v2685_v25  ;;  %v2703_v38 = vadd.f32 %v2575_v15, %v2297_v27  ;;  %v2249_v40 = vadd.f32 %v2248_v33, %v4912_v37  ;;  %v2250_v41 = vpop.f32.mrb[171].mxu0  ;;  %v2581_v15 = vmul.f32 %v3809_v14, %v4907_v34  ;;  %v3821_v14 = vld [vmem:[%s4460_s22 + $0x230] sm:$0xff] }
 0x4da   : > { %2814 = vst [vmem:[%s4931_s26 + $0x148] sm:$0xff] %v2686_v31  ;;  %v2704_v44 = vadd.f32 %v2576_v19, %v2299_v32  ;;  %v2251_v45 = vadd.f32 %v2250_v41, %v4914_v39  ;;  %v2302_v46 = vpop.f32.mrb[132].mxu1  ;;  %v2582_v19 = vmul.f32 %v3810_v60, %v4909_v51  ;;  %v3822_v60 = vld [vmem:[%s4460_s22 + $0x238] sm:$0xff] }
 0x4db   : > { %2831 = vst [vmem:[%s4931_s26 + $0x1d0] sm:$0xff] %v2703_v38  ;;  %v2687_v49 = vadd.f32 %v2559_v24, %v2249_v40  ;;  %v2303_v50 = vadd.f32 %v2302_v46, %v4912_v37  ;;  %v2304_v52 = vpop.f32.mrb[133].mxu1  ;;  %v2565_v24 = vmul.f32 %v3811_v23, %v4907_v34  ;;  %v3823_v23 = vld [vmem:[%s4460_s22 + $0x1b0] sm:$0xff] }
 0x4dc   : > { %2832 = vst [vmem:[%s4931_s26 + $0x1d8] sm:$0xff] %v2704_v44  ;;  %v2688_v56 = vadd.f32 %v2560_v30, %v2251_v45  ;;  %v2305_v57 = vadd.f32 %v2304_v52, %v4914_v39  ;;  %v2254_v58 = vpop.f32.mrb[172].mxu0  ;;  %v2566_v30 = vmul.f32 %v3812_v29, %v4909_v51  ;;  %v3824_v29 = vld [vmem:[%s4460_s22 + $0x1b8] sm:$0xff] }
 0x4dd   : > { %2815 = vst [vmem:[%s4931_s26 + $0x150] sm:$0xff] %v2687_v49  ;;  %v2705_v61 = vadd.f32 %v2577_v36, %v2303_v50  ;;  %v2255_v63 = vadd.f32 %v2254_v58, %v4912_v37  ;;  %v2256_v0 = vpop.f32.mrb[173].mxu0  ;;  %v2583_v36 = vmul.f32 %v3813_v35, %v4907_v34  ;;  %v3825_v35 = vld [vmem:[%s4460_s22 + $0x240] sm:$0xff] }
 0x4de   : > { %2816 = vst [vmem:[%s4931_s26 + $0x158] sm:$0xff] %v2688_v56  ;;  %v2706_v62 = vadd.f32 %v2578_v43, %v2305_v57  ;;  %v2257_v3 = vadd.f32 %v2256_v0, %v4914_v39  ;;  %v2308_v4 = vpop.f32.mrb[134].mxu1  ;;  %v2584_v43 = vmul.f32 %v3814_v42, %v4909_v51  ;;  %v3826_v42 = vld [vmem:[%s4460_s22 + $0x248] sm:$0xff] }
 0x4df   : > { %2833 = vst [vmem:[%s4931_s26 + $0x1e0] sm:$0xff] %v2705_v61  ;;  %v2689_v7 = vadd.f32 %v2561_v48, %v2255_v63  ;;  %v2309_v53 = vadd.f32 %v2308_v4, %v4912_v37  ;;  %v2310_v8 = vpop.f32.mrb[135].mxu1  ;;  %v2567_v48 = vmul.f32 %v3815_v47, %v4907_v34 }
 0x4e0   : > { %2834 = vst [vmem:[%s4931_s26 + $0x1e8] sm:$0xff] %v2706_v62  ;;  %v2690_v11 = vadd.f32 %v2562_v55, %v2257_v3  ;;  %v2311_v12 = vadd.f32 %v2310_v8, %v4914_v39  ;;  %v2260_v13 = vpop.f32.mrb[174].mxu0  ;;  %v2568_v55 = vmul.f32 %v3816_v54, %v4909_v51  ;;  %v3827_v54 = vld [vmem:[%s4460_s22 + $0x250] sm:$0xff] }
 0x4e1   : > { %2817 = vst [vmem:[%s4931_s26 + $0x160] sm:$0xff] %v2689_v7  ;;  %v2707_v16 = vadd.f32 %v2579_v26, %v2309_v53  ;;  %v2261_v17 = vadd.f32 %v2260_v13, %v4912_v37  ;;  %v2262_v18 = vpop.f32.mrb[175].mxu0  ;;  %v2585_v26 = vmul.f32 %v3817_v59, %v4907_v34 }
 0x4e2   : > { %2818 = vst [vmem:[%s4931_s26 + $0x168] sm:$0xff] %v2690_v11  ;;  %v2708_v20 = vadd.f32 %v2580_v2, %v2311_v12  ;;  %v2263_v21 = vadd.f32 %v2262_v18, %v4914_v39  ;;  %v2314_v22 = vpop.f32.mrb[136].mxu1  ;;  %v2586_v2 = vmul.f32 %v3818_v1, %v4909_v51  ;;  %v3829_v1 = vld [vmem:[%s4460_s22 + $0x260] sm:$0xff] }
 0x4e3   : > { %2835 = vst [vmem:[%s4931_s26 + $0x1f0] sm:$0xff] %v2707_v16  ;;  %v2691_v25 = vadd.f32 %v2563_v6, %v2261_v17  ;;  %v2315_v27 = vadd.f32 %v2314_v22, %v4912_v37  ;;  %v2316_v28 = vpop.f32.mrb[137].mxu1  ;;  %v2569_v6 = vmul.f32 %v3819_v5, %v4907_v34 }
 0x4e4   : > { %2836 = vst [vmem:[%s4931_s26 + $0x1f8] sm:$0xff] %v2708_v20  ;;  %v2692_v31 = vadd.f32 %v2564_v10, %v2263_v21  ;;  %v2317_v32 = vadd.f32 %v2316_v28, %v4914_v39  ;;  %v2266_v33 = vpop.f32.mrb[176].mxu0  ;;  %v2570_v10 = vmul.f32 %v3820_v9, %v4909_v51  ;;  %v3831_v9 = vld [vmem:[%s4460_s22 + $0x270] sm:$0xff] }
 0x4e5   : > { %2819 = vst [vmem:[%s4931_s26 + $0x170] sm:$0xff] %v2691_v25  ;;  %v2709_v38 = vadd.f32 %v2581_v15, %v2315_v27  ;;  %v2267_v40 = vadd.f32 %v2266_v33, %v4912_v37  ;;  %v2268_v41 = vpop.f32.mrb[177].mxu0  ;;  %v2587_v15 = vmul.f32 %v3821_v14, %v4907_v34 }
 0x4e6   : > { %2820 = vst [vmem:[%s4931_s26 + $0x178] sm:$0xff] %v2692_v31  ;;  %v2710_v44 = vadd.f32 %v2582_v19, %v2317_v32  ;;  %v2269_v45 = vadd.f32 %v2268_v41, %v4914_v39  ;;  %v2320_v46 = vpop.f32.mrb[138].mxu1  ;;  %v2588_v19 = vmul.f32 %v3822_v60, %v4909_v51  ;;  %v3833_v60 = vld [vmem:[%s4460_s22 + $0x280] sm:$0xff] }
 0x4e7   : > { %2837 = vst [vmem:[%s4931_s26 + $0x200] sm:$0xff] %v2709_v38  ;;  %v2693_v49 = vadd.f32 %v2565_v24, %v2267_v40  ;;  %v2321_v50 = vadd.f32 %v2320_v46, %v4912_v37  ;;  %v2322_v52 = vpop.f32.mrb[139].mxu1  ;;  %v2571_v24 = vmul.f32 %v3823_v23, %v4907_v34 }
 0x4e8   : > { %2838 = vst [vmem:[%s4931_s26 + $0x208] sm:$0xff] %v2710_v44  ;;  %v2694_v56 = vadd.f32 %v2566_v30, %v2269_v45  ;;  %v2323_v57 = vadd.f32 %v2322_v52, %v4914_v39  ;;  %v2272_v58 = vpop.f32.mrb[178].mxu0  ;;  %v2572_v30 = vmul.f32 %v3824_v29, %v4909_v51  ;;  %v3835_v29 = vld [vmem:[%s4460_s22 + $0x290] sm:$0xff] }
 0x4e9   : > { %2821 = vst [vmem:[%s4931_s26 + $0x180] sm:$0xff] %v2693_v49  ;;  %v2711_v61 = vadd.f32 %v2583_v36, %v2321_v50  ;;  %v2273_v63 = vadd.f32 %v2272_v58, %v4912_v37  ;;  %v2274_v0 = vpop.f32.mrb[179].mxu0  ;;  %v2589_v36 = vmul.f32 %v3825_v35, %v4907_v34 }
 0x4ea   : > { %2822 = vst [vmem:[%s4931_s26 + $0x188] sm:$0xff] %v2694_v56  ;;  %v2712_v62 = vadd.f32 %v2584_v43, %v2323_v57  ;;  %v2275_v3 = vadd.f32 %v2274_v0, %v4914_v39  ;;  %v2326_v4 = vpop.f32.mrb[140].mxu1  ;;  %v2590_v43 = vmul.f32 %v3826_v42, %v4909_v51  ;;  %v3828_v57 = vld [vmem:[%s4460_s22 + $0x258] sm:$0xff]  ;;  %v3837_v42 = vld [vmem:[%s4460_s22 + $0x2a0] sm:$0xff] }
 0x4eb   : > { %2839 = vst [vmem:[%s4931_s26 + $0x210] sm:$0xff] %v2711_v61  ;;  %v2695_v7 = vadd.f32 %v2567_v48, %v2273_v63  ;;  %v2327_v53 = vadd.f32 %v2326_v4, %v4912_v37  ;;  %v2328_v8 = vpop.f32.mrb[141].mxu1  ;;  %v2592_v58 = vmul.f32 %v3828_v57, %v4909_v51  ;;  %v3840_v57 = vld [vmem:[%s4460_s22 + $0x2b8] sm:$0xff] }
 0x4ec   : > { %2840 = vst [vmem:[%s4931_s26 + $0x218] sm:$0xff] %v2712_v62  ;;  %v2696_v11 = vadd.f32 %v2568_v55, %v2275_v3  ;;  %v2329_v12 = vadd.f32 %v2328_v8, %v4914_v39  ;;  %v2278_v13 = vpop.f32.mrb[180].mxu0  ;;  %v2591_v55 = vmul.f32 %v3827_v54, %v4907_v34  ;;  %v3830_v3 = vld [vmem:[%s4460_s22 + $0x268] sm:$0xff]  ;;  %v3839_v54 = vld [vmem:[%s4460_s22 + $0x2b0] sm:$0xff] }
 0x4ed   : > { %2823 = vst [vmem:[%s4931_s26 + $0x190] sm:$0xff] %v2695_v7  ;;  %v2713_v16 = vadd.f32 %v2585_v26, %v2327_v53  ;;  %v2279_v17 = vadd.f32 %v2278_v13, %v4912_v37  ;;  %v2280_v18 = vpop.f32.mrb[181].mxu0  ;;  %v2594_v4 = vmul.f32 %v3830_v3, %v4909_v51  ;;  %v3842_v3 = vld [vmem:[%s4460_s22 + $0x2c8] sm:$0xff] }
 0x4ee   : > { %2824 = vst [vmem:[%s4931_s26 + $0x198] sm:$0xff] %v2696_v11  ;;  %v2714_v20 = vadd.f32 %v2586_v2, %v2329_v12  ;;  %v2281_v21 = vadd.f32 %v2280_v18, %v4914_v39  ;;  %v2332_v22 = vpop.f32.mrb[142].mxu1  ;;  %v2593_v2 = vmul.f32 %v3829_v1, %v4907_v34  ;;  %v3832_v12 = vld [vmem:[%s4460_s22 + $0x278] sm:$0xff]  ;;  %v3841_v1 = vld [vmem:[%s4460_s22 + $0x2c0] sm:$0xff] }
 0x4ef   : > { %2841 = vst [vmem:[%s4931_s26 + $0x220] sm:$0xff] %v2713_v16  ;;  %v2697_v25 = vadd.f32 %v2569_v6, %v2279_v17  ;;  %v2333_v27 = vadd.f32 %v2332_v22, %v4912_v37  ;;  %v2334_v28 = vpop.f32.mrb[143].mxu1  ;;  %v2596_v13 = vmul.f32 %v3832_v12, %v4909_v51  ;;  %v3844_v12 = vld [vmem:[%s4460_s22 + $0x2d8] sm:$0xff] }
 0x4f0   : > { %2842 = vst [vmem:[%s4931_s26 + $0x228] sm:$0xff] %v2714_v20  ;;  %v2698_v31 = vadd.f32 %v2570_v10, %v2281_v21  ;;  %v2335_v32 = vadd.f32 %v2334_v28, %v4914_v39  ;;  %v2284_v33 = vpop.f32.mrb[182].mxu0  ;;  %v2595_v10 = vmul.f32 %v3831_v9, %v4907_v34  ;;  %v3834_v21 = vld [vmem:[%s4460_s22 + $0x288] sm:$0xff]  ;;  %v3843_v9 = vld [vmem:[%s4460_s22 + $0x2d0] sm:$0xff] }
 0x4f1   : > { %2825 = vst [vmem:[%s4931_s26 + $0x1a0] sm:$0xff] %v2697_v25  ;;  %v2715_v38 = vadd.f32 %v2587_v15, %v2333_v27  ;;  %v2285_v40 = vadd.f32 %v2284_v33, %v4912_v37  ;;  %v2286_v41 = vpop.f32.mrb[183].mxu0  ;;  %v2598_v22 = vmul.f32 %v3834_v21, %v4909_v51  ;;  %v3846_v21 = vld [vmem:[%s4460_s22 + $0x2e8] sm:$0xff] }
 0x4f2   : > { %2826 = vst [vmem:[%s4931_s26 + $0x1a8] sm:$0xff] %v2698_v31  ;;  %v2716_v44 = vadd.f32 %v2588_v19, %v2335_v32  ;;  %v2287_v45 = vadd.f32 %v2286_v41, %v4914_v39  ;;  %v2338_v46 = vpop.f32.mrb[144].mxu1  ;;  %v2597_v19 = vmul.f32 %v3833_v60, %v4907_v34  ;;  %v3836_v32 = vld [vmem:[%s4460_s22 + $0x298] sm:$0xff]  ;;  %v3845_v60 = vld [vmem:[%s4460_s22 + $0x2e0] sm:$0xff] }
 0x4f3   : > { %2843 = vst [vmem:[%s4931_s26 + $0x230] sm:$0xff] %v2715_v38  ;;  %v2699_v47 = vadd.f32 %v2571_v24, %v2285_v40  ;;  %v2339_v48 = vadd.f32 %v2338_v46, %v4912_v37  ;;  %v2340_v49 = vpop.f32.mrb[145].mxu1  ;;  %v2600_v33 = vmul.f32 %v3836_v32, %v4909_v51  ;;  %v3848_v32 = vld [vmem:[%s4460_s22 + $0x2f8] sm:$0xff] }
 0x4f4   : > { %2844 = vst [vmem:[%s4931_s26 + $0x238] sm:$0xff] %v2716_v44  ;;  %v2700_v50 = vadd.f32 %v2572_v30, %v2287_v45  ;;  %v2341_v52 = vadd.f32 %v2340_v49, %v4914_v39  ;;  %v2599_v30 = vmul.f32 %v3835_v29, %v4907_v34  ;;  %v3838_v45 = vld [vmem:[%s4460_s22 + $0x2a8] sm:$0xff]  ;;  %v3847_v29 = vld [vmem:[%s4460_s22 + $0x2f0] sm:$0xff] }
 0x4f5   : > { %2827 = vst [vmem:[%s4931_s26 + $0x1b0] sm:$0xff] %v2699_v47  ;;  %v2717_v56 = vadd.f32 %v2589_v36, %v2339_v48  ;;  %v2602_v46 = vmul.f32 %v3838_v45, %v4909_v51  ;;  %v3850_v45 = vld [vmem:[%s4460_s22 + $0x308] sm:$0xff] }
 0x4f6   : > { %2828 = vst [vmem:[%s4931_s26 + $0x1b8] sm:$0xff] %v2700_v50  ;;  %v2718_v59 = vadd.f32 %v2590_v43, %v2341_v52  ;;  %v2344_v26 = vpop.f32.mrb[146].mxu1  ;;  %v2601_v43 = vmul.f32 %v3837_v42, %v4907_v34  ;;  %v3849_v42 = vld [vmem:[%s4460_s22 + $0x300] sm:$0xff] }
 0x4f7   : > { %2845 = vst [vmem:[%s4931_s26 + $0x240] sm:$0xff] %v2717_v56  ;;  %v2345_v61 = vadd.f32 %v2344_v26, %v4912_v37  ;;  %v2346_v63 = vpop.f32.mrb[147].mxu1 }
 0x4f8   : > { %2846 = vst [vmem:[%s4931_s26 + $0x248] sm:$0xff] %v2718_v59  ;;  %v2347_v0 = vadd.f32 %v2346_v63, %v4914_v39 }
 0x4f9   : > { %v2719_v62 = vadd.f32 %v2591_v55, %v2345_v61  ;;  %v2603_v55 = vmul.f32 %v3839_v54, %v4907_v34  ;;  %v3851_v54 = vld [vmem:[%s4460_s22 + $0x310] sm:$0xff] }
 0x4fa   : > { %v2720_v5 = vadd.f32 %v2592_v58, %v2347_v0  ;;  %v2350_v6 = vpop.f32.mrb[148].mxu1  ;;  %v2604_v58 = vmul.f32 %v3840_v57, %v4909_v51  ;;  %v3852_v57 = vld [vmem:[%s4460_s22 + $0x318] sm:$0xff] }
 0x4fb   : > { %2847 = vst [vmem:[%s4931_s26 + $0x250] sm:$0xff] %v2719_v62  ;;  %v2351_v7 = vadd.f32 %v2350_v6, %v4912_v37  ;;  %v2352_v53 = vpop.f32.mrb[149].mxu1 }
 0x4fc   : > { %2848 = vst [vmem:[%s4931_s26 + $0x258] sm:$0xff] %v2720_v5  ;;  %v2353_v8 = vadd.f32 %v2352_v53, %v4914_v39 }
 0x4fd   : > { %v2721_v11 = vadd.f32 %v2593_v2, %v2351_v7  ;;  %v2605_v2 = vmul.f32 %v3841_v1, %v4907_v34  ;;  %v3853_v1 = vld [vmem:[%s4460_s22 + $0x320] sm:$0xff] }
 0x4fe   : > { %v2722_v14 = vadd.f32 %v2594_v4, %v2353_v8  ;;  %v2356_v15 = vpop.f32.mrb[150].mxu1  ;;  %v2606_v4 = vmul.f32 %v3842_v3, %v4909_v51  ;;  %v3854_v3 = vld [vmem:[%s4460_s22 + $0x328] sm:$0xff] }
 0x4ff   : > { %2849 = vst [vmem:[%s4931_s26 + $0x260] sm:$0xff] %v2721_v11  ;;  %v2357_v16 = vadd.f32 %v2356_v15, %v4912_v37  ;;  %v2358_v17 = vpop.f32.mrb[151].mxu1 }
 0x500   : > { %2850 = vst [vmem:[%s4931_s26 + $0x268] sm:$0xff] %v2722_v14  ;;  %v2359_v18 = vadd.f32 %v2358_v17, %v4914_v39 }
 0x501   : > { %v2723_v20 = vadd.f32 %v2595_v10, %v2357_v16  ;;  %v2607_v10 = vmul.f32 %v3843_v9, %v4907_v34  ;;  %v3855_v9 = vld [vmem:[%s4460_s22 + $0x330] sm:$0xff] }
 0x502   : > { %v2724_v23 = vadd.f32 %v2596_v13, %v2359_v18  ;;  %v2362_v24 = vpop.f32.mrb[152].mxu1  ;;  %v2608_v13 = vmul.f32 %v3844_v12, %v4909_v51  ;;  %v3856_v12 = vld [vmem:[%s4460_s22 + $0x338] sm:$0xff] }
 0x503   : > { %2851 = vst [vmem:[%s4931_s26 + $0x270] sm:$0xff] %v2723_v20  ;;  %v2363_v25 = vadd.f32 %v2362_v24, %v4912_v37  ;;  %v2364_v27 = vpop.f32.mrb[153].mxu1 }
 0x504   : > { %2852 = vst [vmem:[%s4931_s26 + $0x278] sm:$0xff] %v2724_v23  ;;  %v2365_v28 = vadd.f32 %v2364_v27, %v4914_v39 }
 0x505   : > { %v2725_v31 = vadd.f32 %v2597_v19, %v2363_v25  ;;  %v2609_v19 = vmul.f32 %v3845_v60, %v4907_v34  ;;  %v3857_v60 = vld [vmem:[%s4460_s22 + $0x340] sm:$0xff] }
 0x506   : > { %v2726_v35 = vadd.f32 %v2598_v22, %v2365_v28  ;;  %v2368_v36 = vpop.f32.mrb[154].mxu1  ;;  %v2610_v22 = vmul.f32 %v3846_v21, %v4909_v51  ;;  %v3858_v21 = vld [vmem:[%s4460_s22 + $0x348] sm:$0xff] }
 0x507   : > { %2853 = vst [vmem:[%s4931_s26 + $0x280] sm:$0xff] %v2725_v31  ;;  %v2369_v38 = vadd.f32 %v2368_v36, %v4912_v37  ;;  %v2370_v40 = vpop.f32.mrb[155].mxu1 }
 0x508   : > { %2854 = vst [vmem:[%s4931_s26 + $0x288] sm:$0xff] %v2726_v35  ;;  %v2371_v41 = vadd.f32 %v2370_v40, %v4914_v39 }
 0x509   : > { %v2727_v44 = vadd.f32 %v2599_v30, %v2369_v38  ;;  %v2611_v30 = vmul.f32 %v3847_v29, %v4907_v34  ;;  %v3859_v29 = vld [vmem:[%s4460_s22 + $0x350] sm:$0xff] }
 0x50a   : > { %v2728_v47 = vadd.f32 %v2600_v33, %v2371_v41  ;;  %v2374_v48 = vpop.f32.mrb[156].mxu1  ;;  %v2612_v33 = vmul.f32 %v3848_v32, %v4909_v51  ;;  %v3860_v32 = vld [vmem:[%s4460_s22 + $0x358] sm:$0xff] }
 0x50b   : > { %2855 = vst [vmem:[%s4931_s26 + $0x290] sm:$0xff] %v2727_v44  ;;  %v2375_v49 = vadd.f32 %v2374_v48, %v4912_v37  ;;  %v2376_v50 = vpop.f32.mrb[157].mxu1 }
 0x50c   : > { %2856 = vst [vmem:[%s4931_s26 + $0x298] sm:$0xff] %v2728_v47  ;;  %v2377_v52 = vadd.f32 %v2376_v50, %v4914_v39 }
 0x50d   : > { %v2729_v56 = vadd.f32 %v2601_v43, %v2375_v49  ;;  %v2613_v43 = vmul.f32 %v3849_v42, %v4907_v34  ;;  %v3861_v42 = vld [vmem:[%s4460_s22 + $0x360] sm:$0xff] }
 0x50e   : > { %v2730_v59 = vadd.f32 %v2602_v46, %v2377_v52  ;;  %v2380_v26 = vpop.f32.mrb[158].mxu1  ;;  %v2614_v46 = vmul.f32 %v3850_v45, %v4909_v51  ;;  %v3862_v45 = vld [vmem:[%s4460_s22 + $0x368] sm:$0xff] }
 0x50f   : > { %2857 = vst [vmem:[%s4931_s26 + $0x2a0] sm:$0xff] %v2729_v56  ;;  %v2381_v61 = vadd.f32 %v2380_v26, %v4912_v37  ;;  %v2382_v63 = vpop.f32.mrb[159].mxu1 }
 0x510   : > { %2858 = vst [vmem:[%s4931_s26 + $0x2a8] sm:$0xff] %v2730_v59  ;;  %v2383_v0 = vadd.f32 %v2382_v63, %v4914_v39 }
 0x511   : > { %v2731_v62 = vadd.f32 %v2603_v55, %v2381_v61  ;;  %v2615_v55 = vmul.f32 %v3851_v54, %v4907_v34  ;;  %v3863_v54 = vld [vmem:[%s4460_s22 + $0x370] sm:$0xff] }
 0x512   : > { %v2732_v5 = vadd.f32 %v2604_v58, %v2383_v0  ;;  %v2386_v6 = vpop.f32.mrb[160].mxu1  ;;  %v2616_v58 = vmul.f32 %v3852_v57, %v4909_v51  ;;  %v3864_v57 = vld [vmem:[%s4460_s22 + $0x378] sm:$0xff] }
 0x513   : > { %2859 = vst [vmem:[%s4931_s26 + $0x2b0] sm:$0xff] %v2731_v62  ;;  %v2387_v7 = vadd.f32 %v2386_v6, %v4912_v37  ;;  %v2388_v53 = vpop.f32.mrb[161].mxu1 }
 0x514   : > { %2860 = vst [vmem:[%s4931_s26 + $0x2b8] sm:$0xff] %v2732_v5  ;;  %v2389_v8 = vadd.f32 %v2388_v53, %v4914_v39 }
 0x515   : > { %v2733_v11 = vadd.f32 %v2605_v2, %v2387_v7  ;;  %v2617_v2 = vmul.f32 %v3853_v1, %v4907_v34  ;;  %v3865_v1 = vld [vmem:[%s4460_s22 + $0x380] sm:$0xff] }
 0x516   : > { %v2734_v14 = vadd.f32 %v2606_v4, %v2389_v8  ;;  %v2392_v15 = vpop.f32.mrb[162].mxu1  ;;  %v2618_v4 = vmul.f32 %v3854_v3, %v4909_v51  ;;  %v3866_v3 = vld [vmem:[%s4460_s22 + $0x388] sm:$0xff] }
 0x517   : > { %2861 = vst [vmem:[%s4931_s26 + $0x2c0] sm:$0xff] %v2733_v11  ;;  %v2393_v16 = vadd.f32 %v2392_v15, %v4912_v37  ;;  %v2394_v17 = vpop.f32.mrb[163].mxu1 }
 0x518   : > { %2862 = vst [vmem:[%s4931_s26 + $0x2c8] sm:$0xff] %v2734_v14  ;;  %v2395_v18 = vadd.f32 %v2394_v17, %v4914_v39 }
 0x519   : > { %v2735_v20 = vadd.f32 %v2607_v10, %v2393_v16  ;;  %v2619_v10 = vmul.f32 %v3855_v9, %v4907_v34  ;;  %v3867_v9 = vld [vmem:[%s4460_s22 + $0x390] sm:$0xff] }
 0x51a   : > { %v2736_v23 = vadd.f32 %v2608_v13, %v2395_v18  ;;  %v2398_v24 = vpop.f32.mrb[164].mxu1  ;;  %v2620_v13 = vmul.f32 %v3856_v12, %v4909_v51  ;;  %v3868_v12 = vld [vmem:[%s4460_s22 + $0x398] sm:$0xff] }
 0x51b   : > { %2863 = vst [vmem:[%s4931_s26 + $0x2d0] sm:$0xff] %v2735_v20  ;;  %v2399_v25 = vadd.f32 %v2398_v24, %v4912_v37  ;;  %v2400_v27 = vpop.f32.mrb[165].mxu1 }
 0x51c   : > { %2864 = vst [vmem:[%s4931_s26 + $0x2d8] sm:$0xff] %v2736_v23  ;;  %v2401_v28 = vadd.f32 %v2400_v27, %v4914_v39 }
 0x51d   : > { %v2737_v31 = vadd.f32 %v2609_v19, %v2399_v25  ;;  %v2621_v19 = vmul.f32 %v3857_v60, %v4907_v34  ;;  %v3869_v60 = vld [vmem:[%s4460_s22 + $0x3a0] sm:$0xff] }
 0x51e   : > { %v2738_v35 = vadd.f32 %v2610_v22, %v2401_v28  ;;  %v2404_v36 = vpop.f32.mrb[166].mxu1  ;;  %v2622_v22 = vmul.f32 %v3858_v21, %v4909_v51  ;;  %v3870_v21 = vld [vmem:[%s4460_s22 + $0x3a8] sm:$0xff] }
 0x51f   : > { %2865 = vst [vmem:[%s4931_s26 + $0x2e0] sm:$0xff] %v2737_v31  ;;  %v2405_v38 = vadd.f32 %v2404_v36, %v4912_v37  ;;  %v2406_v40 = vpop.f32.mrb[167].mxu1 }
 0x520   : > { %2866 = vst [vmem:[%s4931_s26 + $0x2e8] sm:$0xff] %v2738_v35  ;;  %v2407_v41 = vadd.f32 %v2406_v40, %v4914_v39 }
 0x521   : > { %v2739_v44 = vadd.f32 %v2611_v30, %v2405_v38  ;;  %v2623_v30 = vmul.f32 %v3859_v29, %v4907_v34  ;;  %v3871_v29 = vld [vmem:[%s4460_s22 + $0x3b0] sm:$0xff] }
 0x522   : > { %v2740_v47 = vadd.f32 %v2612_v33, %v2407_v41  ;;  %v2410_v48 = vpop.f32.mrb[168].mxu1  ;;  %v2624_v33 = vmul.f32 %v3860_v32, %v4909_v51  ;;  %v3872_v32 = vld [vmem:[%s4460_s22 + $0x3b8] sm:$0xff] }
 0x523   : > { %2867 = vst [vmem:[%s4931_s26 + $0x2f0] sm:$0xff] %v2739_v44  ;;  %v2411_v49 = vadd.f32 %v2410_v48, %v4912_v37  ;;  %v2412_v50 = vpop.f32.mrb[169].mxu1 }
 0x524   : > { %2868 = vst [vmem:[%s4931_s26 + $0x2f8] sm:$0xff] %v2740_v47  ;;  %v2413_v52 = vadd.f32 %v2412_v50, %v4914_v39 }
 0x525   : > { %v2741_v56 = vadd.f32 %v2613_v43, %v2411_v49  ;;  %v2625_v43 = vmul.f32 %v3861_v42, %v4907_v34  ;;  %v3873_v42 = vld [vmem:[%s4460_s22 + $0x3c0] sm:$0xff] }
 0x526   : > { %v2742_v59 = vadd.f32 %v2614_v46, %v2413_v52  ;;  %v2416_v26 = vpop.f32.mrb[170].mxu1  ;;  %v2626_v46 = vmul.f32 %v3862_v45, %v4909_v51  ;;  %v3874_v45 = vld [vmem:[%s4460_s22 + $0x3c8] sm:$0xff] }
 0x527   : > { %2869 = vst [vmem:[%s4931_s26 + $0x300] sm:$0xff] %v2741_v56  ;;  %v2417_v61 = vadd.f32 %v2416_v26, %v4912_v37  ;;  %v2418_v63 = vpop.f32.mrb[171].mxu1 }
 0x528   : > { %2870 = vst [vmem:[%s4931_s26 + $0x308] sm:$0xff] %v2742_v59  ;;  %v2419_v0 = vadd.f32 %v2418_v63, %v4914_v39 }
 0x529   : > { %v2743_v62 = vadd.f32 %v2615_v55, %v2417_v61  ;;  %v2627_v55 = vmul.f32 %v3863_v54, %v4907_v34  ;;  %v3875_v54 = vld [vmem:[%s4460_s22 + $0x3d0] sm:$0xff] }
 0x52a   : > { %v2744_v5 = vadd.f32 %v2616_v58, %v2419_v0  ;;  %v2422_v6 = vpop.f32.mrb[172].mxu1  ;;  %v2628_v58 = vmul.f32 %v3864_v57, %v4909_v51  ;;  %v3876_v57 = vld [vmem:[%s4460_s22 + $0x3d8] sm:$0xff] }
 0x52b   : > { %2871 = vst [vmem:[%s4931_s26 + $0x310] sm:$0xff] %v2743_v62  ;;  %v2423_v7 = vadd.f32 %v2422_v6, %v4912_v37  ;;  %v2424_v53 = vpop.f32.mrb[173].mxu1 }
 0x52c   : > { %2872 = vst [vmem:[%s4931_s26 + $0x318] sm:$0xff] %v2744_v5  ;;  %v2425_v8 = vadd.f32 %v2424_v53, %v4914_v39 }
 0x52d   : > { %v2745_v11 = vadd.f32 %v2617_v2, %v2423_v7  ;;  %v2629_v2 = vmul.f32 %v3865_v1, %v4907_v34  ;;  %v3877_v1 = vld [vmem:[%s4460_s22 + $0x3e0] sm:$0xff] }
 0x52e   : > { %v2746_v14 = vadd.f32 %v2618_v4, %v2425_v8  ;;  %v2428_v15 = vpop.f32.mrb[174].mxu1  ;;  %v2630_v4 = vmul.f32 %v3866_v3, %v4909_v51  ;;  %v3878_v3 = vld [vmem:[%s4460_s22 + $0x3e8] sm:$0xff] }
 0x52f   : > { %2873 = vst [vmem:[%s4931_s26 + $0x320] sm:$0xff] %v2745_v11  ;;  %v2429_v16 = vadd.f32 %v2428_v15, %v4912_v37  ;;  %v2430_v17 = vpop.f32.mrb[175].mxu1 }
 0x530   : > { %2874 = vst [vmem:[%s4931_s26 + $0x328] sm:$0xff] %v2746_v14  ;;  %v2431_v18 = vadd.f32 %v2430_v17, %v4914_v39 }
 0x531   : > { %v2747_v20 = vadd.f32 %v2619_v10, %v2429_v16  ;;  %v2631_v10 = vmul.f32 %v3867_v9, %v4907_v34  ;;  %v3879_v9 = vld [vmem:[%s4460_s22 + $0x3f0] sm:$0xff] }
 0x532   : > { %v2748_v23 = vadd.f32 %v2620_v13, %v2431_v18  ;;  %v2434_v24 = vpop.f32.mrb[176].mxu1  ;;  %v2632_v13 = vmul.f32 %v3868_v12, %v4909_v51  ;;  %v3880_v12 = vld [vmem:[%s4460_s22 + $0x3f8] sm:$0xff]  ;;  %s5530_s22 = sld [smem:[#allocation23_spill]] }
 0x533   : > { %2875 = vst [vmem:[%s4931_s26 + $0x330] sm:$0xff] %v2747_v20  ;;  %v2435_v25 = vadd.f32 %v2434_v24, %v4912_v37  ;;  %v2436_v27 = vpop.f32.mrb[177].mxu1 }
 0x534   : > { %2876 = vst [vmem:[%s4931_s26 + $0x338] sm:$0xff] %v2748_v23  ;;  %v2437_v28 = vadd.f32 %v2436_v27, %v4914_v39 }
 0x535   : > { %v2749_v31 = vadd.f32 %v2621_v19, %v2435_v25  ;;  %v2633_v19 = vmul.f32 %v3869_v60, %v4907_v34 }
 0x536   : > { %v2750_v35 = vadd.f32 %v2622_v22, %v2437_v28  ;;  %v2440_v36 = vpop.f32.mrb[178].mxu1  ;;  %v2634_v22 = vmul.f32 %v3870_v21, %v4909_v51 }
 0x537   : > { %2877 = vst [vmem:[%s4931_s26 + $0x340] sm:$0xff] %v2749_v31  ;;  %v2441_v38 = vadd.f32 %v2440_v36, %v4912_v37  ;;  %v2442_v40 = vpop.f32.mrb[179].mxu1 }
 0x538   : > { %2878 = vst [vmem:[%s4931_s26 + $0x348] sm:$0xff] %v2750_v35  ;;  %v2443_v41 = vadd.f32 %v2442_v40, %v4914_v39  ;;  %s5438_s21 = scalar_lea.hbm %s5530_s22, %s3071_s10 }
 0x539   : > { %v2751_v44 = vadd.f32 %v2623_v30, %v2441_v38  ;;  %v2635_v30 = vmul.f32 %v3871_v29, %v4907_v34 }
 0x53a   : > { %v2752_v47 = vadd.f32 %v2624_v33, %v2443_v41  ;;  %v2446_v48 = vpop.f32.mrb[180].mxu1  ;;  %v2636_v33 = vmul.f32 %v3872_v32, %v4909_v51 }
 0x53b   : > { %2879 = vst [vmem:[%s4931_s26 + $0x350] sm:$0xff] %v2751_v44  ;;  %v2447_v49 = vadd.f32 %v2446_v48, %v4912_v37  ;;  %v2448_v50 = vpop.f32.mrb[181].mxu1 }
 0x53c   : > { %2880 = vst [vmem:[%s4931_s26 + $0x358] sm:$0xff] %v2752_v47  ;;  %v2449_v52 = vadd.f32 %v2448_v50, %v4914_v39 }
 0x53d   : > { %v2753_v56 = vadd.f32 %v2625_v43, %v2447_v49  ;;  %v2637_v43 = vmul.f32 %v3873_v42, %v4907_v34 }
 0x53e   : > { %v2754_v59 = vadd.f32 %v2626_v46, %v2449_v52  ;;  %v2452_v26 = vpop.f32.mrb[182].mxu1  ;;  %v2638_v46 = vmul.f32 %v3874_v45, %v4909_v51 }
 0x53f   : > { %2881 = vst [vmem:[%s4931_s26 + $0x360] sm:$0xff] %v2753_v56  ;;  %v2453_v61 = vadd.f32 %v2452_v26, %v4912_v37  ;;  %v2454_v63 = vpop.f32.mrb[183].mxu1 }
 0x540   : > { %2882 = vst [vmem:[%s4931_s26 + $0x368] sm:$0xff] %v2754_v59  ;;  %v2455_v0 = vadd.f32 %v2454_v63, %v4914_v39 }
 0x541   : > { %v2755_v62 = vadd.f32 %v2627_v55, %v2453_v61  ;;  %v2639_v55 = vmul.f32 %v3875_v54, %v4907_v34 }
 0x542   : > { %v2756_v5 = vadd.f32 %v2628_v58, %v2455_v0  ;;  %v2458_v6 = vpop.f32.mrb[184].mxu1  ;;  %v2640_v58 = vmul.f32 %v3876_v57, %v4909_v51 }
 0x543   : > { %2883 = vst [vmem:[%s4931_s26 + $0x370] sm:$0xff] %v2755_v62  ;;  %v2459_v7 = vadd.f32 %v2458_v6, %v4912_v37  ;;  %v2460_v53 = vpop.f32.mrb[185].mxu1 }
 0x544   : > { %2884 = vst [vmem:[%s4931_s26 + $0x378] sm:$0xff] %v2756_v5  ;;  %v2461_v8 = vadd.f32 %v2460_v53, %v4914_v39 }
 0x545   : > { %v2757_v11 = vadd.f32 %v2629_v2, %v2459_v7  ;;  %v2641_v2 = vmul.f32 %v3877_v1, %v4907_v34 }
 0x546   : > { %v2758_v14 = vadd.f32 %v2630_v4, %v2461_v8  ;;  %v2464_v15 = vpop.f32.mrb[186].mxu1  ;;  %v2642_v4 = vmul.f32 %v3878_v3, %v4909_v51 }
 0x547   : > { %2885 = vst [vmem:[%s4931_s26 + $0x380] sm:$0xff] %v2757_v11  ;;  %v2465_v16 = vadd.f32 %v2464_v15, %v4912_v37  ;;  %v2466_v17 = vpop.f32.mrb[187].mxu1 }
 0x548   : > { %2886 = vst [vmem:[%s4931_s26 + $0x388] sm:$0xff] %v2758_v14  ;;  %v2467_v18 = vadd.f32 %v2466_v17, %v4914_v39 }
 0x549   : > { %v2759_v20 = vadd.f32 %v2631_v10, %v2465_v16  ;;  %v2643_v10 = vmul.f32 %v3879_v9, %v4907_v34 }
 0x54a   : > { %v2760_v23 = vadd.f32 %v2632_v13, %v2467_v18  ;;  %v2470_v24 = vpop.f32.mrb[188].mxu1  ;;  %v2644_v13 = vmul.f32 %v3880_v12, %v4909_v51 }
 0x54b   : > { %2887 = vst [vmem:[%s4931_s26 + $0x390] sm:$0xff] %v2759_v20  ;;  %v2471_v25 = vadd.f32 %v2470_v24, %v4912_v37  ;;  %v2472_v27 = vpop.f32.mrb[189].mxu1 }
 0x54c   : > { %2888 = vst [vmem:[%s4931_s26 + $0x398] sm:$0xff] %v2760_v23  ;;  %v2473_v28 = vadd.f32 %v2472_v27, %v4914_v39 }
 0x54d   : > { %v2761_v31 = vadd.f32 %v2633_v19, %v2471_v25 }
 0x54e   : > { %v2762_v35 = vadd.f32 %v2634_v22, %v2473_v28  ;;  %v2476_v36 = vpop.f32.mrb[190].mxu1 }
 0x54f   : > { %2889 = vst [vmem:[%s4931_s26 + $0x3a0] sm:$0xff] %v2761_v31  ;;  %v2477_v38 = vadd.f32 %v2476_v36, %v4912_v37  ;;  %v2478_v40 = vpop.f32.mrb[191].mxu1 }
 0x550   : > { %2890 = vst [vmem:[%s4931_s26 + $0x3a8] sm:$0xff] %v2762_v35  ;;  %v2479_v41 = vadd.f32 %v2478_v40, %v4914_v39 }
 0x551   : > { %v2763_v44 = vadd.f32 %v2635_v30, %v2477_v38 }
 0x552   : > { %v2764_v47 = vadd.f32 %v2636_v33, %v2479_v41  ;;  %v2482_v48 = vpop.f32.mrb[192].mxu1 }
 0x553   : > { %2891 = vst [vmem:[%s4931_s26 + $0x3b0] sm:$0xff] %v2763_v44  ;;  %v2483_v49 = vadd.f32 %v2482_v48, %v4912_v37  ;;  %v2484_v50 = vpop.f32.mrb[193].mxu1 }
 0x554   : > { %2892 = vst [vmem:[%s4931_s26 + $0x3b8] sm:$0xff] %v2764_v47  ;;  %v2485_v52 = vadd.f32 %v2484_v50, %v4914_v39 }
 0x555   : > { %v2765_v56 = vadd.f32 %v2637_v43, %v2483_v49 }
 0x556   : > { %v2766_v59 = vadd.f32 %v2638_v46, %v2485_v52  ;;  %v2488_v26 = vpop.f32.mrb[194].mxu1 }
 0x557   : > { %2893 = vst [vmem:[%s4931_s26 + $0x3c0] sm:$0xff] %v2765_v56  ;;  %v2489_v61 = vadd.f32 %v2488_v26, %v4912_v37  ;;  %v2490_v63 = vpop.f32.mrb[195].mxu1 }
 0x558   : > { %2894 = vst [vmem:[%s4931_s26 + $0x3c8] sm:$0xff] %v2766_v59  ;;  %v2491_v0 = vadd.f32 %v2490_v63, %v4914_v39 }
 0x559   : > { %v2767_v62 = vadd.f32 %v2639_v55, %v2489_v61 }
 0x55a   : > { %v2768_v5 = vadd.f32 %v2640_v58, %v2491_v0  ;;  %v2494_v6 = vpop.f32.mrb[196].mxu1 }
 0x55b   : > { %2895 = vst [vmem:[%s4931_s26 + $0x3d0] sm:$0xff] %v2767_v62  ;;  %v2495_v7 = vadd.f32 %v2494_v6, %v4912_v37  ;;  %v2496_v53 = vpop.f32.mrb[197].mxu1 }
 0x55c   : > { %2896 = vst [vmem:[%s4931_s26 + $0x3d8] sm:$0xff] %v2768_v5  ;;  %v2497_v8 = vadd.f32 %v2496_v53, %v4914_v39 }
 0x55d   : > { %v2769_v11 = vadd.f32 %v2641_v2, %v2495_v7 }
 0x55e   : > { %v2770_v14 = vadd.f32 %v2642_v4, %v2497_v8  ;;  %v2500_v15 = vpop.f32.mrb[198].mxu1 }
 0x55f   : > { %2897 = vst [vmem:[%s4931_s26 + $0x3e0] sm:$0xff] %v2769_v11  ;;  %v2501_v16 = vadd.f32 %v2500_v15, %v4912_v37  ;;  %v2502_v17 = vpop.f32.mrb[199].mxu1 }
 0x560   : > { %2898 = vst [vmem:[%s4931_s26 + $0x3e8] sm:$0xff] %v2770_v14  ;;  %v2503_v18 = vadd.f32 %v2502_v17, %v4914_v39 }
 0x561   : > { %v2771_v34 = vadd.f32 %v2643_v10, %v2501_v16 }
 0x562   : > { %v2772_v51 = vadd.f32 %v2644_v13, %v2503_v18 }
 0x563   : > { %2899 = vst [vmem:[%s4931_s26 + $0x3f0] sm:$0xff] %v2771_v34 }
 0x564   : > { %2900 = vst [vmem:[%s4931_s26 + $0x3f8] sm:$0xff] %v2772_v51 }
 0x565   : > { %4064 = shalt.err (!%p4061_p11)
}
 0x566   : > { %s4065_s27 = scalar_lea.hbm %s5438_s21, 16384  ;;  %s4069_s29 = scalar_lea.hbm %s5530_s22, 32768 }
 0x567   : > { %p4066_p8 = scmp.ne.s32.totalorder %s5438_s21, %s4065_s27  ;;  %p4070_p3 = scmp.lt.u32.totalorder %s5438_s21, %s5530_s22 }
 0x568   : > { %p4071_p7 = scmp.lt.u32.totalorder %s4069_s29, %s4065_s27  ;;  %p4073_p1 = scmp.lt.u32.totalorder %s4065_s27, %s5438_s21 }
 0x569   : > { %p4067_p6 = pnand %p4066_p8, %p4398_p5 }
 0x56a   : > { %p4072_p12 = por %p4071_p7, %p4070_p3 }
 0x56b   : > { %p4068_p10 = pneg %p4067_p6 }
 0x56c   : > { %p4074_p2 = por %p4073_p1, %p4072_p12 }
 0x56e   : > { %p4075_p13 = pnand %p4074_p2, %p4068_p10 }
 0x570   : > { %4078 = shalt.err (!%p4075_p13)
}
 0x571   : > { %s4148_s11 = smov 256   ;;  %s4149_s19 = smov 16  }
 0x572   : > { %3670 = dma.vmem_to_hbm [thread:$0]  (%p4398_p5), %s5440_s23, 16384, %s5438_s21, %s5446_s17, %s4148_s11, %s4148_s11, %s4149_s19  }
 0x573 PF: > { %s5531_s28 = sld [smem:[#allocation20_spill]]  ;;  %s5532_s9 = sld [smem:[#allocation21_spill]] }
 0x574   : > { %p5534_p0 = scmp.ge.s32.totalorder %s4133_s16, 2 }
 0x579   : > { %s2931_s20 = sand.u32 1, %s5531_s28   ;;  %p5533_p9 = scmp.ne.s32.totalorder %s5532_s9, 0 }
 0x57a   : > { %s2932_s13 = scalar_lea.sflag [#allocation4], %s2931_s20 }
 0x57b   : > { %p3693_p4 = pnand %p5534_p0, %p5533_p9 }
 0x57d   : > { %4116 = dma.done.wait (!%p3693_p4), %s2932_s13, 16384  }
 0x57e   : > { %4118 = vsyncadd (!%p3693_p4), %s2932_s13, 4294950912  ;;  %p26_p11 = scmp.ge.s32.totalorder %s4384_s30, 4   ;;  %s5535_s13 = smov %s4125_s14 }
 0x57f   : > { %s5536_s14 = smov %s4129_s15  ;;  %s5537_s15 = smov %s4394_s18 }
 0x580   : > { %s5538_s16 = smov %s4384_s30  ;;  %28 = sbr.rel (!%p26_p11) target bundleno = 11 (0xb), region = 126 }
 0x587   :  { %2937 = vsyncpa [#allocation3], 1 }
 0x588   :  { %2939 = vsyncpa [#allocation3 + $0x1], 1 }
 0x589   :  { %2940 = vsyncpa [#allocation6], 1 }
 0x58a   :  { %2942 = vsyncpa [#allocation6 + $0x1], 1 }
 0x58b   :  { %2943 = vsyncpa [#allocation9], 1 }
 0x58c   :  { %2944 = vsyncpa [#allocation12], 1 }
 0x58d   :  { %2945 = vsyncpa [#allocation4], 1 }
 0x58e   :  { %2947 = vsyncpa [#allocation4 + $0x1], 1 }

// kernel: tpu_custom_call.1
= control target key start
LH: loop header
LB: loop body
LE: loop exit
PB: predicated region body
PF: predicated region fallthrough
CT: control target
= control target key end

     0   :  { %s5488_s0 = inlined_call_operand.hbm [shape: f32[1,256], index: 0, kind: input, shape index: {}]   ;;  %s5489_s1 = inlined_call_operand.hbm [shape: f32[1024,256], index: 1, kind: input, shape index: {}]   ;;  %s5490_s2 = inlined_call_operand.hbm [shape: f32[256,128], index: 2, kind: input, shape index: {}]   ;;  %s5491_s3 = inlined_call_operand.vmem [shape: f32[1,128], index: 3, kind: input, shape index: {}]   ;;  %s5492_s4 = inlined_call_operand.hbm [shape: f32[128,128], index: 4, kind: input, shape index: {}]   ;;  %s5493_s5 = inlined_call_operand.vmem [shape: f32[1,128], index: 5, kind: input, shape index: {}]   ;;  %s5494_s6 = inlined_call_operand.hbm [shape: f32[128,128], index: 6, kind: input, shape index: {}]   ;;  %s5495_s7 = inlined_call_operand.vmem [shape: f32[1,128], index: 7, kind: input, shape index: {}]   ;;  %s5496_s8 = inlined_call_operand.hbm [shape: f32[128,256], index: 8, kind: input, shape index: {}]   ;;  %s5497_s9 = inlined_call_operand.vmem [shape: f32[1,256], index: 9, kind: input, shape index: {}]   ;;  %s5498_s10 = inlined_call_operand.hbm [shape: f32[1024,256], index: 10, kind: output, shape index: {}]  }
   0x1   :  { %5506 = sst [smem:[#allocation22_spill]] %s5497_s9 }
   0x2   :  { %5507 = sst [smem:[#allocation23_spill]] %s5498_s10 }
   0x3   :  { %15 = vsyncpa [#allocation3], 0 }
   0x4   :  { %16 = vsyncpa [#allocation6], 0 }
   0x5   :  { %18 = vsyncpa [#allocation6 + $0x1], 0 }
   0x6   :  { %19 = vsyncpa [#allocation9], 0 }
   0x7   :  { %20 = vsyncpa [#allocation12], 0 }
   0x8   :  { %21 = vsyncpa [#allocation4], 0 }
   0x9   :  { %23 = vsyncpa [#allocation4 + $0x1], 0  ;;  %s4205_s13 = smov 0   ;;  %s4207_s14 = smov 0  }
   0xa   :  { %s4209_s15 = smov 0   ;;  %s4211_s16 = smov 0  }
   0xb LB: > { %5508 = sst [smem:[#allocation20_spill]] %s4121_s13  ;;  %s4226_s17 = sadd.s32 4294967295, %s4133_s16   ;;  %s4133_s16 = sphi %s4211_s16, %s5538_s16   ;;  %s4129_s15 = sphi %s4209_s15, %s5537_s15   ;;  %s4125_s14 = sphi %s4207_s14, %s5536_s14   ;;  %s4121_s13 = sphi %s4205_s13, %s5535_s13  }
   0xc   : > { %s3039_s18 = sadd.s32 4294967294, %s4133_s16   ;;  %p70_p0 = scmp.ne.s32.totalorder %s4125_s14, %s4121_s13 }
   0xd   : > { %p5499_p1 = scmp.eq.s32.totalorder %s4226_s17, 0  ;;  %p268_p3 = scmp.eq.s32.totalorder %s3039_s18, 1 }
   0xe   : > { %p3040_p5 = scmp.ge.s32.totalorder %s4133_s16, 1  ;;  %p275_p7 = scmp.lt.s32.totalorder %s4133_s16, 3 }
   0xf   : > { %p4235_p4 = por %p5499_p1, %p70_p0  ;;  %p4240_p6 = por %p268_p3, %p70_p0 }
  0x10   : > { %p4245_p8 = pnand %p3040_p5, %p275_p7  ;;  %s4135_s22 = smov [#allocation7]  }
  0x11   : > { %s5509_s19 = scalar_select %p4235_p4, 1, 0 }
  0x12   : > { %s5510_s20 = scalar_select %p4240_p6, 1, 0 }
  0x13   : > { %s5512_s21 = scalar_select %p4245_p8, 1, 0 }
  0x14   : > { %5511 = sst [smem:[#allocation21_spill]] %s5510_s20  ;;  %s298_s23 = sshll.u32 %s4135_s22, 4  ;;  %s4249_s23 = int_to_ptr.vmem [resolvable:$true] %s298_s23 }
  0x15   : > { %p3672_p9 = pneg %p4245_p8  ;;  %s4136_s25 = smov [#allocation8]  }
  0x16   : > { %s314_s26 = sshll.u32 %s4136_s25, 4  ;;  %s4137_s27 = smov [#allocation2]   ;;  %s4260_s26 = int_to_ptr.vmem [resolvable:$true] %s314_s26 }
  0x17   : > { %p4256_p11 = pnand %p3672_p9, %p5499_p1  ;;  %s4262_s28 = sshll.u32 %s4137_s27, 4  ;;  %s289_s28 = int_to_ptr.vmem [resolvable:$true] %s4262_s28 }
  0x18   : > { %s3881_s11 = scalar_lea.hbm %s5490_s2, 4096 }
  0x19   : > { %p3882_p12 = scmp.ne.s32.totalorder %s5490_s2, %s3881_s11  ;;  %p4272_p13 = pneg %p4256_p11 }
  0x1a   : > { %p3888_p5 = scmp.lt.u32.totalorder %s3881_s11, %s5490_s2 }
  0x1b   : > { %p3884_p0 = pnand %p4272_p13, %p3882_p12 }
  0x1d   : > { %p3885_p3 = pneg %p3884_p0 }
  0x1f   : > { %p3890_p7 = pnand %p3888_p5, %p3885_p3 }
  0x21   : > { %3893 = shalt.err (!%p3890_p7)
}
  0x22   : > { %s3894_s29 = scalar_lea.vmem %s4249_s23, 4096  ;;  %p3902_p2 = scmp.lt.s32.totalorder %s4249_s23, %s4249_s23 }
  0x23   : > { %p3895_p9 = scmp.ne.s32.totalorder %s4249_s23, %s3894_s29  ;;  %p3903_p6 = scmp.lt.s32.totalorder %s3894_s29, %s3894_s29 }
  0x25   : > { %p3897_p10 = pnand %p3895_p9, %p4272_p13  ;;  %p3904_p12 = por %p3903_p6, %p3902_p2 }
  0x27   : > { %p3898_p1 = pneg %p3897_p10 }
  0x29   : > { %p3905_p0 = pnand %p3904_p12, %p3898_p1 }
  0x2b   : > { %3908 = shalt.err (!%p3905_p0)
}
  0x2c   : > { %s5505_s30 = smov 128   ;;  %s4139_s11 = smov 8  }
  0x2d   : > { %3678 = dma.hbm_to_vmem [thread:$0]  (!%p4256_p11), %s5490_s2, 4096, %s4249_s23, [#allocation6], %s5505_s30, %s5505_s30, %s4139_s11  }
  0x2e   : > { %s3909_s29 = scalar_lea.hbm %s5492_s4, 2048 }
  0x2f   : > { %p3910_p1 = scmp.ne.s32.totalorder %s5492_s4, %s3909_s29  ;;  %p3916_p10 = scmp.lt.u32.totalorder %s3909_s29, %s5492_s4 }
  0x31   : > { %p3912_p2 = pnand %p3910_p1, %p4272_p13 }
  0x33   : > { %p3913_p6 = pneg %p3912_p2 }
  0x35   : > { %p3918_p3 = pnand %p3916_p10, %p3913_p6 }
  0x37   : > { %3921 = shalt.err (!%p3918_p3)
}
  0x38   : > { %s3922_s23 = scalar_lea.vmem %s4260_s26, 2048  ;;  %p3930_p12 = scmp.lt.s32.totalorder %s4260_s26, %s4260_s26 }
  0x39   : > { %p3923_p5 = scmp.ne.s32.totalorder %s4260_s26, %s3922_s23  ;;  %p3931_p0 = scmp.lt.s32.totalorder %s3922_s23, %s3922_s23 }
  0x3b   : > { %p3925_p7 = pnand %p3923_p5, %p4272_p13  ;;  %p3932_p1 = por %p3931_p0, %p3930_p12 }
  0x3d   : > { %p3926_p9 = pneg %p3925_p7 }
  0x3f   : > { %p3933_p2 = pnand %p3932_p1, %p3926_p9 }
  0x41   : > { %3936 = shalt.err (!%p3933_p2)
}
  0x42   : > { %3681 = dma.hbm_to_vmem [thread:$0]  (!%p4256_p11), %s5492_s4, 2048, %s4260_s26, [#allocation9], %s5505_s30, %s5505_s30, %s4139_s11  }
  0x43   : > { %s3937_s12 = scalar_lea.hbm %s5488_s0, 32 }
  0x44   : > { %p3938_p6 = scmp.ne.s32.totalorder %s5488_s0, %s3937_s12  ;;  %p3944_p5 = scmp.lt.u32.totalorder %s3937_s12, %s5488_s0 }
  0x46   : > { %p3940_p10 = pnand %p3938_p6, %p4272_p13 }
  0x48   : > { %p3941_p3 = pneg %p3940_p10 }
  0x4a   : > { %p3946_p7 = pnand %p3944_p5, %p3941_p3 }
  0x4c   : > { %3949 = shalt.err (!%p3946_p7)
}
  0x4d   : > { %s3950_s23 = scalar_lea.vmem %s289_s28, 32  ;;  %p3958_p1 = scmp.lt.s32.totalorder %s289_s28, %s289_s28 }
  0x4e   : > { %p3951_p9 = scmp.ne.s32.totalorder %s289_s28, %s3950_s23  ;;  %p3959_p2 = scmp.lt.s32.totalorder %s3950_s23, %s3950_s23 }
  0x50   : > { %p3953_p12 = pnand %p3951_p9, %p4272_p13  ;;  %p3960_p4 = por %p3959_p2, %p3958_p1 }
  0x52   : > { %p3954_p0 = pneg %p3953_p12 }
  0x54   : > { %p3961_p8 = pnand %p3960_p4, %p3954_p0 }
  0x56   : > { %3964 = shalt.err (!%p3961_p8)
}
  0x57   : > { %3675 = dma.hbm_to_vmem [thread:$0]  (!%p4256_p11), %s5488_s0, 32, %s289_s28, [#allocation3]  }
  0x58   : > { %s4140_s10 = smov [#allocation10]   ;;  %s4141_s20 = smov [#allocation11]  }
  0x59   : > { %s330_s13 = sshll.u32 %s4140_s10, 4  ;;  %s346_s12 = sshll.u32 %s4141_s20, 4  ;;  %s331_s13 = int_to_ptr.vmem [resolvable:$true] %s330_s13  ;;  %s347_s12 = int_to_ptr.vmem [resolvable:$true] %s346_s12 }
  0x5a   : > { %s3965_s27 = scalar_lea.hbm %s5494_s6, 2048 }
  0x5b   : > { %p3966_p4 = scmp.ne.s32.totalorder %s5494_s6, %s3965_s27  ;;  %p3972_p10 = scmp.lt.u32.totalorder %s3965_s27, %s5494_s6 }
  0x5d   : > { %p3968_p8 = pnand %p3966_p4, %p4272_p13 }
  0x5f   : > { %p3969_p6 = pneg %p3968_p8 }
  0x61   : > { %p3974_p3 = pnand %p3972_p10, %p3969_p6 }
  0x63   : > { %3977 = shalt.err (!%p3974_p3)
}
  0x64   : > { %s3978_s28 = scalar_lea.vmem %s331_s13, 2048  ;;  %p3986_p12 = scmp.lt.s32.totalorder %s331_s13, %s331_s13 }
  0x65   : > { %p3979_p5 = scmp.ne.s32.totalorder %s331_s13, %s3978_s28  ;;  %p3987_p0 = scmp.lt.s32.totalorder %s3978_s28, %s3978_s28 }
  0x67   : > { %p3981_p7 = pnand %p3979_p5, %p4272_p13  ;;  %p3988_p1 = por %p3987_p0, %p3986_p12 }
  0x69   : > { %p3982_p9 = pneg %p3981_p7 }
  0x6b   : > { %p3989_p2 = pnand %p3988_p1, %p3982_p9 }
  0x6d   : > { %3992 = shalt.err (!%p3989_p2)
}
  0x6e   : > { %s5515_s9 = smov 128   ;;  %s3993_s25 = scalar_lea.hbm %s5496_s8, 4096 }
  0x6f   : > { %3684 = dma.hbm_to_vmem [thread:$0]  (!%p4256_p11), %s5494_s6, 2048, %s331_s13, [#allocation9], %s5515_s9, %s5515_s9, %s4139_s11  }
  0x70   : > { %p3994_p4 = scmp.ne.s32.totalorder %s5496_s8, %s3993_s25  ;;  %p4000_p10 = scmp.lt.u32.totalorder %s3993_s25, %s5496_s8 }
  0x72   : > { %p3996_p8 = pnand %p3994_p4, %p4272_p13 }
  0x74   : > { %p3997_p6 = pneg %p3996_p8 }
  0x76   : > { %p4002_p3 = pnand %p4000_p10, %p3997_p6 }
  0x78   : > { %4005 = shalt.err (!%p4002_p3)
}
  0x79   : > { %s4006_s28 = scalar_lea.vmem %s347_s12, 4096  ;;  %p4014_p12 = scmp.lt.s32.totalorder %s347_s12, %s347_s12 }
  0x7a   : > { %p4007_p5 = scmp.ne.s32.totalorder %s347_s12, %s4006_s28  ;;  %p4015_p0 = scmp.lt.s32.totalorder %s4006_s28, %s4006_s28 }
  0x7c   : > { %p4009_p7 = pnand %p4007_p5, %p4272_p13  ;;  %p4016_p1 = por %p4015_p0, %p4014_p12 }
  0x7e   : > { %p4010_p9 = pneg %p4009_p7 }
  0x80   : > { %p4017_p2 = pnand %p4016_p1, %p4010_p9 }
  0x82   : > { %4020 = shalt.err (!%p4017_p2)
}
  0x83   : > { %s4142_s11 = smov 256   ;;  %s4143_s22 = smov 16  }
  0x84   : > { %3687 = dma.hbm_to_vmem [thread:$0]  (!%p4256_p11), %s5496_s8, 4096, %s347_s12, [#allocation12], %s4142_s11, %s4142_s11, %s4143_s22  }
  0x85   : > { %s4384_s30 = sadd.s32 1, %s4133_s16   ;;  %s57_s20 = sadd.s32 1, %s4129_s15 }
  0x86   : > { %s54_s10 = ssub.s32 %s4133_s16, %s4384_s30  ;;  %p64_p4 = scmp.ne.s32.totalorder %s4129_s15, %s4125_s14 }
  0x87   : > { %p55_p13 = scmp.eq.s32.totalorder %s54_s10, 0  ;;  %p65_p8 = scmp.eq.s32.totalorder %s4133_s16, 0 }
  0x88   : > { %p3701_p6 = scmp.lt.s32.totalorder %s4133_s16, 2  ;;  %p5516_p3 = scmp.eq.s32.totalorder %s4226_s17, 1 }
  0x89   : > { %s4394_s18 = scalar_select %p55_p13, %s4129_s15, %s57_s20  }
  0x8a   : > { %p66_p10 = por %p65_p8, %p64_p4  ;;  %p4398_p5 = por %p5516_p3, %p64_p4 }
  0x8b   : > { %s363_s25 = sand.u32 1, %s4133_s16   ;;  %s365_s27 = sand.u32 1, %s4129_s15  }
  0x8c   : > { %s3047_s12 = sshll.u32 %s365_s27, 10  ;;  %s3069_s29 = sshll.u32 %s4133_s16, 14 }
  0x8d   : > { %s4408_s28 = scalar_lea.hbm %s5489_s1, %s3069_s29  ;;  %s367_s13 = scalar_lea.vmem [#allocation5], %s3047_s12 }
  0x8e   : > { %s375_s9 = sshll.u32 %s367_s13, 4  ;;  %p4412_p11 = pnand %p3701_p6, %p66_p10  ;;  %s4410_s9 = int_to_ptr.vmem [resolvable:$true] %s375_s9 }
  0x8f   : > { %s4416_s20 = scalar_lea.sflag [#allocation6], %s363_s25  ;;  %s4021_s27 = scalar_lea.hbm %s4408_s28, 16384 }
  0x90   : > { %p4022_p7 = scmp.ne.s32.totalorder %s4408_s28, %s4021_s27  ;;  %p4023_p9 = pneg %p4412_p11 }
  0x91   : > { %s4026_s23 = scalar_lea.hbm %s5489_s1, 32768  ;;  %p4027_p1 = scmp.lt.u32.totalorder %s4408_s28, %s5489_s1 }
  0x92   : > { %p4024_p12 = pnand %p4023_p9, %p4022_p7  ;;  %p4028_p2 = scmp.lt.u32.totalorder %s4026_s23, %s4021_s27 }
  0x93   : > { %p4030_p4 = scmp.lt.u32.totalorder %s4021_s27, %s4408_s28 }
  0x94   : > { %p4025_p0 = pneg %p4024_p12  ;;  %p4029_p13 = por %p4028_p2, %p4027_p1 }
  0x96   : > { %p4031_p8 = por %p4030_p4, %p4029_p13 }
  0x98   : > { %p4032_p6 = pnand %p4031_p8, %p4025_p0 }
  0x9a   : > { %4035 = shalt.err (!%p4032_p6)
}
  0x9b   : > { %s4036_s25 = scalar_lea.vmem %s4410_s9, 16384  ;;  %s4144_s12 = smov [#allocation5]  }
  0x9c   : > { %p4037_p10 = scmp.ne.s32.totalorder %s4410_s9, %s4036_s25  ;;  %s4041_s29 = sshll.u32 %s4144_s12, 4  ;;  %s4042_s29 = int_to_ptr.vmem [resolvable:$false] %s4041_s29 }
  0x9d   : > { %s4043_s26 = scalar_lea.vmem %s4042_s29, 32768  ;;  %p4044_p12 = scmp.lt.s32.totalorder %s4410_s9, %s4042_s29 }
  0x9e   : > { %p4039_p3 = pnand %p4037_p10, %p4023_p9  ;;  %p4045_p1 = scmp.lt.s32.totalorder %s4043_s26, %s4036_s25 }
  0xa0   : > { %p4040_p7 = pneg %p4039_p3  ;;  %p4046_p2 = por %p4045_p1, %p4044_p12 }
  0xa2   : > { %p4047_p13 = pnand %p4046_p2, %p4040_p7 }
  0xa4   : > { %4050 = shalt.err (!%p4047_p13)
}
  0xa5   : > { %3691 = dma.hbm_to_vmem [thread:$0]  (!%p4412_p11), %s4408_s28, 16384, %s4410_s9, %s4416_s20, %s4142_s11, %s4142_s11, %s4143_s22  }
  0xa6   : > { %p5519_p9 = scmp.ne.s32.totalorder %s5512_s21, 0 }
  0xa7   : > { %p5520_p0 = scmp.eq.s32.totalorder (!%p5519_p9), %s4226_s17, 0 }
  0xa8   : > { %387 = sbr.rel (%p5519_p9) target bundleno = 1395 (0x573), region = 60 }
  0xaf   : > { %4096 = dma.done.wait (%p5520_p0), [#allocation3], 32   ;;  %p5521_p4 = pmov %p5520_p0 }
  0xb0   : > { %s393_s10 = sand.u32 1, %s4226_s17   ;;  %s395_s27 = sand.u32 1, %s4125_s14  }
  0xb1   : > { %4098 = vsyncadd (%p5521_p4), [#allocation3], 4294967264  ;;  %s4457_s23 = sshll.u32 %s395_s27, 10  ;;  %s394_s11 = scalar_lea.sflag [#allocation6], %s393_s10 }
  0xb2   : > { %s4460_s22 = scalar_lea.vmem [#allocation5], %s4457_s23  ;;  %p5522_p11 = scmp.ne.s32.totalorder %s5509_s19, 0 }
  0xb4   : > { %4100 = dma.done.wait (%p5522_p11), %s394_s11, 16384  }
  0xb5   : > { %4102 = vsyncadd (%p5522_p11), %s394_s11, 4294950912  ;;  %p5523_p8 = pmov %p5520_p0 }
  0xb6   : > { %p5524_p6 = pmov %p5520_p0 }
  0xb7   : > { %4104 = dma.done.wait (%p5523_p8), [#allocation6], 4096  }
  0xb8   : > { %4106 = vsyncadd (%p5524_p6), [#allocation6], 4294963200  ;;  %p5525_p10 = pmov %p5520_p0 }
  0xb9   : > { %p5526_p3 = pmov %p5520_p0 }
  0xba   : > { %4108 = dma.done.wait (%p5525_p10), [#allocation9], 4096  }
  0xbb   : > { %4110 = vsyncadd (%p5526_p3), [#allocation9], 4294963200  ;;  %p5527_p7 = pmov %p5520_p0 }
  0xbc   : > { %p5528_p12 = pmov %p5520_p0 }
  0xbd   : > { %4112 = dma.done.wait (%p5527_p7), [#allocation12], 4096  }
  0xbe   : > { %4114 = vsyncadd (%p5528_p12), [#allocation12], 4294963200  ;;  %v4145_v0 = vmov 0.0|0.0   ;;  %v580_v1 = vld [vmem:[#allocation7] sm:$0xff]  ;;  %v581_v2 = vld [vmem:[#allocation7 + $0x8] sm:$0xff]  ;;  %s5529_s29 = sld [smem:[#allocation22_spill]] }
  0xbf   : > { %3488 = vmatprep.subr.bf16.mxu0 %v4145_v0  ;;  %v582_v3 = vld [vmem:[#allocation7 + $0x10] sm:$0xff]  ;;  %v3489_v4 = vpack.c.bf16 %v581_v2, %v580_v1  ;;  %v583_v5 = vld [vmem:[#allocation7 + $0x18] sm:$0xff]  ;;  %v584_v7 = vld [vmem:[#allocation7 + $0x20] sm:$0xff]  ;;  %s4931_s26 = scalar_lea.vmem [#allocation13], %s4457_s23  ;;  %s3071_s10 = sshll.u32 %s4226_s17, 14 }
  0xc0   : > { %v3492_v6 = vpack.c.bf16 %v583_v5, %v582_v3  ;;  %v585_v8 = vld [vmem:[#allocation7 + $0x28] sm:$0xff]  ;;  %v586_v10 = vld [vmem:[#allocation7 + $0x30] sm:$0xff]  ;;  %v587_v11 = vld [vmem:[#allocation7 + $0x38] sm:$0xff]  ;;  %s2916_s23 = sshll.u32 %s4931_s26, 4  ;;  %s5446_s17 = scalar_lea.sflag [#allocation4], %s395_s27  ;;  %s5440_s23 = int_to_ptr.vmem [resolvable:$true] %s2916_s23 }
  0xc1   : > { %3490 = vmatpush1.bf16.msra.mxu0 %v3489_v4  ;;  %v3495_v9 = vpack.c.bf16 %v585_v8, %v584_v7  ;;  %v453_v12 = vld [vmem:[%s4460_s22 + $0x8] sm:$0xff]  ;;  %v3498_v13 = vpack.c.bf16 %v587_v11, %v586_v10  ;;  %v588_v14 = vld [vmem:[#allocation7 + $0x40] sm:$0xff]  ;;  %v590_v17 = vld [vmem:[#allocation7 + $0x50] sm:$0xff]  ;;  %s4051_s28 = scalar_lea.vmem %s5440_s23, 16384  ;;  %s4147_s9 = smov [#allocation13]  }
  0xc2   : > { %3491 = vmatprep.subr.bf16.mxu0 %v4145_v0  ;;  %683 = vmatprep.mubr.f32.mxu0 %v453_v12  ;;  %v589_v15 = vld [vmem:[#allocation7 + $0x48] sm:$0xff]  ;;  %v591_v18 = vld [vmem:[#allocation7 + $0x58] sm:$0xff]  ;;  %v592_v20 = vld [vmem:[#allocation7 + $0x60] sm:$0xff]  ;;  %p4052_p1 = scmp.ne.s32.totalorder %s5440_s23, %s4051_s28  ;;  %s4055_s20 = sshll.u32 %s4147_s9, 4  ;;  %s4056_s20 = int_to_ptr.vmem [resolvable:$false] %s4055_s20 }
  0xc3   : > { %v3501_v16 = vpack.c.bf16 %v589_v15, %v588_v14  ;;  %v3504_v19 = vpack.c.bf16 %v591_v18, %v590_v17  ;;  %v593_v21 = vld [vmem:[#allocation7 + $0x68] sm:$0xff]  ;;  %v594_v23 = vld [vmem:[#allocation7 + $0x70] sm:$0xff]  ;;  %v595_v24 = vld [vmem:[#allocation7 + $0x78] sm:$0xff]  ;;  %s4057_s13 = scalar_lea.vmem %s4056_s20, 32768  ;;  %p4058_p9 = scmp.lt.s32.totalorder %s5440_s23, %s4056_s20 }
  0xc4   : > { %v3507_v22 = vpack.c.bf16 %v593_v21, %v592_v20  ;;  %v3510_v25 = vpack.c.bf16 %v595_v24, %v594_v23  ;;  %v596_v26 = vld [vmem:[#allocation7 + $0x80] sm:$0xff]  ;;  %v597_v27 = vld [vmem:[#allocation7 + $0x88] sm:$0xff]  ;;  %v598_v29 = vld [vmem:[#allocation7 + $0x90] sm:$0xff]  ;;  %p4053_p2 = pnand %p4052_p1, %p4398_p5  ;;  %p4059_p0 = scmp.lt.s32.totalorder %s4057_s13, %s4051_s28 }
  0xc5   : > { %3493 = vmatpush1.bf16.msra.mxu0 %v3492_v6  ;;  %v3513_v28 = vpack.c.bf16 %v597_v27, %v596_v26  ;;  %v599_v30 = vld [vmem:[#allocation7 + $0x98] sm:$0xff]  ;;  %v600_v32 = vld [vmem:[#allocation7 + $0xa0] sm:$0xff]  ;;  %v601_v33 = vld [vmem:[#allocation7 + $0xa8] sm:$0xff] }
  0xc6   : > { %3494 = vmatprep.subr.bf16.mxu0 %v4145_v0  ;;  %v3516_v31 = vpack.c.bf16 %v599_v30, %v598_v29  ;;  %v3519_v34 = vpack.c.bf16 %v601_v33, %v600_v32  ;;  %v602_v35 = vld [vmem:[#allocation7 + $0xb0] sm:$0xff]  ;;  %v603_v36 = vld [vmem:[#allocation7 + $0xb8] sm:$0xff]  ;;  %v604_v38 = vld [vmem:[#allocation7 + $0xc0] sm:$0xff]  ;;  %p4054_p13 = pneg %p4053_p2  ;;  %p4060_p4 = por %p4059_p0, %p4058_p9 }
  0xc7   : > { %v3522_v37 = vpack.c.bf16 %v603_v36, %v602_v35  ;;  %v605_v39 = vld [vmem:[#allocation7 + $0xc8] sm:$0xff]  ;;  %v606_v41 = vld [vmem:[#allocation7 + $0xd0] sm:$0xff]  ;;  %v607_v42 = vld [vmem:[#allocation7 + $0xd8] sm:$0xff] }
  0xc8   : > { %v3525_v40 = vpack.c.bf16 %v605_v39, %v604_v38  ;;  %v3528_v43 = vpack.c.bf16 %v607_v42, %v606_v41  ;;  %v608_v44 = vld [vmem:[#allocation7 + $0xe0] sm:$0xff]  ;;  %v609_v45 = vld [vmem:[#allocation7 + $0xe8] sm:$0xff]  ;;  %v610_v47 = vld [vmem:[#allocation7 + $0xf0] sm:$0xff]  ;;  %p4061_p11 = pnand %p4060_p4, %p4054_p13 }
  0xc9   : > { %3496 = vmatpush1.bf16.msra.mxu0 %v3495_v9  ;;  %v3531_v46 = vpack.c.bf16 %v609_v45, %v608_v44  ;;  %v611_v48 = vld [vmem:[#allocation7 + $0xf8] sm:$0xff]  ;;  %v452_v50 = vld [vmem:[%s4460_s22] sm:$0xff]  ;;  %v454_v52 = vld [vmem:[%s4460_s22 + $0x10] sm:$0xff] }
  0xca   : > { %3497 = vmatprep.subr.bf16.mxu0 %v4145_v0  ;;  %v3534_v49 = vpack.c.bf16 %v611_v48, %v610_v47  ;;  %v455_v51 = vld [vmem:[%s4460_s22 + $0x18] sm:$0xff]  ;;  %v457_v53 = vld [vmem:[%s4460_s22 + $0x28] sm:$0xff]  ;;  %v456_v54 = vld [vmem:[%s4460_s22 + $0x20] sm:$0xff] }
  0xcb   : > { %v459_v55 = vld [vmem:[%s4460_s22 + $0x38] sm:$0xff]  ;;  %v458_v56 = vld [vmem:[%s4460_s22 + $0x30] sm:$0xff]  ;;  %v461_v57 = vld [vmem:[%s4460_s22 + $0x48] sm:$0xff] }
  0xcc   : > { %v460_v58 = vld [vmem:[%s4460_s22 + $0x40] sm:$0xff]  ;;  %v463_v59 = vld [vmem:[%s4460_s22 + $0x58] sm:$0xff]  ;;  %v462_v60 = vld [vmem:[%s4460_s22 + $0x50] sm:$0xff] }
  0xcd   : > { %3499 = vmatpush1.bf16.msra.mxu0 %v3498_v13  ;;  %v465_v61 = vld [vmem:[%s4460_s22 + $0x68] sm:$0xff]  ;;  %v464_v62 = vld [vmem:[%s4460_s22 + $0x60] sm:$0xff]  ;;  %v467_v63 = vld [vmem:[%s4460_s22 + $0x78] sm:$0xff] }
  0xce   : > { %3500 = vmatprep.subr.bf16.mxu0 %v4145_v0  ;;  %v469_v1 = vld [vmem:[%s4460_s22 + $0x88] sm:$0xff]  ;;  %v468_v2 = vld [vmem:[%s4460_s22 + $0x80] sm:$0xff]  ;;  %v471_v3 = vld [vmem:[%s4460_s22 + $0x98] sm:$0xff] }
  0xcf   : > { %v470_v4 = vld [vmem:[%s4460_s22 + $0x90] sm:$0xff]  ;;  %v473_v5 = vld [vmem:[%s4460_s22 + $0xa8] sm:$0xff]  ;;  %v472_v6 = vld [vmem:[%s4460_s22 + $0xa0] sm:$0xff] }
  0xd0   : > { %v475_v7 = vld [vmem:[%s4460_s22 + $0xb8] sm:$0xff]  ;;  %v474_v8 = vld [vmem:[%s4460_s22 + $0xb0] sm:$0xff]  ;;  %v477_v9 = vld [vmem:[%s4460_s22 + $0xc8] sm:$0xff] }
  0xd1   : > { %3502 = vmatpush1.bf16.msra.mxu0 %v3501_v16  ;;  %v476_v10 = vld [vmem:[%s4460_s22 + $0xc0] sm:$0xff]  ;;  %v479_v11 = vld [vmem:[%s4460_s22 + $0xd8] sm:$0xff]  ;;  %v478_v12 = vld [vmem:[%s4460_s22 + $0xd0] sm:$0xff] }
  0xd2   : > { %3503 = vmatprep.subr.bf16.mxu0 %v4145_v0  ;;  %v481_v13 = vld [vmem:[%s4460_s22 + $0xe8] sm:$0xff]  ;;  %v480_v14 = vld [vmem:[%s4460_s22 + $0xe0] sm:$0xff]  ;;  %v483_v15 = vld [vmem:[%s4460_s22 + $0xf8] sm:$0xff] }
  0xd3   : > { %v482_v16 = vld [vmem:[%s4460_s22 + $0xf0] sm:$0xff]  ;;  %v1068_v17 = vld [vmem:[#allocation8] sm:$0xff]  ;;  %v1069_v18 = vld [vmem:[#allocation8 + $0x8] sm:$0xff] }
  0xd4   : > { %v3536_v20 = vpack.c.bf16 %v1069_v18, %v1068_v17  ;;  %v484_v21 = vld [vmem:[%s4460_s22 + $0x100] sm:$0xff]  ;;  %v1071_v23 = vld [vmem:[#allocation8 + $0x18] sm:$0xff]  ;;  %v486_v26 = vld [vmem:[%s4460_s22 + $0x110] sm:$0xff] }
  0xd5   : > { %3505 = vmatpush1.bf16.msra.mxu0 %v3504_v19  ;;  %v485_v19 = vld [vmem:[%s4460_s22 + $0x108] sm:$0xff]  ;;  %v487_v24 = vld [vmem:[%s4460_s22 + $0x118] sm:$0xff]  ;;  %v1072_v27 = vld [vmem:[#allocation8 + $0x20] sm:$0xff] }
  0xd6   : > { %3506 = vmatprep.subr.bf16.mxu0 %v4145_v0  ;;  %3537 = vmatprep.subr.bf16.mxu1 %v3536_v20  ;;  %v489_v29 = vld [vmem:[%s4460_s22 + $0x128] sm:$0xff]  ;;  %v1074_v32 = vld [vmem:[#allocation8 + $0x30] sm:$0xff]  ;;  %v1075_v33 = vld [vmem:[#allocation8 + $0x38] sm:$0xff] }
  0xd7   : > { %3539 = vmatpush3.bf16.msra.mxu1 %v3536_v20  ;;  %v3548_v35 = vpack.c.bf16 %v1075_v33, %v1074_v32  ;;  %v490_v36 = vld [vmem:[%s4460_s22 + $0x130] sm:$0xff]  ;;  %v1077_v38 = vld [vmem:[#allocation8 + $0x48] sm:$0xff]  ;;  %v492_v41 = vld [vmem:[%s4460_s22 + $0x140] sm:$0xff] }
  0xd8   : > { %v493_v39 = vld [vmem:[%s4460_s22 + $0x148] sm:$0xff]  ;;  %v1078_v42 = vld [vmem:[#allocation8 + $0x50] sm:$0xff]  ;;  %v495_v44 = vld [vmem:[%s4460_s22 + $0x158] sm:$0xff] }
  0xd9   : > { %3508 = vmatpush1.bf16.msra.mxu0 %v3507_v22  ;;  %v1070_v22 = vld [vmem:[#allocation8 + $0x10] sm:$0xff]  ;;  %v1080_v47 = vld [vmem:[#allocation8 + $0x60] sm:$0xff]  ;;  %v1081_v48 = vld [vmem:[#allocation8 + $0x68] sm:$0xff] }
  0xda   : > { %3509 = vmatprep.subr.bf16.mxu0 %v4145_v0  ;;  %v525_v17 = vld [vmem:[%s4460_s22 + $0x248] sm:$0xff]  ;;  %v524_v18 = vld [vmem:[%s4460_s22 + $0x240] sm:$0xff]  ;;  %v526_v20 = vld [vmem:[%s4460_s22 + $0x250] sm:$0xff] }
  0xdb   : > { %v538_v32 = vld [vmem:[%s4460_s22 + $0x2b0] sm:$0xff]  ;;  %v541_v33 = vld [vmem:[%s4460_s22 + $0x2c8] sm:$0xff] }
  0xdd   : > { %3511 = vmatpush1.bf16.msra.mxu0 %v3510_v25  ;;  %v3540_v25 = vpack.c.bf16 %v1071_v23, %v1070_v22  ;;  %v528_v22 = vld [vmem:[%s4460_s22 + $0x260] sm:$0xff]  ;;  %v531_v23 = vld [vmem:[%s4460_s22 + $0x278] sm:$0xff] }
  0xde   : > { %3512 = vmatprep.subr.bf16.mxu0 %v4145_v0 }
  0xdf   : > { %3541 = vmatprep.subr.bf16.mxu1 %v3540_v25 }
  0xe0   : > { %3543 = vmatpush3.bf16.msra.mxu1 %v3540_v25  ;;  %v533_v25 = vld [vmem:[%s4460_s22 + $0x288] sm:$0xff] }
  0xe1   : > { %3514 = vmatpush1.bf16.msra.mxu0 %v3513_v28  ;;  %v1073_v28 = vld [vmem:[#allocation8 + $0x28] sm:$0xff] }
  0xe2   : > { %3515 = vmatprep.subr.bf16.mxu0 %v4145_v0  ;;  %v3544_v30 = vpack.c.bf16 %v1073_v28, %v1072_v27  ;;  %v535_v27 = vld [vmem:[%s4460_s22 + $0x298] sm:$0xff]  ;;  %v534_v28 = vld [vmem:[%s4460_s22 + $0x290] sm:$0xff] }
  0xe4   : > { %3545 = vmatprep.subr.bf16.mxu1 %v3544_v30 }
  0xe5   : > { %3517 = vmatpush1.bf16.msra.mxu0 %v3516_v31  ;;  %v488_v31 = vld [vmem:[%s4460_s22 + $0x120] sm:$0xff]  ;;  %3547 = vmatpush3.bf16.msra.mxu1 %v3544_v30 }
  0xe6   : > { %3518 = vmatprep.subr.bf16.mxu0 %v4145_v0  ;;  %3549 = vmatprep.subr.bf16.mxu1 %v3548_v35  ;;  %v536_v30 = vld [vmem:[%s4460_s22 + $0x2a0] sm:$0xff] }
  0xe9   : > { %3520 = vmatpush1.bf16.msra.mxu0 %v3519_v34  ;;  %v491_v34 = vld [vmem:[%s4460_s22 + $0x138] sm:$0xff]  ;;  %3551 = vmatpush3.bf16.msra.mxu1 %v3548_v35 }
  0xea   : > { %3521 = vmatprep.subr.bf16.mxu0 %v4145_v0  ;;  %v543_v35 = vld [vmem:[%s4460_s22 + $0x2d8] sm:$0xff] }
  0xed   : > { %3523 = vmatpush1.bf16.msra.mxu0 %v3522_v37  ;;  %v1076_v37 = vld [vmem:[#allocation8 + $0x40] sm:$0xff] }
  0xee   : > { %3524 = vmatprep.subr.bf16.mxu0 %v4145_v0 }
  0xf1   : > { %3526 = vmatpush1.bf16.msra.mxu0 %v3525_v40  ;;  %v3552_v40 = vpack.c.bf16 %v1077_v38, %v1076_v37  ;;  %v545_v37 = vld [vmem:[%s4460_s22 + $0x2e8] sm:$0xff]  ;;  %v544_v38 = vld [vmem:[%s4460_s22 + $0x2e0] sm:$0xff] }
  0xf2   : > { %3527 = vmatprep.subr.bf16.mxu0 %v4145_v0 }
  0xf3   : > { %3553 = vmatprep.subr.bf16.mxu1 %v3552_v40 }
  0xf4   : > { %3555 = vmatpush3.bf16.msra.mxu1 %v3552_v40  ;;  %v546_v40 = vld [vmem:[%s4460_s22 + $0x2f0] sm:$0xff] }
  0xf5   : > { %3529 = vmatpush1.bf16.msra.mxu0 %v3528_v43  ;;  %v1079_v43 = vld [vmem:[#allocation8 + $0x58] sm:$0xff] }
  0xf6   : > { %3530 = vmatprep.subr.bf16.mxu0 %v4145_v0  ;;  %v3556_v45 = vpack.c.bf16 %v1079_v43, %v1078_v42  ;;  %v548_v42 = vld [vmem:[%s4460_s22 + $0x300] sm:$0xff]  ;;  %v551_v43 = vld [vmem:[%s4460_s22 + $0x318] sm:$0xff] }
  0xf8   : > { %3557 = vmatprep.subr.bf16.mxu1 %v3556_v45 }
  0xf9   : > { %3532 = vmatpush1.bf16.msra.mxu0 %v3531_v46  ;;  %v494_v46 = vld [vmem:[%s4460_s22 + $0x150] sm:$0xff]  ;;  %3559 = vmatpush3.bf16.msra.mxu1 %v3556_v45  ;;  %v553_v45 = vld [vmem:[%s4460_s22 + $0x328] sm:$0xff] }
  0xfa   : > { %3533 = vmatprep.subr.bf16.mxu0 %v4145_v0  ;;  %v466_v0 = vld [vmem:[%s4460_s22 + $0x70] sm:$0xff] }
  0xfd   : > { %3535 = vmatpush1.bf16.msra.mxu0 %v3534_v49  ;;  %v497_v49 = vld [vmem:[%s4460_s22 + $0x168] sm:$0xff] }
 0x100   : > { %684 = vmatmul.mubr.f32.vlgmr.msra.gmra.mrb[0].mxu0 %v452_v50  ;;  %v3560_v50 = vpack.c.bf16 %v1081_v48, %v1080_v47  ;;  %v555_v47 = vld [vmem:[%s4460_s22 + $0x338] sm:$0xff]  ;;  %v554_v48 = vld [vmem:[%s4460_s22 + $0x330] sm:$0xff] }
 0x101   : > { %688 = vmatprep.mubr.f32.mxu0 %v455_v51  ;;  %v496_v51 = vld [vmem:[%s4460_s22 + $0x160] sm:$0xff] }
 0x102   : > { %3561 = vmatprep.subr.bf16.mxu1 %v3560_v50 }
 0x103   : > { %3563 = vmatpush3.bf16.msra.mxu1 %v3560_v50  ;;  %v556_v50 = vld [vmem:[%s4460_s22 + $0x340] sm:$0xff] }
 0x104   : > { %689 = vmatmul.mubr.f32.gmra.mrb[2].mxu0 %v454_v52  ;;  %v1082_v52 = vld [vmem:[#allocation8 + $0x70] sm:$0xff] }
 0x105   : > { %693 = vmatprep.mubr.f32.mxu0 %v457_v53  ;;  %v1083_v53 = vld [vmem:[#allocation8 + $0x78] sm:$0xff] }
 0x108   : > { %694 = vmatmul.mubr.f32.gmra.mrb[4].mxu0 %v456_v54  ;;  %v499_v54 = vld [vmem:[%s4460_s22 + $0x178] sm:$0xff] }
 0x109   : > { %698 = vmatprep.mubr.f32.mxu0 %v459_v55  ;;  %v3564_v55 = vpack.c.bf16 %v1083_v53, %v1082_v52  ;;  %v558_v52 = vld [vmem:[%s4460_s22 + $0x350] sm:$0xff]  ;;  %v4605_v53 = vld [vmem:[%s5491_s3] ss:$0 sm:$0xff] }
 0x10b   : > { %3565 = vmatprep.subr.bf16.mxu1 %v3564_v55 }
 0x10c   : > { %699 = vmatmul.mubr.f32.gmra.mrb[6].mxu0 %v458_v56  ;;  %v498_v56 = vld [vmem:[%s4460_s22 + $0x170] sm:$0xff]  ;;  %3567 = vmatpush3.bf16.msra.mxu1 %v3564_v55 }
 0x10d   : > { %703 = vmatprep.mubr.f32.mxu0 %v461_v57  ;;  %v501_v57 = vld [vmem:[%s4460_s22 + $0x188] sm:$0xff] }
 0x110   : > { %704 = vmatmul.mubr.f32.gmra.mrb[8].mxu0 %v460_v58  ;;  %v500_v58 = vld [vmem:[%s4460_s22 + $0x180] sm:$0xff] }
 0x111   : > { %708 = vmatprep.mubr.f32.mxu0 %v463_v59  ;;  %v503_v59 = vld [vmem:[%s4460_s22 + $0x198] sm:$0xff] }
 0x114   : > { %709 = vmatmul.mubr.f32.gmra.mrb[10].mxu0 %v462_v60  ;;  %v502_v60 = vld [vmem:[%s4460_s22 + $0x190] sm:$0xff] }
 0x115   : > { %713 = vmatprep.mubr.f32.mxu0 %v465_v61  ;;  %v505_v61 = vld [vmem:[%s4460_s22 + $0x1a8] sm:$0xff] }
 0x118   : > { %714 = vmatmul.mubr.f32.gmra.mrb[12].mxu0 %v464_v62  ;;  %v504_v62 = vld [vmem:[%s4460_s22 + $0x1a0] sm:$0xff] }
 0x119   : > { %718 = vmatprep.mubr.f32.mxu0 %v467_v63  ;;  %v507_v63 = vld [vmem:[%s4460_s22 + $0x1b8] sm:$0xff] }
 0x11c   : > { %719 = vmatmul.mubr.f32.gmra.mrb[14].mxu0 %v466_v0  ;;  %v506_v0 = vld [vmem:[%s4460_s22 + $0x1b0] sm:$0xff] }
 0x11d   : > { %723 = vmatprep.mubr.f32.mxu0 %v469_v1  ;;  %v509_v1 = vld [vmem:[%s4460_s22 + $0x1c8] sm:$0xff] }
 0x120   : > { %724 = vmatmul.mubr.f32.gmra.mrb[16].mxu0 %v468_v2  ;;  %v508_v2 = vld [vmem:[%s4460_s22 + $0x1c0] sm:$0xff] }
 0x121   : > { %728 = vmatprep.mubr.f32.mxu0 %v471_v3  ;;  %v511_v3 = vld [vmem:[%s4460_s22 + $0x1d8] sm:$0xff] }
 0x124   : > { %729 = vmatmul.mubr.f32.gmra.mrb[18].mxu0 %v470_v4  ;;  %v510_v4 = vld [vmem:[%s4460_s22 + $0x1d0] sm:$0xff] }
 0x125   : > { %733 = vmatprep.mubr.f32.mxu0 %v473_v5  ;;  %v513_v5 = vld [vmem:[%s4460_s22 + $0x1e8] sm:$0xff] }
 0x128   : > { %734 = vmatmul.mubr.f32.gmra.mrb[20].mxu0 %v472_v6  ;;  %v512_v6 = vld [vmem:[%s4460_s22 + $0x1e0] sm:$0xff] }
 0x129   : > { %738 = vmatprep.mubr.f32.mxu0 %v475_v7  ;;  %v515_v7 = vld [vmem:[%s4460_s22 + $0x1f8] sm:$0xff] }
 0x12c   : > { %739 = vmatmul.mubr.f32.gmra.mrb[22].mxu0 %v474_v8  ;;  %v514_v8 = vld [vmem:[%s4460_s22 + $0x1f0] sm:$0xff] }
 0x12d   : > { %743 = vmatprep.mubr.f32.mxu0 %v477_v9  ;;  %v517_v9 = vld [vmem:[%s4460_s22 + $0x208] sm:$0xff] }
 0x130   : > { %744 = vmatmul.mubr.f32.gmra.mrb[24].mxu0 %v476_v10  ;;  %v516_v10 = vld [vmem:[%s4460_s22 + $0x200] sm:$0xff] }
 0x131   : > { %748 = vmatprep.mubr.f32.mxu0 %v479_v11  ;;  %v519_v11 = vld [vmem:[%s4460_s22 + $0x218] sm:$0xff] }
 0x134   : > { %749 = vmatmul.mubr.f32.gmra.mrb[26].mxu0 %v478_v12  ;;  %v518_v12 = vld [vmem:[%s4460_s22 + $0x210] sm:$0xff] }
 0x135   : > { %753 = vmatprep.mubr.f32.mxu0 %v481_v13  ;;  %v521_v13 = vld [vmem:[%s4460_s22 + $0x228] sm:$0xff] }
 0x138   : > { %754 = vmatmul.mubr.f32.gmra.mrb[28].mxu0 %v480_v14  ;;  %v520_v14 = vld [vmem:[%s4460_s22 + $0x220] sm:$0xff] }
 0x139   : > { %758 = vmatprep.mubr.f32.mxu0 %v483_v15  ;;  %v523_v15 = vld [vmem:[%s4460_s22 + $0x238] sm:$0xff] }
 0x13c   : > { %759 = vmatmul.mubr.f32.gmra.mrb[30].mxu0 %v482_v16  ;;  %v522_v16 = vld [vmem:[%s4460_s22 + $0x230] sm:$0xff] }
 0x13d   : > { %763 = vmatprep.mubr.f32.mxu0 %v485_v19  ;;  %v527_v19 = vld [vmem:[%s4460_s22 + $0x258] sm:$0xff] }
 0x140   : > { %764 = vmatmul.mubr.f32.gmra.mrb[32].mxu0 %v484_v21  ;;  %v529_v21 = vld [vmem:[%s4460_s22 + $0x268] sm:$0xff] }
 0x141   : > { %768 = vmatprep.mubr.f32.mxu0 %v487_v24  ;;  %v530_v24 = vld [vmem:[%s4460_s22 + $0x270] sm:$0xff] }
 0x144   : > { %769 = vmatmul.mubr.f32.gmra.mrb[34].mxu0 %v486_v26  ;;  %v532_v26 = vld [vmem:[%s4460_s22 + $0x280] sm:$0xff] }
 0x145   : > { %773 = vmatprep.mubr.f32.mxu0 %v489_v29  ;;  %v537_v29 = vld [vmem:[%s4460_s22 + $0x2a8] sm:$0xff] }
 0x148   : > { %774 = vmatmul.mubr.f32.gmra.mrb[36].mxu0 %v488_v31  ;;  %v539_v31 = vld [vmem:[%s4460_s22 + $0x2b8] sm:$0xff] }
 0x149   : > { %778 = vmatprep.mubr.f32.mxu0 %v491_v34  ;;  %v540_v34 = vld [vmem:[%s4460_s22 + $0x2c0] sm:$0xff] }
 0x14c   : > { %779 = vmatmul.mubr.f32.gmra.mrb[38].mxu0 %v490_v36  ;;  %v542_v36 = vld [vmem:[%s4460_s22 + $0x2d0] sm:$0xff] }
 0x14d   : > { %783 = vmatprep.mubr.f32.mxu0 %v493_v39  ;;  %v547_v39 = vld [vmem:[%s4460_s22 + $0x2f8] sm:$0xff] }
 0x150   : > { %784 = vmatmul.mubr.f32.gmra.mrb[40].mxu0 %v492_v41  ;;  %v549_v41 = vld [vmem:[%s4460_s22 + $0x308] sm:$0xff] }
 0x151   : > { %788 = vmatprep.mubr.f32.mxu0 %v495_v44  ;;  %v550_v44 = vld [vmem:[%s4460_s22 + $0x310] sm:$0xff] }
 0x154   : > { %789 = vmatmul.mubr.f32.gmra.mrb[42].mxu0 %v494_v46  ;;  %v552_v46 = vld [vmem:[%s4460_s22 + $0x320] sm:$0xff] }
 0x155   : > { %793 = vmatprep.mubr.f32.mxu0 %v497_v49  ;;  %v557_v49 = vld [vmem:[%s4460_s22 + $0x348] sm:$0xff] }
 0x158   : > { %794 = vmatmul.mubr.f32.gmra.mrb[44].mxu0 %v496_v51  ;;  %v559_v51 = vld [vmem:[%s4460_s22 + $0x358] sm:$0xff] }
 0x159   : > { %798 = vmatprep.mubr.f32.mxu0 %v499_v54  ;;  %v561_v54 = vld [vmem:[%s4460_s22 + $0x368] sm:$0xff] }
 0x15c   : > { %799 = vmatmul.mubr.f32.gmra.mrb[46].mxu0 %v498_v56 }
 0x15d   : > { %803 = vmatprep.mubr.f32.mxu0 %v501_v57 }
 0x160   : > { %804 = vmatmul.mubr.f32.gmra.mrb[48].mxu0 %v500_v58  ;;  %v560_v58 = vld [vmem:[%s4460_s22 + $0x360] sm:$0xff] }
 0x161   : > { %808 = vmatprep.mubr.f32.mxu0 %v503_v59 }
 0x164   : > { %809 = vmatmul.mubr.f32.gmra.mrb[50].mxu0 %v502_v60  ;;  %v563_v60 = vld [vmem:[%s4460_s22 + $0x378] sm:$0xff] }
 0x165   : > { %813 = vmatprep.mubr.f32.mxu0 %v505_v61 }
 0x168   : > { %814 = vmatmul.mubr.f32.gmra.mrb[52].mxu0 %v504_v62 }
 0x169   : > { %818 = vmatprep.mubr.f32.mxu0 %v507_v63 }
 0x16c   : > { %819 = vmatmul.mubr.f32.gmra.mrb[54].mxu0 %v506_v0  ;;  %v562_v0 = vld [vmem:[%s4460_s22 + $0x370] sm:$0xff] }
 0x16d   : > { %823 = vmatprep.mubr.f32.mxu0 %v509_v1 }
 0x170   : > { %824 = vmatmul.mubr.f32.gmra.mrb[56].mxu0 %v508_v2  ;;  %v565_v2 = vld [vmem:[%s4460_s22 + $0x388] sm:$0xff] }
 0x171   : > { %828 = vmatprep.mubr.f32.mxu0 %v511_v3 }
 0x174   : > { %829 = vmatmul.mubr.f32.gmra.mrb[58].mxu0 %v510_v4 }
 0x175   : > { %833 = vmatprep.mubr.f32.mxu0 %v513_v5 }
 0x178   : > { %834 = vmatmul.mubr.f32.gmra.mrb[60].mxu0 %v512_v6  ;;  %v564_v6 = vld [vmem:[%s4460_s22 + $0x380] sm:$0xff] }
 0x179   : > { %838 = vmatprep.mubr.f32.mxu0 %v515_v7 }
 0x17c   : > { %839 = vmatmul.mubr.f32.gmra.mrb[62].mxu0 %v514_v8  ;;  %v567_v8 = vld [vmem:[%s4460_s22 + $0x398] sm:$0xff] }
 0x17d   : > { %843 = vmatprep.mubr.f32.mxu0 %v517_v9 }
 0x180   : > { %844 = vmatmul.mubr.f32.gmra.mrb[64].mxu0 %v516_v10 }
 0x181   : > { %848 = vmatprep.mubr.f32.mxu0 %v519_v11 }
 0x184   : > { %849 = vmatmul.mubr.f32.gmra.mrb[66].mxu0 %v518_v12  ;;  %v566_v12 = vld [vmem:[%s4460_s22 + $0x390] sm:$0xff] }
 0x185   : > { %853 = vmatprep.mubr.f32.mxu0 %v521_v13 }
 0x188   : > { %854 = vmatmul.mubr.f32.gmra.mrb[68].mxu0 %v520_v14  ;;  %v569_v14 = vld [vmem:[%s4460_s22 + $0x3a8] sm:$0xff] }
 0x189   : > { %858 = vmatprep.mubr.f32.mxu0 %v523_v15 }
 0x18c   : > { %859 = vmatmul.mubr.f32.gmra.mrb[70].mxu0 %v522_v16 }
 0x18d   : > { %863 = vmatprep.mubr.f32.mxu0 %v525_v17 }
 0x190   : > { %864 = vmatmul.mubr.f32.gmra.mrb[72].mxu0 %v524_v18  ;;  %v568_v18 = vld [vmem:[%s4460_s22 + $0x3a0] sm:$0xff] }
 0x191   : > { %868 = vmatprep.mubr.f32.mxu0 %v527_v19 }
 0x194   : > { %869 = vmatmul.mubr.f32.gmra.mrb[74].mxu0 %v526_v20  ;;  %v571_v20 = vld [vmem:[%s4460_s22 + $0x3b8] sm:$0xff] }
 0x195   : > { %873 = vmatprep.mubr.f32.mxu0 %v529_v21 }
 0x198   : > { %874 = vmatmul.mubr.f32.gmra.mrb[76].mxu0 %v528_v22 }
 0x199   : > { %878 = vmatprep.mubr.f32.mxu0 %v531_v23 }
 0x19c   : > { %879 = vmatmul.mubr.f32.gmra.mrb[78].mxu0 %v530_v24  ;;  %v570_v24 = vld [vmem:[%s4460_s22 + $0x3b0] sm:$0xff] }
 0x19d   : > { %883 = vmatprep.mubr.f32.mxu0 %v533_v25 }
 0x1a0   : > { %884 = vmatmul.mubr.f32.gmra.mrb[80].mxu0 %v532_v26  ;;  %v573_v26 = vld [vmem:[%s4460_s22 + $0x3c8] sm:$0xff] }
 0x1a1   : > { %888 = vmatprep.mubr.f32.mxu0 %v535_v27 }
 0x1a4   : > { %889 = vmatmul.mubr.f32.gmra.mrb[82].mxu0 %v534_v28 }
 0x1a5   : > { %893 = vmatprep.mubr.f32.mxu0 %v537_v29 }
 0x1a8   : > { %894 = vmatmul.mubr.f32.gmra.mrb[84].mxu0 %v536_v30  ;;  %v572_v30 = vld [vmem:[%s4460_s22 + $0x3c0] sm:$0xff] }
 0x1a9   : > { %898 = vmatprep.mubr.f32.mxu0 %v539_v31 }
 0x1ac   : > { %899 = vmatmul.mubr.f32.gmra.mrb[86].mxu0 %v538_v32  ;;  %v575_v32 = vld [vmem:[%s4460_s22 + $0x3d8] sm:$0xff] }
 0x1ad   : > { %903 = vmatprep.mubr.f32.mxu0 %v541_v33  ;;  %v1540_v33 = vld [vmem:[#allocation10] sm:$0xff] }
 0x1b0   : > { %904 = vmatmul.mubr.f32.gmra.mrb[88].mxu0 %v540_v34  ;;  %v1541_v34 = vld [vmem:[#allocation10 + $0x8] sm:$0xff] }
 0x1b1   : > { %908 = vmatprep.mubr.f32.mxu0 %v543_v35 }
 0x1b4   : > { %909 = vmatmul.mubr.f32.gmra.mrb[90].mxu0 %v542_v36  ;;  %v3568_v36 = vpack.c.bf16 %v1541_v34, %v1540_v33  ;;  %v1547_v33 = vld [vmem:[#allocation10 + $0x38] sm:$0xff] }
 0x1b5   : > { %913 = vmatprep.mubr.f32.mxu0 %v545_v37 }
 0x1b6   : > { %3569 = vmatprep.subr.bf16.mxu1 %v3568_v36 }
 0x1b8   : > { %914 = vmatmul.mubr.f32.gmra.mrb[92].mxu0 %v544_v38 }
 0x1b9   : > { %918 = vmatprep.mubr.f32.mxu0 %v547_v39  ;;  %v574_v39 = vld [vmem:[%s4460_s22 + $0x3d0] sm:$0xff] }
 0x1bc   : > { %919 = vmatmul.mubr.f32.gmra.mrb[94].mxu0 %v546_v40 }
 0x1bd   : > { %923 = vmatprep.mubr.f32.mxu0 %v549_v41  ;;  %v577_v41 = vld [vmem:[%s4460_s22 + $0x3e8] sm:$0xff] }
 0x1c0   : > { %924 = vmatmul.mubr.f32.gmra.mrb[96].mxu0 %v548_v42 }
 0x1c1   : > { %928 = vmatprep.mubr.f32.mxu0 %v551_v43 }
 0x1c4   : > { %929 = vmatmul.mubr.f32.gmra.mrb[98].mxu0 %v550_v44 }
 0x1c5   : > { %933 = vmatprep.mubr.f32.mxu0 %v553_v45  ;;  %v576_v45 = vld [vmem:[%s4460_s22 + $0x3e0] sm:$0xff] }
 0x1c8   : > { %934 = vmatmul.mubr.f32.gmra.mrb[100].mxu0 %v552_v46 }
 0x1c9   : > { %938 = vmatprep.mubr.f32.mxu0 %v555_v47  ;;  %v579_v47 = vld [vmem:[%s4460_s22 + $0x3f8] sm:$0xff] }
 0x1cc   : > { %939 = vmatmul.mubr.f32.gmra.mrb[102].mxu0 %v554_v48 }
 0x1cd   : > { %943 = vmatprep.mubr.f32.mxu0 %v557_v49 }
 0x1d0   : > { %944 = vmatmul.mubr.f32.gmra.mrb[104].mxu0 %v556_v50 }
 0x1d1   : > { %948 = vmatprep.mubr.f32.mxu0 %v559_v51  ;;  %v578_v51 = vld [vmem:[%s4460_s22 + $0x3f0] sm:$0xff] }
 0x1d3   : > { %v685_v55 = vpop.f32.mrb[0].mxu0 }
 0x1d4   : > { %v687_v56 = vpop.f32.mrb[1].mxu0  ;;  %949 = vmatmul.mubr.f32.gmra.mrb[106].mxu0 %v558_v52  ;;  %v686_v57 = vadd.f32 %v4605_v53, %v685_v55 }
 0x1d5   : > { %953 = vmatprep.mubr.f32.mxu0 %v561_v54 }
 0x1d6   : > { %v1004_v59 = vmax.f32 %v686_v57, 0.0 }
 0x1d7   : > { %v690_v61 = vpop.f32.mrb[2].mxu0 }
 0x1d8   : > { %v691_v62 = vadd.f32 %v4605_v53, %v690_v61  ;;  %v692_v63 = vpop.f32.mrb[3].mxu0  ;;  %954 = vmatmul.mubr.f32.gmra.mrb[108].mxu0 %v560_v58  ;;  %3264 = vmatprep.mubr.f32.mxu1 %v1004_v59  ;;  %v1542_v58 = vld [vmem:[#allocation10 + $0x10] sm:$0xff]  ;;  %v1543_v59 = vld [vmem:[#allocation10 + $0x18] sm:$0xff] }
 0x1d9   : > { %958 = vmatprep.mubr.f32.mxu0 %v563_v60  ;;  %v3572_v61 = vpack.c.bf16 %v1543_v59, %v1542_v58 }
 0x1da   : > { %v1005_v1 = vmax.f32 %v691_v62, 0.0 }
 0x1db   : > { %v695_v3 = vpop.f32.mrb[4].mxu0 }
 0x1dc   : > { %v696_v4 = vadd.f32 %v4605_v53, %v695_v3  ;;  %v697_v5 = vpop.f32.mrb[5].mxu0  ;;  %959 = vmatmul.mubr.f32.gmra.mrb[110].mxu0 %v562_v0  ;;  %3265 = vmatmul.mubr.f32.vlgmr.msra.gmra.mrb[0].mxu1 %v1005_v1 }
 0x1dd   : > { %963 = vmatprep.mubr.f32.mxu0 %v565_v2  ;;  %3571 = vmatpush3.bf16.msra.mxu1 %v3568_v36 }
 0x1de   : > { %v1006_v7 = vmax.f32 %v696_v4, 0.0  ;;  %3573 = vmatprep.subr.bf16.mxu1 %v3572_v61 }
 0x1df   : > { %v700_v9 = vpop.f32.mrb[6].mxu0 }
 0x1e0   : > { %v701_v10 = vadd.f32 %v4605_v53, %v700_v9  ;;  %v702_v11 = vpop.f32.mrb[7].mxu0  ;;  %964 = vmatmul.mubr.f32.gmra.mrb[112].mxu0 %v564_v6  ;;  %3267 = vmatprep.mubr.f32.mxu1 %v1006_v7 }
 0x1e1   : > { %968 = vmatprep.mubr.f32.mxu0 %v567_v8  ;;  %3575 = vmatpush3.bf16.msra.mxu1 %v3572_v61 }
 0x1e2   : > { %v1007_v13 = vmax.f32 %v701_v10, 0.0 }
 0x1e3   : > { %v705_v15 = vpop.f32.mrb[8].mxu0 }
 0x1e4   : > { %v706_v16 = vadd.f32 %v4605_v53, %v705_v15  ;;  %v707_v17 = vpop.f32.mrb[9].mxu0  ;;  %969 = vmatmul.mubr.f32.gmra.mrb[114].mxu0 %v566_v12  ;;  %3268 = vmatmul.mubr.f32.gmra.mrb[2].mxu1 %v1007_v13  ;;  %v1544_v13 = vld [vmem:[#allocation10 + $0x20] sm:$0xff] }
 0x1e5   : > { %973 = vmatprep.mubr.f32.mxu0 %v569_v14  ;;  %v1545_v14 = vld [vmem:[#allocation10 + $0x28] sm:$0xff] }
 0x1e6   : > { %v1008_v19 = vmax.f32 %v706_v16, 0.0  ;;  %v3576_v16 = vpack.c.bf16 %v1545_v14, %v1544_v13 }
 0x1e7   : > { %v710_v21 = vpop.f32.mrb[10].mxu0 }
 0x1e8   : > { %v711_v22 = vadd.f32 %v4605_v53, %v710_v21  ;;  %v712_v23 = vpop.f32.mrb[11].mxu0  ;;  %974 = vmatmul.mubr.f32.gmra.mrb[116].mxu0 %v568_v18  ;;  %3270 = vmatprep.mubr.f32.mxu1 %v1008_v19 }
 0x1e9   : > { %978 = vmatprep.mubr.f32.mxu0 %v571_v20  ;;  %3577 = vmatprep.subr.bf16.mxu1 %v3576_v16 }
 0x1ea   : > { %v1009_v25 = vmax.f32 %v711_v22, 0.0  ;;  %3579 = vmatpush3.bf16.msra.mxu1 %v3576_v16 }
 0x1eb   : > { %v715_v27 = vpop.f32.mrb[12].mxu0 }
 0x1ec   : > { %v716_v28 = vadd.f32 %v4605_v53, %v715_v27  ;;  %v717_v29 = vpop.f32.mrb[13].mxu0  ;;  %979 = vmatmul.mubr.f32.gmra.mrb[118].mxu0 %v570_v24  ;;  %3271 = vmatmul.mubr.f32.gmra.mrb[4].mxu1 %v1009_v25 }
 0x1ed   : > { %983 = vmatprep.mubr.f32.mxu0 %v573_v26 }
 0x1ee   : > { %v1010_v31 = vmax.f32 %v716_v28, 0.0 }
 0x1ef   : > { %v720_v35 = vpop.f32.mrb[14].mxu0 }
 0x1f0   : > { %v721_v37 = vadd.f32 %v4605_v53, %v720_v35  ;;  %v722_v38 = vpop.f32.mrb[15].mxu0  ;;  %984 = vmatmul.mubr.f32.gmra.mrb[120].mxu0 %v572_v30  ;;  %3273 = vmatprep.mubr.f32.mxu1 %v1010_v31 }
 0x1f1   : > { %988 = vmatprep.mubr.f32.mxu0 %v575_v32  ;;  %v1546_v32 = vld [vmem:[#allocation10 + $0x30] sm:$0xff] }
 0x1f2   : > { %v1011_v40 = vmax.f32 %v721_v37, 0.0  ;;  %v3580_v35 = vpack.c.bf16 %v1547_v33, %v1546_v32  ;;  %v1554_v32 = vld [vmem:[#allocation10 + $0x70] sm:$0xff]  ;;  %v1555_v33 = vld [vmem:[#allocation10 + $0x78] sm:$0xff] }
 0x1f3   : > { %v725_v42 = vpop.f32.mrb[16].mxu0 }
 0x1f4   : > { %v726_v43 = vadd.f32 %v4605_v53, %v725_v42  ;;  %v727_v44 = vpop.f32.mrb[17].mxu0  ;;  %989 = vmatmul.mubr.f32.gmra.mrb[122].mxu0 %v574_v39  ;;  %3274 = vmatmul.mubr.f32.gmra.mrb[6].mxu1 %v1011_v40 }
 0x1f5   : > { %993 = vmatprep.mubr.f32.mxu0 %v577_v41  ;;  %3581 = vmatprep.subr.bf16.mxu1 %v3580_v35 }
 0x1f6   : > { %v1012_v46 = vmax.f32 %v726_v43, 0.0  ;;  %3583 = vmatpush3.bf16.msra.mxu1 %v3580_v35  ;;  %v3596_v35 = vpack.c.bf16 %v1555_v33, %v1554_v32 }
 0x1f7   : > { %v730_v48 = vpop.f32.mrb[18].mxu0 }
 0x1f8   : > { %v731_v49 = vadd.f32 %v4605_v53, %v730_v48  ;;  %v732_v50 = vpop.f32.mrb[19].mxu0  ;;  %994 = vmatmul.mubr.f32.gmra.mrb[124].mxu0 %v576_v45  ;;  %3276 = vmatprep.mubr.f32.mxu1 %v1012_v46 }
 0x1f9   : > { %998 = vmatprep.mubr.f32.mxu0 %v579_v47 }
 0x1fa   : > { %v1013_v52 = vmax.f32 %v731_v49, 0.0 }
 0x1fb   : > { %v735_v54 = vpop.f32.mrb[20].mxu0 }
 0x1fc   : > { %v736_v55 = vadd.f32 %v4605_v53, %v735_v54  ;;  %v737_v56 = vpop.f32.mrb[21].mxu0  ;;  %999 = vmatmul.mubr.f32.gmra.mrb[126].mxu0 %v578_v51  ;;  %3277 = vmatmul.mubr.f32.gmra.mrb[8].mxu1 %v1013_v52  ;;  %v1548_v51 = vld [vmem:[#allocation10 + $0x40] sm:$0xff]  ;;  %v1549_v52 = vld [vmem:[#allocation10 + $0x48] sm:$0xff] }
 0x1fe   : > { %v1014_v57 = vmax.f32 %v736_v55, 0.0  ;;  %v3584_v55 = vpack.c.bf16 %v1549_v52, %v1548_v51 }
 0x1ff   : > { %v740_v60 = vpop.f32.mrb[22].mxu0 }
 0x200   : > { %v741_v62 = vadd.f32 %v4605_v53, %v740_v60  ;;  %v742_v63 = vpop.f32.mrb[23].mxu0  ;;  %3279 = vmatprep.mubr.f32.mxu1 %v1014_v57  ;;  %3585 = vmatprep.subr.bf16.mxu1 %v3584_v55 }
 0x201   : > { %3587 = vmatpush3.bf16.msra.mxu1 %v3584_v55 }
 0x202   : > { %v1015_v0 = vmax.f32 %v741_v62, 0.0 }
 0x203   : > { %v745_v1 = vpop.f32.mrb[24].mxu0 }
 0x204   : > { %v746_v2 = vadd.f32 %v4605_v53, %v745_v1  ;;  %v747_v3 = vpop.f32.mrb[25].mxu0  ;;  %3280 = vmatmul.mubr.f32.gmra.mrb[10].mxu1 %v1015_v0 }
 0x206   : > { %v1016_v4 = vmax.f32 %v746_v2, 0.0 }
 0x207   : > { %v750_v5 = vpop.f32.mrb[26].mxu0 }
 0x208   : > { %v751_v6 = vadd.f32 %v4605_v53, %v750_v5  ;;  %v752_v7 = vpop.f32.mrb[27].mxu0  ;;  %3282 = vmatprep.mubr.f32.mxu1 %v1016_v4 }
 0x209   : > { %v1550_v7 = vld [vmem:[#allocation10 + $0x50] sm:$0xff] }
 0x20a   : > { %v1017_v8 = vmax.f32 %v751_v6, 0.0 }
 0x20b   : > { %v755_v9 = vpop.f32.mrb[28].mxu0 }
 0x20c   : > { %v756_v10 = vadd.f32 %v4605_v53, %v755_v9  ;;  %v757_v11 = vpop.f32.mrb[29].mxu0  ;;  %3283 = vmatmul.mubr.f32.gmra.mrb[12].mxu1 %v1017_v8  ;;  %v1551_v8 = vld [vmem:[#allocation10 + $0x58] sm:$0xff] }
 0x20e   : > { %v1018_v12 = vmax.f32 %v756_v10, 0.0  ;;  %v3588_v10 = vpack.c.bf16 %v1551_v8, %v1550_v7 }
 0x20f   : > { %v760_v15 = vpop.f32.mrb[30].mxu0 }
 0x210   : > { %v761_v17 = vadd.f32 %v4605_v53, %v760_v15  ;;  %v762_v18 = vpop.f32.mrb[31].mxu0  ;;  %3285 = vmatprep.mubr.f32.mxu1 %v1018_v12  ;;  %3589 = vmatprep.subr.bf16.mxu1 %v3588_v10 }
 0x211   : > { %3591 = vmatpush3.bf16.msra.mxu1 %v3588_v10 }
 0x212   : > { %v1019_v19 = vmax.f32 %v761_v17, 0.0 }
 0x213   : > { %v765_v20 = vpop.f32.mrb[32].mxu0 }
 0x214   : > { %v766_v21 = vadd.f32 %v4605_v53, %v765_v20  ;;  %v767_v22 = vpop.f32.mrb[33].mxu0  ;;  %3286 = vmatmul.mubr.f32.gmra.mrb[14].mxu1 %v1019_v19 }
 0x216   : > { %v1020_v23 = vmax.f32 %v766_v21, 0.0 }
 0x217   : > { %v770_v24 = vpop.f32.mrb[34].mxu0 }
 0x218   : > { %v771_v25 = vadd.f32 %v4605_v53, %v770_v24  ;;  %v772_v26 = vpop.f32.mrb[35].mxu0  ;;  %3288 = vmatprep.mubr.f32.mxu1 %v1020_v23 }
 0x219   : > { %v1553_v26 = vld [vmem:[#allocation10 + $0x68] sm:$0xff] }
 0x21a   : > { %v1021_v27 = vmax.f32 %v771_v25, 0.0  ;;  %v1552_v25 = vld [vmem:[#allocation10 + $0x60] sm:$0xff] }
 0x21b   : > { %v775_v28 = vpop.f32.mrb[36].mxu0 }
 0x21c   : > { %v776_v29 = vadd.f32 %v4605_v53, %v775_v28  ;;  %v777_v30 = vpop.f32.mrb[37].mxu0  ;;  %3289 = vmatmul.mubr.f32.gmra.mrb[16].mxu1 %v1021_v27  ;;  %v3592_v28 = vpack.c.bf16 %v1553_v26, %v1552_v25 }
 0x21e   : > { %v1022_v31 = vmax.f32 %v776_v29, 0.0  ;;  %3593 = vmatprep.subr.bf16.mxu1 %v3592_v28 }
 0x21f   : > { %v780_v34 = vpop.f32.mrb[38].mxu0  ;;  %3595 = vmatpush3.bf16.msra.mxu1 %v3592_v28 }
 0x220   : > { %v781_v36 = vadd.f32 %v4605_v53, %v780_v34  ;;  %v782_v37 = vpop.f32.mrb[39].mxu0  ;;  %3291 = vmatprep.mubr.f32.mxu1 %v1022_v31  ;;  %3597 = vmatprep.subr.bf16.mxu1 %v3596_v35 }
 0x222   : > { %v1023_v38 = vmax.f32 %v781_v36, 0.0 }
 0x223   : > { %v785_v39 = vpop.f32.mrb[40].mxu0  ;;  %3599 = vmatpush3.bf16.msra.mxu1 %v3596_v35 }
 0x224   : > { %v786_v40 = vadd.f32 %v4605_v53, %v785_v39  ;;  %v787_v41 = vpop.f32.mrb[41].mxu0  ;;  %3292 = vmatmul.mubr.f32.gmra.mrb[18].mxu1 %v1023_v38 }
 0x226   : > { %v1024_v42 = vmax.f32 %v786_v40, 0.0 }
 0x227   : > { %v790_v43 = vpop.f32.mrb[42].mxu0 }
 0x228   : > { %v791_v44 = vadd.f32 %v4605_v53, %v790_v43  ;;  %v792_v45 = vpop.f32.mrb[43].mxu0  ;;  %3294 = vmatprep.mubr.f32.mxu1 %v1024_v42 }
 0x22a   : > { %v1025_v46 = vmax.f32 %v791_v44, 0.0 }
 0x22b   : > { %v795_v47 = vpop.f32.mrb[44].mxu0 }
 0x22c   : > { %v796_v48 = vadd.f32 %v4605_v53, %v795_v47  ;;  %v797_v49 = vpop.f32.mrb[45].mxu0  ;;  %3295 = vmatmul.mubr.f32.gmra.mrb[20].mxu1 %v1025_v46 }
 0x22e   : > { %v1026_v50 = vmax.f32 %v796_v48, 0.0 }
 0x22f   : > { %v800_v54 = vpop.f32.mrb[46].mxu0 }
 0x230   : > { %v801_v56 = vadd.f32 %v4605_v53, %v800_v54  ;;  %v802_v57 = vpop.f32.mrb[47].mxu0  ;;  %3297 = vmatprep.mubr.f32.mxu1 %v1026_v50 }
 0x232   : > { %v1027_v58 = vmax.f32 %v801_v56, 0.0 }
 0x233   : > { %v805_v59 = vpop.f32.mrb[48].mxu0 }
 0x234   : > { %v806_v60 = vadd.f32 %v4605_v53, %v805_v59  ;;  %v807_v61 = vpop.f32.mrb[49].mxu0  ;;  %3298 = vmatmul.mubr.f32.gmra.mrb[22].mxu1 %v1027_v58 }
 0x236   : > { %v1028_v62 = vmax.f32 %v806_v60, 0.0 }
 0x237   : > { %v810_v63 = vpop.f32.mrb[50].mxu0 }
 0x238   : > { %v811_v0 = vadd.f32 %v4605_v53, %v810_v63  ;;  %v812_v1 = vpop.f32.mrb[51].mxu0  ;;  %3300 = vmatprep.mubr.f32.mxu1 %v1028_v62 }
 0x23a   : > { %v1029_v2 = vmax.f32 %v811_v0, 0.0 }
 0x23b   : > { %v815_v3 = vpop.f32.mrb[52].mxu0 }
 0x23c   : > { %v816_v4 = vadd.f32 %v4605_v53, %v815_v3  ;;  %v817_v5 = vpop.f32.mrb[53].mxu0  ;;  %3301 = vmatmul.mubr.f32.gmra.mrb[24].mxu1 %v1029_v2 }
 0x23e   : > { %v1030_v6 = vmax.f32 %v816_v4, 0.0 }
 0x23f   : > { %v820_v9 = vpop.f32.mrb[54].mxu0 }
 0x240   : > { %v821_v11 = vadd.f32 %v4605_v53, %v820_v9  ;;  %v822_v12 = vpop.f32.mrb[55].mxu0  ;;  %3303 = vmatprep.mubr.f32.mxu1 %v1030_v6 }
 0x242   : > { %v1031_v13 = vmax.f32 %v821_v11, 0.0 }
 0x243   : > { %v825_v14 = vpop.f32.mrb[56].mxu0 }
 0x244   : > { %v826_v15 = vadd.f32 %v4605_v53, %v825_v14  ;;  %v827_v16 = vpop.f32.mrb[57].mxu0  ;;  %3304 = vmatmul.mubr.f32.gmra.mrb[26].mxu1 %v1031_v13 }
 0x246   : > { %v1032_v17 = vmax.f32 %v826_v15, 0.0 }
 0x247   : > { %v830_v18 = vpop.f32.mrb[58].mxu0 }
 0x248   : > { %v831_v19 = vadd.f32 %v4605_v53, %v830_v18  ;;  %v832_v20 = vpop.f32.mrb[59].mxu0  ;;  %3306 = vmatprep.mubr.f32.mxu1 %v1032_v17 }
 0x24a   : > { %v1033_v21 = vmax.f32 %v831_v19, 0.0 }
 0x24b   : > { %v835_v22 = vpop.f32.mrb[60].mxu0 }
 0x24c   : > { %v836_v23 = vadd.f32 %v4605_v53, %v835_v22  ;;  %v837_v24 = vpop.f32.mrb[61].mxu0  ;;  %3307 = vmatmul.mubr.f32.gmra.mrb[28].mxu1 %v1033_v21 }
 0x24e   : > { %v1034_v27 = vmax.f32 %v836_v23, 0.0 }
 0x24f   : > { %v840_v29 = vpop.f32.mrb[62].mxu0 }
 0x250   : > { %v841_v30 = vadd.f32 %v4605_v53, %v840_v29  ;;  %v842_v31 = vpop.f32.mrb[63].mxu0  ;;  %3309 = vmatprep.mubr.f32.mxu1 %v1034_v27 }
 0x252   : > { %v1035_v34 = vmax.f32 %v841_v30, 0.0 }
 0x253   : > { %v845_v36 = vpop.f32.mrb[64].mxu0 }
 0x254   : > { %v846_v37 = vadd.f32 %v4605_v53, %v845_v36  ;;  %v847_v38 = vpop.f32.mrb[65].mxu0  ;;  %3310 = vmatmul.mubr.f32.gmra.mrb[30].mxu1 %v1035_v34 }
 0x256   : > { %v1036_v39 = vmax.f32 %v846_v37, 0.0 }
 0x257   : > { %v850_v40 = vpop.f32.mrb[66].mxu0 }
 0x258   : > { %v851_v41 = vadd.f32 %v4605_v53, %v850_v40  ;;  %v852_v42 = vpop.f32.mrb[67].mxu0  ;;  %3312 = vmatprep.mubr.f32.mxu1 %v1036_v39 }
 0x25a   : > { %v1037_v43 = vmax.f32 %v851_v41, 0.0 }
 0x25b   : > { %v855_v44 = vpop.f32.mrb[68].mxu0 }
 0x25c   : > { %v856_v45 = vadd.f32 %v4605_v53, %v855_v44  ;;  %v857_v46 = vpop.f32.mrb[69].mxu0  ;;  %3313 = vmatmul.mubr.f32.gmra.mrb[32].mxu1 %v1037_v43 }
 0x25e   : > { %v1038_v47 = vmax.f32 %v856_v45, 0.0 }
 0x25f   : > { %v860_v48 = vpop.f32.mrb[70].mxu0 }
 0x260   : > { %v861_v49 = vadd.f32 %v4605_v53, %v860_v48  ;;  %v862_v50 = vpop.f32.mrb[71].mxu0  ;;  %3315 = vmatprep.mubr.f32.mxu1 %v1038_v47 }
 0x261   : > { %v2015_v50 = vld [vmem:[#allocation11 + $0x18] sm:$0xff] }
 0x262   : > { %v1039_v51 = vmax.f32 %v861_v49, 0.0  ;;  %v2013_v49 = vld [vmem:[#allocation11 + $0x8] sm:$0xff] }
 0x263   : > { %v865_v52 = vpop.f32.mrb[72].mxu0 }
 0x264   : > { %v866_v54 = vadd.f32 %v4605_v53, %v865_v52  ;;  %v867_v55 = vpop.f32.mrb[73].mxu0  ;;  %3316 = vmatmul.mubr.f32.gmra.mrb[34].mxu1 %v1039_v51  ;;  %v3600_v52 = vpack.c.bf16 %v2015_v50, %v2013_v49 }
 0x266   : > { %v1040_v56 = vmax.f32 %v866_v54, 0.0  ;;  %3601 = vmatprep.subr.bf16.mxu0 %v3600_v52  ;;  %3632 = vmatprep.subr.bf16.mxu1 %v3600_v52 }
 0x267   : > { %v870_v57 = vpop.f32.mrb[74].mxu0 }
 0x268   : > { %v871_v58 = vadd.f32 %v4605_v53, %v870_v57  ;;  %v872_v59 = vpop.f32.mrb[75].mxu0  ;;  %3318 = vmatprep.mubr.f32.mxu1 %v1040_v56  ;;  %v2012_v57 = vld [vmem:[#allocation11] sm:$0xff] }
 0x26a   : > { %v1041_v60 = vmax.f32 %v871_v58, 0.0  ;;  %v2014_v58 = vld [vmem:[#allocation11 + $0x10] sm:$0xff] }
 0x26b   : > { %v875_v61 = vpop.f32.mrb[76].mxu0 }
 0x26c   : > { %v876_v62 = vadd.f32 %v4605_v53, %v875_v61  ;;  %v877_v63 = vpop.f32.mrb[77].mxu0  ;;  %3319 = vmatmul.mubr.f32.gmra.mrb[36].mxu1 %v1041_v60  ;;  %v4679_v60 = vpack.c.bf16 %v2014_v58, %v2012_v57 }
 0x26e   : > { %v1042_v0 = vmax.f32 %v876_v62, 0.0  ;;  %3603 = vmatpush1.bf16.msra.mxu0 %v4679_v60 }
 0x26f   : > { %v880_v1 = vpop.f32.mrb[78].mxu0 }
 0x270   : > { %v881_v2 = vadd.f32 %v4605_v53, %v880_v1  ;;  %v882_v3 = vpop.f32.mrb[79].mxu0  ;;  %3321 = vmatprep.mubr.f32.mxu1 %v1042_v0 }
 0x272   : > { %v1043_v4 = vmax.f32 %v881_v2, 0.0 }
 0x273   : > { %v885_v5 = vpop.f32.mrb[80].mxu0 }
 0x274   : > { %v886_v6 = vadd.f32 %v4605_v53, %v885_v5  ;;  %v887_v7 = vpop.f32.mrb[81].mxu0  ;;  %3322 = vmatmul.mubr.f32.gmra.mrb[38].mxu1 %v1043_v4 }
 0x276   : > { %v1044_v8 = vmax.f32 %v886_v6, 0.0 }
 0x277   : > { %v890_v9 = vpop.f32.mrb[82].mxu0 }
 0x278   : > { %v891_v10 = vadd.f32 %v4605_v53, %v890_v9  ;;  %v892_v11 = vpop.f32.mrb[83].mxu0  ;;  %3324 = vmatprep.mubr.f32.mxu1 %v1044_v8 }
 0x27a   : > { %v1045_v12 = vmax.f32 %v891_v10, 0.0 }
 0x27b   : > { %v895_v13 = vpop.f32.mrb[84].mxu0 }
 0x27c   : > { %v896_v14 = vadd.f32 %v4605_v53, %v895_v13  ;;  %v897_v15 = vpop.f32.mrb[85].mxu0  ;;  %3325 = vmatmul.mubr.f32.gmra.mrb[40].mxu1 %v1045_v12 }
 0x27e   : > { %v1046_v16 = vmax.f32 %v896_v14, 0.0 }
 0x27f   : > { %v900_v17 = vpop.f32.mrb[86].mxu0 }
 0x280   : > { %v901_v18 = vadd.f32 %v4605_v53, %v900_v17  ;;  %v902_v19 = vpop.f32.mrb[87].mxu0  ;;  %3327 = vmatprep.mubr.f32.mxu1 %v1046_v16 }
 0x282   : > { %v1047_v20 = vmax.f32 %v901_v18, 0.0 }
 0x283   : > { %v905_v21 = vpop.f32.mrb[88].mxu0 }
 0x284   : > { %v906_v22 = vadd.f32 %v4605_v53, %v905_v21  ;;  %v907_v23 = vpop.f32.mrb[89].mxu0  ;;  %3328 = vmatmul.mubr.f32.gmra.mrb[42].mxu1 %v1047_v20 }
 0x286   : > { %v1048_v24 = vmax.f32 %v906_v22, 0.0 }
 0x287   : > { %v910_v25 = vpop.f32.mrb[90].mxu0 }
 0x288   : > { %v911_v26 = vadd.f32 %v4605_v53, %v910_v25  ;;  %v912_v27 = vpop.f32.mrb[91].mxu0  ;;  %3330 = vmatprep.mubr.f32.mxu1 %v1048_v24 }
 0x28a   : > { %v1049_v28 = vmax.f32 %v911_v26, 0.0 }
 0x28b   : > { %v915_v29 = vpop.f32.mrb[92].mxu0 }
 0x28c   : > { %v916_v30 = vadd.f32 %v4605_v53, %v915_v29  ;;  %v917_v31 = vpop.f32.mrb[93].mxu0  ;;  %3331 = vmatmul.mubr.f32.gmra.mrb[44].mxu1 %v1049_v28  ;;  %v2017_v28 = vld [vmem:[#allocation11 + $0x28] sm:$0xff]  ;;  %v2019_v29 = vld [vmem:[#allocation11 + $0x38] sm:$0xff] }
 0x28e   : > { %v1050_v32 = vmax.f32 %v916_v30, 0.0 }
 0x28f   : > { %v920_v33 = vpop.f32.mrb[94].mxu0 }
 0x290   : > { %v921_v34 = vadd.f32 %v4605_v53, %v920_v33  ;;  %v922_v35 = vpop.f32.mrb[95].mxu0  ;;  %3333 = vmatprep.mubr.f32.mxu1 %v1050_v32  ;;  %v3604_v32 = vpack.c.bf16 %v2019_v29, %v2017_v28 }
 0x292   : > { %v1051_v36 = vmax.f32 %v921_v34, 0.0  ;;  %3605 = vmatprep.subr.bf16.mxu0 %v3604_v32 }
 0x293   : > { %v925_v37 = vpop.f32.mrb[96].mxu0 }
 0x294   : > { %v926_v38 = vadd.f32 %v4605_v53, %v925_v37  ;;  %v927_v39 = vpop.f32.mrb[97].mxu0  ;;  %3334 = vmatmul.mubr.f32.gmra.mrb[46].mxu1 %v1051_v36  ;;  %v2016_v37 = vld [vmem:[#allocation11 + $0x20] sm:$0xff] }
 0x296   : > { %v1052_v40 = vmax.f32 %v926_v38, 0.0  ;;  %v2018_v38 = vld [vmem:[#allocation11 + $0x30] sm:$0xff] }
 0x297   : > { %v930_v41 = vpop.f32.mrb[98].mxu0 }
 0x298   : > { %v931_v42 = vadd.f32 %v4605_v53, %v930_v41  ;;  %v932_v43 = vpop.f32.mrb[99].mxu0  ;;  %3336 = vmatprep.mubr.f32.mxu1 %v1052_v40  ;;  %v3606_v40 = vpack.c.bf16 %v2018_v38, %v2016_v37 }
 0x29a   : > { %v1053_v44 = vmax.f32 %v931_v42, 0.0  ;;  %3607 = vmatpush1.bf16.msra.mxu0 %v3606_v40 }
 0x29b   : > { %v935_v45 = vpop.f32.mrb[100].mxu0 }
 0x29c   : > { %v936_v46 = vadd.f32 %v4605_v53, %v935_v45  ;;  %v937_v47 = vpop.f32.mrb[101].mxu0  ;;  %3337 = vmatmul.mubr.f32.gmra.mrb[48].mxu1 %v1053_v44 }
 0x29e   : > { %v1054_v48 = vmax.f32 %v936_v46, 0.0 }
 0x29f   : > { %v940_v51 = vpop.f32.mrb[102].mxu0 }
 0x2a0   : > { %v941_v54 = vadd.f32 %v4605_v53, %v940_v51  ;;  %v942_v55 = vpop.f32.mrb[103].mxu0  ;;  %3339 = vmatprep.mubr.f32.mxu1 %v1054_v48  ;;  %v4697_v51 = vld [vmem:[%s5493_s5] ss:$0 sm:$0xff] }
 0x2a2   : > { %v1055_v56 = vmax.f32 %v941_v54, 0.0 }
 0x2a3   : > { %v945_v59 = vpop.f32.mrb[104].mxu0 }
 0x2a4   : > { %v946_v61 = vadd.f32 %v4605_v53, %v945_v59  ;;  %v947_v62 = vpop.f32.mrb[105].mxu0  ;;  %3340 = vmatmul.mubr.f32.gmra.mrb[50].mxu1 %v1055_v56 }
 0x2a6   : > { %v1056_v63 = vmax.f32 %v946_v61, 0.0 }
 0x2a7   : > { %v950_v0 = vpop.f32.mrb[106].mxu0 }
 0x2a8   : > { %v951_v1 = vadd.f32 %v4605_v53, %v950_v0  ;;  %v952_v2 = vpop.f32.mrb[107].mxu0  ;;  %3342 = vmatprep.mubr.f32.mxu1 %v1056_v63 }
 0x2aa   : > { %v1057_v3 = vmax.f32 %v951_v1, 0.0 }
 0x2ab   : > { %v955_v4 = vpop.f32.mrb[108].mxu0 }
 0x2ac   : > { %v956_v5 = vadd.f32 %v4605_v53, %v955_v4  ;;  %v957_v6 = vpop.f32.mrb[109].mxu0  ;;  %3343 = vmatmul.mubr.f32.gmra.mrb[52].mxu1 %v1057_v3 }
 0x2ae   : > { %v1058_v7 = vmax.f32 %v956_v5, 0.0 }
 0x2af   : > { %v960_v8 = vpop.f32.mrb[110].mxu0  ;;  %v4685_v9 = vpop.f32.mrb[0].mxu1 }
 0x2b0   : > { %v961_v10 = vadd.f32 %v4605_v53, %v960_v8  ;;  %v962_v11 = vpop.f32.mrb[111].mxu0  ;;  %v1157_v12 = vpop.f32.mrb[1].mxu1  ;;  %3345 = vmatprep.mubr.f32.mxu1 %v1058_v7  ;;  %v1163_v63 = vadd.f32 %v4685_v9, %v4697_v51 }
 0x2b1   : > { %v1158_v56 = vadd.f32 %v4697_v51, %v1157_v12 }
 0x2b2   : > { %v1059_v13 = vmax.f32 %v961_v10, 0.0  ;;  %v1477_v3 = vmax.f32 %v1163_v63, 0.0  ;;  %v2024_v63 = vld [vmem:[#allocation11 + $0x60] sm:$0xff] }
 0x2b3   : > { %v965_v14 = vpop.f32.mrb[112].mxu0  ;;  %v1476_v1 = vmax.f32 %v1158_v56, 0.0  ;;  %v2027_v56 = vld [vmem:[#allocation11 + $0x78] sm:$0xff] }
 0x2b4   : > { %v966_v15 = vadd.f32 %v4605_v53, %v965_v14  ;;  %v967_v16 = vpop.f32.mrb[113].mxu0  ;;  %3346 = vmatmul.mubr.f32.gmra.mrb[54].mxu1 %v1059_v13  ;;  %v2021_v14 = vld [vmem:[#allocation11 + $0x48] sm:$0xff] }
 0x2b6   : > { %v1060_v17 = vmax.f32 %v966_v15, 0.0  ;;  %v2023_v15 = vld [vmem:[#allocation11 + $0x58] sm:$0xff] }
 0x2b7   : > { %v970_v18 = vpop.f32.mrb[114].mxu0  ;;  %v3269_v19 = vpop.f32.mrb[2].mxu1 }
 0x2b8   : > { %v971_v20 = vadd.f32 %v4605_v53, %v970_v18  ;;  %v972_v21 = vpop.f32.mrb[115].mxu0  ;;  %v1167_v22 = vpop.f32.mrb[3].mxu1  ;;  %3348 = vmatprep.mubr.f32.mxu1 %v1060_v17  ;;  %v1173_v4 = vadd.f32 %v3269_v19, %v4697_v51 }
 0x2b9   : > { %v1168_v2 = vadd.f32 %v4697_v51, %v1167_v22  ;;  %v2020_v22 = vld [vmem:[#allocation11 + $0x40] sm:$0xff] }
 0x2ba   : > { %v1061_v23 = vmax.f32 %v971_v20, 0.0  ;;  %v1479_v8 = vmax.f32 %v1173_v4, 0.0 }
 0x2bb   : > { %v975_v24 = vpop.f32.mrb[116].mxu0  ;;  %v1478_v5 = vmax.f32 %v1168_v2, 0.0 }
 0x2bc   : > { %v976_v25 = vadd.f32 %v4605_v53, %v975_v24  ;;  %v977_v26 = vpop.f32.mrb[117].mxu0  ;;  %3349 = vmatmul.mubr.f32.gmra.mrb[56].mxu1 %v1061_v23  ;;  %v2022_v23 = vld [vmem:[#allocation11 + $0x50] sm:$0xff] }
 0x2bd   : > { %v3610_v26 = vpack.c.bf16 %v2022_v23, %v2020_v22 }
 0x2be   : > { %v1062_v27 = vmax.f32 %v976_v25, 0.0 }
 0x2bf   : > { %v980_v30 = vpop.f32.mrb[118].mxu0  ;;  %v3272_v31 = vpop.f32.mrb[4].mxu1 }
 0x2c0   : > { %v981_v33 = vadd.f32 %v4605_v53, %v980_v30  ;;  %v982_v34 = vpop.f32.mrb[119].mxu0  ;;  %v1177_v35 = vpop.f32.mrb[5].mxu1  ;;  %3351 = vmatprep.mubr.f32.mxu1 %v1062_v27  ;;  %v1183_v9 = vadd.f32 %v3272_v31, %v4697_v51 }
 0x2c1   : > { %v1178_v6 = vadd.f32 %v4697_v51, %v1177_v35 }
 0x2c2   : > { %v1063_v36 = vmax.f32 %v981_v33, 0.0  ;;  %v1481_v12 = vmax.f32 %v1183_v9, 0.0 }
 0x2c3   : > { %v985_v39 = vpop.f32.mrb[120].mxu0  ;;  %v1480_v10 = vmax.f32 %v1178_v6, 0.0 }
 0x2c4   : > { %v986_v41 = vadd.f32 %v4605_v53, %v985_v39  ;;  %v987_v42 = vpop.f32.mrb[121].mxu0  ;;  %3352 = vmatmul.mubr.f32.gmra.mrb[58].mxu1 %v1063_v36 }
 0x2c6   : > { %v1064_v43 = vmax.f32 %v986_v41, 0.0 }
 0x2c7   : > { %v990_v44 = vpop.f32.mrb[122].mxu0  ;;  %v3275_v45 = vpop.f32.mrb[6].mxu1 }
 0x2c8   : > { %v991_v46 = vadd.f32 %v4605_v53, %v990_v44  ;;  %v992_v47 = vpop.f32.mrb[123].mxu0  ;;  %v1187_v48 = vpop.f32.mrb[7].mxu1  ;;  %3354 = vmatprep.mubr.f32.mxu1 %v1064_v43  ;;  %v1193_v13 = vadd.f32 %v3275_v45, %v4697_v51 }
 0x2c9   : > { %v1188_v11 = vadd.f32 %v4697_v51, %v1187_v48 }
 0x2ca   : > { %v1065_v49 = vmax.f32 %v991_v46, 0.0  ;;  %v1483_v20 = vmax.f32 %v1193_v13, 0.0 }
 0x2cb   : > { %v995_v50 = vpop.f32.mrb[124].mxu0  ;;  %v1482_v16 = vmax.f32 %v1188_v11, 0.0 }
 0x2cc   : > { %v996_v52 = vadd.f32 %v4605_v53, %v995_v50  ;;  %v997_v54 = vpop.f32.mrb[125].mxu0  ;;  %3355 = vmatmul.mubr.f32.gmra.mrb[60].mxu1 %v1065_v49 }
 0x2ce   : > { %v1066_v55 = vmax.f32 %v996_v52, 0.0 }
 0x2cf   : > { %v1000_v57 = vpop.f32.mrb[126].mxu0  ;;  %v3278_v58 = vpop.f32.mrb[8].mxu1 }
 0x2d0   : > { %v1001_v59 = vadd.f32 %v4605_v53, %v1000_v57  ;;  %v1002_v61 = vpop.f32.mrb[127].mxu0  ;;  %v1197_v62 = vpop.f32.mrb[9].mxu1  ;;  %3357 = vmatprep.mubr.f32.mxu1 %v1066_v55  ;;  %v1203_v21 = vadd.f32 %v3278_v58, %v4697_v51  ;;  %v2025_v55 = vld [vmem:[#allocation11 + $0x68] sm:$0xff] }
 0x2d1   : > { %v1198_v17 = vadd.f32 %v4697_v51, %v1197_v62  ;;  %v3612_v58 = vpack.c.bf16 %v2027_v56, %v2025_v55  ;;  %v2042_v55 = vld [vmem:[#allocation11 + $0xf0] sm:$0xff] }
 0x2d2   : > { %v1067_v0 = vmax.f32 %v1001_v59, 0.0  ;;  %v1485_v27 = vmax.f32 %v1203_v21, 0.0  ;;  %v2031_v21 = vld [vmem:[#allocation11 + $0x98] sm:$0xff] }
 0x2d3   : > { %v1484_v24 = vmax.f32 %v1198_v17, 0.0 }
 0x2d4   : > { %3358 = vmatmul.mubr.f32.gmra.mrb[62].mxu1 %v1067_v0  ;;  %v2026_v0 = vld [vmem:[#allocation11 + $0x70] sm:$0xff] }
 0x2d5   : > { %3392 = vmatprep.mubr.f32.mxu1 %v1476_v1  ;;  %v3614_v2 = vpack.c.bf16 %v2026_v0, %v2024_v63 }
 0x2d7   : > { %v3281_v7 = vpop.f32.mrb[10].mxu1 }
 0x2d8   : > { %v1207_v53 = vpop.f32.mrb[11].mxu1  ;;  %3393 = vmatmul.mubr.f32.vlgmr.msra.gmra.mrb[64].mxu1 %v1477_v3  ;;  %v1213_v28 = vadd.f32 %v3281_v7, %v4697_v51 }
 0x2d9   : > { %3395 = vmatprep.mubr.f32.mxu1 %v1478_v5  ;;  %3640 = vmatpush1.bf16.msra.mxu1 %v4679_v60  ;;  %v3608_v60 = vpack.c.bf16 %v2023_v15, %v2021_v14  ;;  %v1208_v25 = vadd.f32 %v4697_v51, %v1207_v53 }
 0x2da   : > { %3633 = vmatprep.subr.bf16.mxu1 %v3604_v32  ;;  %v1487_v33 = vmax.f32 %v1213_v28, 0.0 }
 0x2db   : > { %3609 = vmatprep.subr.bf16.mxu0 %v3608_v60  ;;  %v1486_v29 = vmax.f32 %v1208_v25, 0.0  ;;  %v2030_v25 = vld [vmem:[#allocation11 + $0x90] sm:$0xff] }
 0x2dc   : > { %3396 = vmatmul.mubr.f32.gmra.mrb[66].mxu1 %v1479_v8  ;;  %3611 = vmatpush1.bf16.msra.mxu0 %v3610_v26 }
 0x2dd   : > { %3398 = vmatprep.mubr.f32.mxu1 %v1480_v10  ;;  %3641 = vmatpush1.bf16.msra.mxu1 %v3606_v40 }
 0x2de   : > { %3634 = vmatprep.subr.bf16.mxu1 %v3608_v60  ;;  %3613 = vmatprep.subr.bf16.mxu0 %v3612_v58 }
 0x2df   : > { %v3284_v18 = vpop.f32.mrb[12].mxu1 }
 0x2e0   : > { %v1217_v19 = vpop.f32.mrb[13].mxu1  ;;  %3399 = vmatmul.mubr.f32.gmra.mrb[68].mxu1 %v1481_v12  ;;  %v1223_v34 = vadd.f32 %v3284_v18, %v4697_v51  ;;  %3615 = vmatpush1.bf16.msra.mxu0 %v3614_v2 }
 0x2e1   : > { %3401 = vmatprep.mubr.f32.mxu1 %v1482_v16  ;;  %3642 = vmatpush1.bf16.msra.mxu1 %v3610_v26  ;;  %v1218_v30 = vadd.f32 %v4697_v51, %v1217_v19 }
 0x2e2   : > { %v1489_v37 = vmax.f32 %v1223_v34, 0.0  ;;  %3635 = vmatprep.subr.bf16.mxu1 %v3612_v58  ;;  %v2032_v34 = vld [vmem:[#allocation11 + $0xa0] sm:$0xff] }
 0x2e3   : > { %v1488_v35 = vmax.f32 %v1218_v30, 0.0  ;;  %v2033_v30 = vld [vmem:[#allocation11 + $0xa8] sm:$0xff] }
 0x2e4   : > { %3402 = vmatmul.mubr.f32.gmra.mrb[70].mxu1 %v1483_v20  ;;  %v2029_v20 = vld [vmem:[#allocation11 + $0x88] sm:$0xff] }
 0x2e5   : > { %3404 = vmatprep.mubr.f32.mxu1 %v1484_v24  ;;  %3643 = vmatpush1.bf16.msra.mxu1 %v3614_v2  ;;  %v3616_v23 = vpack.c.bf16 %v2031_v21, %v2029_v20  ;;  %v2028_v24 = vld [vmem:[#allocation11 + $0x80] sm:$0xff] }
 0x2e6   : > { %v3618_v28 = vpack.c.bf16 %v2030_v25, %v2028_v24 }
 0x2e7   : > { %v3287_v31 = vpop.f32.mrb[14].mxu1  ;;  %3617 = vmatprep.subr.bf16.mxu0 %v3616_v23  ;;  %3636 = vmatprep.subr.bf16.mxu1 %v3616_v23 }
 0x2e8   : > { %v1227_v32 = vpop.f32.mrb[15].mxu1  ;;  %3405 = vmatmul.mubr.f32.gmra.mrb[72].mxu1 %v1485_v27  ;;  %v1233_v38 = vadd.f32 %v3287_v31, %v4697_v51  ;;  %3619 = vmatpush1.bf16.msra.mxu0 %v3618_v28  ;;  %v2035_v31 = vld [vmem:[#allocation11 + $0xb8] sm:$0xff] }
 0x2e9   : > { %3407 = vmatprep.mubr.f32.mxu1 %v1486_v29  ;;  %v1228_v36 = vadd.f32 %v4697_v51, %v1227_v32  ;;  %3644 = vmatpush1.bf16.msra.mxu1 %v3618_v28 }
 0x2ea   : > { %v1491_v43 = vmax.f32 %v1233_v38, 0.0  ;;  %v2037_v38 = vld [vmem:[#allocation11 + $0xc8] sm:$0xff] }
 0x2eb   : > { %v1490_v39 = vmax.f32 %v1228_v36, 0.0 }
 0x2ec   : > { %3408 = vmatmul.mubr.f32.gmra.mrb[74].mxu1 %v1487_v33  ;;  %v3620_v33 = vpack.c.bf16 %v2035_v31, %v2033_v30 }
 0x2ed   : > { %3410 = vmatprep.mubr.f32.mxu1 %v1488_v35  ;;  %v2034_v35 = vld [vmem:[#allocation11 + $0xb0] sm:$0xff] }
 0x2ee   : > { %3621 = vmatprep.subr.bf16.mxu0 %v3620_v33  ;;  %3637 = vmatprep.subr.bf16.mxu1 %v3620_v33 }
 0x2ef   : > { %v3290_v40 = vpop.f32.mrb[16].mxu1 }
 0x2f0   : > { %v1237_v41 = vpop.f32.mrb[17].mxu1  ;;  %3411 = vmatmul.mubr.f32.gmra.mrb[76].mxu1 %v1489_v37  ;;  %v1243_v44 = vadd.f32 %v3290_v40, %v4697_v51  ;;  %v3622_v37 = vpack.c.bf16 %v2034_v35, %v2032_v34 }
 0x2f1   : > { %v1238_v42 = vadd.f32 %v4697_v51, %v1237_v41  ;;  %3413 = vmatprep.mubr.f32.mxu1 %v1490_v39  ;;  %v2039_v39 = vld [vmem:[#allocation11 + $0xd8] sm:$0xff] }
 0x2f2   : > { %v1493_v46 = vmax.f32 %v1243_v44, 0.0  ;;  %3623 = vmatpush1.bf16.msra.mxu0 %v3622_v37  ;;  %v3624_v41 = vpack.c.bf16 %v2039_v39, %v2037_v38  ;;  %3645 = vmatpush1.bf16.msra.mxu1 %v3622_v37 }
 0x2f3   : > { %v1492_v45 = vmax.f32 %v1238_v42, 0.0  ;;  %v2036_v42 = vld [vmem:[#allocation11 + $0xc0] sm:$0xff] }
 0x2f4   : > { %3414 = vmatmul.mubr.f32.gmra.mrb[78].mxu1 %v1491_v43  ;;  %v2038_v43 = vld [vmem:[#allocation11 + $0xd0] sm:$0xff]  ;;  %3625 = vmatprep.subr.bf16.mxu0 %v3624_v41 }
 0x2f5   : > { %3416 = vmatprep.mubr.f32.mxu1 %v1492_v45  ;;  %3638 = vmatprep.subr.bf16.mxu1 %v3624_v41 }
 0x2f7   : > { %v3293_v47 = vpop.f32.mrb[18].mxu1 }
 0x2f8   : > { %v1253_v48 = vadd.f32 %v3293_v47, %v4697_v51  ;;  %v1247_v49 = vpop.f32.mrb[19].mxu1  ;;  %3417 = vmatmul.mubr.f32.gmra.mrb[80].mxu1 %v1493_v46  ;;  %v3626_v46 = vpack.c.bf16 %v2038_v43, %v2036_v42 }
 0x2f9   : > { %v1248_v50 = vadd.f32 %v4697_v51, %v1247_v49  ;;  %v2043_v49 = vld [vmem:[#allocation11 + $0xf8] sm:$0xff] }
 0x2fa   : > { %v1495_v54 = vmax.f32 %v1253_v48, 0.0  ;;  %3627 = vmatpush1.bf16.msra.mxu0 %v3626_v46  ;;  %v2041_v48 = vld [vmem:[#allocation11 + $0xe8] sm:$0xff]  ;;  %3646 = vmatpush1.bf16.msra.mxu1 %v3626_v46 }
 0x2fb   : > { %v1494_v52 = vmax.f32 %v1248_v50, 0.0 }
 0x2fd   : > { %3419 = vmatprep.mubr.f32.mxu1 %v1494_v52  ;;  %v3628_v52 = vpack.c.bf16 %v2043_v49, %v2041_v48 }
 0x2fe   : > { %3420 = vmatmul.mubr.f32.gmra.mrb[82].mxu1 %v1495_v54  ;;  %v2040_v54 = vld [vmem:[#allocation11 + $0xe0] sm:$0xff] }
 0x2ff   : > { %v3296_v57 = vpop.f32.mrb[20].mxu1  ;;  %3629 = vmatprep.subr.bf16.mxu0 %v3628_v52  ;;  %3639 = vmatprep.subr.bf16.mxu1 %v3628_v52 }
 0x300   : > { %v1263_v59 = vadd.f32 %v3296_v57, %v4697_v51  ;;  %v1257_v61 = vpop.f32.mrb[21].mxu1  ;;  %v3630_v57 = vpack.c.bf16 %v2042_v55, %v2040_v54 }
 0x301   : > { %v1258_v62 = vadd.f32 %v4697_v51, %v1257_v61 }
 0x302   : > { %v1497_v3 = vmax.f32 %v1263_v59, 0.0  ;;  %3631 = vmatpush1.bf16.msra.mxu0 %v3630_v57  ;;  %3647 = vmatpush1.bf16.msra.mxu1 %v3630_v57 }
 0x303   : > { %v1496_v1 = vmax.f32 %v1258_v62, 0.0  ;;  %v4146_v62 = vmov 0.0  }
 0x304   : > { %2120 = vmatprep.mubr.f32.mxu0 %v4146_v62 }
 0x305   : > { %3422 = vmatprep.mubr.f32.mxu1 %v1496_v1 }
 0x306   : > { %3423 = vmatmul.mubr.f32.gmra.mrb[84].mxu1 %v1497_v3 }
 0x307   : > { %v3299_v4 = vpop.f32.mrb[22].mxu1 }
 0x308   : > { %v1273_v5 = vadd.f32 %v3299_v4, %v4697_v51  ;;  %v1267_v6 = vpop.f32.mrb[23].mxu1 }
 0x309   : > { %v1268_v7 = vadd.f32 %v4697_v51, %v1267_v6 }
 0x30a   : > { %v1499_v8 = vmax.f32 %v1273_v5, 0.0 }
 0x30b   : > { %v1498_v53 = vmax.f32 %v1268_v7, 0.0 }
 0x30d   : > { %3425 = vmatprep.mubr.f32.mxu1 %v1498_v53 }
 0x30e   : > { %3426 = vmatmul.mubr.f32.gmra.mrb[86].mxu1 %v1499_v8 }
 0x30f   : > { %v3302_v9 = vpop.f32.mrb[24].mxu1 }
 0x310   : > { %v1283_v10 = vadd.f32 %v3302_v9, %v4697_v51  ;;  %v1277_v11 = vpop.f32.mrb[25].mxu1 }
 0x311   : > { %v1278_v12 = vadd.f32 %v4697_v51, %v1277_v11 }
 0x312   : > { %v1501_v14 = vmax.f32 %v1283_v10, 0.0 }
 0x313   : > { %v1500_v13 = vmax.f32 %v1278_v12, 0.0 }
 0x315   : > { %3428 = vmatprep.mubr.f32.mxu1 %v1500_v13 }
 0x316   : > { %3429 = vmatmul.mubr.f32.gmra.mrb[88].mxu1 %v1501_v14 }
 0x317   : > { %v3305_v15 = vpop.f32.mrb[26].mxu1 }
 0x318   : > { %v1293_v16 = vadd.f32 %v3305_v15, %v4697_v51  ;;  %v1287_v17 = vpop.f32.mrb[27].mxu1 }
 0x319   : > { %v1288_v18 = vadd.f32 %v4697_v51, %v1287_v17 }
 0x31a   : > { %v1503_v19 = vmax.f32 %v1293_v16, 0.0 }
 0x31b   : > { %v1502_v60 = vmax.f32 %v1288_v18, 0.0 }
 0x31d   : > { %3431 = vmatprep.mubr.f32.mxu1 %v1502_v60 }
 0x31e   : > { %3432 = vmatmul.mubr.f32.gmra.mrb[90].mxu1 %v1503_v19 }
 0x31f   : > { %v3308_v22 = vpop.f32.mrb[28].mxu1 }
 0x320   : > { %v1303_v26 = vadd.f32 %v3308_v22, %v4697_v51  ;;  %v1297_v27 = vpop.f32.mrb[29].mxu1 }
 0x321   : > { %v1298_v29 = vadd.f32 %v4697_v51, %v1297_v27 }
 0x322   : > { %v1505_v36 = vmax.f32 %v1303_v26, 0.0 }
 0x323   : > { %v1504_v32 = vmax.f32 %v1298_v29, 0.0 }
 0x325   : > { %3434 = vmatprep.mubr.f32.mxu1 %v1504_v32 }
 0x326   : > { %3435 = vmatmul.mubr.f32.gmra.mrb[92].mxu1 %v1505_v36 }
 0x327   : > { %v3311_v40 = vpop.f32.mrb[30].mxu1 }
 0x328   : > { %v1313_v44 = vadd.f32 %v3311_v40, %v4697_v51  ;;  %v1307_v45 = vpop.f32.mrb[31].mxu1 }
 0x329   : > { %v1308_v47 = vadd.f32 %v4697_v51, %v1307_v45 }
 0x32a   : > { %v1507_v56 = vmax.f32 %v1313_v44, 0.0 }
 0x32b   : > { %v1506_v50 = vmax.f32 %v1308_v47, 0.0 }
 0x32d   : > { %3437 = vmatprep.mubr.f32.mxu1 %v1506_v50 }
 0x32e   : > { %3438 = vmatmul.mubr.f32.gmra.mrb[94].mxu1 %v1507_v56 }
 0x32f   : > { %v3314_v58 = vpop.f32.mrb[32].mxu1 }
 0x330   : > { %v1323_v59 = vadd.f32 %v3314_v58, %v4697_v51  ;;  %v1317_v61 = vpop.f32.mrb[33].mxu1 }
 0x331   : > { %v1318_v63 = vadd.f32 %v4697_v51, %v1317_v61 }
 0x332   : > { %v1509_v1 = vmax.f32 %v1323_v59, 0.0 }
 0x333   : > { %v1508_v0 = vmax.f32 %v1318_v63, 0.0 }
 0x335   : > { %3440 = vmatprep.mubr.f32.mxu1 %v1508_v0 }
 0x336   : > { %3441 = vmatmul.mubr.f32.gmra.mrb[96].mxu1 %v1509_v1 }
 0x337   : > { %v3317_v2 = vpop.f32.mrb[34].mxu1 }
 0x338   : > { %v1333_v3 = vadd.f32 %v3317_v2, %v4697_v51  ;;  %v1327_v4 = vpop.f32.mrb[35].mxu1 }
 0x339   : > { %v1328_v5 = vadd.f32 %v4697_v51, %v1327_v4 }
 0x33a   : > { %v1511_v7 = vmax.f32 %v1333_v3, 0.0 }
 0x33b   : > { %v1510_v6 = vmax.f32 %v1328_v5, 0.0 }
 0x33d   : > { %3443 = vmatprep.mubr.f32.mxu1 %v1510_v6 }
 0x33e   : > { %3444 = vmatmul.mubr.f32.gmra.mrb[98].mxu1 %v1511_v7 }
 0x33f   : > { %v3320_v53 = vpop.f32.mrb[36].mxu1 }
 0x340   : > { %v1343_v8 = vadd.f32 %v3320_v53, %v4697_v51  ;;  %v1337_v9 = vpop.f32.mrb[37].mxu1 }
 0x341   : > { %v1338_v10 = vadd.f32 %v4697_v51, %v1337_v9 }
 0x342   : > { %v1513_v12 = vmax.f32 %v1343_v8, 0.0 }
 0x343   : > { %v1512_v11 = vmax.f32 %v1338_v10, 0.0 }
 0x345   : > { %3446 = vmatprep.mubr.f32.mxu1 %v1512_v11 }
 0x346   : > { %3447 = vmatmul.mubr.f32.gmra.mrb[100].mxu1 %v1513_v12 }
 0x347   : > { %v3323_v13 = vpop.f32.mrb[38].mxu1 }
 0x348   : > { %v1353_v14 = vadd.f32 %v3323_v13, %v4697_v51  ;;  %v1347_v15 = vpop.f32.mrb[39].mxu1 }
 0x349   : > { %v1348_v16 = vadd.f32 %v4697_v51, %v1347_v15 }
 0x34a   : > { %v1515_v18 = vmax.f32 %v1353_v14, 0.0 }
 0x34b   : > { %v1514_v17 = vmax.f32 %v1348_v16, 0.0 }
 0x34d   : > { %3449 = vmatprep.mubr.f32.mxu1 %v1514_v17 }
 0x34e   : > { %3450 = vmatmul.mubr.f32.gmra.mrb[102].mxu1 %v1515_v18 }
 0x34f   : > { %v3326_v60 = vpop.f32.mrb[40].mxu1 }
 0x350   : > { %v1363_v19 = vadd.f32 %v3326_v60, %v4697_v51  ;;  %v1357_v20 = vpop.f32.mrb[41].mxu1 }
 0x351   : > { %v1358_v21 = vadd.f32 %v4697_v51, %v1357_v20 }
 0x352   : > { %v1517_v23 = vmax.f32 %v1363_v19, 0.0 }
 0x353   : > { %v1516_v22 = vmax.f32 %v1358_v21, 0.0 }
 0x355   : > { %3452 = vmatprep.mubr.f32.mxu1 %v1516_v22 }
 0x356   : > { %3453 = vmatmul.mubr.f32.gmra.mrb[104].mxu1 %v1517_v23 }
 0x357   : > { %v3329_v24 = vpop.f32.mrb[42].mxu1 }
 0x358   : > { %v1373_v25 = vadd.f32 %v3329_v24, %v4697_v51  ;;  %v1367_v26 = vpop.f32.mrb[43].mxu1 }
 0x359   : > { %v1368_v27 = vadd.f32 %v4697_v51, %v1367_v26  ;;  %v4771_v26 = vld [vmem:[%s5495_s7] ss:$0 sm:$0xff] }
 0x35a   : > { %v1519_v29 = vmax.f32 %v1373_v25, 0.0 }
 0x35b   : > { %v1518_v28 = vmax.f32 %v1368_v27, 0.0 }
 0x35d   : > { %3455 = vmatprep.mubr.f32.mxu1 %v1518_v28 }
 0x35e   : > { %3456 = vmatmul.mubr.f32.gmra.mrb[106].mxu1 %v1519_v29 }
 0x35f   : > { %v3332_v30 = vpop.f32.mrb[44].mxu1 }
 0x360   : > { %v1383_v31 = vadd.f32 %v3332_v30, %v4697_v51  ;;  %v1377_v32 = vpop.f32.mrb[45].mxu1 }
 0x361   : > { %v1378_v33 = vadd.f32 %v4697_v51, %v1377_v32 }
 0x362   : > { %v1521_v35 = vmax.f32 %v1383_v31, 0.0 }
 0x363   : > { %v1520_v34 = vmax.f32 %v1378_v33, 0.0 }
 0x365   : > { %3458 = vmatprep.mubr.f32.mxu1 %v1520_v34 }
 0x366   : > { %3459 = vmatmul.mubr.f32.gmra.mrb[108].mxu1 %v1521_v35 }
 0x367   : > { %v3335_v36 = vpop.f32.mrb[46].mxu1 }
 0x368   : > { %v1393_v37 = vadd.f32 %v3335_v36, %v4697_v51  ;;  %v1387_v38 = vpop.f32.mrb[47].mxu1 }
 0x369   : > { %v1388_v39 = vadd.f32 %v4697_v51, %v1387_v38 }
 0x36a   : > { %v1523_v41 = vmax.f32 %v1393_v37, 0.0 }
 0x36b   : > { %v1522_v40 = vmax.f32 %v1388_v39, 0.0 }
 0x36d   : > { %3461 = vmatprep.mubr.f32.mxu1 %v1522_v40 }
 0x36e   : > { %3462 = vmatmul.mubr.f32.gmra.mrb[110].mxu1 %v1523_v41 }
 0x36f   : > { %v3338_v42 = vpop.f32.mrb[48].mxu1 }
 0x370   : > { %v1403_v43 = vadd.f32 %v3338_v42, %v4697_v51  ;;  %v1397_v44 = vpop.f32.mrb[49].mxu1 }
 0x371   : > { %v1398_v45 = vadd.f32 %v4697_v51, %v1397_v44 }
 0x372   : > { %v1525_v47 = vmax.f32 %v1403_v43, 0.0 }
 0x373   : > { %v1524_v46 = vmax.f32 %v1398_v45, 0.0 }
 0x375   : > { %3464 = vmatprep.mubr.f32.mxu1 %v1524_v46 }
 0x376   : > { %3465 = vmatmul.mubr.f32.gmra.mrb[112].mxu1 %v1525_v47 }
 0x377   : > { %v3341_v48 = vpop.f32.mrb[50].mxu1 }
 0x378   : > { %v1413_v49 = vadd.f32 %v3341_v48, %v4697_v51  ;;  %v1407_v50 = vpop.f32.mrb[51].mxu1 }
 0x379   : > { %v1408_v52 = vadd.f32 %v4697_v51, %v1407_v50 }
 0x37a   : > { %v1527_v55 = vmax.f32 %v1413_v49, 0.0 }
 0x37b   : > { %v1526_v54 = vmax.f32 %v1408_v52, 0.0 }
 0x37d   : > { %3467 = vmatprep.mubr.f32.mxu1 %v1526_v54 }
 0x37e   : > { %3468 = vmatmul.mubr.f32.gmra.mrb[114].mxu1 %v1527_v55 }
 0x37f   : > { %v3344_v56 = vpop.f32.mrb[52].mxu1 }
 0x380   : > { %v1423_v57 = vadd.f32 %v3344_v56, %v4697_v51  ;;  %v1417_v58 = vpop.f32.mrb[53].mxu1 }
 0x381   : > { %v1418_v59 = vadd.f32 %v4697_v51, %v1417_v58 }
 0x382   : > { %v1529_v63 = vmax.f32 %v1423_v57, 0.0 }
 0x383   : > { %v1528_v61 = vmax.f32 %v1418_v59, 0.0 }
 0x385   : > { %3470 = vmatprep.mubr.f32.mxu1 %v1528_v61 }
 0x386   : > { %3471 = vmatmul.mubr.f32.gmra.mrb[116].mxu1 %v1529_v63 }
 0x387   : > { %v3347_v0 = vpop.f32.mrb[54].mxu1 }
 0x388   : > { %v1433_v1 = vadd.f32 %v3347_v0, %v4697_v51  ;;  %v1427_v2 = vpop.f32.mrb[55].mxu1 }
 0x389   : > { %v1428_v3 = vadd.f32 %v4697_v51, %v1427_v2 }
 0x38a   : > { %v1531_v5 = vmax.f32 %v1433_v1, 0.0 }
 0x38b   : > { %v1530_v4 = vmax.f32 %v1428_v3, 0.0 }
 0x38d   : > { %3473 = vmatprep.mubr.f32.mxu1 %v1530_v4 }
 0x38e   : > { %3474 = vmatmul.mubr.f32.gmra.mrb[118].mxu1 %v1531_v5 }
 0x38f   : > { %v3350_v6 = vpop.f32.mrb[56].mxu1 }
 0x390   : > { %v1443_v7 = vadd.f32 %v3350_v6, %v4697_v51  ;;  %v1437_v53 = vpop.f32.mrb[57].mxu1 }
 0x391   : > { %v1438_v8 = vadd.f32 %v4697_v51, %v1437_v53 }
 0x392   : > { %v1533_v10 = vmax.f32 %v1443_v7, 0.0 }
 0x393   : > { %v1532_v9 = vmax.f32 %v1438_v8, 0.0 }
 0x395   : > { %3476 = vmatprep.mubr.f32.mxu1 %v1532_v9 }
 0x396   : > { %3477 = vmatmul.mubr.f32.gmra.mrb[120].mxu1 %v1533_v10 }
 0x397   : > { %v3353_v11 = vpop.f32.mrb[58].mxu1 }
 0x398   : > { %v1453_v12 = vadd.f32 %v3353_v11, %v4697_v51  ;;  %v1447_v13 = vpop.f32.mrb[59].mxu1 }
 0x399   : > { %v1448_v14 = vadd.f32 %v4697_v51, %v1447_v13 }
 0x39a   : > { %v1535_v16 = vmax.f32 %v1453_v12, 0.0 }
 0x39b   : > { %v1534_v15 = vmax.f32 %v1448_v14, 0.0 }
 0x39d   : > { %3479 = vmatprep.mubr.f32.mxu1 %v1534_v15 }
 0x39e   : > { %3480 = vmatmul.mubr.f32.gmra.mrb[122].mxu1 %v1535_v16 }
 0x39f   : > { %v3356_v17 = vpop.f32.mrb[60].mxu1 }
 0x3a0   : > { %v1463_v18 = vadd.f32 %v3356_v17, %v4697_v51  ;;  %v1457_v60 = vpop.f32.mrb[61].mxu1 }
 0x3a1   : > { %v1458_v19 = vadd.f32 %v4697_v51, %v1457_v60 }
 0x3a2   : > { %v1537_v21 = vmax.f32 %v1463_v18, 0.0 }
 0x3a3   : > { %v1536_v20 = vmax.f32 %v1458_v19, 0.0 }
 0x3a5   : > { %3482 = vmatprep.mubr.f32.mxu1 %v1536_v20 }
 0x3a6   : > { %3483 = vmatmul.mubr.f32.gmra.mrb[124].mxu1 %v1537_v21 }
 0x3a7   : > { %v3359_v22 = vpop.f32.mrb[62].mxu1 }
 0x3a8   : > { %v1473_v23 = vadd.f32 %v3359_v22, %v4697_v51  ;;  %v1467_v24 = vpop.f32.mrb[63].mxu1 }
 0x3a9   : > { %v1468_v25 = vadd.f32 %v4697_v51, %v1467_v24 }
 0x3aa   : > { %v1539_v29 = vmax.f32 %v1473_v23, 0.0 }
 0x3ab   : > { %v1538_v27 = vmax.f32 %v1468_v25, 0.0  ;;  %v3394_v28 = vpop.f32.mrb[64].mxu1 }
 0x3ac   : > { %v1629_v30 = vpop.f32.mrb[65].mxu1  ;;  %v1635_v32 = vadd.f32 %v3394_v28, %v4771_v26 }
 0x3ad   : > { %v1630_v31 = vadd.f32 %v4771_v26, %v1629_v30  ;;  %3485 = vmatprep.mubr.f32.mxu1 %v1538_v27 }
 0x3ae   : > { %3486 = vmatmul.mubr.f32.gmra.mrb[126].mxu1 %v1539_v29  ;;  %v1949_v35 = vmax.f32 %v1635_v32, 0.0 }
 0x3af   : > { %v1948_v33 = vmax.f32 %v1630_v31, 0.0  ;;  %v3397_v34 = vpop.f32.mrb[66].mxu1  ;;  %2288 = vmatprep.mubr.f32.mxu1 %v4146_v62 }
 0x3b0   : > { %v1639_v51 = vpop.f32.mrb[67].mxu1  ;;  %v1645_v39 = vadd.f32 %v3397_v34, %v4771_v26 }
 0x3b1   : > { %2121 = vmatmul.mubr.f32.vlgmr.msra.gmra.mrb[128].mxu0 %v1948_v33  ;;  %v1640_v36 = vadd.f32 %v4771_v26, %v1639_v51 }
 0x3b2   : > { %2126 = vmatprep.mubr.f32.mxu0 %v4146_v62  ;;  %v1951_v43 = vmax.f32 %v1645_v39, 0.0 }
 0x3b3   : > { %v3400_v37 = vpop.f32.mrb[68].mxu1  ;;  %v1950_v40 = vmax.f32 %v1640_v36, 0.0 }
 0x3b4   : > { %v1649_v38 = vpop.f32.mrb[69].mxu1  ;;  %v1655_v47 = vadd.f32 %v3400_v37, %v4771_v26 }
 0x3b5   : > { %2127 = vmatmul.mubr.f32.gmra.mrb[130].mxu0 %v1949_v35  ;;  %v1650_v44 = vadd.f32 %v4771_v26, %v1649_v38 }
 0x3b6   : > { %2132 = vmatprep.mubr.f32.mxu0 %v4146_v62  ;;  %v1953_v52 = vmax.f32 %v1655_v47, 0.0 }
 0x3b7   : > { %v3403_v41 = vpop.f32.mrb[70].mxu1  ;;  %v1952_v48 = vmax.f32 %v1650_v44, 0.0 }
 0x3b8   : > { %v1659_v42 = vpop.f32.mrb[71].mxu1  ;;  %v1665_v57 = vadd.f32 %v3403_v41, %v4771_v26 }
 0x3b9   : > { %2133 = vmatmul.mubr.f32.gmra.mrb[132].mxu0 %v1950_v40  ;;  %v1660_v54 = vadd.f32 %v4771_v26, %v1659_v42 }
 0x3ba   : > { %2138 = vmatprep.mubr.f32.mxu0 %v4146_v62  ;;  %v1955_v63 = vmax.f32 %v1665_v57, 0.0 }
 0x3bb   : > { %v3406_v45 = vpop.f32.mrb[72].mxu1  ;;  %v1954_v58 = vmax.f32 %v1660_v54, 0.0 }
 0x3bc   : > { %v1669_v46 = vpop.f32.mrb[73].mxu1  ;;  %v1675_v3 = vadd.f32 %v3406_v45, %v4771_v26 }
 0x3bd   : > { %2139 = vmatmul.mubr.f32.gmra.mrb[134].mxu0 %v1951_v43  ;;  %v1670_v0 = vadd.f32 %v4771_v26, %v1669_v46 }
 0x3be   : > { %2144 = vmatprep.mubr.f32.mxu0 %v4146_v62  ;;  %v1957_v7 = vmax.f32 %v1675_v3, 0.0 }
 0x3bf   : > { %v3409_v49 = vpop.f32.mrb[74].mxu1  ;;  %v1956_v4 = vmax.f32 %v1670_v0, 0.0 }
 0x3c0   : > { %v1679_v50 = vpop.f32.mrb[75].mxu1  ;;  %v1685_v8 = vadd.f32 %v3409_v49, %v4771_v26 }
 0x3c1   : > { %2145 = vmatmul.mubr.f32.gmra.mrb[136].mxu0 %v1952_v48  ;;  %v1680_v53 = vadd.f32 %v4771_v26, %v1679_v50 }
 0x3c2   : > { %2150 = vmatprep.mubr.f32.mxu0 %v4146_v62  ;;  %v1959_v12 = vmax.f32 %v1685_v8, 0.0 }
 0x3c3   : > { %v3412_v55 = vpop.f32.mrb[76].mxu1  ;;  %v1958_v9 = vmax.f32 %v1680_v53, 0.0 }
 0x3c4   : > { %v1689_v56 = vpop.f32.mrb[77].mxu1  ;;  %v1695_v14 = vadd.f32 %v3412_v55, %v4771_v26 }
 0x3c5   : > { %2151 = vmatmul.mubr.f32.gmra.mrb[138].mxu0 %v1953_v52  ;;  %v1690_v13 = vadd.f32 %v4771_v26, %v1689_v56 }
 0x3c6   : > { %2156 = vmatprep.mubr.f32.mxu0 %v4146_v62  ;;  %v1961_v18 = vmax.f32 %v1695_v14, 0.0 }
 0x3c7   : > { %v3415_v59 = vpop.f32.mrb[78].mxu1  ;;  %v1960_v15 = vmax.f32 %v1690_v13, 0.0 }
 0x3c8   : > { %v1699_v61 = vpop.f32.mrb[79].mxu1  ;;  %v1705_v19 = vadd.f32 %v3415_v59, %v4771_v26 }
 0x3c9   : > { %2157 = vmatmul.mubr.f32.gmra.mrb[140].mxu0 %v1954_v58  ;;  %v1700_v60 = vadd.f32 %v4771_v26, %v1699_v61 }
 0x3ca   : > { %2162 = vmatprep.mubr.f32.mxu0 %v4146_v62  ;;  %v1963_v23 = vmax.f32 %v1705_v19, 0.0 }
 0x3cb   : > { %v3418_v1 = vpop.f32.mrb[80].mxu1  ;;  %v1962_v20 = vmax.f32 %v1700_v60, 0.0 }
 0x3cc   : > { %v1709_v2 = vpop.f32.mrb[81].mxu1  ;;  %v1715_v25 = vadd.f32 %v3418_v1, %v4771_v26 }
 0x3cd   : > { %2163 = vmatmul.mubr.f32.gmra.mrb[142].mxu0 %v1955_v63  ;;  %v1710_v24 = vadd.f32 %v4771_v26, %v1709_v2 }
 0x3ce   : > { %2168 = vmatprep.mubr.f32.mxu0 %v4146_v62  ;;  %v1965_v30 = vmax.f32 %v1715_v25, 0.0 }
 0x3cf   : > { %v1964_v27 = vmax.f32 %v1710_v24, 0.0 }
 0x3d1   : > { %v3421_v5 = vpop.f32.mrb[82].mxu1  ;;  %2169 = vmatmul.mubr.f32.gmra.mrb[144].mxu0 %v1956_v4 }
 0x3d2   : > { %v1719_v6 = vpop.f32.mrb[83].mxu1  ;;  %2174 = vmatprep.mubr.f32.mxu0 %v4146_v62  ;;  %v1725_v32 = vadd.f32 %v3421_v5, %v4771_v26 }
 0x3d3   : > { %v1720_v31 = vadd.f32 %v4771_v26, %v1719_v6 }
 0x3d4   : > { %v1967_v35 = vmax.f32 %v1725_v32, 0.0 }
 0x3d5   : > { %2175 = vmatmul.mubr.f32.gmra.mrb[146].mxu0 %v1957_v7  ;;  %v1966_v33 = vmax.f32 %v1720_v31, 0.0 }
 0x3d6   : > { %2180 = vmatprep.mubr.f32.mxu0 %v4146_v62 }
 0x3d9   : > { %v3424_v10 = vpop.f32.mrb[84].mxu1  ;;  %2181 = vmatmul.mubr.f32.gmra.mrb[148].mxu0 %v1958_v9 }
 0x3da   : > { %v1729_v11 = vpop.f32.mrb[85].mxu1  ;;  %2186 = vmatprep.mubr.f32.mxu0 %v4146_v62  ;;  %v1735_v40 = vadd.f32 %v3424_v10, %v4771_v26 }
 0x3db   : > { %v1730_v36 = vadd.f32 %v4771_v26, %v1729_v11 }
 0x3dc   : > { %v1969_v45 = vmax.f32 %v1735_v40, 0.0 }
 0x3dd   : > { %2187 = vmatmul.mubr.f32.gmra.mrb[150].mxu0 %v1959_v12  ;;  %v1968_v41 = vmax.f32 %v1730_v36, 0.0 }
 0x3de   : > { %2192 = vmatprep.mubr.f32.mxu0 %v4146_v62 }
 0x3e1   : > { %v3427_v16 = vpop.f32.mrb[86].mxu1  ;;  %2193 = vmatmul.mubr.f32.gmra.mrb[152].mxu0 %v1960_v15 }
 0x3e2   : > { %v1739_v17 = vpop.f32.mrb[87].mxu1  ;;  %2198 = vmatprep.mubr.f32.mxu0 %v4146_v62  ;;  %v1745_v50 = vadd.f32 %v3427_v16, %v4771_v26 }
 0x3e3   : > { %v1740_v46 = vadd.f32 %v4771_v26, %v1739_v17 }
 0x3e4   : > { %v1971_v57 = vmax.f32 %v1745_v50, 0.0 }
 0x3e5   : > { %2199 = vmatmul.mubr.f32.gmra.mrb[154].mxu0 %v1961_v18  ;;  %v1970_v52 = vmax.f32 %v1740_v46, 0.0 }
 0x3e6   : > { %2204 = vmatprep.mubr.f32.mxu0 %v4146_v62 }
 0x3e9   : > { %v4804_v21 = vpop.f32.mrb[88].mxu1  ;;  %2205 = vmatmul.mubr.f32.gmra.mrb[156].mxu0 %v1962_v20 }
 0x3ea   : > { %v1749_v22 = vpop.f32.mrb[89].mxu1  ;;  %2210 = vmatprep.mubr.f32.mxu0 %v4146_v62  ;;  %v1755_v0 = vadd.f32 %v4804_v21, %v4771_v26 }
 0x3eb   : > { %v1750_v58 = vadd.f32 %v4771_v26, %v1749_v22 }
 0x3ec   : > { %v1973_v5 = vmax.f32 %v1755_v0, 0.0 }
 0x3ed   : > { %2211 = vmatmul.mubr.f32.gmra.mrb[158].mxu0 %v1963_v23  ;;  %v1972_v1 = vmax.f32 %v1750_v58, 0.0 }
 0x3ee   : > { %2216 = vmatprep.mubr.f32.mxu0 %v4146_v62 }
 0x3f1   : > { %v4810_v28 = vpop.f32.mrb[90].mxu1  ;;  %2217 = vmatmul.mubr.f32.gmra.mrb[160].mxu0 %v1964_v27 }
 0x3f2   : > { %v4812_v29 = vpop.f32.mrb[91].mxu1  ;;  %2222 = vmatprep.mubr.f32.mxu0 %v4146_v62  ;;  %v1765_v9 = vadd.f32 %v4810_v28, %v4771_v26 }
 0x3f3   : > { %v1760_v6 = vadd.f32 %v4771_v26, %v4812_v29 }
 0x3f4   : > { %v1975_v14 = vmax.f32 %v1765_v9, 0.0 }
 0x3f5   : > { %2223 = vmatmul.mubr.f32.gmra.mrb[162].mxu0 %v1965_v30  ;;  %v1974_v10 = vmax.f32 %v1760_v6, 0.0 }
 0x3f6   : > { %2228 = vmatprep.mubr.f32.mxu0 %v4146_v62 }
 0x3f9   : > { %v3436_v34 = vpop.f32.mrb[92].mxu1  ;;  %2229 = vmatmul.mubr.f32.gmra.mrb[164].mxu0 %v1966_v33 }
 0x3fa   : > { %v1769_v51 = vpop.f32.mrb[93].mxu1  ;;  %2234 = vmatprep.mubr.f32.mxu0 %v4146_v62  ;;  %v1775_v38 = vadd.f32 %v3436_v34, %v4771_v26 }
 0x3fb   : > { %v1770_v37 = vadd.f32 %v4771_v26, %v1769_v51 }
 0x3fc   : > { %v1977_v42 = vmax.f32 %v1775_v38, 0.0 }
 0x3fd   : > { %v1976_v39 = vmax.f32 %v1770_v37, 0.0  ;;  %2235 = vmatmul.mubr.f32.gmra.mrb[166].mxu0 %v1967_v35 }
 0x3fe   : > { %2240 = vmatprep.mubr.f32.mxu0 %v4146_v62 }
 0x3ff   : > { %2289 = vmatmul.mubr.f32.vlgmr.msra.gmra.mrb[128].mxu1 %v1976_v39 }
 0x400   : > { %2294 = vmatprep.mubr.f32.mxu1 %v4146_v62 }
 0x401   : > { %v3439_v43 = vpop.f32.mrb[94].mxu1  ;;  %2241 = vmatmul.mubr.f32.gmra.mrb[168].mxu0 %v1968_v41 }
 0x402   : > { %v1779_v44 = vpop.f32.mrb[95].mxu1  ;;  %2246 = vmatprep.mubr.f32.mxu0 %v4146_v62  ;;  %v1785_v48 = vadd.f32 %v3439_v43, %v4771_v26 }
 0x403   : > { %v1780_v47 = vadd.f32 %v4771_v26, %v1779_v44  ;;  %2295 = vmatmul.mubr.f32.gmra.mrb[130].mxu1 %v1977_v42 }
 0x404   : > { %2300 = vmatprep.mubr.f32.mxu1 %v4146_v62  ;;  %v1979_v54 = vmax.f32 %v1785_v48, 0.0 }
 0x405   : > { %v1978_v49 = vmax.f32 %v1780_v47, 0.0  ;;  %2247 = vmatmul.mubr.f32.gmra.mrb[170].mxu0 %v1969_v45 }
 0x406   : > { %2252 = vmatprep.mubr.f32.mxu0 %v4146_v62 }
 0x407   : > { %2301 = vmatmul.mubr.f32.gmra.mrb[132].mxu1 %v1978_v49 }
 0x408   : > { %2306 = vmatprep.mubr.f32.mxu1 %v4146_v62 }
 0x409   : > { %v3442_v55 = vpop.f32.mrb[96].mxu1  ;;  %2253 = vmatmul.mubr.f32.gmra.mrb[172].mxu0 %v1970_v52 }
 0x40a   : > { %v1789_v56 = vpop.f32.mrb[97].mxu1  ;;  %2258 = vmatprep.mubr.f32.mxu0 %v4146_v62  ;;  %v1795_v61 = vadd.f32 %v3442_v55, %v4771_v26 }
 0x40b   : > { %v1790_v59 = vadd.f32 %v4771_v26, %v1789_v56  ;;  %2307 = vmatmul.mubr.f32.gmra.mrb[134].mxu1 %v1979_v54 }
 0x40c   : > { %2312 = vmatprep.mubr.f32.mxu1 %v4146_v62  ;;  %v1981_v2 = vmax.f32 %v1795_v61, 0.0 }
 0x40d   : > { %v1980_v63 = vmax.f32 %v1790_v59, 0.0  ;;  %2259 = vmatmul.mubr.f32.gmra.mrb[174].mxu0 %v1971_v57 }
 0x40e   : > { %2264 = vmatprep.mubr.f32.mxu0 %v4146_v62 }
 0x40f   : > { %2313 = vmatmul.mubr.f32.gmra.mrb[136].mxu1 %v1980_v63 }
 0x410   : > { %2318 = vmatprep.mubr.f32.mxu1 %v4146_v62 }
 0x411   : > { %v3445_v3 = vpop.f32.mrb[98].mxu1  ;;  %2265 = vmatmul.mubr.f32.gmra.mrb[176].mxu0 %v1972_v1 }
 0x412   : > { %v1799_v4 = vpop.f32.mrb[99].mxu1  ;;  %2270 = vmatprep.mubr.f32.mxu0 %v4146_v62  ;;  %v1805_v53 = vadd.f32 %v3445_v3, %v4771_v26 }
 0x413   : > { %v1800_v7 = vadd.f32 %v4771_v26, %v1799_v4  ;;  %2319 = vmatmul.mubr.f32.gmra.mrb[138].mxu1 %v1981_v2 }
 0x414   : > { %2324 = vmatprep.mubr.f32.mxu1 %v4146_v62  ;;  %v1983_v11 = vmax.f32 %v1805_v53, 0.0 }
 0x415   : > { %v1982_v8 = vmax.f32 %v1800_v7, 0.0  ;;  %2271 = vmatmul.mubr.f32.gmra.mrb[178].mxu0 %v1973_v5 }
 0x416   : > { %2276 = vmatprep.mubr.f32.mxu0 %v4146_v62 }
 0x417   : > { %2325 = vmatmul.mubr.f32.gmra.mrb[140].mxu1 %v1982_v8 }
 0x418   : > { %2330 = vmatprep.mubr.f32.mxu1 %v4146_v62 }
 0x419   : > { %v3448_v12 = vpop.f32.mrb[100].mxu1  ;;  %2277 = vmatmul.mubr.f32.gmra.mrb[180].mxu0 %v1974_v10 }
 0x41a   : > { %v1809_v13 = vpop.f32.mrb[101].mxu1  ;;  %2282 = vmatprep.mubr.f32.mxu0 %v4146_v62  ;;  %v1815_v16 = vadd.f32 %v3448_v12, %v4771_v26 }
 0x41b   : > { %v1810_v15 = vadd.f32 %v4771_v26, %v1809_v13  ;;  %2331 = vmatmul.mubr.f32.gmra.mrb[142].mxu1 %v1983_v11 }
 0x41c   : > { %2336 = vmatprep.mubr.f32.mxu1 %v4146_v62  ;;  %v1985_v18 = vmax.f32 %v1815_v16, 0.0 }
 0x41d   : > { %v1984_v17 = vmax.f32 %v1810_v15, 0.0  ;;  %2283 = vmatmul.mubr.f32.gmra.mrb[182].mxu0 %v1975_v14 }
 0x41f   : > { %2337 = vmatmul.mubr.f32.gmra.mrb[144].mxu1 %v1984_v17 }
 0x420   : > { %2342 = vmatprep.mubr.f32.mxu1 %v4146_v62 }
 0x421   : > { %v3451_v60 = vpop.f32.mrb[102].mxu1 }
 0x422   : > { %v1819_v19 = vpop.f32.mrb[103].mxu1  ;;  %v1825_v21 = vadd.f32 %v3451_v60, %v4771_v26  ;;  %v2046_v60 = vlaneseq }
 0x423   : > { %v1820_v20 = vadd.f32 %v4771_v26, %v1819_v19  ;;  %2343 = vmatmul.mubr.f32.gmra.mrb[146].mxu1 %v1985_v18 }
 0x424   : > { %2348 = vmatprep.mubr.f32.mxu1 %v4146_v62  ;;  %v1987_v23 = vmax.f32 %v1825_v21, 0.0 }
 0x425   : > { %v1986_v22 = vmax.f32 %v1820_v20, 0.0 }
 0x427   : > { %2349 = vmatmul.mubr.f32.gmra.mrb[148].mxu1 %v1986_v22  ;;  %v2047_v22 = vshrl.u32 %v2046_v60, 7  ;;  %v3761_v60 = vld [vmem:[%s4460_s22 + $0x40] sm:$0xff] }
 0x428   : > { %2354 = vmatprep.mubr.f32.mxu1 %v4146_v62 }
 0x429   : > { %v3454_v24 = vpop.f32.mrb[104].mxu1 }
 0x42a   : > { %v1829_v25 = vpop.f32.mrb[105].mxu1  ;;  %v1835_v28 = vadd.f32 %v3454_v24, %v4771_v26 }
 0x42b   : > { %v1830_v27 = vadd.f32 %v4771_v26, %v1829_v25  ;;  %2355 = vmatmul.mubr.f32.gmra.mrb[150].mxu1 %v1987_v23 }
 0x42c   : > { %2360 = vmatprep.mubr.f32.mxu1 %v4146_v62  ;;  %v1989_v30 = vmax.f32 %v1835_v28, 0.0 }
 0x42d   : > { %v1988_v29 = vmax.f32 %v1830_v27, 0.0  ;;  %v2048_v27 = vsub.s32 0, %v2047_v22 }
 0x42f   : > { %2361 = vmatmul.mubr.f32.gmra.mrb[152].mxu1 %v1988_v29  ;;  %v2052_v29 = vsub.s32 1, %v2047_v22 }
 0x430   : > { %2366 = vmatprep.mubr.f32.mxu1 %v4146_v62 }
 0x431   : > { %v3457_v31 = vpop.f32.mrb[106].mxu1 }
 0x432   : > { %v1839_v32 = vpop.f32.mrb[107].mxu1  ;;  %v1845_v34 = vadd.f32 %v3457_v31, %v4771_v26 }
 0x433   : > { %v1840_v33 = vadd.f32 %v4771_v26, %v1839_v32  ;;  %2367 = vmatmul.mubr.f32.gmra.mrb[154].mxu1 %v1989_v30  ;;  %v2505_v30 = vld [vmem:[#allocation2] sm:$0x3] }
 0x434   : > { %2372 = vmatprep.mubr.f32.mxu1 %v4146_v62  ;;  %v1991_v35 = vmax.f32 %v1845_v34, 0.0  ;;  %v4907_v34 = vrot.slane %v2505_v30, %v2048_v27 }
 0x435   : > { %v1990_v51 = vmax.f32 %v1840_v33, 0.0  ;;  %v2044_v33 = vld [vmem:[%s5529_s29] sm:$0x3] }
 0x437   : > { %2373 = vmatmul.mubr.f32.gmra.mrb[156].mxu1 %v1990_v51  ;;  %v4909_v51 = vrot.slane %v2505_v30, %v2052_v29 }
 0x438   : > { %2378 = vmatprep.mubr.f32.mxu1 %v4146_v62 }
 0x439   : > { %v3460_v36 = vpop.f32.mrb[108].mxu1 }
 0x43a   : > { %v1849_v37 = vpop.f32.mrb[109].mxu1  ;;  %v1855_v39 = vadd.f32 %v3460_v36, %v4771_v26 }
 0x43b   : > { %v1850_v38 = vadd.f32 %v4771_v26, %v1849_v37  ;;  %2379 = vmatmul.mubr.f32.gmra.mrb[158].mxu1 %v1991_v35  ;;  %v4912_v37 = vrot.slane %v2044_v33, %v2048_v27 }
 0x43c   : > { %2384 = vmatprep.mubr.f32.mxu1 %v4146_v62  ;;  %v1993_v41 = vmax.f32 %v1855_v39, 0.0  ;;  %v4914_v39 = vrot.slane %v2044_v33, %v2052_v29  ;;  %v3763_v29 = vld [vmem:[%s4460_s22 + $0x50] sm:$0xff] }
 0x43d   : > { %v1992_v40 = vmax.f32 %v1850_v38, 0.0  ;;  %v2527_v30 = vmul.f32 %v3763_v29, %v4907_v34  ;;  %v3775_v29 = vld [vmem:[%s4460_s22 + $0xb0] sm:$0xff] }
 0x43f   : > { %2385 = vmatmul.mubr.f32.gmra.mrb[160].mxu1 %v1992_v40  ;;  %v3753_v40 = vld [vmem:[%s4460_s22] sm:$0xff] }
 0x440   : > { %2390 = vmatprep.mubr.f32.mxu1 %v4146_v62 }
 0x441   : > { %v3463_v42 = vpop.f32.mrb[110].mxu1 }
 0x442   : > { %v1859_v43 = vpop.f32.mrb[111].mxu1  ;;  %v1865_v45 = vadd.f32 %v3463_v42, %v4771_v26 }
 0x443   : > { %v1860_v44 = vadd.f32 %v4771_v26, %v1859_v43  ;;  %2391 = vmatmul.mubr.f32.gmra.mrb[162].mxu1 %v1993_v41  ;;  %v2517_v41 = vmul.f32 %v3753_v40, %v4907_v34  ;;  %v3754_v43 = vld [vmem:[%s4460_s22 + $0x8] sm:$0xff] }
 0x444   : > { %2396 = vmatprep.mubr.f32.mxu1 %v4146_v62  ;;  %v1995_v47 = vmax.f32 %v1865_v45, 0.0 }
 0x445   : > { %v1994_v46 = vmax.f32 %v1860_v44, 0.0  ;;  %v2518_v44 = vmul.f32 %v3754_v43, %v4909_v51 }
 0x447   : > { %2397 = vmatmul.mubr.f32.gmra.mrb[164].mxu1 %v1994_v46 }
 0x448   : > { %2402 = vmatprep.mubr.f32.mxu1 %v4146_v62 }
 0x449   : > { %v3466_v48 = vpop.f32.mrb[112].mxu1 }
 0x44a   : > { %v1869_v49 = vpop.f32.mrb[113].mxu1  ;;  %v1875_v52 = vadd.f32 %v3466_v48, %v4771_v26 }
 0x44b   : > { %v1870_v50 = vadd.f32 %v4771_v26, %v1869_v49  ;;  %2403 = vmatmul.mubr.f32.gmra.mrb[166].mxu1 %v1995_v47 }
 0x44c   : > { %2408 = vmatprep.mubr.f32.mxu1 %v4146_v62  ;;  %v1997_v55 = vmax.f32 %v1875_v52, 0.0  ;;  %v3755_v52 = vld [vmem:[%s4460_s22 + $0x10] sm:$0xff] }
 0x44d   : > { %v1996_v54 = vmax.f32 %v1870_v50, 0.0 }
 0x44f   : > { %2409 = vmatmul.mubr.f32.gmra.mrb[168].mxu1 %v1996_v54  ;;  %v2519_v54 = vmul.f32 %v3755_v52, %v4907_v34 }
 0x450   : > { %2414 = vmatprep.mubr.f32.mxu1 %v4146_v62 }
 0x451   : > { %v3469_v56 = vpop.f32.mrb[114].mxu1 }
 0x452   : > { %v1879_v57 = vpop.f32.mrb[115].mxu1  ;;  %v1885_v59 = vadd.f32 %v3469_v56, %v4771_v26  ;;  %v3756_v56 = vld [vmem:[%s4460_s22 + $0x18] sm:$0xff] }
 0x453   : > { %v1880_v58 = vadd.f32 %v4771_v26, %v1879_v57  ;;  %2415 = vmatmul.mubr.f32.gmra.mrb[170].mxu1 %v1997_v55  ;;  %v2520_v57 = vmul.f32 %v3756_v56, %v4909_v51 }
 0x454   : > { %2420 = vmatprep.mubr.f32.mxu1 %v4146_v62  ;;  %v1999_v63 = vmax.f32 %v1885_v59, 0.0 }
 0x455   : > { %v1998_v61 = vmax.f32 %v1880_v58, 0.0 }
 0x457   : > { %2421 = vmatmul.mubr.f32.gmra.mrb[172].mxu1 %v1998_v61 }
 0x458   : > { %2426 = vmatprep.mubr.f32.mxu1 %v4146_v62 }
 0x459   : > { %v3472_v0 = vpop.f32.mrb[116].mxu1 }
 0x45a   : > { %v1889_v1 = vpop.f32.mrb[117].mxu1  ;;  %v1895_v3 = vadd.f32 %v3472_v0, %v4771_v26 }
 0x45b   : > { %v1890_v2 = vadd.f32 %v4771_v26, %v1889_v1  ;;  %2427 = vmatmul.mubr.f32.gmra.mrb[174].mxu1 %v1999_v63  ;;  %v3757_v1 = vld [vmem:[%s4460_s22 + $0x20] sm:$0xff] }
 0x45c   : > { %2432 = vmatprep.mubr.f32.mxu1 %v4146_v62  ;;  %v2001_v5 = vmax.f32 %v1895_v3, 0.0  ;;  %v3758_v3 = vld [vmem:[%s4460_s22 + $0x28] sm:$0xff] }
 0x45d   : > { %v2000_v4 = vmax.f32 %v1890_v2, 0.0  ;;  %v2521_v2 = vmul.f32 %v3757_v1, %v4907_v34  ;;  %v3769_v1 = vld [vmem:[%s4460_s22 + $0x80] sm:$0xff] }
 0x45f   : > { %2433 = vmatmul.mubr.f32.gmra.mrb[176].mxu1 %v2000_v4  ;;  %v2522_v4 = vmul.f32 %v3758_v3, %v4909_v51  ;;  %v3770_v3 = vld [vmem:[%s4460_s22 + $0x88] sm:$0xff] }
 0x460   : > { %2438 = vmatprep.mubr.f32.mxu1 %v4146_v62 }
 0x461   : > { %v3475_v6 = vpop.f32.mrb[118].mxu1 }
 0x462   : > { %v1899_v7 = vpop.f32.mrb[119].mxu1  ;;  %v1905_v8 = vadd.f32 %v3475_v6, %v4771_v26 }
 0x463   : > { %v1900_v53 = vadd.f32 %v4771_v26, %v1899_v7  ;;  %2439 = vmatmul.mubr.f32.gmra.mrb[178].mxu1 %v2001_v5 }
 0x464   : > { %2444 = vmatprep.mubr.f32.mxu1 %v4146_v62  ;;  %v2003_v10 = vmax.f32 %v1905_v8, 0.0 }
 0x465   : > { %v2002_v9 = vmax.f32 %v1900_v53, 0.0 }
 0x467   : > { %2445 = vmatmul.mubr.f32.gmra.mrb[180].mxu1 %v2002_v9  ;;  %v3759_v9 = vld [vmem:[%s4460_s22 + $0x30] sm:$0xff] }
 0x468   : > { %2450 = vmatprep.mubr.f32.mxu1 %v4146_v62 }
 0x469   : > { %v3478_v11 = vpop.f32.mrb[120].mxu1 }
 0x46a   : > { %v1909_v12 = vpop.f32.mrb[121].mxu1  ;;  %v1915_v14 = vadd.f32 %v3478_v11, %v4771_v26 }
 0x46b   : > { %v1910_v13 = vadd.f32 %v4771_v26, %v1909_v12  ;;  %2451 = vmatmul.mubr.f32.gmra.mrb[182].mxu1 %v2003_v10  ;;  %v2523_v10 = vmul.f32 %v3759_v9, %v4907_v34  ;;  %v3760_v12 = vld [vmem:[%s4460_s22 + $0x38] sm:$0xff]  ;;  %v3771_v9 = vld [vmem:[%s4460_s22 + $0x90] sm:$0xff] }
 0x46c   : > { %2456 = vmatprep.mubr.f32.mxu1 %v4146_v62  ;;  %v2005_v16 = vmax.f32 %v1915_v14, 0.0 }
 0x46d   : > { %v2004_v15 = vmax.f32 %v1910_v13, 0.0  ;;  %v2524_v13 = vmul.f32 %v3760_v12, %v4909_v51  ;;  %v3772_v12 = vld [vmem:[%s4460_s22 + $0x98] sm:$0xff] }
 0x46f   : > { %2457 = vmatmul.mubr.f32.gmra.mrb[184].mxu1 %v2004_v15 }
 0x470   : > { %2462 = vmatprep.mubr.f32.mxu1 %v4146_v62 }
 0x471   : > { %v3481_v17 = vpop.f32.mrb[122].mxu1 }
 0x472   : > { %v1919_v18 = vpop.f32.mrb[123].mxu1  ;;  %v1925_v20 = vadd.f32 %v3481_v17, %v4771_v26 }
 0x473   : > { %v1920_v19 = vadd.f32 %v4771_v26, %v1919_v18  ;;  %2463 = vmatmul.mubr.f32.gmra.mrb[186].mxu1 %v2005_v16 }
 0x474   : > { %2468 = vmatprep.mubr.f32.mxu1 %v4146_v62  ;;  %v2007_v23 = vmax.f32 %v1925_v20, 0.0 }
 0x475   : > { %v2006_v21 = vmax.f32 %v1920_v19, 0.0  ;;  %v2525_v19 = vmul.f32 %v3761_v60, %v4907_v34  ;;  %v3773_v60 = vld [vmem:[%s4460_s22 + $0xa0] sm:$0xff] }
 0x477   : > { %2469 = vmatmul.mubr.f32.gmra.mrb[188].mxu1 %v2006_v21  ;;  %v3762_v21 = vld [vmem:[%s4460_s22 + $0x48] sm:$0xff] }
 0x478   : > { %2474 = vmatprep.mubr.f32.mxu1 %v4146_v62  ;;  %v2526_v22 = vmul.f32 %v3762_v21, %v4909_v51  ;;  %v3774_v21 = vld [vmem:[%s4460_s22 + $0xa8] sm:$0xff] }
 0x479   : > { %v3484_v24 = vpop.f32.mrb[124].mxu1 }
 0x47a   : > { %v1929_v25 = vpop.f32.mrb[125].mxu1  ;;  %v1935_v31 = vadd.f32 %v3484_v24, %v4771_v26 }
 0x47b   : > { %v1930_v28 = vadd.f32 %v4771_v26, %v1929_v25  ;;  %2475 = vmatmul.mubr.f32.gmra.mrb[190].mxu1 %v2007_v23 }
 0x47c   : > { %2480 = vmatprep.mubr.f32.mxu1 %v4146_v62  ;;  %v2009_v35 = vmax.f32 %v1935_v31, 0.0 }
 0x47d   : > { %v2008_v32 = vmax.f32 %v1930_v28, 0.0 }
 0x47f   : > { %2481 = vmatmul.mubr.f32.gmra.mrb[192].mxu1 %v2008_v32  ;;  %v3764_v32 = vld [vmem:[%s4460_s22 + $0x58] sm:$0xff] }
 0x480   : > { %2486 = vmatprep.mubr.f32.mxu1 %v4146_v62  ;;  %v2528_v33 = vmul.f32 %v3764_v32, %v4909_v51  ;;  %v3776_v32 = vld [vmem:[%s4460_s22 + $0xb8] sm:$0xff] }
 0x481   : > { %v3487_v36 = vpop.f32.mrb[126].mxu1 }
 0x482   : > { %v1939_v38 = vpop.f32.mrb[127].mxu1  ;;  %v1945_v46 = vadd.f32 %v3487_v36, %v4771_v26 }
 0x483   : > { %v1940_v42 = vadd.f32 %v4771_v26, %v1939_v38  ;;  %2487 = vmatmul.mubr.f32.gmra.mrb[194].mxu1 %v2009_v35 }
 0x484   : > { %v2122_v45 = vpop.f32.mrb[128].mxu0  ;;  %2492 = vmatprep.mubr.f32.mxu1 %v4146_v62  ;;  %v2011_v26 = vmax.f32 %v1945_v46, 0.0 }
 0x485   : > { %v2010_v47 = vmax.f32 %v1940_v42, 0.0  ;;  %v2123_v48 = vadd.f32 %v2122_v45, %v4912_v37  ;;  %v2124_v49 = vpop.f32.mrb[129].mxu0  ;;  %v3765_v42 = vld [vmem:[%s4460_s22 + $0x60] sm:$0xff]  ;;  %v3766_v45 = vld [vmem:[%s4460_s22 + $0x68] sm:$0xff] }
 0x486   : > { %v2125_v50 = vadd.f32 %v2124_v49, %v4914_v39  ;;  %v2529_v43 = vmul.f32 %v3765_v42, %v4907_v34  ;;  %v2530_v46 = vmul.f32 %v3766_v45, %v4909_v51  ;;  %v3777_v42 = vld [vmem:[%s4460_s22 + $0xc0] sm:$0xff]  ;;  %v3778_v45 = vld [vmem:[%s4460_s22 + $0xc8] sm:$0xff] }
 0x487   : > { %v2645_v55 = vadd.f32 %v2517_v41, %v2123_v48  ;;  %2493 = vmatmul.mubr.f32.gmra.mrb[196].mxu1 %v2010_v47 }
 0x488   : > { %v2646_v58 = vadd.f32 %v2518_v44, %v2125_v50  ;;  %v2128_v59 = vpop.f32.mrb[130].mxu0  ;;  %2498 = vmatprep.mubr.f32.mxu1 %v4146_v62 }
 0x489   : > { %2773 = vst [vmem:[%s4931_s26] sm:$0xff] %v2645_v55  ;;  %v2129_v61 = vadd.f32 %v2128_v59, %v4912_v37  ;;  %v2130_v63 = vpop.f32.mrb[131].mxu0 }
 0x48a   : > { %2774 = vst [vmem:[%s4931_s26 + $0x8] sm:$0xff] %v2646_v58  ;;  %v2131_v0 = vadd.f32 %v2130_v63, %v4914_v39 }
 0x48b   : > { %v2647_v62 = vadd.f32 %v2519_v54, %v2129_v61  ;;  %2499 = vmatmul.mubr.f32.gmra.mrb[198].mxu1 %v2011_v26  ;;  %v3767_v54 = vld [vmem:[%s4460_s22 + $0x70] sm:$0xff] }
 0x48c   : > { %v2648_v5 = vadd.f32 %v2520_v57, %v2131_v0  ;;  %v2134_v6 = vpop.f32.mrb[132].mxu0  ;;  %v2531_v55 = vmul.f32 %v3767_v54, %v4907_v34  ;;  %v3768_v57 = vld [vmem:[%s4460_s22 + $0x78] sm:$0xff]  ;;  %v3779_v54 = vld [vmem:[%s4460_s22 + $0xd0] sm:$0xff] }
 0x48d   : > { %2775 = vst [vmem:[%s4931_s26 + $0x10] sm:$0xff] %v2647_v62  ;;  %v2135_v7 = vadd.f32 %v2134_v6, %v4912_v37  ;;  %v2136_v53 = vpop.f32.mrb[133].mxu0  ;;  %v2532_v58 = vmul.f32 %v3768_v57, %v4909_v51  ;;  %v3780_v57 = vld [vmem:[%s4460_s22 + $0xd8] sm:$0xff] }
 0x48e   : > { %2776 = vst [vmem:[%s4931_s26 + $0x18] sm:$0xff] %v2648_v5  ;;  %v2137_v8 = vadd.f32 %v2136_v53, %v4914_v39 }
 0x48f   : > { %v2649_v11 = vadd.f32 %v2521_v2, %v2135_v7  ;;  %v2533_v2 = vmul.f32 %v3769_v1, %v4907_v34  ;;  %v3781_v1 = vld [vmem:[%s4460_s22 + $0xe0] sm:$0xff] }
 0x490   : > { %v2650_v14 = vadd.f32 %v2522_v4, %v2137_v8  ;;  %v2140_v15 = vpop.f32.mrb[134].mxu0  ;;  %v2534_v4 = vmul.f32 %v3770_v3, %v4909_v51  ;;  %v3782_v3 = vld [vmem:[%s4460_s22 + $0xe8] sm:$0xff] }
 0x491   : > { %2777 = vst [vmem:[%s4931_s26 + $0x20] sm:$0xff] %v2649_v11  ;;  %v2141_v16 = vadd.f32 %v2140_v15, %v4912_v37  ;;  %v2142_v17 = vpop.f32.mrb[135].mxu0 }
 0x492   : > { %2778 = vst [vmem:[%s4931_s26 + $0x28] sm:$0xff] %v2650_v14  ;;  %v2143_v18 = vadd.f32 %v2142_v17, %v4914_v39 }
 0x493   : > { %v2651_v20 = vadd.f32 %v2523_v10, %v2141_v16  ;;  %v2535_v10 = vmul.f32 %v3771_v9, %v4907_v34  ;;  %v3783_v9 = vld [vmem:[%s4460_s22 + $0xf0] sm:$0xff] }
 0x494   : > { %v2652_v23 = vadd.f32 %v2524_v13, %v2143_v18  ;;  %v2146_v24 = vpop.f32.mrb[136].mxu0  ;;  %v2536_v13 = vmul.f32 %v3772_v12, %v4909_v51  ;;  %v3784_v12 = vld [vmem:[%s4460_s22 + $0xf8] sm:$0xff] }
 0x495   : > { %2779 = vst [vmem:[%s4931_s26 + $0x30] sm:$0xff] %v2651_v20  ;;  %v2147_v25 = vadd.f32 %v2146_v24, %v4912_v37  ;;  %v2148_v27 = vpop.f32.mrb[137].mxu0 }
 0x496   : > { %2780 = vst [vmem:[%s4931_s26 + $0x38] sm:$0xff] %v2652_v23  ;;  %v2149_v28 = vadd.f32 %v2148_v27, %v4914_v39 }
 0x497   : > { %v2653_v31 = vadd.f32 %v2525_v19, %v2147_v25  ;;  %v2537_v19 = vmul.f32 %v3773_v60, %v4907_v34  ;;  %v3785_v60 = vld [vmem:[%s4460_s22 + $0x100] sm:$0xff] }
 0x498   : > { %v2654_v35 = vadd.f32 %v2526_v22, %v2149_v28  ;;  %v2152_v36 = vpop.f32.mrb[138].mxu0  ;;  %v2538_v22 = vmul.f32 %v3774_v21, %v4909_v51  ;;  %v3786_v21 = vld [vmem:[%s4460_s22 + $0x108] sm:$0xff] }
 0x499   : > { %2781 = vst [vmem:[%s4931_s26 + $0x40] sm:$0xff] %v2653_v31  ;;  %v2153_v38 = vadd.f32 %v2152_v36, %v4912_v37  ;;  %v2154_v40 = vpop.f32.mrb[139].mxu0 }
 0x49a   : > { %2782 = vst [vmem:[%s4931_s26 + $0x48] sm:$0xff] %v2654_v35  ;;  %v2155_v41 = vadd.f32 %v2154_v40, %v4914_v39 }
 0x49b   : > { %v2655_v44 = vadd.f32 %v2527_v30, %v2153_v38  ;;  %v2539_v30 = vmul.f32 %v3775_v29, %v4907_v34  ;;  %v3787_v29 = vld [vmem:[%s4460_s22 + $0x110] sm:$0xff] }
 0x49c   : > { %v2656_v47 = vadd.f32 %v2528_v33, %v2155_v41  ;;  %v2158_v48 = vpop.f32.mrb[140].mxu0  ;;  %v2540_v33 = vmul.f32 %v3776_v32, %v4909_v51  ;;  %v3788_v32 = vld [vmem:[%s4460_s22 + $0x118] sm:$0xff] }
 0x49d   : > { %2783 = vst [vmem:[%s4931_s26 + $0x50] sm:$0xff] %v2655_v44  ;;  %v2159_v49 = vadd.f32 %v2158_v48, %v4912_v37  ;;  %v2160_v50 = vpop.f32.mrb[141].mxu0 }
 0x49e   : > { %2784 = vst [vmem:[%s4931_s26 + $0x58] sm:$0xff] %v2656_v47  ;;  %v2161_v52 = vadd.f32 %v2160_v50, %v4914_v39 }
 0x49f   : > { %v2657_v56 = vadd.f32 %v2529_v43, %v2159_v49  ;;  %v2541_v43 = vmul.f32 %v3777_v42, %v4907_v34  ;;  %v3789_v42 = vld [vmem:[%s4460_s22 + $0x120] sm:$0xff] }
 0x4a0   : > { %v2658_v59 = vadd.f32 %v2530_v46, %v2161_v52  ;;  %v2164_v26 = vpop.f32.mrb[142].mxu0  ;;  %v2542_v46 = vmul.f32 %v3778_v45, %v4909_v51  ;;  %v3790_v45 = vld [vmem:[%s4460_s22 + $0x128] sm:$0xff] }
 0x4a1   : > { %2785 = vst [vmem:[%s4931_s26 + $0x60] sm:$0xff] %v2657_v56  ;;  %v2165_v61 = vadd.f32 %v2164_v26, %v4912_v37  ;;  %v2166_v63 = vpop.f32.mrb[143].mxu0 }
 0x4a2   : > { %2786 = vst [vmem:[%s4931_s26 + $0x68] sm:$0xff] %v2658_v59  ;;  %v2167_v0 = vadd.f32 %v2166_v63, %v4914_v39 }
 0x4a3   : > { %v2659_v62 = vadd.f32 %v2531_v55, %v2165_v61  ;;  %v2543_v55 = vmul.f32 %v3779_v54, %v4907_v34  ;;  %v3791_v54 = vld [vmem:[%s4460_s22 + $0x130] sm:$0xff] }
 0x4a4   : > { %v2660_v5 = vadd.f32 %v2532_v58, %v2167_v0  ;;  %v2170_v6 = vpop.f32.mrb[144].mxu0  ;;  %v2544_v58 = vmul.f32 %v3780_v57, %v4909_v51  ;;  %v3792_v57 = vld [vmem:[%s4460_s22 + $0x138] sm:$0xff] }
 0x4a5   : > { %2787 = vst [vmem:[%s4931_s26 + $0x70] sm:$0xff] %v2659_v62  ;;  %v2171_v7 = vadd.f32 %v2170_v6, %v4912_v37  ;;  %v2172_v53 = vpop.f32.mrb[145].mxu0 }
 0x4a6   : > { %2788 = vst [vmem:[%s4931_s26 + $0x78] sm:$0xff] %v2660_v5  ;;  %v2173_v8 = vadd.f32 %v2172_v53, %v4914_v39 }
 0x4a7   : > { %v2661_v11 = vadd.f32 %v2533_v2, %v2171_v7  ;;  %v2545_v2 = vmul.f32 %v3781_v1, %v4907_v34 }
 0x4a8   : > { %v2662_v14 = vadd.f32 %v2534_v4, %v2173_v8  ;;  %v2176_v15 = vpop.f32.mrb[146].mxu0  ;;  %v2546_v4 = vmul.f32 %v3782_v3, %v4909_v51 }
 0x4a9   : > { %2789 = vst [vmem:[%s4931_s26 + $0x80] sm:$0xff] %v2661_v11  ;;  %v2177_v16 = vadd.f32 %v2176_v15, %v4912_v37  ;;  %v2178_v17 = vpop.f32.mrb[147].mxu0 }
 0x4aa   : > { %2790 = vst [vmem:[%s4931_s26 + $0x88] sm:$0xff] %v2662_v14  ;;  %v2179_v18 = vadd.f32 %v2178_v17, %v4914_v39 }
 0x4ab   : > { %v2663_v20 = vadd.f32 %v2535_v10, %v2177_v16  ;;  %v2547_v10 = vmul.f32 %v3783_v9, %v4907_v34  ;;  %v3796_v9 = vld [vmem:[%s4460_s22 + $0x148] sm:$0xff] }
 0x4ac   : > { %v2664_v23 = vadd.f32 %v2536_v13, %v2179_v18  ;;  %v2182_v24 = vpop.f32.mrb[148].mxu0  ;;  %v2548_v13 = vmul.f32 %v3784_v12, %v4909_v51 }
 0x4ad   : > { %2791 = vst [vmem:[%s4931_s26 + $0x90] sm:$0xff] %v2663_v20  ;;  %v2183_v25 = vadd.f32 %v2182_v24, %v4912_v37  ;;  %v2184_v27 = vpop.f32.mrb[149].mxu0 }
 0x4ae   : > { %2792 = vst [vmem:[%s4931_s26 + $0x98] sm:$0xff] %v2664_v23  ;;  %v2185_v28 = vadd.f32 %v2184_v27, %v4914_v39 }
 0x4af   : > { %v2665_v31 = vadd.f32 %v2537_v19, %v2183_v25  ;;  %v2549_v19 = vmul.f32 %v3785_v60, %v4907_v34  ;;  %v3798_v60 = vld [vmem:[%s4460_s22 + $0x1d8] sm:$0xff] }
 0x4b0   : > { %v2666_v35 = vadd.f32 %v2538_v22, %v2185_v28  ;;  %v2188_v36 = vpop.f32.mrb[150].mxu0  ;;  %v2550_v22 = vmul.f32 %v3786_v21, %v4909_v51 }
 0x4b1   : > { %2793 = vst [vmem:[%s4931_s26 + $0xa0] sm:$0xff] %v2665_v31  ;;  %v2189_v38 = vadd.f32 %v2188_v36, %v4912_v37  ;;  %v2190_v40 = vpop.f32.mrb[151].mxu0 }
 0x4b2   : > { %2794 = vst [vmem:[%s4931_s26 + $0xa8] sm:$0xff] %v2666_v35  ;;  %v2191_v41 = vadd.f32 %v2190_v40, %v4914_v39 }
 0x4b3   : > { %v2667_v44 = vadd.f32 %v2539_v30, %v2189_v38  ;;  %v2551_v30 = vmul.f32 %v3787_v29, %v4907_v34  ;;  %v3800_v29 = vld [vmem:[%s4460_s22 + $0x158] sm:$0xff] }
 0x4b4   : > { %v2668_v47 = vadd.f32 %v2540_v33, %v2191_v41  ;;  %v2194_v48 = vpop.f32.mrb[152].mxu0  ;;  %v2552_v33 = vmul.f32 %v3788_v32, %v4909_v51 }
 0x4b5   : > { %2795 = vst [vmem:[%s4931_s26 + $0xb0] sm:$0xff] %v2667_v44  ;;  %v2195_v49 = vadd.f32 %v2194_v48, %v4912_v37  ;;  %v2196_v50 = vpop.f32.mrb[153].mxu0 }
 0x4b6   : > { %2796 = vst [vmem:[%s4931_s26 + $0xb8] sm:$0xff] %v2668_v47  ;;  %v2197_v52 = vadd.f32 %v2196_v50, %v4914_v39 }
 0x4b7   : > { %v2669_v56 = vadd.f32 %v2541_v43, %v2195_v49  ;;  %v2553_v43 = vmul.f32 %v3789_v42, %v4907_v34  ;;  %v3802_v42 = vld [vmem:[%s4460_s22 + $0x1e8] sm:$0xff] }
 0x4b8   : > { %v2670_v59 = vadd.f32 %v2542_v46, %v2197_v52  ;;  %v2200_v26 = vpop.f32.mrb[154].mxu0  ;;  %v2554_v46 = vmul.f32 %v3790_v45, %v4909_v51 }
 0x4b9   : > { %2797 = vst [vmem:[%s4931_s26 + $0xc0] sm:$0xff] %v2669_v56  ;;  %v2201_v61 = vadd.f32 %v2200_v26, %v4912_v37  ;;  %v2202_v63 = vpop.f32.mrb[155].mxu0 }
 0x4ba   : > { %2798 = vst [vmem:[%s4931_s26 + $0xc8] sm:$0xff] %v2670_v59  ;;  %v2203_v0 = vadd.f32 %v2202_v63, %v4914_v39 }
 0x4bb   : > { %v2671_v62 = vadd.f32 %v2543_v55, %v2201_v61  ;;  %v2555_v55 = vmul.f32 %v3791_v54, %v4907_v34  ;;  %v3793_v61 = vld [vmem:[%s4460_s22 + $0x1c0] sm:$0xff]  ;;  %v3804_v54 = vld [vmem:[%s4460_s22 + $0x168] sm:$0xff] }
 0x4bc   : > { %v2672_v5 = vadd.f32 %v2544_v58, %v2203_v0  ;;  %v2206_v6 = vpop.f32.mrb[156].mxu0  ;;  %v2556_v58 = vmul.f32 %v3792_v57, %v4909_v51  ;;  %v2573_v63 = vmul.f32 %v3793_v61, %v4907_v34 }
 0x4bd   : > { %2799 = vst [vmem:[%s4931_s26 + $0xd0] sm:$0xff] %v2671_v62  ;;  %v2207_v7 = vadd.f32 %v2206_v6, %v4912_v37  ;;  %v2208_v53 = vpop.f32.mrb[157].mxu0 }
 0x4be   : > { %2800 = vst [vmem:[%s4931_s26 + $0xd8] sm:$0xff] %v2672_v5  ;;  %v2209_v8 = vadd.f32 %v2208_v53, %v4914_v39  ;;  %v3795_v5 = vld [vmem:[%s4460_s22 + $0x140] sm:$0xff] }
 0x4bf   : > { %v2673_v11 = vadd.f32 %v2545_v2, %v2207_v7  ;;  %v3794_v2 = vld [vmem:[%s4460_s22 + $0x1c8] sm:$0xff]  ;;  %v2557_v6 = vmul.f32 %v3795_v5, %v4907_v34  ;;  %v3807_v5 = vld [vmem:[%s4460_s22 + $0x170] sm:$0xff] }
 0x4c0   : > { %v2674_v14 = vadd.f32 %v2546_v4, %v2209_v8  ;;  %v2212_v15 = vpop.f32.mrb[158].mxu0  ;;  %v2574_v62 = vmul.f32 %v3794_v2, %v4909_v51 }
 0x4c1   : > { %2801 = vst [vmem:[%s4931_s26 + $0xe0] sm:$0xff] %v2673_v11  ;;  %v2213_v16 = vadd.f32 %v2212_v15, %v4912_v37  ;;  %v2214_v17 = vpop.f32.mrb[159].mxu0 }
 0x4c2   : > { %2802 = vst [vmem:[%s4931_s26 + $0xe8] sm:$0xff] %v2674_v14  ;;  %v2215_v18 = vadd.f32 %v2214_v17, %v4914_v39  ;;  %v3797_v14 = vld [vmem:[%s4460_s22 + $0x1d0] sm:$0xff] }
 0x4c3   : > { %v2675_v20 = vadd.f32 %v2547_v10, %v2213_v16  ;;  %v2558_v10 = vmul.f32 %v3796_v9, %v4909_v51  ;;  %v2575_v15 = vmul.f32 %v3797_v14, %v4907_v34  ;;  %v3808_v9 = vld [vmem:[%s4460_s22 + $0x178] sm:$0xff]  ;;  %v3809_v14 = vld [vmem:[%s4460_s22 + $0x200] sm:$0xff] }
 0x4c4   : > { %v2676_v23 = vadd.f32 %v2548_v13, %v2215_v18  ;;  %v2218_v24 = vpop.f32.mrb[160].mxu0 }
 0x4c5   : > { %2803 = vst [vmem:[%s4931_s26 + $0xf0] sm:$0xff] %v2675_v20  ;;  %v2219_v25 = vadd.f32 %v2218_v24, %v4912_v37  ;;  %v2220_v27 = vpop.f32.mrb[161].mxu0 }
 0x4c6   : > { %2804 = vst [vmem:[%s4931_s26 + $0xf8] sm:$0xff] %v2676_v23  ;;  %v2221_v28 = vadd.f32 %v2220_v27, %v4914_v39  ;;  %v3799_v23 = vld [vmem:[%s4460_s22 + $0x150] sm:$0xff] }
 0x4c7   : > { %v2677_v31 = vadd.f32 %v2549_v19, %v2219_v25  ;;  %v2576_v19 = vmul.f32 %v3798_v60, %v4909_v51  ;;  %v2559_v24 = vmul.f32 %v3799_v23, %v4907_v34  ;;  %v3810_v60 = vld [vmem:[%s4460_s22 + $0x208] sm:$0xff]  ;;  %v3811_v23 = vld [vmem:[%s4460_s22 + $0x180] sm:$0xff] }
 0x4c8   : > { %v2678_v35 = vadd.f32 %v2550_v22, %v2221_v28  ;;  %v2224_v36 = vpop.f32.mrb[162].mxu0 }
 0x4c9   : > { %2805 = vst [vmem:[%s4931_s26 + $0x100] sm:$0xff] %v2677_v31  ;;  %v2225_v38 = vadd.f32 %v2224_v36, %v4912_v37  ;;  %v2226_v40 = vpop.f32.mrb[163].mxu0 }
 0x4ca   : > { %2806 = vst [vmem:[%s4931_s26 + $0x108] sm:$0xff] %v2678_v35  ;;  %v2227_v41 = vadd.f32 %v2226_v40, %v4914_v39  ;;  %v3801_v35 = vld [vmem:[%s4460_s22 + $0x1e0] sm:$0xff] }
 0x4cb   : > { %v2679_v44 = vadd.f32 %v2551_v30, %v2225_v38  ;;  %v2560_v30 = vmul.f32 %v3800_v29, %v4909_v51  ;;  %v2577_v36 = vmul.f32 %v3801_v35, %v4907_v34  ;;  %v3812_v29 = vld [vmem:[%s4460_s22 + $0x188] sm:$0xff]  ;;  %v3813_v35 = vld [vmem:[%s4460_s22 + $0x210] sm:$0xff] }
 0x4cc   : > { %v2680_v47 = vadd.f32 %v2552_v33, %v2227_v41  ;;  %v2230_v48 = vpop.f32.mrb[164].mxu0 }
 0x4cd   : > { %2807 = vst [vmem:[%s4931_s26 + $0x110] sm:$0xff] %v2679_v44  ;;  %v2231_v49 = vadd.f32 %v2230_v48, %v4912_v37  ;;  %v2232_v50 = vpop.f32.mrb[165].mxu0 }
 0x4ce   : > { %2808 = vst [vmem:[%s4931_s26 + $0x118] sm:$0xff] %v2680_v47  ;;  %v2233_v52 = vadd.f32 %v2232_v50, %v4914_v39  ;;  %v3803_v47 = vld [vmem:[%s4460_s22 + $0x160] sm:$0xff] }
 0x4cf   : > { %v2681_v56 = vadd.f32 %v2553_v43, %v2231_v49  ;;  %v2578_v43 = vmul.f32 %v3802_v42, %v4909_v51  ;;  %v2561_v48 = vmul.f32 %v3803_v47, %v4907_v34  ;;  %v3814_v42 = vld [vmem:[%s4460_s22 + $0x218] sm:$0xff]  ;;  %v3815_v47 = vld [vmem:[%s4460_s22 + $0x190] sm:$0xff] }
 0x4d0   : > { %v2682_v59 = vadd.f32 %v2554_v46, %v2233_v52  ;;  %v2236_v26 = vpop.f32.mrb[166].mxu0 }
 0x4d1   : > { %2809 = vst [vmem:[%s4931_s26 + $0x120] sm:$0xff] %v2681_v56  ;;  %v2237_v0 = vadd.f32 %v2236_v26, %v4912_v37  ;;  %v2238_v1 = vpop.f32.mrb[167].mxu0 }
 0x4d2   : > { %2810 = vst [vmem:[%s4931_s26 + $0x128] sm:$0xff] %v2682_v59  ;;  %v2239_v3 = vadd.f32 %v2238_v1, %v4914_v39  ;;  %v2290_v4 = vpop.f32.mrb[128].mxu1  ;;  %v3805_v59 = vld [vmem:[%s4460_s22 + $0x1f0] sm:$0xff]  ;;  %v3806_v1 = vld [vmem:[%s4460_s22 + $0x1f8] sm:$0xff] }
 0x4d3   : > { %v2683_v7 = vadd.f32 %v2555_v55, %v2237_v0  ;;  %v2291_v53 = vadd.f32 %v2290_v4, %v4912_v37  ;;  %v2292_v8 = vpop.f32.mrb[129].mxu1  ;;  %v2562_v55 = vmul.f32 %v3804_v54, %v4909_v51  ;;  %v2579_v26 = vmul.f32 %v3805_v59, %v4907_v34  ;;  %v3816_v54 = vld [vmem:[%s4460_s22 + $0x198] sm:$0xff]  ;;  %v3817_v59 = vld [vmem:[%s4460_s22 + $0x220] sm:$0xff] }
 0x4d4   : > { %v2684_v11 = vadd.f32 %v2556_v58, %v2239_v3  ;;  %v2293_v12 = vadd.f32 %v2292_v8, %v4914_v39  ;;  %v2242_v13 = vpop.f32.mrb[168].mxu0  ;;  %v2580_v2 = vmul.f32 %v3806_v1, %v4909_v51  ;;  %v3818_v1 = vld [vmem:[%s4460_s22 + $0x228] sm:$0xff] }
 0x4d5   : > { %2811 = vst [vmem:[%s4931_s26 + $0x130] sm:$0xff] %v2683_v7  ;;  %v2701_v16 = vadd.f32 %v2573_v63, %v2291_v53  ;;  %v2243_v17 = vadd.f32 %v2242_v13, %v4912_v37  ;;  %v2244_v18 = vpop.f32.mrb[169].mxu0 }
 0x4d6   : > { %2812 = vst [vmem:[%s4931_s26 + $0x138] sm:$0xff] %v2684_v11  ;;  %v2702_v20 = vadd.f32 %v2574_v62, %v2293_v12  ;;  %v2245_v21 = vadd.f32 %v2244_v18, %v4914_v39  ;;  %v2296_v22 = vpop.f32.mrb[130].mxu1 }
 0x4d7   : > { %2829 = vst [vmem:[%s4931_s26 + $0x1c0] sm:$0xff] %v2701_v16  ;;  %v2685_v25 = vadd.f32 %v2557_v6, %v2243_v17  ;;  %v2297_v27 = vadd.f32 %v2296_v22, %v4912_v37  ;;  %v2298_v28 = vpop.f32.mrb[131].mxu1  ;;  %v2563_v6 = vmul.f32 %v3807_v5, %v4907_v34  ;;  %v3819_v5 = vld [vmem:[%s4460_s22 + $0x1a0] sm:$0xff] }
 0x4d8   : > { %2830 = vst [vmem:[%s4931_s26 + $0x1c8] sm:$0xff] %v2702_v20  ;;  %v2686_v31 = vadd.f32 %v2558_v10, %v2245_v21  ;;  %v2299_v32 = vadd.f32 %v2298_v28, %v4914_v39  ;;  %v2248_v33 = vpop.f32.mrb[170].mxu0  ;;  %v2564_v10 = vmul.f32 %v3808_v9, %v4909_v51  ;;  %v3820_v9 = vld [vmem:[%s4460_s22 + $0x1a8] sm:$0xff] }
 0x4d9   : > { %2813 = vst [vmem:[%s4931_s26 + $0x140] sm:$0xff] %v2685_v25  ;;  %v2703_v38 = vadd.f32 %v2575_v15, %v2297_v27  ;;  %v2249_v40 = vadd.f32 %v2248_v33, %v4912_v37  ;;  %v2250_v41 = vpop.f32.mrb[171].mxu0  ;;  %v2581_v15 = vmul.f32 %v3809_v14, %v4907_v34  ;;  %v3821_v14 = vld [vmem:[%s4460_s22 + $0x230] sm:$0xff] }
 0x4da   : > { %2814 = vst [vmem:[%s4931_s26 + $0x148] sm:$0xff] %v2686_v31  ;;  %v2704_v44 = vadd.f32 %v2576_v19, %v2299_v32  ;;  %v2251_v45 = vadd.f32 %v2250_v41, %v4914_v39  ;;  %v2302_v46 = vpop.f32.mrb[132].mxu1  ;;  %v2582_v19 = vmul.f32 %v3810_v60, %v4909_v51  ;;  %v3822_v60 = vld [vmem:[%s4460_s22 + $0x238] sm:$0xff] }
 0x4db   : > { %2831 = vst [vmem:[%s4931_s26 + $0x1d0] sm:$0xff] %v2703_v38  ;;  %v2687_v49 = vadd.f32 %v2559_v24, %v2249_v40  ;;  %v2303_v50 = vadd.f32 %v2302_v46, %v4912_v37  ;;  %v2304_v52 = vpop.f32.mrb[133].mxu1  ;;  %v2565_v24 = vmul.f32 %v3811_v23, %v4907_v34  ;;  %v3823_v23 = vld [vmem:[%s4460_s22 + $0x1b0] sm:$0xff] }
 0x4dc   : > { %2832 = vst [vmem:[%s4931_s26 + $0x1d8] sm:$0xff] %v2704_v44  ;;  %v2688_v56 = vadd.f32 %v2560_v30, %v2251_v45  ;;  %v2305_v57 = vadd.f32 %v2304_v52, %v4914_v39  ;;  %v2254_v58 = vpop.f32.mrb[172].mxu0  ;;  %v2566_v30 = vmul.f32 %v3812_v29, %v4909_v51  ;;  %v3824_v29 = vld [vmem:[%s4460_s22 + $0x1b8] sm:$0xff] }
 0x4dd   : > { %2815 = vst [vmem:[%s4931_s26 + $0x150] sm:$0xff] %v2687_v49  ;;  %v2705_v61 = vadd.f32 %v2577_v36, %v2303_v50  ;;  %v2255_v63 = vadd.f32 %v2254_v58, %v4912_v37  ;;  %v2256_v0 = vpop.f32.mrb[173].mxu0  ;;  %v2583_v36 = vmul.f32 %v3813_v35, %v4907_v34  ;;  %v3825_v35 = vld [vmem:[%s4460_s22 + $0x240] sm:$0xff] }
 0x4de   : > { %2816 = vst [vmem:[%s4931_s26 + $0x158] sm:$0xff] %v2688_v56  ;;  %v2706_v62 = vadd.f32 %v2578_v43, %v2305_v57  ;;  %v2257_v3 = vadd.f32 %v2256_v0, %v4914_v39  ;;  %v2308_v4 = vpop.f32.mrb[134].mxu1  ;;  %v2584_v43 = vmul.f32 %v3814_v42, %v4909_v51  ;;  %v3826_v42 = vld [vmem:[%s4460_s22 + $0x248] sm:$0xff] }
 0x4df   : > { %2833 = vst [vmem:[%s4931_s26 + $0x1e0] sm:$0xff] %v2705_v61  ;;  %v2689_v7 = vadd.f32 %v2561_v48, %v2255_v63  ;;  %v2309_v53 = vadd.f32 %v2308_v4, %v4912_v37  ;;  %v2310_v8 = vpop.f32.mrb[135].mxu1  ;;  %v2567_v48 = vmul.f32 %v3815_v47, %v4907_v34 }
 0x4e0   : > { %2834 = vst [vmem:[%s4931_s26 + $0x1e8] sm:$0xff] %v2706_v62  ;;  %v2690_v11 = vadd.f32 %v2562_v55, %v2257_v3  ;;  %v2311_v12 = vadd.f32 %v2310_v8, %v4914_v39  ;;  %v2260_v13 = vpop.f32.mrb[174].mxu0  ;;  %v2568_v55 = vmul.f32 %v3816_v54, %v4909_v51  ;;  %v3827_v54 = vld [vmem:[%s4460_s22 + $0x250] sm:$0xff] }
 0x4e1   : > { %2817 = vst [vmem:[%s4931_s26 + $0x160] sm:$0xff] %v2689_v7  ;;  %v2707_v16 = vadd.f32 %v2579_v26, %v2309_v53  ;;  %v2261_v17 = vadd.f32 %v2260_v13, %v4912_v37  ;;  %v2262_v18 = vpop.f32.mrb[175].mxu0  ;;  %v2585_v26 = vmul.f32 %v3817_v59, %v4907_v34 }
 0x4e2   : > { %2818 = vst [vmem:[%s4931_s26 + $0x168] sm:$0xff] %v2690_v11  ;;  %v2708_v20 = vadd.f32 %v2580_v2, %v2311_v12  ;;  %v2263_v21 = vadd.f32 %v2262_v18, %v4914_v39  ;;  %v2314_v22 = vpop.f32.mrb[136].mxu1  ;;  %v2586_v2 = vmul.f32 %v3818_v1, %v4909_v51  ;;  %v3829_v1 = vld [vmem:[%s4460_s22 + $0x260] sm:$0xff] }
 0x4e3   : > { %2835 = vst [vmem:[%s4931_s26 + $0x1f0] sm:$0xff] %v2707_v16  ;;  %v2691_v25 = vadd.f32 %v2563_v6, %v2261_v17  ;;  %v2315_v27 = vadd.f32 %v2314_v22, %v4912_v37  ;;  %v2316_v28 = vpop.f32.mrb[137].mxu1  ;;  %v2569_v6 = vmul.f32 %v3819_v5, %v4907_v34 }
 0x4e4   : > { %2836 = vst [vmem:[%s4931_s26 + $0x1f8] sm:$0xff] %v2708_v20  ;;  %v2692_v31 = vadd.f32 %v2564_v10, %v2263_v21  ;;  %v2317_v32 = vadd.f32 %v2316_v28, %v4914_v39  ;;  %v2266_v33 = vpop.f32.mrb[176].mxu0  ;;  %v2570_v10 = vmul.f32 %v3820_v9, %v4909_v51  ;;  %v3831_v9 = vld [vmem:[%s4460_s22 + $0x270] sm:$0xff] }
 0x4e5   : > { %2819 = vst [vmem:[%s4931_s26 + $0x170] sm:$0xff] %v2691_v25  ;;  %v2709_v38 = vadd.f32 %v2581_v15, %v2315_v27  ;;  %v2267_v40 = vadd.f32 %v2266_v33, %v4912_v37  ;;  %v2268_v41 = vpop.f32.mrb[177].mxu0  ;;  %v2587_v15 = vmul.f32 %v3821_v14, %v4907_v34 }
 0x4e6   : > { %2820 = vst [vmem:[%s4931_s26 + $0x178] sm:$0xff] %v2692_v31  ;;  %v2710_v44 = vadd.f32 %v2582_v19, %v2317_v32  ;;  %v2269_v45 = vadd.f32 %v2268_v41, %v4914_v39  ;;  %v2320_v46 = vpop.f32.mrb[138].mxu1  ;;  %v2588_v19 = vmul.f32 %v3822_v60, %v4909_v51  ;;  %v3833_v60 = vld [vmem:[%s4460_s22 + $0x280] sm:$0xff] }
 0x4e7   : > { %2837 = vst [vmem:[%s4931_s26 + $0x200] sm:$0xff] %v2709_v38  ;;  %v2693_v49 = vadd.f32 %v2565_v24, %v2267_v40  ;;  %v2321_v50 = vadd.f32 %v2320_v46, %v4912_v37  ;;  %v2322_v52 = vpop.f32.mrb[139].mxu1  ;;  %v2571_v24 = vmul.f32 %v3823_v23, %v4907_v34 }
 0x4e8   : > { %2838 = vst [vmem:[%s4931_s26 + $0x208] sm:$0xff] %v2710_v44  ;;  %v2694_v56 = vadd.f32 %v2566_v30, %v2269_v45  ;;  %v2323_v57 = vadd.f32 %v2322_v52, %v4914_v39  ;;  %v2272_v58 = vpop.f32.mrb[178].mxu0  ;;  %v2572_v30 = vmul.f32 %v3824_v29, %v4909_v51  ;;  %v3835_v29 = vld [vmem:[%s4460_s22 + $0x290] sm:$0xff] }
 0x4e9   : > { %2821 = vst [vmem:[%s4931_s26 + $0x180] sm:$0xff] %v2693_v49  ;;  %v2711_v61 = vadd.f32 %v2583_v36, %v2321_v50  ;;  %v2273_v63 = vadd.f32 %v2272_v58, %v4912_v37  ;;  %v2274_v0 = vpop.f32.mrb[179].mxu0  ;;  %v2589_v36 = vmul.f32 %v3825_v35, %v4907_v34 }
 0x4ea   : > { %2822 = vst [vmem:[%s4931_s26 + $0x188] sm:$0xff] %v2694_v56  ;;  %v2712_v62 = vadd.f32 %v2584_v43, %v2323_v57  ;;  %v2275_v3 = vadd.f32 %v2274_v0, %v4914_v39  ;;  %v2326_v4 = vpop.f32.mrb[140].mxu1  ;;  %v2590_v43 = vmul.f32 %v3826_v42, %v4909_v51  ;;  %v3828_v57 = vld [vmem:[%s4460_s22 + $0x258] sm:$0xff]  ;;  %v3837_v42 = vld [vmem:[%s4460_s22 + $0x2a0] sm:$0xff] }
 0x4eb   : > { %2839 = vst [vmem:[%s4931_s26 + $0x210] sm:$0xff] %v2711_v61  ;;  %v2695_v7 = vadd.f32 %v2567_v48, %v2273_v63  ;;  %v2327_v53 = vadd.f32 %v2326_v4, %v4912_v37  ;;  %v2328_v8 = vpop.f32.mrb[141].mxu1  ;;  %v2592_v58 = vmul.f32 %v3828_v57, %v4909_v51  ;;  %v3840_v57 = vld [vmem:[%s4460_s22 + $0x2b8] sm:$0xff] }
 0x4ec   : > { %2840 = vst [vmem:[%s4931_s26 + $0x218] sm:$0xff] %v2712_v62  ;;  %v2696_v11 = vadd.f32 %v2568_v55, %v2275_v3  ;;  %v2329_v12 = vadd.f32 %v2328_v8, %v4914_v39  ;;  %v2278_v13 = vpop.f32.mrb[180].mxu0  ;;  %v2591_v55 = vmul.f32 %v3827_v54, %v4907_v34  ;;  %v3830_v3 = vld [vmem:[%s4460_s22 + $0x268] sm:$0xff]  ;;  %v3839_v54 = vld [vmem:[%s4460_s22 + $0x2b0] sm:$0xff] }
 0x4ed   : > { %2823 = vst [vmem:[%s4931_s26 + $0x190] sm:$0xff] %v2695_v7  ;;  %v2713_v16 = vadd.f32 %v2585_v26, %v2327_v53  ;;  %v2279_v17 = vadd.f32 %v2278_v13, %v4912_v37  ;;  %v2280_v18 = vpop.f32.mrb[181].mxu0  ;;  %v2594_v4 = vmul.f32 %v3830_v3, %v4909_v51  ;;  %v3842_v3 = vld [vmem:[%s4460_s22 + $0x2c8] sm:$0xff] }
 0x4ee   : > { %2824 = vst [vmem:[%s4931_s26 + $0x198] sm:$0xff] %v2696_v11  ;;  %v2714_v20 = vadd.f32 %v2586_v2, %v2329_v12  ;;  %v2281_v21 = vadd.f32 %v2280_v18, %v4914_v39  ;;  %v2332_v22 = vpop.f32.mrb[142].mxu1  ;;  %v2593_v2 = vmul.f32 %v3829_v1, %v4907_v34  ;;  %v3832_v12 = vld [vmem:[%s4460_s22 + $0x278] sm:$0xff]  ;;  %v3841_v1 = vld [vmem:[%s4460_s22 + $0x2c0] sm:$0xff] }
 0x4ef   : > { %2841 = vst [vmem:[%s4931_s26 + $0x220] sm:$0xff] %v2713_v16  ;;  %v2697_v25 = vadd.f32 %v2569_v6, %v2279_v17  ;;  %v2333_v27 = vadd.f32 %v2332_v22, %v4912_v37  ;;  %v2334_v28 = vpop.f32.mrb[143].mxu1  ;;  %v2596_v13 = vmul.f32 %v3832_v12, %v4909_v51  ;;  %v3844_v12 = vld [vmem:[%s4460_s22 + $0x2d8] sm:$0xff] }
 0x4f0   : > { %2842 = vst [vmem:[%s4931_s26 + $0x228] sm:$0xff] %v2714_v20  ;;  %v2698_v31 = vadd.f32 %v2570_v10, %v2281_v21  ;;  %v2335_v32 = vadd.f32 %v2334_v28, %v4914_v39  ;;  %v2284_v33 = vpop.f32.mrb[182].mxu0  ;;  %v2595_v10 = vmul.f32 %v3831_v9, %v4907_v34  ;;  %v3834_v21 = vld [vmem:[%s4460_s22 + $0x288] sm:$0xff]  ;;  %v3843_v9 = vld [vmem:[%s4460_s22 + $0x2d0] sm:$0xff] }
 0x4f1   : > { %2825 = vst [vmem:[%s4931_s26 + $0x1a0] sm:$0xff] %v2697_v25  ;;  %v2715_v38 = vadd.f32 %v2587_v15, %v2333_v27  ;;  %v2285_v40 = vadd.f32 %v2284_v33, %v4912_v37  ;;  %v2286_v41 = vpop.f32.mrb[183].mxu0  ;;  %v2598_v22 = vmul.f32 %v3834_v21, %v4909_v51  ;;  %v3846_v21 = vld [vmem:[%s4460_s22 + $0x2e8] sm:$0xff] }
 0x4f2   : > { %2826 = vst [vmem:[%s4931_s26 + $0x1a8] sm:$0xff] %v2698_v31  ;;  %v2716_v44 = vadd.f32 %v2588_v19, %v2335_v32  ;;  %v2287_v45 = vadd.f32 %v2286_v41, %v4914_v39  ;;  %v2338_v46 = vpop.f32.mrb[144].mxu1  ;;  %v2597_v19 = vmul.f32 %v3833_v60, %v4907_v34  ;;  %v3836_v32 = vld [vmem:[%s4460_s22 + $0x298] sm:$0xff]  ;;  %v3845_v60 = vld [vmem:[%s4460_s22 + $0x2e0] sm:$0xff] }
 0x4f3   : > { %2843 = vst [vmem:[%s4931_s26 + $0x230] sm:$0xff] %v2715_v38  ;;  %v2699_v47 = vadd.f32 %v2571_v24, %v2285_v40  ;;  %v2339_v48 = vadd.f32 %v2338_v46, %v4912_v37  ;;  %v2340_v49 = vpop.f32.mrb[145].mxu1  ;;  %v2600_v33 = vmul.f32 %v3836_v32, %v4909_v51  ;;  %v3848_v32 = vld [vmem:[%s4460_s22 + $0x2f8] sm:$0xff] }
 0x4f4   : > { %2844 = vst [vmem:[%s4931_s26 + $0x238] sm:$0xff] %v2716_v44  ;;  %v2700_v50 = vadd.f32 %v2572_v30, %v2287_v45  ;;  %v2341_v52 = vadd.f32 %v2340_v49, %v4914_v39  ;;  %v2599_v30 = vmul.f32 %v3835_v29, %v4907_v34  ;;  %v3838_v45 = vld [vmem:[%s4460_s22 + $0x2a8] sm:$0xff]  ;;  %v3847_v29 = vld [vmem:[%s4460_s22 + $0x2f0] sm:$0xff] }
 0x4f5   : > { %2827 = vst [vmem:[%s4931_s26 + $0x1b0] sm:$0xff] %v2699_v47  ;;  %v2717_v56 = vadd.f32 %v2589_v36, %v2339_v48  ;;  %v2602_v46 = vmul.f32 %v3838_v45, %v4909_v51  ;;  %v3850_v45 = vld [vmem:[%s4460_s22 + $0x308] sm:$0xff] }
 0x4f6   : > { %2828 = vst [vmem:[%s4931_s26 + $0x1b8] sm:$0xff] %v2700_v50  ;;  %v2718_v59 = vadd.f32 %v2590_v43, %v2341_v52  ;;  %v2344_v26 = vpop.f32.mrb[146].mxu1  ;;  %v2601_v43 = vmul.f32 %v3837_v42, %v4907_v34  ;;  %v3849_v42 = vld [vmem:[%s4460_s22 + $0x300] sm:$0xff] }
 0x4f7   : > { %2845 = vst [vmem:[%s4931_s26 + $0x240] sm:$0xff] %v2717_v56  ;;  %v2345_v61 = vadd.f32 %v2344_v26, %v4912_v37  ;;  %v2346_v63 = vpop.f32.mrb[147].mxu1 }
 0x4f8   : > { %2846 = vst [vmem:[%s4931_s26 + $0x248] sm:$0xff] %v2718_v59  ;;  %v2347_v0 = vadd.f32 %v2346_v63, %v4914_v39 }
 0x4f9   : > { %v2719_v62 = vadd.f32 %v2591_v55, %v2345_v61  ;;  %v2603_v55 = vmul.f32 %v3839_v54, %v4907_v34  ;;  %v3851_v54 = vld [vmem:[%s4460_s22 + $0x310] sm:$0xff] }
 0x4fa   : > { %v2720_v5 = vadd.f32 %v2592_v58, %v2347_v0  ;;  %v2350_v6 = vpop.f32.mrb[148].mxu1  ;;  %v2604_v58 = vmul.f32 %v3840_v57, %v4909_v51  ;;  %v3852_v57 = vld [vmem:[%s4460_s22 + $0x318] sm:$0xff] }
 0x4fb   : > { %2847 = vst [vmem:[%s4931_s26 + $0x250] sm:$0xff] %v2719_v62  ;;  %v2351_v7 = vadd.f32 %v2350_v6, %v4912_v37  ;;  %v2352_v53 = vpop.f32.mrb[149].mxu1 }
 0x4fc   : > { %2848 = vst [vmem:[%s4931_s26 + $0x258] sm:$0xff] %v2720_v5  ;;  %v2353_v8 = vadd.f32 %v2352_v53, %v4914_v39 }
 0x4fd   : > { %v2721_v11 = vadd.f32 %v2593_v2, %v2351_v7  ;;  %v2605_v2 = vmul.f32 %v3841_v1, %v4907_v34  ;;  %v3853_v1 = vld [vmem:[%s4460_s22 + $0x320] sm:$0xff] }
 0x4fe   : > { %v2722_v14 = vadd.f32 %v2594_v4, %v2353_v8  ;;  %v2356_v15 = vpop.f32.mrb[150].mxu1  ;;  %v2606_v4 = vmul.f32 %v3842_v3, %v4909_v51  ;;  %v3854_v3 = vld [vmem:[%s4460_s22 + $0x328] sm:$0xff] }
 0x4ff   : > { %2849 = vst [vmem:[%s4931_s26 + $0x260] sm:$0xff] %v2721_v11  ;;  %v2357_v16 = vadd.f32 %v2356_v15, %v4912_v37  ;;  %v2358_v17 = vpop.f32.mrb[151].mxu1 }
 0x500   : > { %2850 = vst [vmem:[%s4931_s26 + $0x268] sm:$0xff] %v2722_v14  ;;  %v2359_v18 = vadd.f32 %v2358_v17, %v4914_v39 }
 0x501   : > { %v2723_v20 = vadd.f32 %v2595_v10, %v2357_v16  ;;  %v2607_v10 = vmul.f32 %v3843_v9, %v4907_v34  ;;  %v3855_v9 = vld [vmem:[%s4460_s22 + $0x330] sm:$0xff] }
 0x502   : > { %v2724_v23 = vadd.f32 %v2596_v13, %v2359_v18  ;;  %v2362_v24 = vpop.f32.mrb[152].mxu1  ;;  %v2608_v13 = vmul.f32 %v3844_v12, %v4909_v51  ;;  %v3856_v12 = vld [vmem:[%s4460_s22 + $0x338] sm:$0xff] }
 0x503   : > { %2851 = vst [vmem:[%s4931_s26 + $0x270] sm:$0xff] %v2723_v20  ;;  %v2363_v25 = vadd.f32 %v2362_v24, %v4912_v37  ;;  %v2364_v27 = vpop.f32.mrb[153].mxu1 }
 0x504   : > { %2852 = vst [vmem:[%s4931_s26 + $0x278] sm:$0xff] %v2724_v23  ;;  %v2365_v28 = vadd.f32 %v2364_v27, %v4914_v39 }
 0x505   : > { %v2725_v31 = vadd.f32 %v2597_v19, %v2363_v25  ;;  %v2609_v19 = vmul.f32 %v3845_v60, %v4907_v34  ;;  %v3857_v60 = vld [vmem:[%s4460_s22 + $0x340] sm:$0xff] }
 0x506   : > { %v2726_v35 = vadd.f32 %v2598_v22, %v2365_v28  ;;  %v2368_v36 = vpop.f32.mrb[154].mxu1  ;;  %v2610_v22 = vmul.f32 %v3846_v21, %v4909_v51  ;;  %v3858_v21 = vld [vmem:[%s4460_s22 + $0x348] sm:$0xff] }
 0x507   : > { %2853 = vst [vmem:[%s4931_s26 + $0x280] sm:$0xff] %v2725_v31  ;;  %v2369_v38 = vadd.f32 %v2368_v36, %v4912_v37  ;;  %v2370_v40 = vpop.f32.mrb[155].mxu1 }
 0x508   : > { %2854 = vst [vmem:[%s4931_s26 + $0x288] sm:$0xff] %v2726_v35  ;;  %v2371_v41 = vadd.f32 %v2370_v40, %v4914_v39 }
 0x509   : > { %v2727_v44 = vadd.f32 %v2599_v30, %v2369_v38  ;;  %v2611_v30 = vmul.f32 %v3847_v29, %v4907_v34  ;;  %v3859_v29 = vld [vmem:[%s4460_s22 + $0x350] sm:$0xff] }
 0x50a   : > { %v2728_v47 = vadd.f32 %v2600_v33, %v2371_v41  ;;  %v2374_v48 = vpop.f32.mrb[156].mxu1  ;;  %v2612_v33 = vmul.f32 %v3848_v32, %v4909_v51  ;;  %v3860_v32 = vld [vmem:[%s4460_s22 + $0x358] sm:$0xff] }
 0x50b   : > { %2855 = vst [vmem:[%s4931_s26 + $0x290] sm:$0xff] %v2727_v44  ;;  %v2375_v49 = vadd.f32 %v2374_v48, %v4912_v37  ;;  %v2376_v50 = vpop.f32.mrb[157].mxu1 }
 0x50c   : > { %2856 = vst [vmem:[%s4931_s26 + $0x298] sm:$0xff] %v2728_v47  ;;  %v2377_v52 = vadd.f32 %v2376_v50, %v4914_v39 }
 0x50d   : > { %v2729_v56 = vadd.f32 %v2601_v43, %v2375_v49  ;;  %v2613_v43 = vmul.f32 %v3849_v42, %v4907_v34  ;;  %v3861_v42 = vld [vmem:[%s4460_s22 + $0x360] sm:$0xff] }
 0x50e   : > { %v2730_v59 = vadd.f32 %v2602_v46, %v2377_v52  ;;  %v2380_v26 = vpop.f32.mrb[158].mxu1  ;;  %v2614_v46 = vmul.f32 %v3850_v45, %v4909_v51  ;;  %v3862_v45 = vld [vmem:[%s4460_s22 + $0x368] sm:$0xff] }
 0x50f   : > { %2857 = vst [vmem:[%s4931_s26 + $0x2a0] sm:$0xff] %v2729_v56  ;;  %v2381_v61 = vadd.f32 %v2380_v26, %v4912_v37  ;;  %v2382_v63 = vpop.f32.mrb[159].mxu1 }
 0x510   : > { %2858 = vst [vmem:[%s4931_s26 + $0x2a8] sm:$0xff] %v2730_v59  ;;  %v2383_v0 = vadd.f32 %v2382_v63, %v4914_v39 }
 0x511   : > { %v2731_v62 = vadd.f32 %v2603_v55, %v2381_v61  ;;  %v2615_v55 = vmul.f32 %v3851_v54, %v4907_v34  ;;  %v3863_v54 = vld [vmem:[%s4460_s22 + $0x370] sm:$0xff] }
 0x512   : > { %v2732_v5 = vadd.f32 %v2604_v58, %v2383_v0  ;;  %v2386_v6 = vpop.f32.mrb[160].mxu1  ;;  %v2616_v58 = vmul.f32 %v3852_v57, %v4909_v51  ;;  %v3864_v57 = vld [vmem:[%s4460_s22 + $0x378] sm:$0xff] }
 0x513   : > { %2859 = vst [vmem:[%s4931_s26 + $0x2b0] sm:$0xff] %v2731_v62  ;;  %v2387_v7 = vadd.f32 %v2386_v6, %v4912_v37  ;;  %v2388_v53 = vpop.f32.mrb[161].mxu1 }
 0x514   : > { %2860 = vst [vmem:[%s4931_s26 + $0x2b8] sm:$0xff] %v2732_v5  ;;  %v2389_v8 = vadd.f32 %v2388_v53, %v4914_v39 }
 0x515   : > { %v2733_v11 = vadd.f32 %v2605_v2, %v2387_v7  ;;  %v2617_v2 = vmul.f32 %v3853_v1, %v4907_v34  ;;  %v3865_v1 = vld [vmem:[%s4460_s22 + $0x380] sm:$0xff] }
 0x516   : > { %v2734_v14 = vadd.f32 %v2606_v4, %v2389_v8  ;;  %v2392_v15 = vpop.f32.mrb[162].mxu1  ;;  %v2618_v4 = vmul.f32 %v3854_v3, %v4909_v51  ;;  %v3866_v3 = vld [vmem:[%s4460_s22 + $0x388] sm:$0xff] }
 0x517   : > { %2861 = vst [vmem:[%s4931_s26 + $0x2c0] sm:$0xff] %v2733_v11  ;;  %v2393_v16 = vadd.f32 %v2392_v15, %v4912_v37  ;;  %v2394_v17 = vpop.f32.mrb[163].mxu1 }
 0x518   : > { %2862 = vst [vmem:[%s4931_s26 + $0x2c8] sm:$0xff] %v2734_v14  ;;  %v2395_v18 = vadd.f32 %v2394_v17, %v4914_v39 }
 0x519   : > { %v2735_v20 = vadd.f32 %v2607_v10, %v2393_v16  ;;  %v2619_v10 = vmul.f32 %v3855_v9, %v4907_v34  ;;  %v3867_v9 = vld [vmem:[%s4460_s22 + $0x390] sm:$0xff] }
 0x51a   : > { %v2736_v23 = vadd.f32 %v2608_v13, %v2395_v18  ;;  %v2398_v24 = vpop.f32.mrb[164].mxu1  ;;  %v2620_v13 = vmul.f32 %v3856_v12, %v4909_v51  ;;  %v3868_v12 = vld [vmem:[%s4460_s22 + $0x398] sm:$0xff] }
 0x51b   : > { %2863 = vst [vmem:[%s4931_s26 + $0x2d0] sm:$0xff] %v2735_v20  ;;  %v2399_v25 = vadd.f32 %v2398_v24, %v4912_v37  ;;  %v2400_v27 = vpop.f32.mrb[165].mxu1 }
 0x51c   : > { %2864 = vst [vmem:[%s4931_s26 + $0x2d8] sm:$0xff] %v2736_v23  ;;  %v2401_v28 = vadd.f32 %v2400_v27, %v4914_v39 }
 0x51d   : > { %v2737_v31 = vadd.f32 %v2609_v19, %v2399_v25  ;;  %v2621_v19 = vmul.f32 %v3857_v60, %v4907_v34  ;;  %v3869_v60 = vld [vmem:[%s4460_s22 + $0x3a0] sm:$0xff] }
 0x51e   : > { %v2738_v35 = vadd.f32 %v2610_v22, %v2401_v28  ;;  %v2404_v36 = vpop.f32.mrb[166].mxu1  ;;  %v2622_v22 = vmul.f32 %v3858_v21, %v4909_v51  ;;  %v3870_v21 = vld [vmem:[%s4460_s22 + $0x3a8] sm:$0xff] }
 0x51f   : > { %2865 = vst [vmem:[%s4931_s26 + $0x2e0] sm:$0xff] %v2737_v31  ;;  %v2405_v38 = vadd.f32 %v2404_v36, %v4912_v37  ;;  %v2406_v40 = vpop.f32.mrb[167].mxu1 }
 0x520   : > { %2866 = vst [vmem:[%s4931_s26 + $0x2e8] sm:$0xff] %v2738_v35  ;;  %v2407_v41 = vadd.f32 %v2406_v40, %v4914_v39 }
 0x521   : > { %v2739_v44 = vadd.f32 %v2611_v30, %v2405_v38  ;;  %v2623_v30 = vmul.f32 %v3859_v29, %v4907_v34  ;;  %v3871_v29 = vld [vmem:[%s4460_s22 + $0x3b0] sm:$0xff] }
 0x522   : > { %v2740_v47 = vadd.f32 %v2612_v33, %v2407_v41  ;;  %v2410_v48 = vpop.f32.mrb[168].mxu1  ;;  %v2624_v33 = vmul.f32 %v3860_v32, %v4909_v51  ;;  %v3872_v32 = vld [vmem:[%s4460_s22 + $0x3b8] sm:$0xff] }
 0x523   : > { %2867 = vst [vmem:[%s4931_s26 + $0x2f0] sm:$0xff] %v2739_v44  ;;  %v2411_v49 = vadd.f32 %v2410_v48, %v4912_v37  ;;  %v2412_v50 = vpop.f32.mrb[169].mxu1 }
 0x524   : > { %2868 = vst [vmem:[%s4931_s26 + $0x2f8] sm:$0xff] %v2740_v47  ;;  %v2413_v52 = vadd.f32 %v2412_v50, %v4914_v39 }
 0x525   : > { %v2741_v56 = vadd.f32 %v2613_v43, %v2411_v49  ;;  %v2625_v43 = vmul.f32 %v3861_v42, %v4907_v34  ;;  %v3873_v42 = vld [vmem:[%s4460_s22 + $0x3c0] sm:$0xff] }
 0x526   : > { %v2742_v59 = vadd.f32 %v2614_v46, %v2413_v52  ;;  %v2416_v26 = vpop.f32.mrb[170].mxu1  ;;  %v2626_v46 = vmul.f32 %v3862_v45, %v4909_v51  ;;  %v3874_v45 = vld [vmem:[%s4460_s22 + $0x3c8] sm:$0xff] }
 0x527   : > { %2869 = vst [vmem:[%s4931_s26 + $0x300] sm:$0xff] %v2741_v56  ;;  %v2417_v61 = vadd.f32 %v2416_v26, %v4912_v37  ;;  %v2418_v63 = vpop.f32.mrb[171].mxu1 }
 0x528   : > { %2870 = vst [vmem:[%s4931_s26 + $0x308] sm:$0xff] %v2742_v59  ;;  %v2419_v0 = vadd.f32 %v2418_v63, %v4914_v39 }
 0x529   : > { %v2743_v62 = vadd.f32 %v2615_v55, %v2417_v61  ;;  %v2627_v55 = vmul.f32 %v3863_v54, %v4907_v34  ;;  %v3875_v54 = vld [vmem:[%s4460_s22 + $0x3d0] sm:$0xff] }
 0x52a   : > { %v2744_v5 = vadd.f32 %v2616_v58, %v2419_v0  ;;  %v2422_v6 = vpop.f32.mrb[172].mxu1  ;;  %v2628_v58 = vmul.f32 %v3864_v57, %v4909_v51  ;;  %v3876_v57 = vld [vmem:[%s4460_s22 + $0x3d8] sm:$0xff] }
 0x52b   : > { %2871 = vst [vmem:[%s4931_s26 + $0x310] sm:$0xff] %v2743_v62  ;;  %v2423_v7 = vadd.f32 %v2422_v6, %v4912_v37  ;;  %v2424_v53 = vpop.f32.mrb[173].mxu1 }
 0x52c   : > { %2872 = vst [vmem:[%s4931_s26 + $0x318] sm:$0xff] %v2744_v5  ;;  %v2425_v8 = vadd.f32 %v2424_v53, %v4914_v39 }
 0x52d   : > { %v2745_v11 = vadd.f32 %v2617_v2, %v2423_v7  ;;  %v2629_v2 = vmul.f32 %v3865_v1, %v4907_v34  ;;  %v3877_v1 = vld [vmem:[%s4460_s22 + $0x3e0] sm:$0xff] }
 0x52e   : > { %v2746_v14 = vadd.f32 %v2618_v4, %v2425_v8  ;;  %v2428_v15 = vpop.f32.mrb[174].mxu1  ;;  %v2630_v4 = vmul.f32 %v3866_v3, %v4909_v51  ;;  %v3878_v3 = vld [vmem:[%s4460_s22 + $0x3e8] sm:$0xff] }
 0x52f   : > { %2873 = vst [vmem:[%s4931_s26 + $0x320] sm:$0xff] %v2745_v11  ;;  %v2429_v16 = vadd.f32 %v2428_v15, %v4912_v37  ;;  %v2430_v17 = vpop.f32.mrb[175].mxu1 }
 0x530   : > { %2874 = vst [vmem:[%s4931_s26 + $0x328] sm:$0xff] %v2746_v14  ;;  %v2431_v18 = vadd.f32 %v2430_v17, %v4914_v39 }
 0x531   : > { %v2747_v20 = vadd.f32 %v2619_v10, %v2429_v16  ;;  %v2631_v10 = vmul.f32 %v3867_v9, %v4907_v34  ;;  %v3879_v9 = vld [vmem:[%s4460_s22 + $0x3f0] sm:$0xff] }
 0x532   : > { %v2748_v23 = vadd.f32 %v2620_v13, %v2431_v18  ;;  %v2434_v24 = vpop.f32.mrb[176].mxu1  ;;  %v2632_v13 = vmul.f32 %v3868_v12, %v4909_v51  ;;  %v3880_v12 = vld [vmem:[%s4460_s22 + $0x3f8] sm:$0xff]  ;;  %s5530_s22 = sld [smem:[#allocation23_spill]] }
 0x533   : > { %2875 = vst [vmem:[%s4931_s26 + $0x330] sm:$0xff] %v2747_v20  ;;  %v2435_v25 = vadd.f32 %v2434_v24, %v4912_v37  ;;  %v2436_v27 = vpop.f32.mrb[177].mxu1 }
 0x534   : > { %2876 = vst [vmem:[%s4931_s26 + $0x338] sm:$0xff] %v2748_v23  ;;  %v2437_v28 = vadd.f32 %v2436_v27, %v4914_v39 }
 0x535   : > { %v2749_v31 = vadd.f32 %v2621_v19, %v2435_v25  ;;  %v2633_v19 = vmul.f32 %v3869_v60, %v4907_v34 }
 0x536   : > { %v2750_v35 = vadd.f32 %v2622_v22, %v2437_v28  ;;  %v2440_v36 = vpop.f32.mrb[178].mxu1  ;;  %v2634_v22 = vmul.f32 %v3870_v21, %v4909_v51 }
 0x537   : > { %2877 = vst [vmem:[%s4931_s26 + $0x340] sm:$0xff] %v2749_v31  ;;  %v2441_v38 = vadd.f32 %v2440_v36, %v4912_v37  ;;  %v2442_v40 = vpop.f32.mrb[179].mxu1 }
 0x538   : > { %2878 = vst [vmem:[%s4931_s26 + $0x348] sm:$0xff] %v2750_v35  ;;  %v2443_v41 = vadd.f32 %v2442_v40, %v4914_v39  ;;  %s5438_s21 = scalar_lea.hbm %s5530_s22, %s3071_s10 }
 0x539   : > { %v2751_v44 = vadd.f32 %v2623_v30, %v2441_v38  ;;  %v2635_v30 = vmul.f32 %v3871_v29, %v4907_v34 }
 0x53a   : > { %v2752_v47 = vadd.f32 %v2624_v33, %v2443_v41  ;;  %v2446_v48 = vpop.f32.mrb[180].mxu1  ;;  %v2636_v33 = vmul.f32 %v3872_v32, %v4909_v51 }
 0x53b   : > { %2879 = vst [vmem:[%s4931_s26 + $0x350] sm:$0xff] %v2751_v44  ;;  %v2447_v49 = vadd.f32 %v2446_v48, %v4912_v37  ;;  %v2448_v50 = vpop.f32.mrb[181].mxu1 }
 0x53c   : > { %2880 = vst [vmem:[%s4931_s26 + $0x358] sm:$0xff] %v2752_v47  ;;  %v2449_v52 = vadd.f32 %v2448_v50, %v4914_v39 }
 0x53d   : > { %v2753_v56 = vadd.f32 %v2625_v43, %v2447_v49  ;;  %v2637_v43 = vmul.f32 %v3873_v42, %v4907_v34 }
 0x53e   : > { %v2754_v59 = vadd.f32 %v2626_v46, %v2449_v52  ;;  %v2452_v26 = vpop.f32.mrb[182].mxu1  ;;  %v2638_v46 = vmul.f32 %v3874_v45, %v4909_v51 }
 0x53f   : > { %2881 = vst [vmem:[%s4931_s26 + $0x360] sm:$0xff] %v2753_v56  ;;  %v2453_v61 = vadd.f32 %v2452_v26, %v4912_v37  ;;  %v2454_v63 = vpop.f32.mrb[183].mxu1 }
 0x540   : > { %2882 = vst [vmem:[%s4931_s26 + $0x368] sm:$0xff] %v2754_v59  ;;  %v2455_v0 = vadd.f32 %v2454_v63, %v4914_v39 }
 0x541   : > { %v2755_v62 = vadd.f32 %v2627_v55, %v2453_v61  ;;  %v2639_v55 = vmul.f32 %v3875_v54, %v4907_v34 }
 0x542   : > { %v2756_v5 = vadd.f32 %v2628_v58, %v2455_v0  ;;  %v2458_v6 = vpop.f32.mrb[184].mxu1  ;;  %v2640_v58 = vmul.f32 %v3876_v57, %v4909_v51 }
 0x543   : > { %2883 = vst [vmem:[%s4931_s26 + $0x370] sm:$0xff] %v2755_v62  ;;  %v2459_v7 = vadd.f32 %v2458_v6, %v4912_v37  ;;  %v2460_v53 = vpop.f32.mrb[185].mxu1 }
 0x544   : > { %2884 = vst [vmem:[%s4931_s26 + $0x378] sm:$0xff] %v2756_v5  ;;  %v2461_v8 = vadd.f32 %v2460_v53, %v4914_v39 }
 0x545   : > { %v2757_v11 = vadd.f32 %v2629_v2, %v2459_v7  ;;  %v2641_v2 = vmul.f32 %v3877_v1, %v4907_v34 }
 0x546   : > { %v2758_v14 = vadd.f32 %v2630_v4, %v2461_v8  ;;  %v2464_v15 = vpop.f32.mrb[186].mxu1  ;;  %v2642_v4 = vmul.f32 %v3878_v3, %v4909_v51 }
 0x547   : > { %2885 = vst [vmem:[%s4931_s26 + $0x380] sm:$0xff] %v2757_v11  ;;  %v2465_v16 = vadd.f32 %v2464_v15, %v4912_v37  ;;  %v2466_v17 = vpop.f32.mrb[187].mxu1 }
 0x548   : > { %2886 = vst [vmem:[%s4931_s26 + $0x388] sm:$0xff] %v2758_v14  ;;  %v2467_v18 = vadd.f32 %v2466_v17, %v4914_v39 }
 0x549   : > { %v2759_v20 = vadd.f32 %v2631_v10, %v2465_v16  ;;  %v2643_v10 = vmul.f32 %v3879_v9, %v4907_v34 }
 0x54a   : > { %v2760_v23 = vadd.f32 %v2632_v13, %v2467_v18  ;;  %v2470_v24 = vpop.f32.mrb[188].mxu1  ;;  %v2644_v13 = vmul.f32 %v3880_v12, %v4909_v51 }
 0x54b   : > { %2887 = vst [vmem:[%s4931_s26 + $0x390] sm:$0xff] %v2759_v20  ;;  %v2471_v25 = vadd.f32 %v2470_v24, %v4912_v37  ;;  %v2472_v27 = vpop.f32.mrb[189].mxu1 }
 0x54c   : > { %2888 = vst [vmem:[%s4931_s26 + $0x398] sm:$0xff] %v2760_v23  ;;  %v2473_v28 = vadd.f32 %v2472_v27, %v4914_v39 }
 0x54d   : > { %v2761_v31 = vadd.f32 %v2633_v19, %v2471_v25 }
 0x54e   : > { %v2762_v35 = vadd.f32 %v2634_v22, %v2473_v28  ;;  %v2476_v36 = vpop.f32.mrb[190].mxu1 }
 0x54f   : > { %2889 = vst [vmem:[%s4931_s26 + $0x3a0] sm:$0xff] %v2761_v31  ;;  %v2477_v38 = vadd.f32 %v2476_v36, %v4912_v37  ;;  %v2478_v40 = vpop.f32.mrb[191].mxu1 }
 0x550   : > { %2890 = vst [vmem:[%s4931_s26 + $0x3a8] sm:$0xff] %v2762_v35  ;;  %v2479_v41 = vadd.f32 %v2478_v40, %v4914_v39 }
 0x551   : > { %v2763_v44 = vadd.f32 %v2635_v30, %v2477_v38 }
 0x552   : > { %v2764_v47 = vadd.f32 %v2636_v33, %v2479_v41  ;;  %v2482_v48 = vpop.f32.mrb[192].mxu1 }
 0x553   : > { %2891 = vst [vmem:[%s4931_s26 + $0x3b0] sm:$0xff] %v2763_v44  ;;  %v2483_v49 = vadd.f32 %v2482_v48, %v4912_v37  ;;  %v2484_v50 = vpop.f32.mrb[193].mxu1 }
 0x554   : > { %2892 = vst [vmem:[%s4931_s26 + $0x3b8] sm:$0xff] %v2764_v47  ;;  %v2485_v52 = vadd.f32 %v2484_v50, %v4914_v39 }
 0x555   : > { %v2765_v56 = vadd.f32 %v2637_v43, %v2483_v49 }
 0x556   : > { %v2766_v59 = vadd.f32 %v2638_v46, %v2485_v52  ;;  %v2488_v26 = vpop.f32.mrb[194].mxu1 }
 0x557   : > { %2893 = vst [vmem:[%s4931_s26 + $0x3c0] sm:$0xff] %v2765_v56  ;;  %v2489_v61 = vadd.f32 %v2488_v26, %v4912_v37  ;;  %v2490_v63 = vpop.f32.mrb[195].mxu1 }
 0x558   : > { %2894 = vst [vmem:[%s4931_s26 + $0x3c8] sm:$0xff] %v2766_v59  ;;  %v2491_v0 = vadd.f32 %v2490_v63, %v4914_v39 }
 0x559   : > { %v2767_v62 = vadd.f32 %v2639_v55, %v2489_v61 }
 0x55a   : > { %v2768_v5 = vadd.f32 %v2640_v58, %v2491_v0  ;;  %v2494_v6 = vpop.f32.mrb[196].mxu1 }
 0x55b   : > { %2895 = vst [vmem:[%s4931_s26 + $0x3d0] sm:$0xff] %v2767_v62  ;;  %v2495_v7 = vadd.f32 %v2494_v6, %v4912_v37  ;;  %v2496_v53 = vpop.f32.mrb[197].mxu1 }
 0x55c   : > { %2896 = vst [vmem:[%s4931_s26 + $0x3d8] sm:$0xff] %v2768_v5  ;;  %v2497_v8 = vadd.f32 %v2496_v53, %v4914_v39 }
 0x55d   : > { %v2769_v11 = vadd.f32 %v2641_v2, %v2495_v7 }
 0x55e   : > { %v2770_v14 = vadd.f32 %v2642_v4, %v2497_v8  ;;  %v2500_v15 = vpop.f32.mrb[198].mxu1 }
 0x55f   : > { %2897 = vst [vmem:[%s4931_s26 + $0x3e0] sm:$0xff] %v2769_v11  ;;  %v2501_v16 = vadd.f32 %v2500_v15, %v4912_v37  ;;  %v2502_v17 = vpop.f32.mrb[199].mxu1 }
 0x560   : > { %2898 = vst [vmem:[%s4931_s26 + $0x3e8] sm:$0xff] %v2770_v14  ;;  %v2503_v18 = vadd.f32 %v2502_v17, %v4914_v39 }
 0x561   : > { %v2771_v34 = vadd.f32 %v2643_v10, %v2501_v16 }
 0x562   : > { %v2772_v51 = vadd.f32 %v2644_v13, %v2503_v18 }
 0x563   : > { %2899 = vst [vmem:[%s4931_s26 + $0x3f0] sm:$0xff] %v2771_v34 }
 0x564   : > { %2900 = vst [vmem:[%s4931_s26 + $0x3f8] sm:$0xff] %v2772_v51 }
 0x565   : > { %4064 = shalt.err (!%p4061_p11)
}
 0x566   : > { %s4065_s27 = scalar_lea.hbm %s5438_s21, 16384  ;;  %s4069_s29 = scalar_lea.hbm %s5530_s22, 32768 }
 0x567   : > { %p4066_p8 = scmp.ne.s32.totalorder %s5438_s21, %s4065_s27  ;;  %p4070_p3 = scmp.lt.u32.totalorder %s5438_s21, %s5530_s22 }
 0x568   : > { %p4071_p7 = scmp.lt.u32.totalorder %s4069_s29, %s4065_s27  ;;  %p4073_p1 = scmp.lt.u32.totalorder %s4065_s27, %s5438_s21 }
 0x569   : > { %p4067_p6 = pnand %p4066_p8, %p4398_p5 }
 0x56a   : > { %p4072_p12 = por %p4071_p7, %p4070_p3 }
 0x56b   : > { %p4068_p10 = pneg %p4067_p6 }
 0x56c   : > { %p4074_p2 = por %p4073_p1, %p4072_p12 }
 0x56e   : > { %p4075_p13 = pnand %p4074_p2, %p4068_p10 }
 0x570   : > { %4078 = shalt.err (!%p4075_p13)
}
 0x571   : > { %s4148_s11 = smov 256   ;;  %s4149_s19 = smov 16  }
 0x572   : > { %3670 = dma.vmem_to_hbm [thread:$0]  (%p4398_p5), %s5440_s23, 16384, %s5438_s21, %s5446_s17, %s4148_s11, %s4148_s11, %s4149_s19  }
 0x573 PF: > { %s5531_s28 = sld [smem:[#allocation20_spill]]  ;;  %s5532_s9 = sld [smem:[#allocation21_spill]] }
 0x574   : > { %p5534_p0 = scmp.ge.s32.totalorder %s4133_s16, 2 }
 0x579   : > { %s2931_s20 = sand.u32 1, %s5531_s28   ;;  %p5533_p9 = scmp.ne.s32.totalorder %s5532_s9, 0 }
 0x57a   : > { %s2932_s13 = scalar_lea.sflag [#allocation4], %s2931_s20 }
 0x57b   : > { %p3693_p4 = pnand %p5534_p0, %p5533_p9 }
 0x57d   : > { %4116 = dma.done.wait (!%p3693_p4), %s2932_s13, 16384  }
 0x57e   : > { %4118 = vsyncadd (!%p3693_p4), %s2932_s13, 4294950912  ;;  %p26_p11 = scmp.ge.s32.totalorder %s4384_s30, 4   ;;  %s5535_s13 = smov %s4125_s14 }
 0x57f   : > { %s5536_s14 = smov %s4129_s15  ;;  %s5537_s15 = smov %s4394_s18 }
 0x580   : > { %s5538_s16 = smov %s4384_s30  ;;  %28 = sbr.rel (!%p26_p11) target bundleno = 11 (0xb), region = 126 }
 0x587   :  { %2937 = vsyncpa [#allocation3], 1 }
 0x588   :  { %2939 = vsyncpa [#allocation3 + $0x1], 1 }
 0x589   :  { %2940 = vsyncpa [#allocation6], 1 }
 0x58a   :  { %2942 = vsyncpa [#allocation6 + $0x1], 1 }
 0x58b   :  { %2943 = vsyncpa [#allocation9], 1 }
 0x58c   :  { %2944 = vsyncpa [#allocation12], 1 }
 0x58d   :  { %2945 = vsyncpa [#allocation4], 1 }
 0x58e   :  { %2947 = vsyncpa [#allocation4 + $0x1], 1 }

</bundles_post_ra>
